<compile_context>
chip_gen: v7x
topology: tpu7x:2x2x1
jax: 0.10.0
libtpu: 0.0.40
codegen_flags: <defaults>
</compile_context>

<pallas_src>
import functools
import math

import jax
import jax.numpy as jnp
from jax.experimental import pallas as pl
from jax.experimental.pallas import tpu as pltpu

# Default PixelEncoder filters: [[out_channels, kernel_size, stride], ...]
_DEFAULT_FILTERS = [[32, 8, 4], [64, 4, 2], [64, 3, 1]]


def _conv_out(size, k, s):
    return (size - k) // s + 1


def _pixel_encoder_kernel(
    x_ref,    # (P1, TB, K1*K1*Cin)           bf16  conv1 im2col patches for this batch tile
    w1_ref,   # (K1*K1*Cin, C1)               bf16
    b1_ref,   # (1, C1)                       f32
    w2_ref,   # (K2*K2, C1, C2)               bf16
    b2_ref,   # (1, C2)                       f32
    w3_ref,   # (K3*K3, C2, C3)               bf16
    b3_ref,   # (1, C3)                       f32
    wf_ref,   # (P3*C3, F)                    bf16
    bf_ref,   # (1, F)                        f32
    o_ref,    # (TB, F)                       f32
    a1_ref,   # scratch (Hq2, S2, Wq2, S2, TB, C1) f32 : conv1 output, phase-split by conv2 stride
    *,
    g,        # dict of static python ints (geometry)
):
    f32 = jnp.float32
    bf16 = jnp.bfloat16
    TB = g["tb"]
    s2 = g["s2"]

    if g["zero_scratch"]:
        a1_ref[...] = jnp.zeros(a1_ref.shape, f32)

    # ---- conv1 (stride s1, VALID): one MXU matmul per output row ------------------
    w1 = w1_ref[...]
    b1 = b1_ref[...]
    wq_used = g["ow1"] // s2
    for oh in range(g["oh1"]):
        patches = x_ref[oh * g["ow1"]:(oh + 1) * g["ow1"], :, :]       # (OW1, TB, Kf1) bf16
        lhs = patches.reshape(g["ow1"] * TB, g["kf1"])
        h = jnp.dot(lhs, w1, preferred_element_type=f32) + b1          # (OW1*TB, C1) f32
        h = jnp.maximum(h, 0.0)
        # store into the stride-s2 phase-decomposed scratch used by conv2
        h = h.reshape(wq_used, s2, TB, g["c1"])
        qh, ph = divmod(oh, s2)
        a1_ref[qh, ph, 0:wq_used, :, :, :] = h

    # ---- conv2 (stride s2, VALID): accumulate one matmul per filter tap -----------
    acc2 = jnp.zeros((g["p2"] * TB, g["c2"]), f32)
    for kh in range(g["k2"]):
        for kw in range(g["k2"]):
            qh, ph = divmod(kh, s2)
            qw, pw = divmod(kw, s2)
            win = a1_ref[qh:qh + g["oh2"], ph, qw:qw + g["ow2"], pw, :, :]  # (OH2, OW2, TB, C1)
            lhs = win.reshape(g["p2"] * TB, g["c1"]).astype(bf16)
            acc2 = acc2 + jnp.dot(lhs, w2_ref[kh * g["k2"] + kw],
                                  preferred_element_type=f32)
    h2 = jnp.maximum(acc2 + b2_ref[...], 0.0)                          # (P2*TB, C2) f32
    h2 = h2.reshape(g["oh2"], g["ow2"], TB, g["c2"])

    # ---- conv3 (stride 1, VALID): accumulate one matmul per filter tap ------------
    acc3 = jnp.zeros((g["p3"] * TB, g["c3"]), f32)
    for kh in range(g["k3"]):
        for kw in range(g["k3"]):
            win = h2[kh:kh + g["oh3"], kw:kw + g["ow3"], :, :]          # (OH3, OW3, TB, C2)
            lhs = win.reshape(g["p3"] * TB, g["c2"]).astype(bf16)
            acc3 = acc3 + jnp.dot(lhs, w3_ref[kh * g["k3"] + kw],
                                  preferred_element_type=f32)
    h3 = jnp.maximum(acc3 + b3_ref[...], 0.0)                          # (P3*TB, C3) f32

    # ---- flatten (H, W, C order; fc weight pre-permuted to match) + Linear + ReLU --
    if g["p3"] == 1:
        feats = h3                                                     # (TB, C3)
    else:
        h3r = h3.reshape(g["p3"], TB, g["c3"])
        feats = jnp.concatenate([h3r[p] for p in range(g["p3"])], axis=-1)
    out = jnp.dot(feats.astype(bf16), wf_ref[...], preferred_element_type=f32)
    out = jnp.maximum(out + bf_ref[...], 0.0)
    o_ref[...] = out.astype(o_ref.dtype)


def pixel_encoder_forward(x, params, *, batch_tile=16, filters=None):
    """x: (B, Cin, H, W) float32; params in PyTorch layout (see init_params)."""
    filters = filters or _DEFAULT_FILTERS
    b, c_in, h, w = x.shape
    (c1, k1, s1), (c2, k2, s2), (c3, k3, s3) = filters
    feature_size = params["fc_w"].shape[0]

    oh1, ow1 = _conv_out(h, k1, s1), _conv_out(w, k1, s1)
    oh2, ow2 = _conv_out(oh1, k2, s2), _conv_out(ow1, k2, s2)
    oh3, ow3 = _conv_out(oh2, k3, s3), _conv_out(ow2, k3, s3)
    assert min(oh1, ow1, oh2, ow2, oh3, ow3) >= 1, "input spatial size too small for filters"
    assert s3 == 1, "kernel is specialised to the default filters (last conv stride 1)"
    assert oh1 % s2 == 0 and ow1 % s2 == 0, "conv1 output must tile by conv2 stride"

    hq2 = max((k2 - 1) // s2 + oh2, oh1 // s2)
    wq2 = max((k2 - 1) // s2 + ow2, ow1 // s2)
    p1, p2, p3 = oh1 * ow1, oh2 * ow2, oh3 * ow3
    kf1 = k1 * k1 * c_in
    tb = batch_tile
    b_pad = pl.cdiv(b, tb) * tb

    geom = dict(
        tb=tb, oh1=oh1, ow1=ow1, kf1=kf1, c1=c1, s2=s2, k2=k2,
        oh2=oh2, ow2=ow2, p2=p2, c2=c2, k3=k3, oh3=oh3, ow3=ow3,
        p3=p3, c3=c3,
        zero_scratch=(hq2 * s2 > oh1) or (wq2 * s2 > ow1),
    )

    bf16, f32 = jnp.bfloat16, jnp.float32

    # --- host-side layout prep (pure data movement; all FLOPs run in the kernel) ---
    # im2col for the first conv, features ordered (kh, kw, cin); rows ordered (oh, ow).
    cols = []
    for kh in range(k1):
        for kw in range(k1):
            cols.append(x[:, :,
                          kh:kh + (oh1 - 1) * s1 + 1:s1,
                          kw:kw + (ow1 - 1) * s1 + 1:s1])                # (B, Cin, OH1, OW1)
    patches = jnp.stack(cols, axis=0)                                    # (K1*K1, B, Cin, OH1, OW1)
    patches = patches.transpose(3, 4, 1, 0, 2)                           # (OH1, OW1, B, K1*K1, Cin)
    patches = patches.reshape(p1, b, kf1).astype(bf16)
    if b_pad != b:
        patches = jnp.pad(patches, ((0, 0), (0, b_pad - b), (0, 0)))

    # weights in kernel layout: (in, out) per tap, bf16; biases as (1, out) f32
    w1k = params["conv1_w"].transpose(2, 3, 1, 0).reshape(kf1, c1).astype(bf16)
    b1k = params["conv1_b"].reshape(1, c1).astype(f32)
    w2k = params["conv2_w"].transpose(2, 3, 1, 0).reshape(k2 * k2, c1, c2).astype(bf16)
    b2k = params["conv2_b"].reshape(1, c2).astype(f32)
    w3k = params["conv3_w"].transpose(2, 3, 1, 0).reshape(k3 * k3, c2, c3).astype(bf16)
    b3k = params["conv3_b"].reshape(1, c3).astype(f32)
    # fc weight: PyTorch flattens the conv output in (C, H, W) order -> permute to (H, W, C)
    wf = params["fc_w"].reshape(feature_size, c3, oh3, ow3)
    wf = wf.transpose(0, 2, 3, 1).reshape(feature_size, p3 * c3)
    wfk = wf.T.astype(bf16)                                              # (P3*C3, F)
    bfk = params["fc_b"].reshape(1, feature_size).astype(f32)

    flops = 2 * b_pad * (p1 * kf1 * c1
                         + p2 * (k2 * k2 * c1) * c2
                         + p3 * (k3 * k3 * c2) * c3
                         + p3 * c3 * feature_size)
    bytes_accessed = (patches.size * 2
                      + (w1k.size + w2k.size + w3k.size + wfk.size) * 2
                      + (b1k.size + b2k.size + b3k.size + bfk.size) * 4
                      + b_pad * feature_size * 4)

    kernel = functools.partial(_pixel_encoder_kernel, g=geom)
    out = pl.pallas_call(
        kernel,
        out_shape=jax.ShapeDtypeStruct((b_pad, feature_size), jnp.float32),
        grid_spec=pltpu.PrefetchScalarGridSpec(
            num_scalar_prefetch=0,
            grid=(b_pad // tb,),
            in_specs=[
                pl.BlockSpec((p1, tb, kf1), lambda i: (0, i, 0)),
                pl.BlockSpec(w1k.shape, lambda i: (0, 0)),
                pl.BlockSpec(b1k.shape, lambda i: (0, 0)),
                pl.BlockSpec(w2k.shape, lambda i: (0, 0, 0)),
                pl.BlockSpec(b2k.shape, lambda i: (0, 0)),
                pl.BlockSpec(w3k.shape, lambda i: (0, 0, 0)),
                pl.BlockSpec(b3k.shape, lambda i: (0, 0)),
                pl.BlockSpec(wfk.shape, lambda i: (0, 0)),
                pl.BlockSpec(bfk.shape, lambda i: (0, 0)),
            ],
            out_specs=pl.BlockSpec((tb, feature_size), lambda i: (i, 0)),
            scratch_shapes=[pltpu.VMEM((hq2, s2, wq2, s2, tb, c1), jnp.float32)],
        ),
        compiler_params=pltpu.CompilerParams(
            dimension_semantics=("parallel",),
            vmem_limit_bytes=32 * 1024 * 1024,
        ),
        cost_estimate=pl.CostEstimate(flops=flops, transcendentals=0,
                                      bytes_accessed=bytes_accessed),
    )(patches, w1k, b1k, w2k, b2k, w3k, b3k, wfk, bfk)
    return out[:b]


def init_params(key, obs_shape, feature_size=512, filters=None):
    """PyTorch-layout parameters with PyTorch-default-like uniform init."""
    filters = filters or _DEFAULT_FILTERS
    c_in, h, w = obs_shape
    (c1, k1, s1), (c2, k2, s2), (c3, k3, s3) = filters
    oh1, ow1 = _conv_out(h, k1, s1), _conv_out(w, k1, s1)
    oh2, ow2 = _conv_out(oh1, k2, s2), _conv_out(ow1, k2, s2)
    oh3, ow3 = _conv_out(oh2, k3, s3), _conv_out(ow2, k3, s3)
    fc_in = c3 * oh3 * ow3
    ks = jax.random.split(key, 8)

    def unif(k, shape, fan_in):
        bound = 1.0 / math.sqrt(float(fan_in))
        return jax.random.uniform(k, shape, jnp.float32, -bound, bound)

    return {
        "conv1_w": unif(ks[0], (c1, c_in, k1, k1), c_in * k1 * k1),
        "conv1_b": unif(ks[1], (c1,), c_in * k1 * k1),
        "conv2_w": unif(ks[2], (c2, c1, k2, k2), c1 * k2 * k2),
        "conv2_b": unif(ks[3], (c2,), c1 * k2 * k2),
        "conv3_w": unif(ks[4], (c3, c2, k3, k3), c2 * k3 * k3),
        "conv3_b": unif(ks[5], (c3,), c2 * k3 * k3),
        "fc_w": unif(ks[6], (feature_size, fc_in), fc_in),
        "fc_b": unif(ks[7], (feature_size,), fc_in),
    }


def pixel_encoder_ref(x, params, *, filters=None):
    """Pure-JAX reference mirroring the PyTorch forward (bf16 operands, f32 accumulation)."""
    filters = filters or _DEFAULT_FILTERS
    bf16, f32 = jnp.bfloat16, jnp.float32
    h = x
    for name, (_, _, stride) in zip(("conv1", "conv2", "conv3"), filters):
        wgt = params[f"{name}_w"]
        bias = params[f"{name}_b"]
        h = jax.lax.conv_general_dilated(
            h.astype(bf16), wgt.astype(bf16),
            window_strides=(stride, stride), padding="VALID",
            dimension_numbers=("NCHW", "OIHW", "NCHW"),
            preferred_element_type=f32)
        h = jnp.maximum(h + bias.reshape(1, -1, 1, 1), 0.0)
    h = h.reshape(x.shape[0], -1)                   # (C, H, W) flatten order, like PyTorch
    out = jnp.dot(h.astype(bf16), params["fc_w"].astype(bf16).T,
                  preferred_element_type=f32) + params["fc_b"].reshape(1, -1)
    return jnp.maximum(out, 0.0)


if __name__ == "__main__":
    key = jax.random.PRNGKey(0)
    kx, kp = jax.random.split(key)

    batch = 32
    obs_shape = (4, 36, 36)   # smallest spatial size the default 8/4, 4/2, 3/1 conv stack admits
    feature_size = 512        # PixelEncoder default (lane-dense output)

    x = jax.random.uniform(kx, (batch,) + obs_shape, jnp.float32)
    params = init_params(kp, obs_shape, feature_size)

    fwd = jax.jit(pixel_encoder_forward)
    out = jax.block_until_ready(fwd(x, params))

    ref = pixel_encoder_ref(x, params)
    assert out.shape == (batch, feature_size)
    max_err = float(jnp.max(jnp.abs(out - ref)))
    assert jnp.allclose(out, ref, atol=5e-3, rtol=5e-3), max_err

    print("KERNEL_OK")
</pallas_src>

<mosaic_0001>
module attributes {stable_mosaic.version = 11 : i64} {
  func.func @_pixel_encoder_kernel(%arg0: i32, %arg1: memref<64x16x256xbf16, #tpu.memory_space<vmem>>, %arg2: memref<256x32xbf16, #tpu.memory_space<vmem>>, %arg3: memref<1x32xf32, #tpu.memory_space<vmem>>, %arg4: memref<16x32x64xbf16, #tpu.memory_space<vmem>>, %arg5: memref<1x64xf32, #tpu.memory_space<vmem>>, %arg6: memref<9x64x64xbf16, #tpu.memory_space<vmem>>, %arg7: memref<1x64xf32, #tpu.memory_space<vmem>>, %arg8: memref<64x512xbf16, #tpu.memory_space<vmem>>, %arg9: memref<1x512xf32, #tpu.memory_space<vmem>>, %arg10: memref<16x512xf32, #tpu.memory_space<vmem>>, %arg11: memref<4x2x4x2x16x32xf32, #tpu.memory_space<vmem>>) attributes {dimension_semantics = [#tpu.dimension_semantics<parallel>], iteration_bounds = array<i64: 2>, scalar_prefetch = 0 : i64, scratch_operands = 1 : i64, tpu.core_type = #tpu.core_type<tc>, window_params = [{transform_indices = @transform_0, window_bounds = array<i64: 64, 16, 256>}, {pipeline_mode = #tpu.pipeline_mode<synchronous>, transform_indices = @transform_1, window_bounds = array<i64: 256, 32>}, {pipeline_mode = #tpu.pipeline_mode<synchronous>, transform_indices = @transform_2, window_bounds = array<i64: 1, 32>}, {pipeline_mode = #tpu.pipeline_mode<synchronous>, transform_indices = @transform_3, window_bounds = array<i64: 16, 32, 64>}, {pipeline_mode = #tpu.pipeline_mode<synchronous>, transform_indices = @transform_4, window_bounds = array<i64: 1, 64>}, {pipeline_mode = #tpu.pipeline_mode<synchronous>, transform_indices = @transform_5, window_bounds = array<i64: 9, 64, 64>}, {pipeline_mode = #tpu.pipeline_mode<synchronous>, transform_indices = @transform_6, window_bounds = array<i64: 1, 64>}, {pipeline_mode = #tpu.pipeline_mode<synchronous>, transform_indices = @transform_7, window_bounds = array<i64: 64, 512>}, {pipeline_mode = #tpu.pipeline_mode<synchronous>, transform_indices = @transform_8, window_bounds = array<i64: 1, 512>}, {transform_indices = @transform_9, window_bounds = array<i64: 16, 512>}]} {
    %c0 = arith.constant 0 : index
    %c0_0 = arith.constant 0 : index
    %0 = vector.load %arg2[%c0, %c0_0] : memref<256x32xbf16, #tpu.memory_space<vmem>>, vector<256x32xbf16>
    %c0_1 = arith.constant 0 : index
    %c0_2 = arith.constant 0 : index
    %1 = vector.load %arg3[%c0_1, %c0_2] : memref<1x32xf32, #tpu.memory_space<vmem>>, vector<1x32xf32>
    %c0_3 = arith.constant 0 : index
    %c0_4 = arith.constant 0 : index
    %c0_5 = arith.constant 0 : index
    %2 = vector.load %arg1[%c0_3, %c0_4, %c0_5] : memref<64x16x256xbf16, #tpu.memory_space<vmem>>, vector<8x16x256xbf16>
    %3 = vector.shape_cast %2 : vector<8x16x256xbf16> to vector<128x256xbf16>
    %cst = arith.constant dense<0.000000e+00> : vector<128x32xf32>
    %4 = tpu.matmul %3, %0, %cst {dimension_numbers = #tpu.dot_dimension_numbers<[1], [0], [0], [1], [0, 0, 1, 1], [], []>} : vector<128x256xbf16>, vector<256x32xbf16>, vector<128x32xf32> -> vector<128x32xf32>
    %5 = vector.broadcast %1 : vector<1x32xf32> to vector<128x32xf32>
    %6 = arith.addf %4, %5 : vector<128x32xf32>
    %cst_6 = arith.constant 0.000000e+00 : f32
    %7 = vector.broadcast %cst_6 : f32 to vector<128x32xf32>
    %8 = arith.maximumf %6, %7 : vector<128x32xf32>
    %9 = vector.shape_cast %8 : vector<128x32xf32> to vector<4x2x16x32xf32>
    %c0_7 = arith.constant 0 : index
    %c0_8 = arith.constant 0 : index
    %c0_9 = arith.constant 0 : index
    %c0_10 = arith.constant 0 : index
    %c0_11 = arith.constant 0 : index
    %c0_12 = arith.constant 0 : index
    %10 = vector.load %arg11[%c0_7, %c0_8, %c0_9, %c0_10, %c0_11, %c0_12] : memref<4x2x4x2x16x32xf32, #tpu.memory_space<vmem>>, vector<1x1x4x2x16x32xf32>
    %11 = vector.shape_cast %10 : vector<1x1x4x2x16x32xf32> to vector<4x2x16x32xf32>
    %12 = vector.shape_cast %9 : vector<4x2x16x32xf32> to vector<1x1x4x2x16x32xf32>
    tpu.vector_store %arg11[%c0_7, %c0_8, %c0_9, %c0_10, %c0_11, %c0_12], %12 {strides = array<i32>} : memref<4x2x4x2x16x32xf32, #tpu.memory_space<vmem>>, vector<1x1x4x2x16x32xf32>,
    %c8 = arith.constant 8 : index
    %c0_13 = arith.constant 0 : index
    %c0_14 = arith.constant 0 : index
    %13 = vector.load %arg1[%c8, %c0_13, %c0_14] : memref<64x16x256xbf16, #tpu.memory_space<vmem>>, vector<8x16x256xbf16>
    %14 = vector.shape_cast %13 : vector<8x16x256xbf16> to vector<128x256xbf16>
    %cst_15 = arith.constant dense<0.000000e+00> : vector<128x32xf32>
    %15 = tpu.matmul %14, %0, %cst_15 {dimension_numbers = #tpu.dot_dimension_numbers<[1], [0], [0], [1], [0, 0, 1, 1], [], []>} : vector<128x256xbf16>, vector<256x32xbf16>, vector<128x32xf32> -> vector<128x32xf32>
    %16 = vector.broadcast %1 : vector<1x32xf32> to vector<128x32xf32>
    %17 = arith.addf %15, %16 : vector<128x32xf32>
    %cst_16 = arith.constant 0.000000e+00 : f32
    %18 = vector.broadcast %cst_16 : f32 to vector<128x32xf32>
    %19 = arith.maximumf %17, %18 : vector<128x32xf32>
    %20 = vector.shape_cast %19 : vector<128x32xf32> to vector<4x2x16x32xf32>
    %c0_17 = arith.constant 0 : index
    %c1 = arith.constant 1 : index
    %c0_18 = arith.constant 0 : index
    %c0_19 = arith.constant 0 : index
    %c0_20 = arith.constant 0 : index
    %c0_21 = arith.constant 0 : index
    %21 = vector.load %arg11[%c0_17, %c1, %c0_18, %c0_19, %c0_20, %c0_21] : memref<4x2x4x2x16x32xf32, #tpu.memory_space<vmem>>, vector<1x1x4x2x16x32xf32>
    %22 = vector.shape_cast %21 : vector<1x1x4x2x16x32xf32> to vector<4x2x16x32xf32>
    %23 = vector.shape_cast %20 : vector<4x2x16x32xf32> to vector<1x1x4x2x16x32xf32>
    tpu.vector_store %arg11[%c0_17, %c1, %c0_18, %c0_19, %c0_20, %c0_21], %23 {strides = array<i32>} : memref<4x2x4x2x16x32xf32, #tpu.memory_space<vmem>>, vector<1x1x4x2x16x32xf32>,
    %c16 = arith.constant 16 : index
    %c0_22 = arith.constant 0 : index
    %c0_23 = arith.constant 0 : index
    %24 = vector.load %arg1[%c16, %c0_22, %c0_23] : memref<64x16x256xbf16, #tpu.memory_space<vmem>>, vector<8x16x256xbf16>
    %25 = vector.shape_cast %24 : vector<8x16x256xbf16> to vector<128x256xbf16>
    %cst_24 = arith.constant dense<0.000000e+00> : vector<128x32xf32>
    %26 = tpu.matmul %25, %0, %cst_24 {dimension_numbers = #tpu.dot_dimension_numbers<[1], [0], [0], [1], [0, 0, 1, 1], [], []>} : vector<128x256xbf16>, vector<256x32xbf16>, vector<128x32xf32> -> vector<128x32xf32>
    %27 = vector.broadcast %1 : vector<1x32xf32> to vector<128x32xf32>
    %28 = arith.addf %26, %27 : vector<128x32xf32>
    %cst_25 = arith.constant 0.000000e+00 : f32
    %29 = vector.broadcast %cst_25 : f32 to vector<128x32xf32>
    %30 = arith.maximumf %28, %29 : vector<128x32xf32>
    %31 = vector.shape_cast %30 : vector<128x32xf32> to vector<4x2x16x32xf32>
    %c1_26 = arith.constant 1 : index
    %c0_27 = arith.constant 0 : index
    %c0_28 = arith.constant 0 : index
    %c0_29 = arith.constant 0 : index
    %c0_30 = arith.constant 0 : index
    %c0_31 = arith.constant 0 : index
    %32 = vector.load %arg11[%c1_26, %c0_27, %c0_28, %c0_29, %c0_30, %c0_31] : memref<4x2x4x2x16x32xf32, #tpu.memory_space<vmem>>, vector<1x1x4x2x16x32xf32>
    %33 = vector.shape_cast %32 : vector<1x1x4x2x16x32xf32> to vector<4x2x16x32xf32>
    %34 = vector.shape_cast %31 : vector<4x2x16x32xf32> to vector<1x1x4x2x16x32xf32>
    tpu.vector_store %arg11[%c1_26, %c0_27, %c0_28, %c0_29, %c0_30, %c0_31], %34 {strides = array<i32>} : memref<4x2x4x2x16x32xf32, #tpu.memory_space<vmem>>, vector<1x1x4x2x16x32xf32>,
    %c24 = arith.constant 24 : index
    %c0_32 = arith.constant 0 : index
    %c0_33 = arith.constant 0 : index
    %35 = vector.load %arg1[%c24, %c0_32, %c0_33] : memref<64x16x256xbf16, #tpu.memory_space<vmem>>, vector<8x16x256xbf16>
    %36 = vector.shape_cast %35 : vector<8x16x256xbf16> to vector<128x256xbf16>
    %cst_34 = arith.constant dense<0.000000e+00> : vector<128x32xf32>
    %37 = tpu.matmul %36, %0, %cst_34 {dimension_numbers = #tpu.dot_dimension_numbers<[1], [0], [0], [1], [0, 0, 1, 1], [], []>} : vector<128x256xbf16>, vector<256x32xbf16>, vector<128x32xf32> -> vector<128x32xf32>
    %38 = vector.broadcast %1 : vector<1x32xf32> to vector<128x32xf32>
    %39 = arith.addf %37, %38 : vector<128x32xf32>
    %cst_35 = arith.constant 0.000000e+00 : f32
    %40 = vector.broadcast %cst_35 : f32 to vector<128x32xf32>
    %41 = arith.maximumf %39, %40 : vector<128x32xf32>
    %42 = vector.shape_cast %41 : vector<128x32xf32> to vector<4x2x16x32xf32>
    %c1_36 = arith.constant 1 : index
    %c1_37 = arith.constant 1 : index
    %c0_38 = arith.constant 0 : index
    %c0_39 = arith.constant 0 : index
    %c0_40 = arith.constant 0 : index
    %c0_41 = arith.constant 0 : index
    %43 = vector.load %arg11[%c1_36, %c1_37, %c0_38, %c0_39, %c0_40, %c0_41] : memref<4x2x4x2x16x32xf32, #tpu.memory_space<vmem>>, vector<1x1x4x2x16x32xf32>
    %44 = vector.shape_cast %43 : vector<1x1x4x2x16x32xf32> to vector<4x2x16x32xf32>
    %45 = vector.shape_cast %42 : vector<4x2x16x32xf32> to vector<1x1x4x2x16x32xf32>
    tpu.vector_store %arg11[%c1_36, %c1_37, %c0_38, %c0_39, %c0_40, %c0_41], %45 {strides = array<i32>} : memref<4x2x4x2x16x32xf32, #tpu.memory_space<vmem>>, vector<1x1x4x2x16x32xf32>,
    %c32 = arith.constant 32 : index
    %c0_42 = arith.constant 0 : index
    %c0_43 = arith.constant 0 : index
    %46 = vector.load %arg1[%c32, %c0_42, %c0_43] : memref<64x16x256xbf16, #tpu.memory_space<vmem>>, vector<8x16x256xbf16>
    %47 = vector.shape_cast %46 : vector<8x16x256xbf16> to vector<128x256xbf16>
    %cst_44 = arith.constant dense<0.000000e+00> : vector<128x32xf32>
    %48 = tpu.matmul %47, %0, %cst_44 {dimension_numbers = #tpu.dot_dimension_numbers<[1], [0], [0], [1], [0, 0, 1, 1], [], []>} : vector<128x256xbf16>, vector<256x32xbf16>, vector<128x32xf32> -> vector<128x32xf32>
    %49 = vector.broadcast %1 : vector<1x32xf32> to vector<128x32xf32>
    %50 = arith.addf %48, %49 : vector<128x32xf32>
    %cst_45 = arith.constant 0.000000e+00 : f32
    %51 = vector.broadcast %cst_45 : f32 to vector<128x32xf32>
    %52 = arith.maximumf %50, %51 : vector<128x32xf32>
    %53 = vector.shape_cast %52 : vector<128x32xf32> to vector<4x2x16x32xf32>
    %c2 = arith.constant 2 : index
    %c0_46 = arith.constant 0 : index
    %c0_47 = arith.constant 0 : index
    %c0_48 = arith.constant 0 : index
    %c0_49 = arith.constant 0 : index
    %c0_50 = arith.constant 0 : index
    %54 = vector.load %arg11[%c2, %c0_46, %c0_47, %c0_48, %c0_49, %c0_50] : memref<4x2x4x2x16x32xf32, #tpu.memory_space<vmem>>, vector<1x1x4x2x16x32xf32>
    %55 = vector.shape_cast %54 : vector<1x1x4x2x16x32xf32> to vector<4x2x16x32xf32>
    %56 = vector.shape_cast %53 : vector<4x2x16x32xf32> to vector<1x1x4x2x16x32xf32>
    tpu.vector_store %arg11[%c2, %c0_46, %c0_47, %c0_48, %c0_49, %c0_50], %56 {strides = array<i32>} : memref<4x2x4x2x16x32xf32, #tpu.memory_space<vmem>>, vector<1x1x4x2x16x32xf32>,
    %c40 = arith.constant 40 : index
    %c0_51 = arith.constant 0 : index
    %c0_52 = arith.constant 0 : index
    %57 = vector.load %arg1[%c40, %c0_51, %c0_52] : memref<64x16x256xbf16, #tpu.memory_space<vmem>>, vector<8x16x256xbf16>
    %58 = vector.shape_cast %57 : vector<8x16x256xbf16> to vector<128x256xbf16>
    %cst_53 = arith.constant dense<0.000000e+00> : vector<128x32xf32>
    %59 = tpu.matmul %58, %0, %cst_53 {dimension_numbers = #tpu.dot_dimension_numbers<[1], [0], [0], [1], [0, 0, 1, 1], [], []>} : vector<128x256xbf16>, vector<256x32xbf16>, vector<128x32xf32> -> vector<128x32xf32>
    %60 = vector.broadcast %1 : vector<1x32xf32> to vector<128x32xf32>
    %61 = arith.addf %59, %60 : vector<128x32xf32>
    %cst_54 = arith.constant 0.000000e+00 : f32
    %62 = vector.broadcast %cst_54 : f32 to vector<128x32xf32>
    %63 = arith.maximumf %61, %62 : vector<128x32xf32>
    %64 = vector.shape_cast %63 : vector<128x32xf32> to vector<4x2x16x32xf32>
    %c2_55 = arith.constant 2 : index
    %c1_56 = arith.constant 1 : index
    %c0_57 = arith.constant 0 : index
    %c0_58 = arith.constant 0 : index
    %c0_59 = arith.constant 0 : index
    %c0_60 = arith.constant 0 : index
    %65 = vector.load %arg11[%c2_55, %c1_56, %c0_57, %c0_58, %c0_59, %c0_60] : memref<4x2x4x2x16x32xf32, #tpu.memory_space<vmem>>, vector<1x1x4x2x16x32xf32>
    %66 = vector.shape_cast %65 : vector<1x1x4x2x16x32xf32> to vector<4x2x16x32xf32>
    %67 = vector.shape_cast %64 : vector<4x2x16x32xf32> to vector<1x1x4x2x16x32xf32>
    tpu.vector_store %arg11[%c2_55, %c1_56, %c0_57, %c0_58, %c0_59, %c0_60], %67 {strides = array<i32>} : memref<4x2x4x2x16x32xf32, #tpu.memory_space<vmem>>, vector<1x1x4x2x16x32xf32>,
    %c48 = arith.constant 48 : index
    %c0_61 = arith.constant 0 : index
    %c0_62 = arith.constant 0 : index
    %68 = vector.load %arg1[%c48, %c0_61, %c0_62] : memref<64x16x256xbf16, #tpu.memory_space<vmem>>, vector<8x16x256xbf16>
    %69 = vector.shape_cast %68 : vector<8x16x256xbf16> to vector<128x256xbf16>
    %cst_63 = arith.constant dense<0.000000e+00> : vector<128x32xf32>
    %70 = tpu.matmul %69, %0, %cst_63 {dimension_numbers = #tpu.dot_dimension_numbers<[1], [0], [0], [1], [0, 0, 1, 1], [], []>} : vector<128x256xbf16>, vector<256x32xbf16>, vector<128x32xf32> -> vector<128x32xf32>
    %71 = vector.broadcast %1 : vector<1x32xf32> to vector<128x32xf32>
    %72 = arith.addf %70, %71 : vector<128x32xf32>
    %cst_64 = arith.constant 0.000000e+00 : f32
    %73 = vector.broadcast %cst_64 : f32 to vector<128x32xf32>
    %74 = arith.maximumf %72, %73 : vector<128x32xf32>
    %75 = vector.shape_cast %74 : vector<128x32xf32> to vector<4x2x16x32xf32>
    %c3 = arith.constant 3 : index
    %c0_65 = arith.constant 0 : index
    %c0_66 = arith.constant 0 : index
    %c0_67 = arith.constant 0 : index
    %c0_68 = arith.constant 0 : index
    %c0_69 = arith.constant 0 : index
    %76 = vector.load %arg11[%c3, %c0_65, %c0_66, %c0_67, %c0_68, %c0_69] : memref<4x2x4x2x16x32xf32, #tpu.memory_space<vmem>>, vector<1x1x4x2x16x32xf32>
    %77 = vector.shape_cast %76 : vector<1x1x4x2x16x32xf32> to vector<4x2x16x32xf32>
    %78 = vector.shape_cast %75 : vector<4x2x16x32xf32> to vector<1x1x4x2x16x32xf32>
    tpu.vector_store %arg11[%c3, %c0_65, %c0_66, %c0_67, %c0_68, %c0_69], %78 {strides = array<i32>} : memref<4x2x4x2x16x32xf32, #tpu.memory_space<vmem>>, vector<1x1x4x2x16x32xf32>,
    %c56 = arith.constant 56 : index
    %c0_70 = arith.constant 0 : index
    %c0_71 = arith.constant 0 : index
    %79 = vector.load %arg1[%c56, %c0_70, %c0_71] : memref<64x16x256xbf16, #tpu.memory_space<vmem>>, vector<8x16x256xbf16>
    %80 = vector.shape_cast %79 : vector<8x16x256xbf16> to vector<128x256xbf16>
    %cst_72 = arith.constant dense<0.000000e+00> : vector<128x32xf32>
    %81 = tpu.matmul %80, %0, %cst_72 {dimension_numbers = #tpu.dot_dimension_numbers<[1], [0], [0], [1], [0, 0, 1, 1], [], []>} : vector<128x256xbf16>, vector<256x32xbf16>, vector<128x32xf32> -> vector<128x32xf32>
    %82 = vector.broadcast %1 : vector<1x32xf32> to vector<128x32xf32>
    %83 = arith.addf %81, %82 : vector<128x32xf32>
    %cst_73 = arith.constant 0.000000e+00 : f32
    %84 = vector.broadcast %cst_73 : f32 to vector<128x32xf32>
    %85 = arith.maximumf %83, %84 : vector<128x32xf32>
    %86 = vector.shape_cast %85 : vector<128x32xf32> to vector<4x2x16x32xf32>
    %c3_74 = arith.constant 3 : index
    %c1_75 = arith.constant 1 : index
    %c0_76 = arith.constant 0 : index
    %c0_77 = arith.constant 0 : index
    %c0_78 = arith.constant 0 : index
    %c0_79 = arith.constant 0 : index
    %87 = vector.load %arg11[%c3_74, %c1_75, %c0_76, %c0_77, %c0_78, %c0_79] : memref<4x2x4x2x16x32xf32, #tpu.memory_space<vmem>>, vector<1x1x4x2x16x32xf32>
    %88 = vector.shape_cast %87 : vector<1x1x4x2x16x32xf32> to vector<4x2x16x32xf32>
    %89 = vector.shape_cast %86 : vector<4x2x16x32xf32> to vector<1x1x4x2x16x32xf32>
    tpu.vector_store %arg11[%c3_74, %c1_75, %c0_76, %c0_77, %c0_78, %c0_79], %89 {strides = array<i32>} : memref<4x2x4x2x16x32xf32, #tpu.memory_space<vmem>>, vector<1x1x4x2x16x32xf32>,
    %cst_80 = arith.constant 0.000000e+00 : f32
    %90 = vector.broadcast %cst_80 : f32 to vector<144x64xf32>
    %c0_81 = arith.constant 0 : index
    %c0_82 = arith.constant 0 : index
    %c0_83 = arith.constant 0 : index
    %c0_84 = arith.constant 0 : index
    %c0_85 = arith.constant 0 : index
    %c0_86 = arith.constant 0 : index
    %91 = vector.load %arg11[%c0_81, %c0_82, %c0_83, %c0_84, %c0_85, %c0_86] : memref<4x2x4x2x16x32xf32, #tpu.memory_space<vmem>>, vector<3x1x3x1x16x32xf32>
    %92 = vector.shape_cast %91 : vector<3x1x3x1x16x32xf32> to vector<3x3x16x32xf32>
    %93 = vector.shape_cast %92 : vector<3x3x16x32xf32> to vector<144x32xf32>
    %94 = arith.truncf %93 : vector<144x32xf32> to vector<144x32xbf16>
    %c0_87 = arith.constant 0 : index
    %c0_88 = arith.constant 0 : index
    %c0_89 = arith.constant 0 : index
    %95 = vector.load %arg4[%c0_87, %c0_88, %c0_89] : memref<16x32x64xbf16, #tpu.memory_space<vmem>>, vector<1x32x64xbf16>
    %96 = vector.shape_cast %95 : vector<1x32x64xbf16> to vector<32x64xbf16>
    %cst_90 = arith.constant dense<0.000000e+00> : vector<144x64xf32>
    %97 = tpu.matmul %94, %96, %cst_90 {dimension_numbers = #tpu.dot_dimension_numbers<[1], [0], [0], [1], [0, 0, 1, 1], [], []>} : vector<144x32xbf16>, vector<32x64xbf16>, vector<144x64xf32> -> vector<144x64xf32>
    %98 = arith.addf %90, %97 : vector<144x64xf32>
    %c0_91 = arith.constant 0 : index
    %c0_92 = arith.constant 0 : index
    %c0_93 = arith.constant 0 : index
    %c1_94 = arith.constant 1 : index
    %c0_95 = arith.constant 0 : index
    %c0_96 = arith.constant 0 : index
    %99 = vector.load %arg11[%c0_91, %c0_92, %c0_93, %c1_94, %c0_95, %c0_96] : memref<4x2x4x2x16x32xf32, #tpu.memory_space<vmem>>, vector<3x1x3x1x16x32xf32>
    %100 = vector.shape_cast %99 : vector<3x1x3x1x16x32xf32> to vector<3x3x16x32xf32>
    %101 = vector.shape_cast %100 : vector<3x3x16x32xf32> to vector<144x32xf32>
    %102 = arith.truncf %101 : vector<144x32xf32> to vector<144x32xbf16>
    %c1_97 = arith.constant 1 : index
    %c0_98 = arith.constant 0 : index
    %c0_99 = arith.constant 0 : index
    %103 = vector.load %arg4[%c1_97, %c0_98, %c0_99] : memref<16x32x64xbf16, #tpu.memory_space<vmem>>, vector<1x32x64xbf16>
    %104 = vector.shape_cast %103 : vector<1x32x64xbf16> to vector<32x64xbf16>
    %cst_100 = arith.constant dense<0.000000e+00> : vector<144x64xf32>
    %105 = tpu.matmul %102, %104, %cst_100 {dimension_numbers = #tpu.dot_dimension_numbers<[1], [0], [0], [1], [0, 0, 1, 1], [], []>} : vector<144x32xbf16>, vector<32x64xbf16>, vector<144x64xf32> -> vector<144x64xf32>
    %106 = arith.addf %98, %105 : vector<144x64xf32>
    %c0_101 = arith.constant 0 : index
    %c0_102 = arith.constant 0 : index
    %c1_103 = arith.constant 1 : index
    %c0_104 = arith.constant 0 : index
    %c0_105 = arith.constant 0 : index
    %c0_106 = arith.constant 0 : index
    %107 = vector.load %arg11[%c0_101, %c0_102, %c1_103, %c0_104, %c0_105, %c0_106] : memref<4x2x4x2x16x32xf32, #tpu.memory_space<vmem>>, vector<3x1x3x1x16x32xf32>
    %108 = vector.shape_cast %107 : vector<3x1x3x1x16x32xf32> to vector<3x3x16x32xf32>
    %109 = vector.shape_cast %108 : vector<3x3x16x32xf32> to vector<144x32xf32>
    %110 = arith.truncf %109 : vector<144x32xf32> to vector<144x32xbf16>
    %c2_107 = arith.constant 2 : index
    %c0_108 = arith.constant 0 : index
    %c0_109 = arith.constant 0 : index
    %111 = vector.load %arg4[%c2_107, %c0_108, %c0_109] : memref<16x32x64xbf16, #tpu.memory_space<vmem>>, vector<1x32x64xbf16>
    %112 = vector.shape_cast %111 : vector<1x32x64xbf16> to vector<32x64xbf16>
    %cst_110 = arith.constant dense<0.000000e+00> : vector<144x64xf32>
    %113 = tpu.matmul %110, %112, %cst_110 {dimension_numbers = #tpu.dot_dimension_numbers<[1], [0], [0], [1], [0, 0, 1, 1], [], []>} : vector<144x32xbf16>, vector<32x64xbf16>, vector<144x64xf32> -> vector<144x64xf32>
    %114 = arith.addf %106, %113 : vector<144x64xf32>
    %c0_111 = arith.constant 0 : index
    %c0_112 = arith.constant 0 : index
    %c1_113 = arith.constant 1 : index
    %c1_114 = arith.constant 1 : index
    %c0_115 = arith.constant 0 : index
    %c0_116 = arith.constant 0 : index
    %115 = vector.load %arg11[%c0_111, %c0_112, %c1_113, %c1_114, %c0_115, %c0_116] : memref<4x2x4x2x16x32xf32, #tpu.memory_space<vmem>>, vector<3x1x3x1x16x32xf32>
    %116 = vector.shape_cast %115 : vector<3x1x3x1x16x32xf32> to vector<3x3x16x32xf32>
    %117 = vector.shape_cast %116 : vector<3x3x16x32xf32> to vector<144x32xf32>
    %118 = arith.truncf %117 : vector<144x32xf32> to vector<144x32xbf16>
    %c3_117 = arith.constant 3 : index
    %c0_118 = arith.constant 0 : index
    %c0_119 = arith.constant 0 : index
    %119 = vector.load %arg4[%c3_117, %c0_118, %c0_119] : memref<16x32x64xbf16, #tpu.memory_space<vmem>>, vector<1x32x64xbf16>
    %120 = vector.shape_cast %119 : vector<1x32x64xbf16> to vector<32x64xbf16>
    %cst_120 = arith.constant dense<0.000000e+00> : vector<144x64xf32>
    %121 = tpu.matmul %118, %120, %cst_120 {dimension_numbers = #tpu.dot_dimension_numbers<[1], [0], [0], [1], [0, 0, 1, 1], [], []>} : vector<144x32xbf16>, vector<32x64xbf16>, vector<144x64xf32> -> vector<144x64xf32>
    %122 = arith.addf %114, %121 : vector<144x64xf32>
    %c0_121 = arith.constant 0 : index
    %c1_122 = arith.constant 1 : index
    %c0_123 = arith.constant 0 : index
    %c0_124 = arith.constant 0 : index
    %c0_125 = arith.constant 0 : index
    %c0_126 = arith.constant 0 : index
    %123 = vector.load %arg11[%c0_121, %c1_122, %c0_123, %c0_124, %c0_125, %c0_126] : memref<4x2x4x2x16x32xf32, #tpu.memory_space<vmem>>, vector<3x1x3x1x16x32xf32>
    %124 = vector.shape_cast %123 : vector<3x1x3x1x16x32xf32> to vector<3x3x16x32xf32>
    %125 = vector.shape_cast %124 : vector<3x3x16x32xf32> to vector<144x32xf32>
    %126 = arith.truncf %125 : vector<144x32xf32> to vector<144x32xbf16>
    %c4 = arith.constant 4 : index
    %c0_127 = arith.constant 0 : index
    %c0_128 = arith.constant 0 : index
    %127 = vector.load %arg4[%c4, %c0_127, %c0_128] : memref<16x32x64xbf16, #tpu.memory_space<vmem>>, vector<1x32x64xbf16>
    %128 = vector.shape_cast %127 : vector<1x32x64xbf16> to vector<32x64xbf16>
    %cst_129 = arith.constant dense<0.000000e+00> : vector<144x64xf32>
    %129 = tpu.matmul %126, %128, %cst_129 {dimension_numbers = #tpu.dot_dimension_numbers<[1], [0], [0], [1], [0, 0, 1, 1], [], []>} : vector<144x32xbf16>, vector<32x64xbf16>, vector<144x64xf32> -> vector<144x64xf32>
    %130 = arith.addf %122, %129 : vector<144x64xf32>
    %c0_130 = arith.constant 0 : index
    %c1_131 = arith.constant 1 : index
    %c0_132 = arith.constant 0 : index
    %c1_133 = arith.constant 1 : index
    %c0_134 = arith.constant 0 : index
    %c0_135 = arith.constant 0 : index
    %131 = vector.load %arg11[%c0_130, %c1_131, %c0_132, %c1_133, %c0_134, %c0_135] : memref<4x2x4x2x16x32xf32, #tpu.memory_space<vmem>>, vector<3x1x3x1x16x32xf32>
    %132 = vector.shape_cast %131 : vector<3x1x3x1x16x32xf32> to vector<3x3x16x32xf32>
    %133 = vector.shape_cast %132 : vector<3x3x16x32xf32> to vector<144x32xf32>
    %134 = arith.truncf %133 : vector<144x32xf32> to vector<144x32xbf16>
    %c5 = arith.constant 5 : index
    %c0_136 = arith.constant 0 : index
    %c0_137 = arith.constant 0 : index
    %135 = vector.load %arg4[%c5, %c0_136, %c0_137] : memref<16x32x64xbf16, #tpu.memory_space<vmem>>, vector<1x32x64xbf16>
    %136 = vector.shape_cast %135 : vector<1x32x64xbf16> to vector<32x64xbf16>
    %cst_138 = arith.constant dense<0.000000e+00> : vector<144x64xf32>
    %137 = tpu.matmul %134, %136, %cst_138 {dimension_numbers = #tpu.dot_dimension_numbers<[1], [0], [0], [1], [0, 0, 1, 1], [], []>} : vector<144x32xbf16>, vector<32x64xbf16>, vector<144x64xf32> -> vector<144x64xf32>
    %138 = arith.addf %130, %137 : vector<144x64xf32>
    %c0_139 = arith.constant 0 : index
    %c1_140 = arith.constant 1 : index
    %c1_141 = arith.constant 1 : index
    %c0_142 = arith.constant 0 : index
    %c0_143 = arith.constant 0 : index
    %c0_144 = arith.constant 0 : index
    %139 = vector.load %arg11[%c0_139, %c1_140, %c1_141, %c0_142, %c0_143, %c0_144] : memref<4x2x4x2x16x32xf32, #tpu.memory_space<vmem>>, vector<3x1x3x1x16x32xf32>
    %140 = vector.shape_cast %139 : vector<3x1x3x1x16x32xf32> to vector<3x3x16x32xf32>
    %141 = vector.shape_cast %140 : vector<3x3x16x32xf32> to vector<144x32xf32>
    %142 = arith.truncf %141 : vector<144x32xf32> to vector<144x32xbf16>
    %c6 = arith.constant 6 : index
    %c0_145 = arith.constant 0 : index
    %c0_146 = arith.constant 0 : index
    %143 = vector.load %arg4[%c6, %c0_145, %c0_146] : memref<16x32x64xbf16, #tpu.memory_space<vmem>>, vector<1x32x64xbf16>
    %144 = vector.shape_cast %143 : vector<1x32x64xbf16> to vector<32x64xbf16>
    %cst_147 = arith.constant dense<0.000000e+00> : vector<144x64xf32>
    %145 = tpu.matmul %142, %144, %cst_147 {dimension_numbers = #tpu.dot_dimension_numbers<[1], [0], [0], [1], [0, 0, 1, 1], [], []>} : vector<144x32xbf16>, vector<32x64xbf16>, vector<144x64xf32> -> vector<144x64xf32>
    %146 = arith.addf %138, %145 : vector<144x64xf32>
    %c0_148 = arith.constant 0 : index
    %c1_149 = arith.constant 1 : index
    %c1_150 = arith.constant 1 : index
    %c1_151 = arith.constant 1 : index
    %c0_152 = arith.constant 0 : index
    %c0_153 = arith.constant 0 : index
    %147 = vector.load %arg11[%c0_148, %c1_149, %c1_150, %c1_151, %c0_152, %c0_153] : memref<4x2x4x2x16x32xf32, #tpu.memory_space<vmem>>, vector<3x1x3x1x16x32xf32>
    %148 = vector.shape_cast %147 : vector<3x1x3x1x16x32xf32> to vector<3x3x16x32xf32>
    %149 = vector.shape_cast %148 : vector<3x3x16x32xf32> to vector<144x32xf32>
    %150 = arith.truncf %149 : vector<144x32xf32> to vector<144x32xbf16>
    %c7 = arith.constant 7 : index
    %c0_154 = arith.constant 0 : index
    %c0_155 = arith.constant 0 : index
    %151 = vector.load %arg4[%c7, %c0_154, %c0_155] : memref<16x32x64xbf16, #tpu.memory_space<vmem>>, vector<1x32x64xbf16>
    %152 = vector.shape_cast %151 : vector<1x32x64xbf16> to vector<32x64xbf16>
    %cst_156 = arith.constant dense<0.000000e+00> : vector<144x64xf32>
    %153 = tpu.matmul %150, %152, %cst_156 {dimension_numbers = #tpu.dot_dimension_numbers<[1], [0], [0], [1], [0, 0, 1, 1], [], []>} : vector<144x32xbf16>, vector<32x64xbf16>, vector<144x64xf32> -> vector<144x64xf32>
    %154 = arith.addf %146, %153 : vector<144x64xf32>
    %c1_157 = arith.constant 1 : index
    %c0_158 = arith.constant 0 : index
    %c0_159 = arith.constant 0 : index
    %c0_160 = arith.constant 0 : index
    %c0_161 = arith.constant 0 : index
    %c0_162 = arith.constant 0 : index
    %155 = vector.load %arg11[%c1_157, %c0_158, %c0_159, %c0_160, %c0_161, %c0_162] : memref<4x2x4x2x16x32xf32, #tpu.memory_space<vmem>>, vector<3x1x3x1x16x32xf32>
    %156 = vector.shape_cast %155 : vector<3x1x3x1x16x32xf32> to vector<3x3x16x32xf32>
    %157 = vector.shape_cast %156 : vector<3x3x16x32xf32> to vector<144x32xf32>
    %158 = arith.truncf %157 : vector<144x32xf32> to vector<144x32xbf16>
    %c8_163 = arith.constant 8 : index
    %c0_164 = arith.constant 0 : index
    %c0_165 = arith.constant 0 : index
    %159 = vector.load %arg4[%c8_163, %c0_164, %c0_165] : memref<16x32x64xbf16, #tpu.memory_space<vmem>>, vector<1x32x64xbf16>
    %160 = vector.shape_cast %159 : vector<1x32x64xbf16> to vector<32x64xbf16>
    %cst_166 = arith.constant dense<0.000000e+00> : vector<144x64xf32>
    %161 = tpu.matmul %158, %160, %cst_166 {dimension_numbers = #tpu.dot_dimension_numbers<[1], [0], [0], [1], [0, 0, 1, 1], [], []>} : vector<144x32xbf16>, vector<32x64xbf16>, vector<144x64xf32> -> vector<144x64xf32>
    %162 = arith.addf %154, %161 : vector<144x64xf32>
    %c1_167 = arith.constant 1 : index
    %c0_168 = arith.constant 0 : index
    %c0_169 = arith.constant 0 : index
    %c1_170 = arith.constant 1 : index
    %c0_171 = arith.constant 0 : index
    %c0_172 = arith.constant 0 : index
    %163 = vector.load %arg11[%c1_167, %c0_168, %c0_169, %c1_170, %c0_171, %c0_172] : memref<4x2x4x2x16x32xf32, #tpu.memory_space<vmem>>, vector<3x1x3x1x16x32xf32>
    %164 = vector.shape_cast %163 : vector<3x1x3x1x16x32xf32> to vector<3x3x16x32xf32>
    %165 = vector.shape_cast %164 : vector<3x3x16x32xf32> to vector<144x32xf32>
    %166 = arith.truncf %165 : vector<144x32xf32> to vector<144x32xbf16>
    %c9 = arith.constant 9 : index
    %c0_173 = arith.constant 0 : index
    %c0_174 = arith.constant 0 : index
    %167 = vector.load %arg4[%c9, %c0_173, %c0_174] : memref<16x32x64xbf16, #tpu.memory_space<vmem>>, vector<1x32x64xbf16>
    %168 = vector.shape_cast %167 : vector<1x32x64xbf16> to vector<32x64xbf16>
    %cst_175 = arith.constant dense<0.000000e+00> : vector<144x64xf32>
    %169 = tpu.matmul %166, %168, %cst_175 {dimension_numbers = #tpu.dot_dimension_numbers<[1], [0], [0], [1], [0, 0, 1, 1], [], []>} : vector<144x32xbf16>, vector<32x64xbf16>, vector<144x64xf32> -> vector<144x64xf32>
    %170 = arith.addf %162, %169 : vector<144x64xf32>
    %c1_176 = arith.constant 1 : index
    %c0_177 = arith.constant 0 : index
    %c1_178 = arith.constant 1 : index
    %c0_179 = arith.constant 0 : index
    %c0_180 = arith.constant 0 : index
    %c0_181 = arith.constant 0 : index
    %171 = vector.load %arg11[%c1_176, %c0_177, %c1_178, %c0_179, %c0_180, %c0_181] : memref<4x2x4x2x16x32xf32, #tpu.memory_space<vmem>>, vector<3x1x3x1x16x32xf32>
    %172 = vector.shape_cast %171 : vector<3x1x3x1x16x32xf32> to vector<3x3x16x32xf32>
    %173 = vector.shape_cast %172 : vector<3x3x16x32xf32> to vector<144x32xf32>
    %174 = arith.truncf %173 : vector<144x32xf32> to vector<144x32xbf16>
    %c10 = arith.constant 10 : index
    %c0_182 = arith.constant 0 : index
    %c0_183 = arith.constant 0 : index
    %175 = vector.load %arg4[%c10, %c0_182, %c0_183] : memref<16x32x64xbf16, #tpu.memory_space<vmem>>, vector<1x32x64xbf16>
    %176 = vector.shape_cast %175 : vector<1x32x64xbf16> to vector<32x64xbf16>
    %cst_184 = arith.constant dense<0.000000e+00> : vector<144x64xf32>
    %177 = tpu.matmul %174, %176, %cst_184 {dimension_numbers = #tpu.dot_dimension_numbers<[1], [0], [0], [1], [0, 0, 1, 1], [], []>} : vector<144x32xbf16>, vector<32x64xbf16>, vector<144x64xf32> -> vector<144x64xf32>
    %178 = arith.addf %170, %177 : vector<144x64xf32>
    %c1_185 = arith.constant 1 : index
    %c0_186 = arith.constant 0 : index
    %c1_187 = arith.constant 1 : index
    %c1_188 = arith.constant 1 : index
    %c0_189 = arith.constant 0 : index
    %c0_190 = arith.constant 0 : index
    %179 = vector.load %arg11[%c1_185, %c0_186, %c1_187, %c1_188, %c0_189, %c0_190] : memref<4x2x4x2x16x32xf32, #tpu.memory_space<vmem>>, vector<3x1x3x1x16x32xf32>
    %180 = vector.shape_cast %179 : vector<3x1x3x1x16x32xf32> to vector<3x3x16x32xf32>
    %181 = vector.shape_cast %180 : vector<3x3x16x32xf32> to vector<144x32xf32>
    %182 = arith.truncf %181 : vector<144x32xf32> to vector<144x32xbf16>
    %c11 = arith.constant 11 : index
    %c0_191 = arith.constant 0 : index
    %c0_192 = arith.constant 0 : index
    %183 = vector.load %arg4[%c11, %c0_191, %c0_192] : memref<16x32x64xbf16, #tpu.memory_space<vmem>>, vector<1x32x64xbf16>
    %184 = vector.shape_cast %183 : vector<1x32x64xbf16> to vector<32x64xbf16>
    %cst_193 = arith.constant dense<0.000000e+00> : vector<144x64xf32>
    %185 = tpu.matmul %182, %184, %cst_193 {dimension_numbers = #tpu.dot_dimension_numbers<[1], [0], [0], [1], [0, 0, 1, 1], [], []>} : vector<144x32xbf16>, vector<32x64xbf16>, vector<144x64xf32> -> vector<144x64xf32>
    %186 = arith.addf %178, %185 : vector<144x64xf32>
    %c1_194 = arith.constant 1 : index
    %c1_195 = arith.constant 1 : index
    %c0_196 = arith.constant 0 : index
    %c0_197 = arith.constant 0 : index
    %c0_198 = arith.constant 0 : index
    %c0_199 = arith.constant 0 : index
    %187 = vector.load %arg11[%c1_194, %c1_195, %c0_196, %c0_197, %c0_198, %c0_199] : memref<4x2x4x2x16x32xf32, #tpu.memory_space<vmem>>, vector<3x1x3x1x16x32xf32>
    %188 = vector.shape_cast %187 : vector<3x1x3x1x16x32xf32> to vector<3x3x16x32xf32>
    %189 = vector.shape_cast %188 : vector<3x3x16x32xf32> to vector<144x32xf32>
    %190 = arith.truncf %189 : vector<144x32xf32> to vector<144x32xbf16>
    %c12 = arith.constant 12 : index
    %c0_200 = arith.constant 0 : index
    %c0_201 = arith.constant 0 : index
    %191 = vector.load %arg4[%c12, %c0_200, %c0_201] : memref<16x32x64xbf16, #tpu.memory_space<vmem>>, vector<1x32x64xbf16>
    %192 = vector.shape_cast %191 : vector<1x32x64xbf16> to vector<32x64xbf16>
    %cst_202 = arith.constant dense<0.000000e+00> : vector<144x64xf32>
    %193 = tpu.matmul %190, %192, %cst_202 {dimension_numbers = #tpu.dot_dimension_numbers<[1], [0], [0], [1], [0, 0, 1, 1], [], []>} : vector<144x32xbf16>, vector<32x64xbf16>, vector<144x64xf32> -> vector<144x64xf32>
    %194 = arith.addf %186, %193 : vector<144x64xf32>
    %c1_203 = arith.constant 1 : index
    %c1_204 = arith.constant 1 : index
    %c0_205 = arith.constant 0 : index
    %c1_206 = arith.constant 1 : index
    %c0_207 = arith.constant 0 : index
    %c0_208 = arith.constant 0 : index
    %195 = vector.load %arg11[%c1_203, %c1_204, %c0_205, %c1_206, %c0_207, %c0_208] : memref<4x2x4x2x16x32xf32, #tpu.memory_space<vmem>>, vector<3x1x3x1x16x32xf32>
    %196 = vector.shape_cast %195 : vector<3x1x3x1x16x32xf32> to vector<3x3x16x32xf32>
    %197 = vector.shape_cast %196 : vector<3x3x16x32xf32> to vector<144x32xf32>
    %198 = arith.truncf %197 : vector<144x32xf32> to vector<144x32xbf16>
    %c13 = arith.constant 13 : index
    %c0_209 = arith.constant 0 : index
    %c0_210 = arith.constant 0 : index
    %199 = vector.load %arg4[%c13, %c0_209, %c0_210] : memref<16x32x64xbf16, #tpu.memory_space<vmem>>, vector<1x32x64xbf16>
    %200 = vector.shape_cast %199 : vector<1x32x64xbf16> to vector<32x64xbf16>
    %cst_211 = arith.constant dense<0.000000e+00> : vector<144x64xf32>
    %201 = tpu.matmul %198, %200, %cst_211 {dimension_numbers = #tpu.dot_dimension_numbers<[1], [0], [0], [1], [0, 0, 1, 1], [], []>} : vector<144x32xbf16>, vector<32x64xbf16>, vector<144x64xf32> -> vector<144x64xf32>
    %202 = arith.addf %194, %201 : vector<144x64xf32>
    %c1_212 = arith.constant 1 : index
    %c1_213 = arith.constant 1 : index
    %c1_214 = arith.constant 1 : index
    %c0_215 = arith.constant 0 : index
    %c0_216 = arith.constant 0 : index
    %c0_217 = arith.constant 0 : index
    %203 = vector.load %arg11[%c1_212, %c1_213, %c1_214, %c0_215, %c0_216, %c0_217] : memref<4x2x4x2x16x32xf32, #tpu.memory_space<vmem>>, vector<3x1x3x1x16x32xf32>
    %204 = vector.shape_cast %203 : vector<3x1x3x1x16x32xf32> to vector<3x3x16x32xf32>
    %205 = vector.shape_cast %204 : vector<3x3x16x32xf32> to vector<144x32xf32>
    %206 = arith.truncf %205 : vector<144x32xf32> to vector<144x32xbf16>
    %c14 = arith.constant 14 : index
    %c0_218 = arith.constant 0 : index
    %c0_219 = arith.constant 0 : index
    %207 = vector.load %arg4[%c14, %c0_218, %c0_219] : memref<16x32x64xbf16, #tpu.memory_space<vmem>>, vector<1x32x64xbf16>
    %208 = vector.shape_cast %207 : vector<1x32x64xbf16> to vector<32x64xbf16>
    %cst_220 = arith.constant dense<0.000000e+00> : vector<144x64xf32>
    %209 = tpu.matmul %206, %208, %cst_220 {dimension_numbers = #tpu.dot_dimension_numbers<[1], [0], [0], [1], [0, 0, 1, 1], [], []>} : vector<144x32xbf16>, vector<32x64xbf16>, vector<144x64xf32> -> vector<144x64xf32>
    %210 = arith.addf %202, %209 : vector<144x64xf32>
    %c1_221 = arith.constant 1 : index
    %c1_222 = arith.constant 1 : index
    %c1_223 = arith.constant 1 : index
    %c1_224 = arith.constant 1 : index
    %c0_225 = arith.constant 0 : index
    %c0_226 = arith.constant 0 : index
    %211 = vector.load %arg11[%c1_221, %c1_222, %c1_223, %c1_224, %c0_225, %c0_226] : memref<4x2x4x2x16x32xf32, #tpu.memory_space<vmem>>, vector<3x1x3x1x16x32xf32>
    %212 = vector.shape_cast %211 : vector<3x1x3x1x16x32xf32> to vector<3x3x16x32xf32>
    %213 = vector.shape_cast %212 : vector<3x3x16x32xf32> to vector<144x32xf32>
    %214 = arith.truncf %213 : vector<144x32xf32> to vector<144x32xbf16>
    %c15 = arith.constant 15 : index
    %c0_227 = arith.constant 0 : index
    %c0_228 = arith.constant 0 : index
    %215 = vector.load %arg4[%c15, %c0_227, %c0_228] : memref<16x32x64xbf16, #tpu.memory_space<vmem>>, vector<1x32x64xbf16>
    %216 = vector.shape_cast %215 : vector<1x32x64xbf16> to vector<32x64xbf16>
    %cst_229 = arith.constant dense<0.000000e+00> : vector<144x64xf32>
    %217 = tpu.matmul %214, %216, %cst_229 {dimension_numbers = #tpu.dot_dimension_numbers<[1], [0], [0], [1], [0, 0, 1, 1], [], []>} : vector<144x32xbf16>, vector<32x64xbf16>, vector<144x64xf32> -> vector<144x64xf32>
    %218 = arith.addf %210, %217 : vector<144x64xf32>
    %c0_230 = arith.constant 0 : index
    %c0_231 = arith.constant 0 : index
    %219 = vector.load %arg5[%c0_230, %c0_231] : memref<1x64xf32, #tpu.memory_space<vmem>>, vector<1x64xf32>
    %220 = vector.broadcast %219 : vector<1x64xf32> to vector<144x64xf32>
    %221 = arith.addf %218, %220 : vector<144x64xf32>
    %cst_232 = arith.constant 0.000000e+00 : f32
    %222 = vector.broadcast %cst_232 : f32 to vector<144x64xf32>
    %223 = arith.maximumf %221, %222 : vector<144x64xf32>
    %224 = vector.shape_cast %223 : vector<144x64xf32> to vector<3x3x16x64xf32>
    %cst_233 = arith.constant 0.000000e+00 : f32
    %225 = vector.broadcast %cst_233 : f32 to vector<16x64xf32>
    %226 = vector.extract_strided_slice %224 {offsets = [0, 0, 0, 0], sizes = [1, 1, 16, 64], strides = [1, 1, 1, 1]} : vector<3x3x16x64xf32> to vector<1x1x16x64xf32>
    %227 = vector.shape_cast %226 : vector<1x1x16x64xf32> to vector<16x64xf32>
    %228 = arith.truncf %227 : vector<16x64xf32> to vector<16x64xbf16>
    %c0_234 = arith.constant 0 : index
    %c0_235 = arith.constant 0 : index
    %c0_236 = arith.constant 0 : index
    %229 = vector.load %arg6[%c0_234, %c0_235, %c0_236] : memref<9x64x64xbf16, #tpu.memory_space<vmem>>, vector<1x64x64xbf16>
    %230 = vector.shape_cast %229 : vector<1x64x64xbf16> to vector<64x64xbf16>
    %cst_237 = arith.constant dense<0.000000e+00> : vector<16x64xf32>
    %231 = tpu.matmul %228, %230, %cst_237 {dimension_numbers = #tpu.dot_dimension_numbers<[1], [0], [0], [1], [0, 0, 1, 1], [], []>} : vector<16x64xbf16>, vector<64x64xbf16>, vector<16x64xf32> -> vector<16x64xf32>
    %232 = arith.addf %225, %231 : vector<16x64xf32>
    %233 = vector.extract_strided_slice %224 {offsets = [0, 1, 0, 0], sizes = [1, 1, 16, 64], strides = [1, 1, 1, 1]} : vector<3x3x16x64xf32> to vector<1x1x16x64xf32>
    %234 = vector.shape_cast %233 : vector<1x1x16x64xf32> to vector<16x64xf32>
    %235 = arith.truncf %234 : vector<16x64xf32> to vector<16x64xbf16>
    %c1_238 = arith.constant 1 : index
    %c0_239 = arith.constant 0 : index
    %c0_240 = arith.constant 0 : index
    %236 = vector.load %arg6[%c1_238, %c0_239, %c0_240] : memref<9x64x64xbf16, #tpu.memory_space<vmem>>, vector<1x64x64xbf16>
    %237 = vector.shape_cast %236 : vector<1x64x64xbf16> to vector<64x64xbf16>
    %cst_241 = arith.constant dense<0.000000e+00> : vector<16x64xf32>
    %238 = tpu.matmul %235, %237, %cst_241 {dimension_numbers = #tpu.dot_dimension_numbers<[1], [0], [0], [1], [0, 0, 1, 1], [], []>} : vector<16x64xbf16>, vector<64x64xbf16>, vector<16x64xf32> -> vector<16x64xf32>
    %239 = arith.addf %232, %238 : vector<16x64xf32>
    %240 = vector.extract_strided_slice %224 {offsets = [0, 2, 0, 0], sizes = [1, 1, 16, 64], strides = [1, 1, 1, 1]} : vector<3x3x16x64xf32> to vector<1x1x16x64xf32>
    %241 = vector.shape_cast %240 : vector<1x1x16x64xf32> to vector<16x64xf32>
    %242 = arith.truncf %241 : vector<16x64xf32> to vector<16x64xbf16>
    %c2_242 = arith.constant 2 : index
    %c0_243 = arith.constant 0 : index
    %c0_244 = arith.constant 0 : index
    %243 = vector.load %arg6[%c2_242, %c0_243, %c0_244] : memref<9x64x64xbf16, #tpu.memory_space<vmem>>, vector<1x64x64xbf16>
    %244 = vector.shape_cast %243 : vector<1x64x64xbf16> to vector<64x64xbf16>
    %cst_245 = arith.constant dense<0.000000e+00> : vector<16x64xf32>
    %245 = tpu.matmul %242, %244, %cst_245 {dimension_numbers = #tpu.dot_dimension_numbers<[1], [0], [0], [1], [0, 0, 1, 1], [], []>} : vector<16x64xbf16>, vector<64x64xbf16>, vector<16x64xf32> -> vector<16x64xf32>
    %246 = arith.addf %239, %245 : vector<16x64xf32>
    %247 = vector.extract_strided_slice %224 {offsets = [1, 0, 0, 0], sizes = [1, 1, 16, 64], strides = [1, 1, 1, 1]} : vector<3x3x16x64xf32> to vector<1x1x16x64xf32>
    %248 = vector.shape_cast %247 : vector<1x1x16x64xf32> to vector<16x64xf32>
    %249 = arith.truncf %248 : vector<16x64xf32> to vector<16x64xbf16>
    %c3_246 = arith.constant 3 : index
    %c0_247 = arith.constant 0 : index
    %c0_248 = arith.constant 0 : index
    %250 = vector.load %arg6[%c3_246, %c0_247, %c0_248] : memref<9x64x64xbf16, #tpu.memory_space<vmem>>, vector<1x64x64xbf16>
    %251 = vector.shape_cast %250 : vector<1x64x64xbf16> to vector<64x64xbf16>
    %cst_249 = arith.constant dense<0.000000e+00> : vector<16x64xf32>
    %252 = tpu.matmul %249, %251, %cst_249 {dimension_numbers = #tpu.dot_dimension_numbers<[1], [0], [0], [1], [0, 0, 1, 1], [], []>} : vector<16x64xbf16>, vector<64x64xbf16>, vector<16x64xf32> -> vector<16x64xf32>
    %253 = arith.addf %246, %252 : vector<16x64xf32>
    %254 = vector.extract_strided_slice %224 {offsets = [1, 1, 0, 0], sizes = [1, 1, 16, 64], strides = [1, 1, 1, 1]} : vector<3x3x16x64xf32> to vector<1x1x16x64xf32>
    %255 = vector.shape_cast %254 : vector<1x1x16x64xf32> to vector<16x64xf32>
    %256 = arith.truncf %255 : vector<16x64xf32> to vector<16x64xbf16>
    %c4_250 = arith.constant 4 : index
    %c0_251 = arith.constant 0 : index
    %c0_252 = arith.constant 0 : index
    %257 = vector.load %arg6[%c4_250, %c0_251, %c0_252] : memref<9x64x64xbf16, #tpu.memory_space<vmem>>, vector<1x64x64xbf16>
    %258 = vector.shape_cast %257 : vector<1x64x64xbf16> to vector<64x64xbf16>
    %cst_253 = arith.constant dense<0.000000e+00> : vector<16x64xf32>
    %259 = tpu.matmul %256, %258, %cst_253 {dimension_numbers = #tpu.dot_dimension_numbers<[1], [0], [0], [1], [0, 0, 1, 1], [], []>} : vector<16x64xbf16>, vector<64x64xbf16>, vector<16x64xf32> -> vector<16x64xf32>
    %260 = arith.addf %253, %259 : vector<16x64xf32>
    %261 = vector.extract_strided_slice %224 {offsets = [1, 2, 0, 0], sizes = [1, 1, 16, 64], strides = [1, 1, 1, 1]} : vector<3x3x16x64xf32> to vector<1x1x16x64xf32>
    %262 = vector.shape_cast %261 : vector<1x1x16x64xf32> to vector<16x64xf32>
    %263 = arith.truncf %262 : vector<16x64xf32> to vector<16x64xbf16>
    %c5_254 = arith.constant 5 : index
    %c0_255 = arith.constant 0 : index
    %c0_256 = arith.constant 0 : index
    %264 = vector.load %arg6[%c5_254, %c0_255, %c0_256] : memref<9x64x64xbf16, #tpu.memory_space<vmem>>, vector<1x64x64xbf16>
    %265 = vector.shape_cast %264 : vector<1x64x64xbf16> to vector<64x64xbf16>
    %cst_257 = arith.constant dense<0.000000e+00> : vector<16x64xf32>
    %266 = tpu.matmul %263, %265, %cst_257 {dimension_numbers = #tpu.dot_dimension_numbers<[1], [0], [0], [1], [0, 0, 1, 1], [], []>} : vector<16x64xbf16>, vector<64x64xbf16>, vector<16x64xf32> -> vector<16x64xf32>
    %267 = arith.addf %260, %266 : vector<16x64xf32>
    %268 = vector.extract_strided_slice %224 {offsets = [2, 0, 0, 0], sizes = [1, 1, 16, 64], strides = [1, 1, 1, 1]} : vector<3x3x16x64xf32> to vector<1x1x16x64xf32>
    %269 = vector.shape_cast %268 : vector<1x1x16x64xf32> to vector<16x64xf32>
    %270 = arith.truncf %269 : vector<16x64xf32> to vector<16x64xbf16>
    %c6_258 = arith.constant 6 : index
    %c0_259 = arith.constant 0 : index
    %c0_260 = arith.constant 0 : index
    %271 = vector.load %arg6[%c6_258, %c0_259, %c0_260] : memref<9x64x64xbf16, #tpu.memory_space<vmem>>, vector<1x64x64xbf16>
    %272 = vector.shape_cast %271 : vector<1x64x64xbf16> to vector<64x64xbf16>
    %cst_261 = arith.constant dense<0.000000e+00> : vector<16x64xf32>
    %273 = tpu.matmul %270, %272, %cst_261 {dimension_numbers = #tpu.dot_dimension_numbers<[1], [0], [0], [1], [0, 0, 1, 1], [], []>} : vector<16x64xbf16>, vector<64x64xbf16>, vector<16x64xf32> -> vector<16x64xf32>
    %274 = arith.addf %267, %273 : vector<16x64xf32>
    %275 = vector.extract_strided_slice %224 {offsets = [2, 1, 0, 0], sizes = [1, 1, 16, 64], strides = [1, 1, 1, 1]} : vector<3x3x16x64xf32> to vector<1x1x16x64xf32>
    %276 = vector.shape_cast %275 : vector<1x1x16x64xf32> to vector<16x64xf32>
    %277 = arith.truncf %276 : vector<16x64xf32> to vector<16x64xbf16>
    %c7_262 = arith.constant 7 : index
    %c0_263 = arith.constant 0 : index
    %c0_264 = arith.constant 0 : index
    %278 = vector.load %arg6[%c7_262, %c0_263, %c0_264] : memref<9x64x64xbf16, #tpu.memory_space<vmem>>, vector<1x64x64xbf16>
    %279 = vector.shape_cast %278 : vector<1x64x64xbf16> to vector<64x64xbf16>
    %cst_265 = arith.constant dense<0.000000e+00> : vector<16x64xf32>
    %280 = tpu.matmul %277, %279, %cst_265 {dimension_numbers = #tpu.dot_dimension_numbers<[1], [0], [0], [1], [0, 0, 1, 1], [], []>} : vector<16x64xbf16>, vector<64x64xbf16>, vector<16x64xf32> -> vector<16x64xf32>
    %281 = arith.addf %274, %280 : vector<16x64xf32>
    %282 = vector.extract_strided_slice %224 {offsets = [2, 2, 0, 0], sizes = [1, 1, 16, 64], strides = [1, 1, 1, 1]} : vector<3x3x16x64xf32> to vector<1x1x16x64xf32>
    %283 = vector.shape_cast %282 : vector<1x1x16x64xf32> to vector<16x64xf32>
    %284 = arith.truncf %283 : vector<16x64xf32> to vector<16x64xbf16>
    %c8_266 = arith.constant 8 : index
    %c0_267 = arith.constant 0 : index
    %c0_268 = arith.constant 0 : index
    %285 = vector.load %arg6[%c8_266, %c0_267, %c0_268] : memref<9x64x64xbf16, #tpu.memory_space<vmem>>, vector<1x64x64xbf16>
    %286 = vector.shape_cast %285 : vector<1x64x64xbf16> to vector<64x64xbf16>
    %cst_269 = arith.constant dense<0.000000e+00> : vector<16x64xf32>
    %287 = tpu.matmul %284, %286, %cst_269 {dimension_numbers = #tpu.dot_dimension_numbers<[1], [0], [0], [1], [0, 0, 1, 1], [], []>} : vector<16x64xbf16>, vector<64x64xbf16>, vector<16x64xf32> -> vector<16x64xf32>
    %288 = arith.addf %281, %287 : vector<16x64xf32>
    %c0_270 = arith.constant 0 : index
    %c0_271 = arith.constant 0 : index
    %289 = vector.load %arg7[%c0_270, %c0_271] : memref<1x64xf32, #tpu.memory_space<vmem>>, vector<1x64xf32>
    %290 = vector.broadcast %289 : vector<1x64xf32> to vector<16x64xf32>
    %291 = arith.addf %288, %290 : vector<16x64xf32>
    %cst_272 = arith.constant 0.000000e+00 : f32
    %292 = vector.broadcast %cst_272 : f32 to vector<16x64xf32>
    %293 = arith.maximumf %291, %292 : vector<16x64xf32>
    %294 = arith.truncf %293 : vector<16x64xf32> to vector<16x64xbf16>
    %c0_273 = arith.constant 0 : index
    %c0_274 = arith.constant 0 : index
    %295 = vector.load %arg8[%c0_273, %c0_274] : memref<64x512xbf16, #tpu.memory_space<vmem>>, vector<64x512xbf16>
    %cst_275 = arith.constant dense<0.000000e+00> : vector<16x512xf32>
    %296 = tpu.matmul %294, %295, %cst_275 {dimension_numbers = #tpu.dot_dimension_numbers<[1], [0], [0], [1], [0, 0, 1, 1], [], []>} : vector<16x64xbf16>, vector<64x512xbf16>, vector<16x512xf32> -> vector<16x512xf32>
    %c0_276 = arith.constant 0 : index
    %c0_277 = arith.constant 0 : index
    %297 = vector.load %arg9[%c0_276, %c0_277] : memref<1x512xf32, #tpu.memory_space<vmem>>, vector<1x512xf32>
    %298 = vector.broadcast %297 : vector<1x512xf32> to vector<16x512xf32>
    %299 = arith.addf %296, %298 : vector<16x512xf32>
    %cst_278 = arith.constant 0.000000e+00 : f32
    %300 = vector.broadcast %cst_278 : f32 to vector<16x512xf32>
    %301 = arith.maximumf %299, %300 : vector<16x512xf32>
    %c0_279 = arith.constant 0 : index
    %c0_280 = arith.constant 0 : index
    %302 = vector.load %arg10[%c0_279, %c0_280] : memref<16x512xf32, #tpu.memory_space<vmem>>, vector<16x512xf32>
    tpu.vector_store %arg10[%c0_279, %c0_280], %301 {strides = array<i32>} : memref<16x512xf32, #tpu.memory_space<vmem>>, vector<16x512xf32>,
    return
  }
  func.func @transform_0(%arg0: i32) -> (i32, i32, i32) {
    %c0_i32 = arith.constant 0 : i32
    %c0_i32_0 = arith.constant 0 : i32
    %c0_i32_1 = arith.constant 0 : i32
    return %c0_i32, %arg0, %c0_i32_0 : i32, i32, i32
  }
  func.func @transform_1(%arg0: i32) -> (i32, i32) {
    %c0_i32 = arith.constant 0 : i32
    %c0_i32_0 = arith.constant 0 : i32
    %c0_i32_1 = arith.constant 0 : i32
    return %c0_i32, %c0_i32_0 : i32, i32
  }
  func.func @transform_2(%arg0: i32) -> (i32, i32) {
    %c0_i32 = arith.constant 0 : i32
    %c0_i32_0 = arith.constant 0 : i32
    %c0_i32_1 = arith.constant 0 : i32
    return %c0_i32, %c0_i32_0 : i32, i32
  }
  func.func @transform_3(%arg0: i32) -> (i32, i32, i32) {
    %c0_i32 = arith.constant 0 : i32
    %c0_i32_0 = arith.constant 0 : i32
    %c0_i32_1 = arith.constant 0 : i32
    %c0_i32_2 = arith.constant 0 : i32
    return %c0_i32, %c0_i32_0, %c0_i32_1 : i32, i32, i32
  }
  func.func @transform_4(%arg0: i32) -> (i32, i32) {
    %c0_i32 = arith.constant 0 : i32
    %c0_i32_0 = arith.constant 0 : i32
    %c0_i32_1 = arith.constant 0 : i32
    return %c0_i32, %c0_i32_0 : i32, i32
  }
  func.func @transform_5(%arg0: i32) -> (i32, i32, i32) {
    %c0_i32 = arith.constant 0 : i32
    %c0_i32_0 = arith.constant 0 : i32
    %c0_i32_1 = arith.constant 0 : i32
    %c0_i32_2 = arith.constant 0 : i32
    return %c0_i32, %c0_i32_0, %c0_i32_1 : i32, i32, i32
  }
  func.func @transform_6(%arg0: i32) -> (i32, i32) {
    %c0_i32 = arith.constant 0 : i32
    %c0_i32_0 = arith.constant 0 : i32
    %c0_i32_1 = arith.constant 0 : i32
    return %c0_i32, %c0_i32_0 : i32, i32
  }
  func.func @transform_7(%arg0: i32) -> (i32, i32) {
    %c0_i32 = arith.constant 0 : i32
    %c0_i32_0 = arith.constant 0 : i32
    %c0_i32_1 = arith.constant 0 : i32
    return %c0_i32, %c0_i32_0 : i32, i32
  }
  func.func @transform_8(%arg0: i32) -> (i32, i32) {
    %c0_i32 = arith.constant 0 : i32
    %c0_i32_0 = arith.constant 0 : i32
    %c0_i32_1 = arith.constant 0 : i32
    return %c0_i32, %c0_i32_0 : i32, i32
  }
  func.func @transform_9(%arg0: i32) -> (i32, i32) {
    %c0_i32 = arith.constant 0 : i32
    %c0_i32_0 = arith.constant 0 : i32
    return %arg0, %c0_i32 : i32, i32
  }
}

</mosaic_0001>

<bundles_post_ra>
// kernel: pixel_encoder_forward.1
= control target key start
LH: loop header
LB: loop body
LE: loop exit
PB: predicated region body
PF: predicated region fallthrough
CT: control target
= control target key end

     0   :  { %14 = vsyncpa [#allocation5], 0  ;;  %s12005_s0 = inlined_call_operand.vmem [shape: bf16[64,32,256], index: 0, kind: input, shape index: {}]   ;;  %s12006_s1 = inlined_call_operand.vmem [shape: bf16[256,32], index: 1, kind: input, shape index: {}]   ;;  %s12007_s2 = inlined_call_operand.vmem [shape: f32[1,32], index: 2, kind: input, shape index: {}]   ;;  %s12008_s3 = inlined_call_operand.vmem [shape: bf16[16,32,64], index: 3, kind: input, shape index: {}]   ;;  %s12009_s4 = inlined_call_operand.vmem [shape: f32[1,64], index: 4, kind: input, shape index: {}]   ;;  %s12010_s5 = inlined_call_operand.vmem [shape: bf16[9,64,64], index: 5, kind: input, shape index: {}]   ;;  %s12011_s6 = inlined_call_operand.vmem [shape: f32[1,64], index: 6, kind: input, shape index: {}]   ;;  %s12012_s7 = inlined_call_operand.vmem [shape: bf16[64,512], index: 7, kind: input, shape index: {}]   ;;  %s12013_s8 = inlined_call_operand.vmem [shape: f32[1,512], index: 8, kind: input, shape index: {}]   ;;  %s12014_s9 = inlined_call_operand.hbm [shape: f32[32,512], index: 9, kind: output, shape index: {}]  }
   0x1   :  { %16 = vsyncpa [#allocation5 + $0x1], 0  ;;  %s9592_s30 = smov 0   ;;  %s9594_s10 = smov 0  }
   0x2   :  { %s9596_s11 = smov 0   ;;  %s9598_s12 = smov 0  }
   0x3 LB: > { %s6983_s13 = sadd.s32 4294967295, %s9534_s12   ;;  %s6984_s14 = sadd.s32 4294967294, %s9534_s12   ;;  %s9534_s12 = sphi %s9598_s12, %s12020_s12   ;;  %s9530_s11 = sphi %s9596_s11, %s12019_s11   ;;  %s9526_s10 = sphi %s9594_s10, %s12018_s10   ;;  %s9522_s30 = sphi %s9592_s30, %s12017_s30  }
   0x4   : > { %s9615_s15 = sadd.s32 1, %s9534_s12   ;;  %s29_s16 = sadd.s32 1, %s9530_s11 }
   0x5   : > { %s26_s17 = ssub.s32 %s9534_s12, %s9615_s15  ;;  %p36_p0 = scmp.ne.s32.totalorder %s9530_s11, %s9526_s10 }
   0x6   : > { %p27_p1 = scmp.eq.s32.totalorder %s26_s17, 0  ;;  %p37_p2 = scmp.eq.s32.totalorder %s9534_s12, 0 }
   0x7   : > { %p234_p3 = scmp.eq.s32.totalorder %s6983_s13, 1  ;;  %p239_p4 = scmp.ne.s32.totalorder %s9526_s10, %s9522_s30 }
   0x8   : > { %s9628_s18 = scalar_select %p27_p1, %s9530_s11, %s29_s16  }
   0x9   : > { %p38_p5 = por %p37_p2, %p36_p0  ;;  %p9630_p6 = por %p234_p3, %p36_p0 }
   0xa   : > { %p240_p7 = scmp.eq.s32.totalorder %s6984_s14, 1  ;;  %p6986_p9 = scmp.ge.s32.totalorder %s9534_s12, 2 }
   0xc   : > { %p9634_p8 = por %p240_p7, %p239_p4  ;;  %280 = sbr.rel (%p6986_p9) target bundleno = 87 (0x57), region = 48 }
  0x13   : > { %283 = sbr.rel (!%p38_p5) target bundleno = 87 (0x57), region = 52  ;;  %s285_s21 = sand.u32 (%p38_p5), 1, %s9530_s11  }
  0x14   : > { %s7623_s22 = sshll.u32 (%p38_p5), %s9534_s12, 4  ;;  %s6987_s23 = sshll.u32 (%p38_p5), %s285_s21, 10 }
  0x15   : > { %s9646_s26 = scalar_lea.vmem (%p38_p5), %s12005_s0, %s7623_s22  ;;  %s9651_s27 = scalar_lea.vmem (%p38_p5), [#allocation3], %s6987_s23 }
  0x16   : > { %v573_v0 = vld [vmem:[%s9646_s26] sm:$0xff] (%p38_p5)  ;;  %v575_v1 = vld [vmem:[%s9646_s26 + $0x8] sm:$0xff] (%p38_p5) }
  0x17   : > { %v577_v2 = vld [vmem:[%s9646_s26 + $0x20] sm:$0xff] (%p38_p5)  ;;  %574 = vst [vmem:[%s9651_s27] sm:$0xff] (%p38_p5), %v573_v0  ;;  %576 = vst [vmem:[%s9651_s27 + $0x8] sm:$0xff] (%p38_p5), %v575_v1  ;;  %v579_v3 = vld [vmem:[%s9646_s26 + $0x28] sm:$0xff] (%p38_p5) }
  0x18   : > { %578 = vst [vmem:[%s9651_s27 + $0x10] sm:$0xff] (%p38_p5), %v577_v2  ;;  %v581_v4 = vld [vmem:[%s9646_s26 + $0x40] sm:$0xff] (%p38_p5)  ;;  %v583_v5 = vld [vmem:[%s9646_s26 + $0x48] sm:$0xff] (%p38_p5)  ;;  %580 = vst [vmem:[%s9651_s27 + $0x18] sm:$0xff] (%p38_p5), %v579_v3 }
  0x19   : > { %582 = vst [vmem:[%s9651_s27 + $0x20] sm:$0xff] (%p38_p5), %v581_v4  ;;  %584 = vst [vmem:[%s9651_s27 + $0x28] sm:$0xff] (%p38_p5), %v583_v5  ;;  %v585_v6 = vld [vmem:[%s9646_s26 + $0x60] sm:$0xff] (%p38_p5)  ;;  %v587_v7 = vld [vmem:[%s9646_s26 + $0x68] sm:$0xff] (%p38_p5) }
  0x1a   : > { %v589_v8 = vld [vmem:[%s9646_s26 + $0x80] sm:$0xff]  ;;  %586 = vst [vmem:[%s9651_s27 + $0x30] sm:$0xff] %v585_v6  ;;  %588 = vst [vmem:[%s9651_s27 + $0x38] sm:$0xff] %v587_v7  ;;  %v591_v9 = vld [vmem:[%s9646_s26 + $0x88] sm:$0xff] }
  0x1b   : > { %590 = vst [vmem:[%s9651_s27 + $0x40] sm:$0xff] %v589_v8  ;;  %v593_v10 = vld [vmem:[%s9646_s26 + $0xa0] sm:$0xff]  ;;  %v595_v11 = vld [vmem:[%s9646_s26 + $0xa8] sm:$0xff]  ;;  %592 = vst [vmem:[%s9651_s27 + $0x48] sm:$0xff] %v591_v9 }
  0x1c   : > { %594 = vst [vmem:[%s9651_s27 + $0x50] sm:$0xff] %v593_v10  ;;  %596 = vst [vmem:[%s9651_s27 + $0x58] sm:$0xff] %v595_v11  ;;  %v597_v12 = vld [vmem:[%s9646_s26 + $0xc0] sm:$0xff]  ;;  %v599_v13 = vld [vmem:[%s9646_s26 + $0xc8] sm:$0xff] }
  0x1d   : > { %v601_v14 = vld [vmem:[%s9646_s26 + $0xe0] sm:$0xff]  ;;  %598 = vst [vmem:[%s9651_s27 + $0x60] sm:$0xff] %v597_v12  ;;  %600 = vst [vmem:[%s9651_s27 + $0x68] sm:$0xff] %v599_v13  ;;  %v603_v15 = vld [vmem:[%s9646_s26 + $0xe8] sm:$0xff] }
  0x1e   : > { %602 = vst [vmem:[%s9651_s27 + $0x70] sm:$0xff] %v601_v14  ;;  %v605_v16 = vld [vmem:[%s9646_s26 + $0x100] sm:$0xff]  ;;  %v607_v17 = vld [vmem:[%s9646_s26 + $0x108] sm:$0xff]  ;;  %604 = vst [vmem:[%s9651_s27 + $0x78] sm:$0xff] %v603_v15 }
  0x1f   : > { %606 = vst [vmem:[%s9651_s27 + $0x80] sm:$0xff] %v605_v16  ;;  %608 = vst [vmem:[%s9651_s27 + $0x88] sm:$0xff] %v607_v17  ;;  %v609_v18 = vld [vmem:[%s9646_s26 + $0x120] sm:$0xff]  ;;  %v611_v19 = vld [vmem:[%s9646_s26 + $0x128] sm:$0xff] }
  0x20   : > { %v613_v20 = vld [vmem:[%s9646_s26 + $0x140] sm:$0xff]  ;;  %610 = vst [vmem:[%s9651_s27 + $0x90] sm:$0xff] %v609_v18  ;;  %612 = vst [vmem:[%s9651_s27 + $0x98] sm:$0xff] %v611_v19  ;;  %v615_v21 = vld [vmem:[%s9646_s26 + $0x148] sm:$0xff] }
  0x21   : > { %614 = vst [vmem:[%s9651_s27 + $0xa0] sm:$0xff] %v613_v20  ;;  %v617_v22 = vld [vmem:[%s9646_s26 + $0x160] sm:$0xff]  ;;  %v619_v23 = vld [vmem:[%s9646_s26 + $0x168] sm:$0xff]  ;;  %616 = vst [vmem:[%s9651_s27 + $0xa8] sm:$0xff] %v615_v21 }
  0x22   : > { %618 = vst [vmem:[%s9651_s27 + $0xb0] sm:$0xff] %v617_v22  ;;  %620 = vst [vmem:[%s9651_s27 + $0xb8] sm:$0xff] %v619_v23  ;;  %v621_v24 = vld [vmem:[%s9646_s26 + $0x180] sm:$0xff]  ;;  %v623_v25 = vld [vmem:[%s9646_s26 + $0x188] sm:$0xff] }
  0x23   : > { %v625_v26 = vld [vmem:[%s9646_s26 + $0x1a0] sm:$0xff]  ;;  %622 = vst [vmem:[%s9651_s27 + $0xc0] sm:$0xff] %v621_v24  ;;  %624 = vst [vmem:[%s9651_s27 + $0xc8] sm:$0xff] %v623_v25  ;;  %v627_v27 = vld [vmem:[%s9646_s26 + $0x1a8] sm:$0xff] }
  0x24   : > { %626 = vst [vmem:[%s9651_s27 + $0xd0] sm:$0xff] %v625_v26  ;;  %v629_v28 = vld [vmem:[%s9646_s26 + $0x1c0] sm:$0xff]  ;;  %v631_v29 = vld [vmem:[%s9646_s26 + $0x1c8] sm:$0xff]  ;;  %628 = vst [vmem:[%s9651_s27 + $0xd8] sm:$0xff] %v627_v27 }
  0x25   : > { %630 = vst [vmem:[%s9651_s27 + $0xe0] sm:$0xff] %v629_v28  ;;  %632 = vst [vmem:[%s9651_s27 + $0xe8] sm:$0xff] %v631_v29  ;;  %v633_v30 = vld [vmem:[%s9646_s26 + $0x1e0] sm:$0xff]  ;;  %v635_v31 = vld [vmem:[%s9646_s26 + $0x1e8] sm:$0xff] }
  0x26   : > { %v637_v32 = vld [vmem:[%s9646_s26 + $0x200] sm:$0xff]  ;;  %634 = vst [vmem:[%s9651_s27 + $0xf0] sm:$0xff] %v633_v30  ;;  %636 = vst [vmem:[%s9651_s27 + $0xf8] sm:$0xff] %v635_v31  ;;  %v639_v33 = vld [vmem:[%s9646_s26 + $0x208] sm:$0xff] }
  0x27   : > { %638 = vst [vmem:[%s9651_s27 + $0x100] sm:$0xff] %v637_v32  ;;  %v641_v34 = vld [vmem:[%s9646_s26 + $0x220] sm:$0xff]  ;;  %v643_v35 = vld [vmem:[%s9646_s26 + $0x228] sm:$0xff]  ;;  %640 = vst [vmem:[%s9651_s27 + $0x108] sm:$0xff] %v639_v33 }
  0x28   : > { %642 = vst [vmem:[%s9651_s27 + $0x110] sm:$0xff] %v641_v34  ;;  %644 = vst [vmem:[%s9651_s27 + $0x118] sm:$0xff] %v643_v35  ;;  %v645_v36 = vld [vmem:[%s9646_s26 + $0x240] sm:$0xff]  ;;  %v647_v37 = vld [vmem:[%s9646_s26 + $0x248] sm:$0xff] }
  0x29   : > { %v649_v38 = vld [vmem:[%s9646_s26 + $0x260] sm:$0xff]  ;;  %646 = vst [vmem:[%s9651_s27 + $0x120] sm:$0xff] %v645_v36  ;;  %648 = vst [vmem:[%s9651_s27 + $0x128] sm:$0xff] %v647_v37  ;;  %v651_v39 = vld [vmem:[%s9646_s26 + $0x268] sm:$0xff] }
  0x2a   : > { %650 = vst [vmem:[%s9651_s27 + $0x130] sm:$0xff] %v649_v38  ;;  %v653_v40 = vld [vmem:[%s9646_s26 + $0x280] sm:$0xff]  ;;  %v655_v41 = vld [vmem:[%s9646_s26 + $0x288] sm:$0xff]  ;;  %652 = vst [vmem:[%s9651_s27 + $0x138] sm:$0xff] %v651_v39 }
  0x2b   : > { %654 = vst [vmem:[%s9651_s27 + $0x140] sm:$0xff] %v653_v40  ;;  %656 = vst [vmem:[%s9651_s27 + $0x148] sm:$0xff] %v655_v41  ;;  %v657_v42 = vld [vmem:[%s9646_s26 + $0x2a0] sm:$0xff]  ;;  %v659_v43 = vld [vmem:[%s9646_s26 + $0x2a8] sm:$0xff] }
  0x2c   : > { %v661_v44 = vld [vmem:[%s9646_s26 + $0x2c0] sm:$0xff]  ;;  %658 = vst [vmem:[%s9651_s27 + $0x150] sm:$0xff] %v657_v42  ;;  %660 = vst [vmem:[%s9651_s27 + $0x158] sm:$0xff] %v659_v43  ;;  %v663_v45 = vld [vmem:[%s9646_s26 + $0x2c8] sm:$0xff] }
  0x2d   : > { %662 = vst [vmem:[%s9651_s27 + $0x160] sm:$0xff] %v661_v44  ;;  %v665_v46 = vld [vmem:[%s9646_s26 + $0x2e0] sm:$0xff]  ;;  %v667_v47 = vld [vmem:[%s9646_s26 + $0x2e8] sm:$0xff]  ;;  %664 = vst [vmem:[%s9651_s27 + $0x168] sm:$0xff] %v663_v45 }
  0x2e   : > { %666 = vst [vmem:[%s9651_s27 + $0x170] sm:$0xff] %v665_v46  ;;  %668 = vst [vmem:[%s9651_s27 + $0x178] sm:$0xff] %v667_v47  ;;  %v669_v48 = vld [vmem:[%s9646_s26 + $0x300] sm:$0xff]  ;;  %v671_v49 = vld [vmem:[%s9646_s26 + $0x308] sm:$0xff] }
  0x2f   : > { %v673_v50 = vld [vmem:[%s9646_s26 + $0x320] sm:$0xff]  ;;  %670 = vst [vmem:[%s9651_s27 + $0x180] sm:$0xff] %v669_v48  ;;  %672 = vst [vmem:[%s9651_s27 + $0x188] sm:$0xff] %v671_v49  ;;  %v675_v51 = vld [vmem:[%s9646_s26 + $0x328] sm:$0xff] }
  0x30   : > { %674 = vst [vmem:[%s9651_s27 + $0x190] sm:$0xff] %v673_v50  ;;  %v677_v52 = vld [vmem:[%s9646_s26 + $0x340] sm:$0xff]  ;;  %v679_v53 = vld [vmem:[%s9646_s26 + $0x348] sm:$0xff]  ;;  %676 = vst [vmem:[%s9651_s27 + $0x198] sm:$0xff] %v675_v51 }
  0x31   : > { %678 = vst [vmem:[%s9651_s27 + $0x1a0] sm:$0xff] %v677_v52  ;;  %680 = vst [vmem:[%s9651_s27 + $0x1a8] sm:$0xff] %v679_v53  ;;  %v681_v54 = vld [vmem:[%s9646_s26 + $0x360] sm:$0xff]  ;;  %v683_v55 = vld [vmem:[%s9646_s26 + $0x368] sm:$0xff] }
  0x32   : > { %v685_v56 = vld [vmem:[%s9646_s26 + $0x380] sm:$0xff]  ;;  %682 = vst [vmem:[%s9651_s27 + $0x1b0] sm:$0xff] %v681_v54  ;;  %684 = vst [vmem:[%s9651_s27 + $0x1b8] sm:$0xff] %v683_v55  ;;  %v687_v57 = vld [vmem:[%s9646_s26 + $0x388] sm:$0xff] }
  0x33   : > { %686 = vst [vmem:[%s9651_s27 + $0x1c0] sm:$0xff] %v685_v56  ;;  %v689_v58 = vld [vmem:[%s9646_s26 + $0x3a0] sm:$0xff]  ;;  %v691_v59 = vld [vmem:[%s9646_s26 + $0x3a8] sm:$0xff]  ;;  %688 = vst [vmem:[%s9651_s27 + $0x1c8] sm:$0xff] %v687_v57 }
  0x34   : > { %690 = vst [vmem:[%s9651_s27 + $0x1d0] sm:$0xff] %v689_v58  ;;  %692 = vst [vmem:[%s9651_s27 + $0x1d8] sm:$0xff] %v691_v59  ;;  %v693_v60 = vld [vmem:[%s9646_s26 + $0x3c0] sm:$0xff]  ;;  %v695_v61 = vld [vmem:[%s9646_s26 + $0x3c8] sm:$0xff] }
  0x35   : > { %v697_v62 = vld [vmem:[%s9646_s26 + $0x3e0] sm:$0xff]  ;;  %694 = vst [vmem:[%s9651_s27 + $0x1e0] sm:$0xff] %v693_v60  ;;  %696 = vst [vmem:[%s9651_s27 + $0x1e8] sm:$0xff] %v695_v61  ;;  %v699_v63 = vld [vmem:[%s9646_s26 + $0x3e8] sm:$0xff] }
  0x36   : > { %698 = vst [vmem:[%s9651_s27 + $0x1f0] sm:$0xff] %v697_v62  ;;  %v701_v0 = vld [vmem:[%s9646_s26 + $0x400] sm:$0xff]  ;;  %v703_v1 = vld [vmem:[%s9646_s26 + $0x408] sm:$0xff]  ;;  %700 = vst [vmem:[%s9651_s27 + $0x1f8] sm:$0xff] %v699_v63 }
  0x37   : > { %702 = vst [vmem:[%s9651_s27 + $0x200] sm:$0xff] %v701_v0  ;;  %704 = vst [vmem:[%s9651_s27 + $0x208] sm:$0xff] %v703_v1  ;;  %v705_v2 = vld [vmem:[%s9646_s26 + $0x420] sm:$0xff]  ;;  %v707_v3 = vld [vmem:[%s9646_s26 + $0x428] sm:$0xff] }
  0x38   : > { %v709_v4 = vld [vmem:[%s9646_s26 + $0x440] sm:$0xff]  ;;  %706 = vst [vmem:[%s9651_s27 + $0x210] sm:$0xff] %v705_v2  ;;  %708 = vst [vmem:[%s9651_s27 + $0x218] sm:$0xff] %v707_v3  ;;  %v711_v5 = vld [vmem:[%s9646_s26 + $0x448] sm:$0xff] }
  0x39   : > { %710 = vst [vmem:[%s9651_s27 + $0x220] sm:$0xff] %v709_v4  ;;  %v713_v6 = vld [vmem:[%s9646_s26 + $0x460] sm:$0xff]  ;;  %v715_v7 = vld [vmem:[%s9646_s26 + $0x468] sm:$0xff]  ;;  %712 = vst [vmem:[%s9651_s27 + $0x228] sm:$0xff] %v711_v5 }
  0x3a   : > { %714 = vst [vmem:[%s9651_s27 + $0x230] sm:$0xff] %v713_v6  ;;  %716 = vst [vmem:[%s9651_s27 + $0x238] sm:$0xff] %v715_v7  ;;  %v717_v8 = vld [vmem:[%s9646_s26 + $0x480] sm:$0xff]  ;;  %v719_v9 = vld [vmem:[%s9646_s26 + $0x488] sm:$0xff] }
  0x3b   : > { %v721_v10 = vld [vmem:[%s9646_s26 + $0x4a0] sm:$0xff]  ;;  %718 = vst [vmem:[%s9651_s27 + $0x240] sm:$0xff] %v717_v8  ;;  %720 = vst [vmem:[%s9651_s27 + $0x248] sm:$0xff] %v719_v9  ;;  %v723_v11 = vld [vmem:[%s9646_s26 + $0x4a8] sm:$0xff] }
  0x3c   : > { %722 = vst [vmem:[%s9651_s27 + $0x250] sm:$0xff] %v721_v10  ;;  %v725_v12 = vld [vmem:[%s9646_s26 + $0x4c0] sm:$0xff]  ;;  %v727_v13 = vld [vmem:[%s9646_s26 + $0x4c8] sm:$0xff]  ;;  %724 = vst [vmem:[%s9651_s27 + $0x258] sm:$0xff] %v723_v11 }
  0x3d   : > { %726 = vst [vmem:[%s9651_s27 + $0x260] sm:$0xff] %v725_v12  ;;  %728 = vst [vmem:[%s9651_s27 + $0x268] sm:$0xff] %v727_v13  ;;  %v729_v14 = vld [vmem:[%s9646_s26 + $0x4e0] sm:$0xff]  ;;  %v731_v15 = vld [vmem:[%s9646_s26 + $0x4e8] sm:$0xff] }
  0x3e   : > { %v733_v16 = vld [vmem:[%s9646_s26 + $0x500] sm:$0xff]  ;;  %730 = vst [vmem:[%s9651_s27 + $0x270] sm:$0xff] %v729_v14  ;;  %732 = vst [vmem:[%s9651_s27 + $0x278] sm:$0xff] %v731_v15  ;;  %v735_v17 = vld [vmem:[%s9646_s26 + $0x508] sm:$0xff] }
  0x3f   : > { %734 = vst [vmem:[%s9651_s27 + $0x280] sm:$0xff] %v733_v16  ;;  %v737_v18 = vld [vmem:[%s9646_s26 + $0x520] sm:$0xff]  ;;  %v739_v19 = vld [vmem:[%s9646_s26 + $0x528] sm:$0xff]  ;;  %736 = vst [vmem:[%s9651_s27 + $0x288] sm:$0xff] %v735_v17 }
  0x40   : > { %738 = vst [vmem:[%s9651_s27 + $0x290] sm:$0xff] %v737_v18  ;;  %740 = vst [vmem:[%s9651_s27 + $0x298] sm:$0xff] %v739_v19  ;;  %v741_v20 = vld [vmem:[%s9646_s26 + $0x540] sm:$0xff]  ;;  %v743_v21 = vld [vmem:[%s9646_s26 + $0x548] sm:$0xff] }
  0x41   : > { %v745_v22 = vld [vmem:[%s9646_s26 + $0x560] sm:$0xff]  ;;  %742 = vst [vmem:[%s9651_s27 + $0x2a0] sm:$0xff] %v741_v20  ;;  %744 = vst [vmem:[%s9651_s27 + $0x2a8] sm:$0xff] %v743_v21  ;;  %v747_v23 = vld [vmem:[%s9646_s26 + $0x568] sm:$0xff] }
  0x42   : > { %746 = vst [vmem:[%s9651_s27 + $0x2b0] sm:$0xff] %v745_v22  ;;  %v749_v24 = vld [vmem:[%s9646_s26 + $0x580] sm:$0xff]  ;;  %v751_v25 = vld [vmem:[%s9646_s26 + $0x588] sm:$0xff]  ;;  %748 = vst [vmem:[%s9651_s27 + $0x2b8] sm:$0xff] %v747_v23 }
  0x43   : > { %750 = vst [vmem:[%s9651_s27 + $0x2c0] sm:$0xff] %v749_v24  ;;  %752 = vst [vmem:[%s9651_s27 + $0x2c8] sm:$0xff] %v751_v25  ;;  %v753_v26 = vld [vmem:[%s9646_s26 + $0x5a0] sm:$0xff]  ;;  %v755_v27 = vld [vmem:[%s9646_s26 + $0x5a8] sm:$0xff] }
  0x44   : > { %v757_v28 = vld [vmem:[%s9646_s26 + $0x5c0] sm:$0xff]  ;;  %754 = vst [vmem:[%s9651_s27 + $0x2d0] sm:$0xff] %v753_v26  ;;  %756 = vst [vmem:[%s9651_s27 + $0x2d8] sm:$0xff] %v755_v27  ;;  %v759_v29 = vld [vmem:[%s9646_s26 + $0x5c8] sm:$0xff] }
  0x45   : > { %758 = vst [vmem:[%s9651_s27 + $0x2e0] sm:$0xff] %v757_v28  ;;  %v761_v30 = vld [vmem:[%s9646_s26 + $0x5e0] sm:$0xff]  ;;  %v763_v31 = vld [vmem:[%s9646_s26 + $0x5e8] sm:$0xff]  ;;  %760 = vst [vmem:[%s9651_s27 + $0x2e8] sm:$0xff] %v759_v29 }
  0x46   : > { %762 = vst [vmem:[%s9651_s27 + $0x2f0] sm:$0xff] %v761_v30  ;;  %764 = vst [vmem:[%s9651_s27 + $0x2f8] sm:$0xff] %v763_v31  ;;  %v765_v32 = vld [vmem:[%s9646_s26 + $0x600] sm:$0xff]  ;;  %v767_v33 = vld [vmem:[%s9646_s26 + $0x608] sm:$0xff] }
  0x47   : > { %v769_v34 = vld [vmem:[%s9646_s26 + $0x620] sm:$0xff]  ;;  %766 = vst [vmem:[%s9651_s27 + $0x300] sm:$0xff] %v765_v32  ;;  %768 = vst [vmem:[%s9651_s27 + $0x308] sm:$0xff] %v767_v33  ;;  %v771_v35 = vld [vmem:[%s9646_s26 + $0x628] sm:$0xff] }
  0x48   : > { %770 = vst [vmem:[%s9651_s27 + $0x310] sm:$0xff] %v769_v34  ;;  %v773_v36 = vld [vmem:[%s9646_s26 + $0x640] sm:$0xff]  ;;  %v775_v37 = vld [vmem:[%s9646_s26 + $0x648] sm:$0xff]  ;;  %772 = vst [vmem:[%s9651_s27 + $0x318] sm:$0xff] %v771_v35 }
  0x49   : > { %774 = vst [vmem:[%s9651_s27 + $0x320] sm:$0xff] %v773_v36  ;;  %776 = vst [vmem:[%s9651_s27 + $0x328] sm:$0xff] %v775_v37  ;;  %v777_v38 = vld [vmem:[%s9646_s26 + $0x660] sm:$0xff]  ;;  %v779_v39 = vld [vmem:[%s9646_s26 + $0x668] sm:$0xff] }
  0x4a   : > { %v781_v40 = vld [vmem:[%s9646_s26 + $0x680] sm:$0xff]  ;;  %778 = vst [vmem:[%s9651_s27 + $0x330] sm:$0xff] %v777_v38  ;;  %780 = vst [vmem:[%s9651_s27 + $0x338] sm:$0xff] %v779_v39  ;;  %v783_v41 = vld [vmem:[%s9646_s26 + $0x688] sm:$0xff] }
  0x4b   : > { %782 = vst [vmem:[%s9651_s27 + $0x340] sm:$0xff] %v781_v40  ;;  %v785_v42 = vld [vmem:[%s9646_s26 + $0x6a0] sm:$0xff]  ;;  %v787_v43 = vld [vmem:[%s9646_s26 + $0x6a8] sm:$0xff]  ;;  %784 = vst [vmem:[%s9651_s27 + $0x348] sm:$0xff] %v783_v41 }
  0x4c   : > { %786 = vst [vmem:[%s9651_s27 + $0x350] sm:$0xff] %v785_v42  ;;  %788 = vst [vmem:[%s9651_s27 + $0x358] sm:$0xff] %v787_v43  ;;  %v789_v44 = vld [vmem:[%s9646_s26 + $0x6c0] sm:$0xff]  ;;  %v791_v45 = vld [vmem:[%s9646_s26 + $0x6c8] sm:$0xff] }
  0x4d   : > { %v793_v46 = vld [vmem:[%s9646_s26 + $0x6e0] sm:$0xff]  ;;  %790 = vst [vmem:[%s9651_s27 + $0x360] sm:$0xff] %v789_v44  ;;  %792 = vst [vmem:[%s9651_s27 + $0x368] sm:$0xff] %v791_v45  ;;  %v795_v47 = vld [vmem:[%s9646_s26 + $0x6e8] sm:$0xff] }
  0x4e   : > { %794 = vst [vmem:[%s9651_s27 + $0x370] sm:$0xff] %v793_v46  ;;  %v797_v48 = vld [vmem:[%s9646_s26 + $0x700] sm:$0xff]  ;;  %v799_v49 = vld [vmem:[%s9646_s26 + $0x708] sm:$0xff]  ;;  %796 = vst [vmem:[%s9651_s27 + $0x378] sm:$0xff] %v795_v47 }
  0x4f   : > { %798 = vst [vmem:[%s9651_s27 + $0x380] sm:$0xff] %v797_v48  ;;  %800 = vst [vmem:[%s9651_s27 + $0x388] sm:$0xff] %v799_v49  ;;  %v801_v50 = vld [vmem:[%s9646_s26 + $0x720] sm:$0xff]  ;;  %v803_v51 = vld [vmem:[%s9646_s26 + $0x728] sm:$0xff] }
  0x50   : > { %v805_v52 = vld [vmem:[%s9646_s26 + $0x740] sm:$0xff]  ;;  %802 = vst [vmem:[%s9651_s27 + $0x390] sm:$0xff] %v801_v50  ;;  %804 = vst [vmem:[%s9651_s27 + $0x398] sm:$0xff] %v803_v51  ;;  %v807_v53 = vld [vmem:[%s9646_s26 + $0x748] sm:$0xff] }
  0x51   : > { %806 = vst [vmem:[%s9651_s27 + $0x3a0] sm:$0xff] %v805_v52  ;;  %v809_v54 = vld [vmem:[%s9646_s26 + $0x760] sm:$0xff]  ;;  %v811_v55 = vld [vmem:[%s9646_s26 + $0x768] sm:$0xff]  ;;  %808 = vst [vmem:[%s9651_s27 + $0x3a8] sm:$0xff] %v807_v53 }
  0x52   : > { %810 = vst [vmem:[%s9651_s27 + $0x3b0] sm:$0xff] %v809_v54  ;;  %812 = vst [vmem:[%s9651_s27 + $0x3b8] sm:$0xff] %v811_v55  ;;  %v813_v56 = vld [vmem:[%s9646_s26 + $0x780] sm:$0xff]  ;;  %v815_v57 = vld [vmem:[%s9646_s26 + $0x788] sm:$0xff] }
  0x53   : > { %v817_v58 = vld [vmem:[%s9646_s26 + $0x7a0] sm:$0xff]  ;;  %814 = vst [vmem:[%s9651_s27 + $0x3c0] sm:$0xff] %v813_v56  ;;  %816 = vst [vmem:[%s9651_s27 + $0x3c8] sm:$0xff] %v815_v57  ;;  %v819_v59 = vld [vmem:[%s9646_s26 + $0x7a8] sm:$0xff] }
  0x54   : > { %818 = vst [vmem:[%s9651_s27 + $0x3d0] sm:$0xff] %v817_v58  ;;  %v821_v60 = vld [vmem:[%s9646_s26 + $0x7c0] sm:$0xff]  ;;  %v823_v61 = vld [vmem:[%s9646_s26 + $0x7c8] sm:$0xff]  ;;  %820 = vst [vmem:[%s9651_s27 + $0x3d8] sm:$0xff] %v819_v59 }
  0x55   : > { %822 = vst [vmem:[%s9651_s27 + $0x3e0] sm:$0xff] %v821_v60  ;;  %824 = vst [vmem:[%s9651_s27 + $0x3e8] sm:$0xff] %v823_v61  ;;  %v825_v62 = vld [vmem:[%s9646_s26 + $0x7e0] sm:$0xff]  ;;  %v827_v63 = vld [vmem:[%s9646_s26 + $0x7e8] sm:$0xff] }
  0x56   : > { %826 = vst [vmem:[%s9651_s27 + $0x3f0] sm:$0xff] %v825_v62  ;;  %828 = vst [vmem:[%s9651_s27 + $0x3f8] sm:$0xff] %v827_v63 }
  0x57 PF: > { %p6991_p10 = scmp.ge.s32.totalorder %s9534_s12, 1  ;;  %p833_p11 = scmp.lt.s32.totalorder %s9534_s12, 3 }
  0x59   : > { %p834_p12 = pnand %p6991_p10, %p833_p11 }
  0x5a   : > { %v9911_v0 = vld [vmem:[%s12006_s1 + $0x40] sm:$0xff] (!%p834_p12)   ;;  %v9922_v2 = vld [vmem:[%s12006_s1 + $0x48] sm:$0xff] (!%p834_p12)   ;;  %v9936_v4 = vld [vmem:[%s12006_s1 + $0x50] sm:$0xff] (!%p834_p12)   ;;  %s9953_s14 = sand.u32 (!%p834_p12), 1, %s9526_s10   ;;  %vm1222_vm0 = vcmask (!%p834_p12), 261120   ;;  %vm9537_vm1 = vmmov (!%p834_p12), 0  }
  0x5b   : > { %837 = sbr.rel (%p834_p12) target bundleno = 1784 (0x6f8), region = 90  ;;  %v9916_v1 = vld [vmem:[%s12006_s1] sm:$0xff] (!%p834_p12)   ;;  %7626 = vmatprep.subr.bf16.mxu0 (!%p834_p12), %v9911_v0  ;;  %7690 = vmatprep.subr.bf16.mxu1 (!%p834_p12), %v9911_v0  ;;  %v9929_v3 = vld [vmem:[%s12006_s1 + $0x8] sm:$0xff] (!%p834_p12)   ;;  %v9943_v5 = vld [vmem:[%s12006_s1 + $0x10] sm:$0xff] (!%p834_p12)   ;;  %s6992_s21 = sshll.u32 (!%p834_p12), %s9953_s14, 10  ;;  %vm5993_vm2 = vcmask (!%p834_p12), 523264  }
  0x5c   : > { %7627 = vmatpush3.bf16.msra.mxu0 (!%p834_p12), %v9916_v1  ;;  %7691 = vmatpush3.bf16.msra.mxu1 (!%p834_p12), %v9916_v1  ;;  %v9950_v6 = vld [vmem:[%s12006_s1 + $0x58] sm:$0xff] (!%p834_p12)   ;;  %v9968_v8 = vld [vmem:[%s12006_s1 + $0x60] sm:$0xff] (!%p834_p12)   ;;  %v9982_v10 = vld [vmem:[%s12006_s1 + $0x68] sm:$0xff] (!%p834_p12)   ;;  %s9984_s28 = scalar_lea.vmem (!%p834_p12), [#allocation3], %s6992_s21  ;;  %s6993_s21 = sshll.u32 (!%p834_p12), %s9953_s14, 6 }
  0x5d   : > { %7628 = vmatprep.subr.bf16.mxu0 (!%p834_p12), %v9922_v2  ;;  %7692 = vmatprep.subr.bf16.mxu1 (!%p834_p12), %v9922_v2  ;;  %v9960_v7 = vld [vmem:[%s12006_s1 + $0x18] sm:$0xff] (!%p834_p12)   ;;  %v9975_v9 = vld [vmem:[%s12006_s1 + $0x20] sm:$0xff] (!%p834_p12)   ;;  %v9992_v12 = vld [vmem:[%s12006_s1 + $0x28] sm:$0xff] (!%p834_p12)   ;;  %s7625_s23 = sshll.u32 (!%p834_p12), %s6983_s13, 10  ;;  %s874_s24 = scalar_lea.vmem (!%p834_p12), [#allocation4], %s6993_s21 }
  0x5e   : > { %v9173_v11 = vld [vmem:[%s9984_s28 + $0x4] ss:$8 sps:$4 sm:$0xff] (!%p834_p12)   ;;  %v9998_v13 = vld [vmem:[%s12006_s1 + $0x70] sm:$0xff] (!%p834_p12)   ;;  %v10012_v15 = vld [vmem:[%s12006_s1 + $0x78] sm:$0xff] (!%p834_p12)   ;;  %s6916_s25 = sshll.u32 (!%p834_p12), %s874_s24, 4  ;;  %s11959_s27 = scalar_lea.hbm (!%p834_p12), %s12014_s9, %s7625_s23  ;;  %s11961_s25 = int_to_ptr.vmem [resolvable:$true] %s6916_s25 }
  0x5f   : > { %1141 = vmatprep.mubr.bf16.mxu0 (!%p834_p12), %v9173_v11  ;;  %v10006_v14 = vld [vmem:[%s12006_s1 + $0x30] sm:$0xff] (!%p834_p12)   ;;  %v10020_v16 = vld [vmem:[%s12006_s1 + $0x38] sm:$0xff] (!%p834_p12)   ;;  %v9171_v17 = vld [vmem:[%s9984_s28] ss:$8 sps:$4 sm:$0xff] (!%p834_p12)   ;;  %s6902_s29 = scalar_lea.sflag (!%p834_p12), [#allocation5], %s9953_s14  ;;  %s9472_s16 = scalar_lea.vmem (!%p834_p12), %s11961_s25, 1024 }
  0x60   : > { %7629 = vmatpush3.bf16.msra.mxu0 (!%p834_p12), %v9929_v3  ;;  %7693 = vmatpush3.bf16.msra.mxu1 (!%p834_p12), %v9929_v3  ;;  %v9174_v18 = vld [vmem:[%s9984_s28 + $0x14] ss:$8 sps:$4 sm:$0xff] (!%p834_p12)   ;;  %v9176_v19 = vld [vmem:[%s9984_s28 + $0x10] ss:$8 sps:$4 sm:$0xff] (!%p834_p12)   ;;  %v9177_v20 = vld [vmem:[%s9984_s28 + $0x24] ss:$8 sps:$4 sm:$0xff] (!%p834_p12)   ;;  %p9473_p13 = scmp.ne.s32.totalorder (!%p834_p12), %s11961_s25, %s9472_s16 }
  0x61   : > { %7630 = vmatprep.subr.bf16.mxu0 (!%p834_p12), %v9936_v4  ;;  %7694 = vmatprep.subr.bf16.mxu1 (!%p834_p12), %v9936_v4  ;;  %v9222_v21 = vld [vmem:[%s9984_s28 + $0x80] ss:$8 sps:$4 sm:$0xff] (!%p834_p12)   ;;  %v9224_v22 = vld [vmem:[%s9984_s28 + $0x84] ss:$8 sps:$4 sm:$0xff] (!%p834_p12)   ;;  %v9228_v23 = vld [vmem:[%s9984_s28 + $0x94] ss:$8 sps:$4 sm:$0xff] (!%p834_p12)  }
  0x62   : > { %1368 = vmatprep.mubr.bf16.mxu1 %v9224_v22  ;;  %v9179_v24 = vld [vmem:[%s9984_s28 + $0x20] ss:$8 sps:$4 sm:$0xff]   ;;  %v9232_v25 = vld [vmem:[%s9984_s28 + $0x90] ss:$8 sps:$4 sm:$0xff]   ;;  %v9180_v26 = vld [vmem:[%s9984_s28 + $0x34] ss:$8 sps:$4 sm:$0xff]   ;;  %p9474_p0 = pnand %p9473_p13, %p9630_p6 }
  0x63   : > { %v9234_v27 = vld [vmem:[%s9984_s28 + $0xa4] ss:$8 sps:$4 sm:$0xff]   ;;  %v9182_v28 = vld [vmem:[%s9984_s28 + $0x30] ss:$8 sps:$4 sm:$0xff]   ;;  %v9238_v29 = vld [vmem:[%s9984_s28 + $0xa0] ss:$8 sps:$4 sm:$0xff]  }
  0x64   : > { %7631 = vmatpush3.bf16.msra.mxu0 %v9943_v5  ;;  %7695 = vmatpush3.bf16.msra.mxu1 %v9943_v5  ;;  %v9183_v30 = vld [vmem:[%s9984_s28 + $0x44] ss:$8 sps:$4 sm:$0xff]   ;;  %v9240_v31 = vld [vmem:[%s9984_s28 + $0xb4] ss:$8 sps:$4 sm:$0xff]   ;;  %v9185_v32 = vld [vmem:[%s9984_s28 + $0x40] ss:$8 sps:$4 sm:$0xff]   ;;  %p9475_p1 = pneg %p9474_p0 }
  0x65   : > { %7632 = vmatprep.subr.bf16.mxu0 %v9950_v6  ;;  %7696 = vmatprep.subr.bf16.mxu1 %v9950_v6  ;;  %v9244_v33 = vld [vmem:[%s9984_s28 + $0xb0] ss:$8 sps:$4 sm:$0xff]   ;;  %v9186_v34 = vld [vmem:[%s9984_s28 + $0x54] ss:$8 sps:$4 sm:$0xff]   ;;  %v9246_v35 = vld [vmem:[%s9984_s28 + $0xc4] ss:$8 sps:$4 sm:$0xff]  }
  0x66   : > { %v9188_v36 = vld [vmem:[%s9984_s28 + $0x50] ss:$8 sps:$4 sm:$0xff]   ;;  %v9250_v37 = vld [vmem:[%s9984_s28 + $0xc0] ss:$8 sps:$4 sm:$0xff]   ;;  %v9189_v38 = vld [vmem:[%s9984_s28 + $0x64] ss:$8 sps:$4 sm:$0xff]  }
  0x67   : > { %v9252_v39 = vld [vmem:[%s9984_s28 + $0xd4] ss:$8 sps:$4 sm:$0xff]   ;;  %v9191_v40 = vld [vmem:[%s9984_s28 + $0x60] ss:$8 sps:$4 sm:$0xff]   ;;  %v9256_v41 = vld [vmem:[%s9984_s28 + $0xd0] ss:$8 sps:$4 sm:$0xff]  }
  0x68   : > { %7633 = vmatpush3.bf16.msra.mxu0 %v9960_v7  ;;  %7697 = vmatpush3.bf16.msra.mxu1 %v9960_v7  ;;  %v9192_v42 = vld [vmem:[%s9984_s28 + $0x74] ss:$8 sps:$4 sm:$0xff]   ;;  %v9258_v43 = vld [vmem:[%s9984_s28 + $0xe4] ss:$8 sps:$4 sm:$0xff]   ;;  %v9194_v44 = vld [vmem:[%s9984_s28 + $0x70] ss:$8 sps:$4 sm:$0xff]  }
  0x69   : > { %7634 = vmatprep.subr.bf16.mxu0 %v9968_v8  ;;  %7698 = vmatprep.subr.bf16.mxu1 %v9968_v8  ;;  %v9262_v45 = vld [vmem:[%s9984_s28 + $0xe0] ss:$8 sps:$4 sm:$0xff]   ;;  %v9197_v46 = vld [vmem:[%s9984_s28 + $0x104] ss:$8 sps:$4 sm:$0xff]   ;;  %v9264_v47 = vld [vmem:[%s9984_s28 + $0xf4] ss:$8 sps:$4 sm:$0xff]  }
  0x6a   : > { %v9195_v48 = vld [vmem:[%s9984_s28 + $0x100] ss:$8 sps:$4 sm:$0xff]   ;;  %v9269_v49 = vld [vmem:[%s9984_s28 + $0xf0] ss:$8 sps:$4 sm:$0xff]   ;;  %v9198_v50 = vld [vmem:[%s9984_s28 + $0x114] ss:$8 sps:$4 sm:$0xff]  }
  0x6b   : > { %v9272_v51 = vld [vmem:[%s9984_s28 + $0x184] ss:$8 sps:$4 sm:$0xff]   ;;  %v9200_v52 = vld [vmem:[%s9984_s28 + $0x110] ss:$8 sps:$4 sm:$0xff]   ;;  %v9270_v53 = vld [vmem:[%s9984_s28 + $0x180] ss:$8 sps:$4 sm:$0xff]  }
  0x6c   : > { %7635 = vmatpush3.bf16.msra.mxu0 %v9975_v9  ;;  %7699 = vmatpush3.bf16.msra.mxu1 %v9975_v9  ;;  %v9201_v54 = vld [vmem:[%s9984_s28 + $0x124] ss:$8 sps:$4 sm:$0xff]   ;;  %v9276_v55 = vld [vmem:[%s9984_s28 + $0x194] ss:$8 sps:$4 sm:$0xff]   ;;  %v9203_v56 = vld [vmem:[%s9984_s28 + $0x120] ss:$8 sps:$4 sm:$0xff]  }
  0x6d   : > { %7636 = vmatprep.subr.bf16.mxu0 %v9982_v10  ;;  %7700 = vmatprep.subr.bf16.mxu1 %v9982_v10  ;;  %v9280_v57 = vld [vmem:[%s9984_s28 + $0x190] ss:$8 sps:$4 sm:$0xff]   ;;  %v9204_v58 = vld [vmem:[%s9984_s28 + $0x134] ss:$8 sps:$4 sm:$0xff]   ;;  %v9207_v60 = vld [vmem:[%s9984_s28 + $0x144] ss:$8 sps:$4 sm:$0xff]  }
  0x6e   : > { %v9206_v59 = vld [vmem:[%s9984_s28 + $0x130] ss:$8 sps:$4 sm:$0xff]   ;;  %v9282_v61 = vld [vmem:[%s9984_s28 + $0x1a4] ss:$8 sps:$4 sm:$0xff]   ;;  %v9286_v62 = vld [vmem:[%s9984_s28 + $0x1a0] ss:$8 sps:$4 sm:$0xff]  }
  0x6f   : > { %v9209_v63 = vld [vmem:[%s9984_s28 + $0x140] ss:$8 sps:$4 sm:$0xff]   ;;  %v9304_v11 = vld [vmem:[%s9984_s28 + $0x1d0] ss:$8 sps:$4 sm:$0xff]  }
  0x70   : > { %7637 = vmatpush3.bf16.msra.mxu0 %v9992_v12  ;;  %7701 = vmatpush3.bf16.msra.mxu1 %v9992_v12  ;;  %v9227_v22 = vld [vmem:[%s9984_s28 + $0x210] ss:$8 sps:$4 sm:$0xff]  }
  0x71   : > { %7638 = vmatprep.subr.bf16.mxu0 %v9998_v13  ;;  %7702 = vmatprep.subr.bf16.mxu1 %v9998_v13 }
  0x74   : > { %7639 = vmatpush3.bf16.msra.mxu0 %v10006_v14  ;;  %7703 = vmatpush3.bf16.msra.mxu1 %v10006_v14 }
  0x75   : > { %7640 = vmatprep.subr.bf16.mxu0 %v10012_v15  ;;  %7704 = vmatprep.subr.bf16.mxu1 %v10012_v15 }
  0x78   : > { %7641 = vmatpush3.bf16.msra.mxu0 %v10020_v16  ;;  %7705 = vmatpush3.bf16.msra.mxu1 %v10020_v16 }
  0x79   : > { %7754 = vmatprep.subr.bf16.mxu0 %v9911_v0  ;;  %7818 = vmatprep.subr.bf16.mxu1 %v9911_v0 }
  0x7b   : > { %1142 = vmatmul.mubr.bf16.vlgmr.msra.gmra.mrb[0].mxu0 %v9171_v17  ;;  %1369 = vmatmul.mubr.bf16.vlgmr.msra.gmra.mrb[0].mxu1 %v9222_v21  ;;  %v9225_v17 = vld [vmem:[%s9984_s28 + $0x214] ss:$8 sps:$4 sm:$0xff]   ;;  %v9457_v21 = vld [vmem:[%s12006_s1 + $0x48] sm:$0xff]  }
  0x7c   : > { %7755 = vmatpush3.bf16.msra.mxu0 %v9916_v1  ;;  %1149 = vmatprep.mubr.bf16.mxu0 %v9174_v18  ;;  %v9314_v18 = vld [vmem:[%s9984_s28 + $0x1f4] ss:$8 sps:$4 sm:$0xff]  }
  0x7d   : > { %7756 = vmatprep.subr.bf16.mxu0 %v9922_v2  ;;  %1376 = vmatprep.mubr.bf16.mxu1 %v9228_v23  ;;  %v9230_v23 = vld [vmem:[%s9984_s28 + $0x224] ss:$8 sps:$4 sm:$0xff]  }
  0x7e   : > { %7819 = vmatpush3.bf16.msra.mxu1 %v9916_v1 }
  0x7f   : > { %7820 = vmatprep.subr.bf16.mxu1 %v9922_v2 }
  0x80   : > { %7757 = vmatpush3.bf16.msra.mxu0 %v9929_v3 }
  0x81   : > { %7758 = vmatprep.subr.bf16.mxu0 %v9936_v4 }
  0x82   : > { %7821 = vmatpush3.bf16.msra.mxu1 %v9929_v3 }
  0x83   : > { %1150 = vmatmul.mubr.bf16.gmra.mrb[4].mxu0 %v9176_v19  ;;  %1377 = vmatmul.mubr.bf16.gmra.mrb[4].mxu1 %v9232_v25  ;;  %v9316_v19 = vld [vmem:[%s9984_s28 + $0x1f0] ss:$8 sps:$4 sm:$0xff]   ;;  %v9319_v25 = vld [vmem:[%s9984_s28 + $0x284] ss:$8 sps:$4 sm:$0xff]  }
  0x84   : > { %1157 = vmatprep.mubr.bf16.mxu0 %v9177_v20  ;;  %7759 = vmatpush3.bf16.msra.mxu0 %v9943_v5  ;;  %v9456_v20 = vld [vmem:[%s12006_s1] sm:$0xff]  }
  0x85   : > { %7760 = vmatprep.subr.bf16.mxu0 %v9950_v6  ;;  %1384 = vmatprep.mubr.bf16.mxu1 %v9234_v27  ;;  %v9317_v27 = vld [vmem:[%s9984_s28 + $0x280] ss:$8 sps:$4 sm:$0xff]  }
  0x86   : > { %7822 = vmatprep.subr.bf16.mxu1 %v9936_v4 }
  0x87   : > { %7823 = vmatpush3.bf16.msra.mxu1 %v9943_v5 }
  0x88   : > { %7761 = vmatpush3.bf16.msra.mxu0 %v9960_v7  ;;  %7824 = vmatprep.subr.bf16.mxu1 %v9950_v6 }
  0x89   : > { %7762 = vmatprep.subr.bf16.mxu0 %v9968_v8 }
  0x8b   : > { %1158 = vmatmul.mubr.bf16.gmra.mrb[8].mxu0 %v9179_v24  ;;  %1385 = vmatmul.mubr.bf16.gmra.mrb[8].mxu1 %v9238_v29  ;;  %v9458_v24 = vld [vmem:[%s12006_s1 + $0x8] sm:$0xff]   ;;  %v9461_v29 = vld [vmem:[%s12006_s1 + $0x58] sm:$0xff]  }
  0x8c   : > { %1165 = vmatprep.mubr.bf16.mxu0 %v9180_v26  ;;  %7763 = vmatpush3.bf16.msra.mxu0 %v9975_v9  ;;  %v9459_v26 = vld [vmem:[%s12006_s1 + $0x50] sm:$0xff]  }
  0x8d   : > { %7764 = vmatprep.subr.bf16.mxu0 %v9982_v10  ;;  %1392 = vmatprep.mubr.bf16.mxu1 %v9240_v31  ;;  %v9236_v31 = vld [vmem:[%s9984_s28 + $0x234] ss:$8 sps:$4 sm:$0xff]  }
  0x8e   : > { %7825 = vmatpush3.bf16.msra.mxu1 %v9960_v7 }
  0x8f   : > { %7826 = vmatprep.subr.bf16.mxu1 %v9968_v8 }
  0x90   : > { %7765 = vmatpush3.bf16.msra.mxu0 %v9992_v12 }
  0x91   : > { %7766 = vmatprep.subr.bf16.mxu0 %v9998_v13 }
  0x92   : > { %7827 = vmatpush3.bf16.msra.mxu1 %v9975_v9 }
  0x93   : > { %1166 = vmatmul.mubr.bf16.gmra.mrb[12].mxu0 %v9182_v28  ;;  %1393 = vmatmul.mubr.bf16.gmra.mrb[12].mxu1 %v9244_v33  ;;  %v9460_v28 = vld [vmem:[%s12006_s1 + $0x10] sm:$0xff]  }
  0x94   : > { %1173 = vmatprep.mubr.bf16.mxu0 %v9183_v30  ;;  %7767 = vmatpush3.bf16.msra.mxu0 %v10006_v14  ;;  %v9233_v30 = vld [vmem:[%s9984_s28 + $0x220] ss:$8 sps:$4 sm:$0xff]   ;;  %v9320_v33 = vld [vmem:[%s9984_s28 + $0x294] ss:$8 sps:$4 sm:$0xff]  }
  0x95   : > { %7768 = vmatprep.subr.bf16.mxu0 %v10012_v15  ;;  %7828 = vmatprep.subr.bf16.mxu1 %v9982_v10 }
  0x96   : > { %1400 = vmatprep.mubr.bf16.mxu1 %v9246_v35  ;;  %7829 = vmatpush3.bf16.msra.mxu1 %v9992_v12  ;;  %v9322_v35 = vld [vmem:[%s9984_s28 + $0x290] ss:$8 sps:$4 sm:$0xff]  }
  0x97   : > { %7830 = vmatprep.subr.bf16.mxu1 %v9998_v13 }
  0x98   : > { %7769 = vmatpush3.bf16.msra.mxu0 %v10020_v16 }
  0x99   : > { %7882 = vmatprep.subr.bf16.mxu0 %v9911_v0 }
  0x9a   : > { %7831 = vmatpush3.bf16.msra.mxu1 %v10006_v14 }
  0x9b   : > { %1174 = vmatmul.mubr.bf16.gmra.mrb[16].mxu0 %v9185_v32  ;;  %1401 = vmatmul.mubr.bf16.gmra.mrb[16].mxu1 %v9250_v37  ;;  %v9462_v32 = vld [vmem:[%s12006_s1 + $0x18] sm:$0xff]   ;;  %v9465_v37 = vld [vmem:[%s12006_s1 + $0x68] sm:$0xff]  }
  0x9c   : > { %1181 = vmatprep.mubr.bf16.mxu0 %v9186_v34  ;;  %7832 = vmatprep.subr.bf16.mxu1 %v10012_v15  ;;  %v9463_v34 = vld [vmem:[%s12006_s1 + $0x60] sm:$0xff]  }
  0x9d   : > { %1408 = vmatprep.mubr.bf16.mxu1 %v9252_v39  ;;  %v9242_v39 = vld [vmem:[%s9984_s28 + $0x244] ss:$8 sps:$4 sm:$0xff]  }
  0x9e   : > { %7833 = vmatpush3.bf16.msra.mxu1 %v10020_v16 }
  0x9f   : > { %7946 = vmatprep.subr.bf16.mxu1 %v9911_v0 }
  0xa3   : > { %1182 = vmatmul.mubr.bf16.gmra.mrb[20].mxu0 %v9188_v36  ;;  %1409 = vmatmul.mubr.bf16.gmra.mrb[20].mxu1 %v9256_v41  ;;  %v9464_v36 = vld [vmem:[%s12006_s1 + $0x20] sm:$0xff]  }
  0xa4   : > { %1189 = vmatprep.mubr.bf16.mxu0 %v9189_v38  ;;  %1416 = vmatprep.mubr.bf16.mxu1 %v9258_v43  ;;  %v9239_v38 = vld [vmem:[%s9984_s28 + $0x230] ss:$8 sps:$4 sm:$0xff]   ;;  %v9323_v41 = vld [vmem:[%s9984_s28 + $0x2a4] ss:$8 sps:$4 sm:$0xff]   ;;  %v9325_v43 = vld [vmem:[%s9984_s28 + $0x2a0] ss:$8 sps:$4 sm:$0xff]  }
  0xab   : > { %1190 = vmatmul.mubr.bf16.gmra.mrb[24].mxu0 %v9191_v40  ;;  %1417 = vmatmul.mubr.bf16.gmra.mrb[24].mxu1 %v9262_v45  ;;  %v9466_v40 = vld [vmem:[%s12006_s1 + $0x28] sm:$0xff]   ;;  %v9469_v45 = vld [vmem:[%s12006_s1 + $0x78] sm:$0xff]  }
  0xac   : > { %1197 = vmatprep.mubr.bf16.mxu0 %v9192_v42  ;;  %1424 = vmatprep.mubr.bf16.mxu1 %v9264_v47  ;;  %v9467_v42 = vld [vmem:[%s12006_s1 + $0x70] sm:$0xff]  }
  0xad   : > { %v9248_v47 = vld [vmem:[%s9984_s28 + $0x254] ss:$8 sps:$4 sm:$0xff]  }
  0xb3   : > { %1198 = vmatmul.mubr.bf16.gmra.mrb[28].mxu0 %v9194_v44  ;;  %1425 = vmatmul.mubr.bf16.gmra.mrb[28].mxu1 %v9269_v49  ;;  %v9468_v44 = vld [vmem:[%s12006_s1 + $0x30] sm:$0xff]  }
  0xb4   : > { %1595 = vmatprep.mubr.bf16.mxu0 %v9197_v46  ;;  %1822 = vmatprep.mubr.bf16.mxu1 %v9272_v51  ;;  %v9245_v46 = vld [vmem:[%s9984_s28 + $0x240] ss:$8 sps:$4 sm:$0xff]   ;;  %v9326_v49 = vld [vmem:[%s9984_s28 + $0x2b4] ss:$8 sps:$4 sm:$0xff]   ;;  %v9328_v51 = vld [vmem:[%s9984_s28 + $0x2b0] ss:$8 sps:$4 sm:$0xff]  }
  0xbb   : > { %1596 = vmatmul.mubr.bf16.vlgmr.msra.gmra.mrb[32].mxu0 %v9195_v48  ;;  %1823 = vmatmul.mubr.bf16.vlgmr.msra.gmra.mrb[32].mxu1 %v9270_v53  ;;  %v9470_v48 = vld [vmem:[%s12006_s1 + $0x38] sm:$0xff]   ;;  %v9254_v53 = vld [vmem:[%s9984_s28 + $0x264] ss:$8 sps:$4 sm:$0xff]  }
  0xbc   : > { %7883 = vmatpush3.bf16.msra.mxu0 %v9916_v1  ;;  %1603 = vmatprep.mubr.bf16.mxu0 %v9198_v50  ;;  %v9536_v50 = vmov 0.0  }
  0xbd   : > { %7884 = vmatprep.subr.bf16.mxu0 %v9922_v2  ;;  %1830 = vmatprep.mubr.bf16.mxu1 %v9276_v55  ;;  %v9331_v55 = vld [vmem:[%s9984_s28 + $0x2c0] ss:$8 sps:$4 sm:$0xff]  }
  0xbe   : > { %7947 = vmatpush3.bf16.msra.mxu1 %v9916_v1  ;;  %v9210_v1 = vld [vmem:[%s9984_s28 + $0x154] ss:$8 sps:$4 sm:$0xff]  }
  0xbf   : > { %7948 = vmatprep.subr.bf16.mxu1 %v9922_v2  ;;  %v9288_v2 = vld [vmem:[%s9984_s28 + $0x1b4] ss:$8 sps:$4 sm:$0xff]  }
  0xc0   : > { %7885 = vmatpush3.bf16.msra.mxu0 %v9929_v3 }
  0xc1   : > { %7886 = vmatprep.subr.bf16.mxu0 %v9936_v4 }
  0xc2   : > { %7949 = vmatpush3.bf16.msra.mxu1 %v9929_v3  ;;  %v9292_v3 = vld [vmem:[%s9984_s28 + $0x1b0] ss:$8 sps:$4 sm:$0xff]  }
  0xc3   : > { %1604 = vmatmul.mubr.bf16.gmra.mrb[36].mxu0 %v9200_v52  ;;  %1831 = vmatmul.mubr.bf16.gmra.mrb[36].mxu1 %v9280_v57  ;;  %v9251_v52 = vld [vmem:[%s9984_s28 + $0x250] ss:$8 sps:$4 sm:$0xff]   ;;  %v9260_v57 = vld [vmem:[%s9984_s28 + $0x274] ss:$8 sps:$4 sm:$0xff]  }
  0xc4   : > { %1611 = vmatprep.mubr.bf16.mxu0 %v9201_v54  ;;  %7887 = vmatpush3.bf16.msra.mxu0 %v9943_v5  ;;  %v9329_v54 = vld [vmem:[%s9984_s28 + $0x2c4] ss:$8 sps:$4 sm:$0xff]  }
  0xc5   : > { %7888 = vmatprep.subr.bf16.mxu0 %v9950_v6  ;;  %7950 = vmatprep.subr.bf16.mxu1 %v9936_v4  ;;  %v9212_v4 = vld [vmem:[%s9984_s28 + $0x150] ss:$8 sps:$4 sm:$0xff]  }
  0xc6   : > { %7951 = vmatpush3.bf16.msra.mxu1 %v9943_v5  ;;  %1838 = vmatprep.mubr.bf16.mxu1 %v9282_v61  ;;  %v9213_v5 = vld [vmem:[%s9984_s28 + $0x164] ss:$8 sps:$4 sm:$0xff]  }
  0xc7   : > { %7952 = vmatprep.subr.bf16.mxu1 %v9950_v6  ;;  %v9298_v6 = vld [vmem:[%s9984_s28 + $0x1c0] ss:$8 sps:$4 sm:$0xff]   ;;  %v9268_v61 = vld [vmem:[%s9984_s28 + $0x304] ss:$8 sps:$4 sm:$0xff]  }
  0xc8   : > { %7889 = vmatpush3.bf16.msra.mxu0 %v9960_v7 }
  0xc9   : > { %7890 = vmatprep.subr.bf16.mxu0 %v9968_v8 }
  0xca   : > { %7953 = vmatpush3.bf16.msra.mxu1 %v9960_v7  ;;  %v9455_v7 = vld [vmem:[%s12006_s1 + $0x40] sm:$0xff]  }
  0xcb   : > { %1612 = vmatmul.mubr.bf16.gmra.mrb[40].mxu0 %v9203_v56  ;;  %1839 = vmatmul.mubr.bf16.gmra.mrb[40].mxu1 %v9286_v62  ;;  %v9257_v56 = vld [vmem:[%s9984_s28 + $0x260] ss:$8 sps:$4 sm:$0xff]   ;;  %v9335_v62 = vld [vmem:[%s9984_s28 + $0x2e4] ss:$8 sps:$4 sm:$0xff]  }
  0xcc   : > { %1619 = vmatprep.mubr.bf16.mxu0 %v9204_v58  ;;  %7891 = vmatpush3.bf16.msra.mxu0 %v9975_v9  ;;  %v9332_v58 = vld [vmem:[%s9984_s28 + $0x2d4] ss:$8 sps:$4 sm:$0xff]  }
  0xcd   : > { %7892 = vmatprep.subr.bf16.mxu0 %v9982_v10  ;;  %7954 = vmatprep.subr.bf16.mxu1 %v9968_v8  ;;  %v9215_v8 = vld [vmem:[%s9984_s28 + $0x160] ss:$8 sps:$4 sm:$0xff]  }
  0xce   : > { %7955 = vmatpush3.bf16.msra.mxu1 %v9975_v9  ;;  %1846 = vmatprep.mubr.bf16.mxu1 %v9288_v2  ;;  %v9216_v9 = vld [vmem:[%s9984_s28 + $0x174] ss:$8 sps:$4 sm:$0xff]  }
  0xcf   : > { %7956 = vmatprep.subr.bf16.mxu1 %v9982_v10  ;;  %v9300_v10 = vld [vmem:[%s9984_s28 + $0x1d4] ss:$8 sps:$4 sm:$0xff]  }
  0xd0   : > { %7893 = vmatpush3.bf16.msra.mxu0 %v9992_v12  ;;  %v9273_v2 = vld [vmem:[%s9984_s28 + $0x314] ss:$8 sps:$4 sm:$0xff]  }
  0xd1   : > { %7894 = vmatprep.subr.bf16.mxu0 %v9998_v13 }
  0xd2   : > { %7957 = vmatpush3.bf16.msra.mxu1 %v9992_v12  ;;  %v9218_v12 = vld [vmem:[%s9984_s28 + $0x170] ss:$8 sps:$4 sm:$0xff]  }
  0xd3   : > { %1620 = vmatmul.mubr.bf16.gmra.mrb[44].mxu0 %v9206_v59  ;;  %1847 = vmatmul.mubr.bf16.gmra.mrb[44].mxu1 %v9292_v3  ;;  %v9334_v59 = vld [vmem:[%s9984_s28 + $0x2d0] ss:$8 sps:$4 sm:$0xff]  }
  0xd4   : > { %1627 = vmatprep.mubr.bf16.mxu0 %v9207_v60  ;;  %7895 = vmatpush3.bf16.msra.mxu0 %v10006_v14  ;;  %v9263_v60 = vld [vmem:[%s9984_s28 + $0x270] ss:$8 sps:$4 sm:$0xff]  }
  0xd5   : > { %7896 = vmatprep.subr.bf16.mxu0 %v10012_v15  ;;  %7958 = vmatprep.subr.bf16.mxu1 %v9998_v13  ;;  %v9221_v13 = vld [vmem:[%s9984_s28 + $0x204] ss:$8 sps:$4 sm:$0xff]   ;;  %v9312_v3 = vld [vmem:[%s12008_s3 + $0x10] sm:$0xff]  }
  0xd6   : > { %7959 = vmatpush3.bf16.msra.mxu1 %v10006_v14  ;;  %v9306_v14 = vld [vmem:[%s9984_s28 + $0x1e4] ss:$8 sps:$4 sm:$0xff]  }
  0xd7   : > { %7960 = vmatprep.subr.bf16.mxu1 %v10012_v15  ;;  %v9310_v15 = vld [vmem:[%s9984_s28 + $0x1e0] ss:$8 sps:$4 sm:$0xff]  }
  0xd8   : > { %7897 = vmatpush3.bf16.msra.mxu0 %v10020_v16 }
  0xd9   : > { %8010 = vmatprep.subr.bf16.mxu0 %v9911_v0  ;;  %v9294_v0 = vld [vmem:[%s9984_s28 + $0x1c4] ss:$8 sps:$4 sm:$0xff]  }
  0xda   : > { %1854 = vmatprep.mubr.bf16.mxu1 %v9294_v0  ;;  %7961 = vmatpush3.bf16.msra.mxu1 %v10020_v16  ;;  %v9219_v16 = vld [vmem:[%s9984_s28 + $0x200] ss:$8 sps:$4 sm:$0xff]   ;;  %v9340_v0 = vld [vmem:[%s9984_s28 + $0x2f0] ss:$8 sps:$4 sm:$0xff]  }
  0xdb   : > { %1628 = vmatmul.mubr.bf16.gmra.mrb[48].mxu0 %v9209_v63  ;;  %1855 = vmatmul.mubr.bf16.gmra.mrb[48].mxu1 %v9298_v6  ;;  %v9337_v63 = vld [vmem:[%s9984_s28 + $0x2e0] ss:$8 sps:$4 sm:$0xff]   ;;  %v9275_v6 = vld [vmem:[%s9984_s28 + $0x310] ss:$8 sps:$4 sm:$0xff]  }
  0xdc   : > { %1635 = vmatprep.mubr.bf16.mxu0 %v9210_v1  ;;  %8074 = vmatprep.subr.bf16.mxu1 %v9455_v7  ;;  %v9266_v1 = vld [vmem:[%s9984_s28 + $0x300] ss:$8 sps:$4 sm:$0xff]   ;;  %v9278_v7 = vld [vmem:[%s9984_s28 + $0x324] ss:$8 sps:$4 sm:$0xff]  }
  0xdd   : > { %1862 = vmatprep.mubr.bf16.mxu1 %v9300_v10  ;;  %v9281_v10 = vld [vmem:[%s9984_s28 + $0x320] ss:$8 sps:$4 sm:$0xff]  }
  0xe3   : > { %1636 = vmatmul.mubr.bf16.gmra.mrb[52].mxu0 %v9212_v4  ;;  %1863 = vmatmul.mubr.bf16.gmra.mrb[52].mxu1 %v9304_v11  ;;  %v9313_v4 = vld [vmem:[%s12008_s3 + $0x18] sm:$0xff]  }
  0xe4   : > { %1643 = vmatprep.mubr.bf16.mxu0 %v9213_v5  ;;  %1870 = vmatprep.mubr.bf16.mxu1 %v9306_v14  ;;  %v9338_v5 = vld [vmem:[%s9984_s28 + $0x2f4] ss:$8 sps:$4 sm:$0xff]  }
  0xe5   : > { %v9284_v11 = vld [vmem:[%s9984_s28 + $0x334] ss:$8 sps:$4 sm:$0xff]  }
  0xeb   : > { %1644 = vmatmul.mubr.bf16.gmra.mrb[56].mxu0 %v9215_v8  ;;  %1871 = vmatmul.mubr.bf16.gmra.mrb[56].mxu1 %v9310_v15  ;;  %v9343_v8 = vld [vmem:[%s9984_s28 + $0x384] ss:$8 sps:$4 sm:$0xff]   ;;  %v10261_v15 = vld [vmem:[%s12007_s2] ss:$0 sm:$0xff] }
  0xec   : > { %1651 = vmatprep.mubr.bf16.mxu0 %v9216_v9  ;;  %1878 = vmatprep.mubr.bf16.mxu1 %v9314_v18  ;;  %v9341_v9 = vld [vmem:[%s9984_s28 + $0x380] ss:$8 sps:$4 sm:$0xff]  }
  0xf3   : > { %1652 = vmatmul.mubr.bf16.gmra.mrb[60].mxu0 %v9218_v12  ;;  %1879 = vmatmul.mubr.bf16.gmra.mrb[60].mxu1 %v9316_v19  ;;  %v9344_v12 = vld [vmem:[%s9984_s28 + $0x394] ss:$8 sps:$4 sm:$0xff]  }
  0xf4   : > { %2049 = vmatprep.mubr.bf16.mxu0 %v9221_v13  ;;  %2276 = vmatprep.mubr.bf16.mxu1 %v9319_v25  ;;  %v9346_v13 = vld [vmem:[%s9984_s28 + $0x390] ss:$8 sps:$4 sm:$0xff]  }
  0xfb   : > { %2050 = vmatmul.mubr.bf16.vlgmr.msra.gmra.mrb[64].mxu0 %v9219_v16  ;;  %2277 = vmatmul.mubr.bf16.vlgmr.msra.gmra.mrb[64].mxu1 %v9317_v27  ;;  %v9349_v27 = vld [vmem:[%s9984_s28 + $0x3a0] ss:$8 sps:$4 sm:$0xff]  }
  0xfc   : > { %2057 = vmatprep.mubr.bf16.mxu0 %v9225_v17  ;;  %8011 = vmatpush3.bf16.msra.mxu0 %v9456_v20  ;;  %v9287_v17 = vld [vmem:[%s9984_s28 + $0x330] ss:$8 sps:$4 sm:$0xff]  }
  0xfd   : > { %8012 = vmatprep.subr.bf16.mxu0 %v9457_v21  ;;  %8075 = vmatpush3.bf16.msra.mxu1 %v9456_v20  ;;  %v9290_v20 = vld [vmem:[%s9984_s28 + $0x344] ss:$8 sps:$4 sm:$0xff]  }
  0xfe   : > { %8076 = vmatprep.subr.bf16.mxu1 %v9457_v21  ;;  %2284 = vmatprep.mubr.bf16.mxu1 %v9320_v33 }
 0x100   : > { %8013 = vmatpush3.bf16.msra.mxu0 %v9458_v24 }
 0x101   : > { %8014 = vmatprep.subr.bf16.mxu0 %v9459_v26  ;;  %8077 = vmatpush3.bf16.msra.mxu1 %v9458_v24 }
 0x102   : > { %8078 = vmatprep.subr.bf16.mxu1 %v9459_v26  ;;  %v9347_v26 = vld [vmem:[%s9984_s28 + $0x3a4] ss:$8 sps:$4 sm:$0xff]  }
 0x103   : > { %2058 = vmatmul.mubr.bf16.gmra.mrb[68].mxu0 %v9227_v22  ;;  %2285 = vmatmul.mubr.bf16.gmra.mrb[68].mxu1 %v9322_v35 }
 0x104   : > { %2065 = vmatprep.mubr.bf16.mxu0 %v9230_v23  ;;  %8015 = vmatpush3.bf16.msra.mxu0 %v9460_v28 }
 0x105   : > { %8016 = vmatprep.subr.bf16.mxu0 %v9461_v29  ;;  %8079 = vmatpush3.bf16.msra.mxu1 %v9460_v28 }
 0x106   : > { %8080 = vmatprep.subr.bf16.mxu1 %v9461_v29  ;;  %2292 = vmatprep.mubr.bf16.mxu1 %v9323_v41 }
 0x108   : > { %8017 = vmatpush3.bf16.msra.mxu0 %v9462_v32 }
 0x109   : > { %8018 = vmatprep.subr.bf16.mxu0 %v9463_v34  ;;  %8081 = vmatpush3.bf16.msra.mxu1 %v9462_v32 }
 0x10a   : > { %8082 = vmatprep.subr.bf16.mxu1 %v9463_v34  ;;  %v9296_v34 = vld [vmem:[%s9984_s28 + $0x354] ss:$8 sps:$4 sm:$0xff]  }
 0x10b   : > { %2066 = vmatmul.mubr.bf16.gmra.mrb[72].mxu0 %v9233_v30  ;;  %2293 = vmatmul.mubr.bf16.gmra.mrb[72].mxu1 %v9325_v43  ;;  %v9350_v43 = vld [vmem:[%s9984_s28 + $0x3b4] ss:$8 sps:$4 sm:$0xff]  }
 0x10c   : > { %2073 = vmatprep.mubr.bf16.mxu0 %v9236_v31  ;;  %8019 = vmatpush3.bf16.msra.mxu0 %v9464_v36  ;;  %v9293_v31 = vld [vmem:[%s9984_s28 + $0x340] ss:$8 sps:$4 sm:$0xff]  }
 0x10d   : > { %8020 = vmatprep.subr.bf16.mxu0 %v9465_v37  ;;  %8083 = vmatpush3.bf16.msra.mxu1 %v9464_v36 }
 0x10e   : > { %8084 = vmatprep.subr.bf16.mxu1 %v9465_v37  ;;  %2300 = vmatprep.mubr.bf16.mxu1 %v9326_v49 }
 0x110   : > { %8021 = vmatpush3.bf16.msra.mxu0 %v9466_v40 }
 0x111   : > { %8022 = vmatprep.subr.bf16.mxu0 %v9467_v42  ;;  %8085 = vmatpush3.bf16.msra.mxu1 %v9466_v40 }
 0x112   : > { %8086 = vmatprep.subr.bf16.mxu1 %v9467_v42 }
 0x113   : > { %2074 = vmatmul.mubr.bf16.gmra.mrb[76].mxu0 %v9239_v38  ;;  %2301 = vmatmul.mubr.bf16.gmra.mrb[76].mxu1 %v9328_v51 }
 0x114   : > { %2081 = vmatprep.mubr.bf16.mxu0 %v9242_v39  ;;  %8023 = vmatpush3.bf16.msra.mxu0 %v9468_v44 }
 0x115   : > { %8024 = vmatprep.subr.bf16.mxu0 %v9469_v45  ;;  %8087 = vmatpush3.bf16.msra.mxu1 %v9468_v44 }
 0x116   : > { %8088 = vmatprep.subr.bf16.mxu1 %v9469_v45  ;;  %2308 = vmatprep.mubr.bf16.mxu1 %v9329_v54  ;;  %v9352_v45 = vld [vmem:[%s9984_s28 + $0x3b0] ss:$8 sps:$4 sm:$0xff]  }
 0x118   : > { %8025 = vmatpush3.bf16.msra.mxu0 %v9470_v48 }
 0x119   : > { %8359 = vmatprep.subr.bf16.mxu0 %v9536_v50  ;;  %8089 = vmatpush3.bf16.msra.mxu1 %v9470_v48 }
 0x11a   : > { %9107 = vmatprep.subr.bf16.mxu1 %v9536_v50 }
 0x11b   : > { %2082 = vmatmul.mubr.bf16.gmra.mrb[80].mxu0 %v9245_v46  ;;  %2309 = vmatmul.mubr.bf16.gmra.mrb[80].mxu1 %v9331_v55  ;;  %v9302_v55 = vld [vmem:[%s9984_s28 + $0x364] ss:$8 sps:$4 sm:$0xff]  }
 0x11c   : > { %2089 = vmatprep.mubr.bf16.mxu0 %v9248_v47  ;;  %2316 = vmatprep.mubr.bf16.mxu1 %v9332_v58 }
 0x123   : > { %2090 = vmatmul.mubr.bf16.gmra.mrb[84].mxu0 %v9251_v52  ;;  %2317 = vmatmul.mubr.bf16.gmra.mrb[84].mxu1 %v9334_v59  ;;  %v9299_v52 = vld [vmem:[%s9984_s28 + $0x350] ss:$8 sps:$4 sm:$0xff]  }
 0x124   : > { %2097 = vmatprep.mubr.bf16.mxu0 %v9254_v53  ;;  %2324 = vmatprep.mubr.bf16.mxu1 %v9335_v62 }
 0x12b   : > { %2098 = vmatmul.mubr.bf16.gmra.mrb[88].mxu0 %v9257_v56  ;;  %2325 = vmatmul.mubr.bf16.gmra.mrb[88].mxu1 %v9337_v63 }
 0x12c   : > { %2105 = vmatprep.mubr.bf16.mxu0 %v9260_v57  ;;  %2332 = vmatprep.mubr.bf16.mxu1 %v9338_v5  ;;  %v9353_v5 = vld [vmem:[%s9984_s28 + $0x3c4] ss:$8 sps:$4 sm:$0xff]  }
 0x133   : > { %2106 = vmatmul.mubr.bf16.gmra.mrb[92].mxu0 %v9263_v60  ;;  %2333 = vmatmul.mubr.bf16.gmra.mrb[92].mxu1 %v9340_v0 }
 0x134   : > { %2503 = vmatprep.mubr.bf16.mxu0 %v9268_v61  ;;  %2730 = vmatprep.mubr.bf16.mxu1 %v9343_v8 }
 0x13b   : > { %2504 = vmatmul.mubr.bf16.vlgmr.msra.gmra.mrb[96].mxu0 %v9266_v1  ;;  %2731 = vmatmul.mubr.bf16.vlgmr.msra.gmra.mrb[96].mxu1 %v9341_v9 }
 0x13c   : > { %2511 = vmatprep.mubr.bf16.mxu0 %v9273_v2  ;;  %8360 = vmatpush3.bf16.msra.mxu0 %v9312_v3 }
 0x13d   : > { %8361 = vmatprep.subr.bf16.mxu0 %v9536_v50  ;;  %9109 = vmatpush3.bf16.msra.mxu1 %v9312_v3 }
 0x13e   : > { %9108 = vmatprep.subr.bf16.mxu1 %v9536_v50  ;;  %2738 = vmatprep.mubr.bf16.mxu1 %v9344_v12  ;;  %v9305_v12 = vld [vmem:[%s9984_s28 + $0x360] ss:$8 sps:$4 sm:$0xff]  }
 0x140   : > { %8362 = vmatpush3.bf16.msra.mxu0 %v9313_v4 }
 0x141   : > { %8439 = vmatprep.subr.bf16.mxu0 %v9536_v50  ;;  %9110 = vmatpush3.bf16.msra.mxu1 %v9313_v4 }
 0x142   : > { %8399 = vmatprep.subr.bf16.mxu1 %v9536_v50 }
 0x143   : > { %2512 = vmatmul.mubr.bf16.gmra.mrb[100].mxu0 %v9275_v6  ;;  %2739 = vmatmul.mubr.bf16.gmra.mrb[100].mxu1 %v9346_v13  ;;  %v9355_v6 = vld [vmem:[%s9984_s28 + $0x3c0] ss:$8 sps:$4 sm:$0xff]  }
 0x144   : > { %2519 = vmatprep.mubr.bf16.mxu0 %v9278_v7  ;;  %2746 = vmatprep.mubr.bf16.mxu1 %v9347_v26 }
 0x14b   : > { %2520 = vmatmul.mubr.bf16.gmra.mrb[104].mxu0 %v9281_v10  ;;  %2747 = vmatmul.mubr.bf16.gmra.mrb[104].mxu1 %v9349_v27 }
 0x14c   : > { %2527 = vmatprep.mubr.bf16.mxu0 %v9284_v11  ;;  %2754 = vmatprep.mubr.bf16.mxu1 %v9350_v43 }
 0x14e   : > { %v7642_v14 = vpop.f32.mrb[0].mxu0  ;;  %v7706_v38 = vpop.f32.mrb[0].mxu1 }
 0x14f   : > { %v7643_v16 = vpop.f32.mrb[1].mxu0  ;;  %v7707_v39 = vpop.f32.mrb[1].mxu1 }
 0x150   : > { %v7644_v18 = vadd.f32 %v7643_v16, %v7642_v14  ;;  %v7645_v19 = vpop.f32.mrb[2].mxu0  ;;  %v7709_v42 = vpop.f32.mrb[2].mxu1  ;;  %v7708_v48 = vadd.f32 %v7707_v39, %v7706_v38  ;;  %v9308_v16 = vld [vmem:[%s9984_s28 + $0x374] ss:$8 sps:$4 sm:$0xff]  }
 0x151   : > { %v7646_v21 = vpop.f32.mrb[3].mxu0  ;;  %v7710_v44 = vpop.f32.mrb[3].mxu1 }
 0x152   : > { %v1144_v22 = vadd.f32 %v7644_v18, %v10261_v15  ;;  %v7647_v23 = vadd.f32 %v7646_v21, %v7645_v19  ;;  %v7711_v49 = vadd.f32 %v7710_v44, %v7709_v42  ;;  %v1371_v56 = vadd.f32 %v7708_v48, %v10261_v15 }
 0x153   : > { %2528 = vmatmul.mubr.bf16.gmra.mrb[108].mxu0 %v9287_v17  ;;  %2755 = vmatmul.mubr.bf16.gmra.mrb[108].mxu1 %v9352_v45 }
 0x154   : > { %v1206_v24 = vmax.f32 %v1144_v22, 0.0  ;;  %v1147_v25 = vadd.f32 %v7647_v23, %v10261_v15  ;;  %2535 = vmatprep.mubr.bf16.mxu0 %v9290_v20  ;;  %v1374_v57 = vadd.f32 %v7711_v49, %v10261_v15  ;;  %v1433_v61 = vmax.f32 %v1371_v56, 0.0  ;;  %2762 = vmatprep.mubr.bf16.mxu1 %v9353_v5 }
 0x156   : > { %1223 = vst.msk [vmem:[#allocation2] sm:$0xff] %vm1222_vm0, %v1206_v24  ;;  %v1207_v28 = vmax.f32 %v1147_v25, 0.0  ;;  %v7648_v29 = vpop.f32.mrb[4].mxu0  ;;  %v1434_v62 = vmax.f32 %v1374_v57, 0.0  ;;  %v7712_v63 = vpop.f32.mrb[4].mxu1  ;;  %1450 = vst.msk [vmem:[#allocation2 + $0x80] sm:$0xff] %vm1222_vm0, %v1433_v61 }
 0x157   : > { %v7649_v30 = vpop.f32.mrb[5].mxu0  ;;  %v7713_v1 = vpop.f32.mrb[5].mxu1 }
 0x158   : > { %1224 = vst.msk [vmem:[#allocation2 + $0x8] sm:$0xff] %vm1222_vm0, %v1207_v28  ;;  %v7650_v32 = vadd.f32 %v7649_v30, %v7648_v29  ;;  %v7651_v33 = vpop.f32.mrb[6].mxu0  ;;  %1451 = vst.msk [vmem:[#allocation2 + $0x88] sm:$0xff] %vm1222_vm0, %v1434_v62  ;;  %v7715_v4 = vpop.f32.mrb[6].mxu1  ;;  %v7714_v9 = vadd.f32 %v7713_v1, %v7712_v63  ;;  %v9356_v29 = vld [vmem:[%s9984_s28 + $0x3d4] ss:$8 sps:$4 sm:$0xff]  }
 0x159   : > { %v7652_v35 = vpop.f32.mrb[7].mxu0  ;;  %v7716_v0 = vpop.f32.mrb[7].mxu1 }
 0x15a   : > { %v1152_v36 = vadd.f32 %v7650_v32, %v10261_v15  ;;  %v7653_v37 = vadd.f32 %v7652_v35, %v7651_v33  ;;  %v7717_v10 = vadd.f32 %v7716_v0, %v7715_v4  ;;  %v1379_v17 = vadd.f32 %v7714_v9, %v10261_v15  ;;  %v9362_v0 = vld [vmem:[%s12008_s3 + $0x20] sm:$0xff]  }
 0x15b   : > { %2536 = vmatmul.mubr.bf16.gmra.mrb[112].mxu0 %v9293_v31  ;;  %2763 = vmatmul.mubr.bf16.gmra.mrb[112].mxu1 %v9355_v6  ;;  %v9358_v31 = vld [vmem:[%s9984_s28 + $0x3d0] ss:$8 sps:$4 sm:$0xff]  }
 0x15c   : > { %v1208_v40 = vmax.f32 %v1152_v36, 0.0  ;;  %v1155_v41 = vadd.f32 %v7653_v37, %v10261_v15  ;;  %2543 = vmatprep.mubr.bf16.mxu0 %v9296_v34  ;;  %v1382_v18 = vadd.f32 %v7717_v10, %v10261_v15  ;;  %v1435_v22 = vmax.f32 %v1379_v17, 0.0  ;;  %2770 = vmatprep.mubr.bf16.mxu1 %v9356_v29  ;;  %v9311_v37 = vld [vmem:[%s9984_s28 + $0x370] ss:$8 sps:$4 sm:$0xff]  }
 0x15e   : > { %1225 = vst.msk [vmem:[#allocation2 + $0x10] sm:$0xff] %vm1222_vm0, %v1208_v40  ;;  %v1209_v46 = vmax.f32 %v1155_v41, 0.0  ;;  %v7654_v47 = vpop.f32.mrb[8].mxu0  ;;  %v1436_v23 = vmax.f32 %v1382_v18, 0.0  ;;  %v7718_v24 = vpop.f32.mrb[8].mxu1  ;;  %1452 = vst.msk [vmem:[#allocation2 + $0x90] sm:$0xff] %vm1222_vm0, %v1435_v22 }
 0x15f   : > { %v7655_v51 = vpop.f32.mrb[9].mxu0  ;;  %v7719_v25 = vpop.f32.mrb[9].mxu1  ;;  %v9365_v18 = vld [vmem:[%s12008_s3 + $0x28] sm:$0xff]  }
 0x160   : > { %1226 = vst.msk [vmem:[#allocation2 + $0x18] sm:$0xff] %vm1222_vm0, %v1209_v46  ;;  %v7656_v53 = vadd.f32 %v7655_v51, %v7654_v47  ;;  %v7657_v54 = vpop.f32.mrb[10].mxu0  ;;  %1453 = vst.msk [vmem:[#allocation2 + $0x98] sm:$0xff] %vm1222_vm0, %v1436_v23  ;;  %v7721_v28 = vpop.f32.mrb[10].mxu1  ;;  %v7720_v34 = vadd.f32 %v7719_v25, %v7718_v24 }
 0x161   : > { %v7658_v58 = vpop.f32.mrb[11].mxu0  ;;  %v7722_v30 = vpop.f32.mrb[11].mxu1 }
 0x162   : > { %v1160_v59 = vadd.f32 %v7656_v53, %v10261_v15  ;;  %v7659_v60 = vadd.f32 %v7658_v58, %v7657_v54  ;;  %v7723_v35 = vadd.f32 %v7722_v30, %v7721_v28  ;;  %v1387_v40 = vadd.f32 %v7720_v34, %v10261_v15  ;;  %v9359_v53 = vld [vmem:[%s9984_s28 + $0x3e4] ss:$8 sps:$4 sm:$0xff]  }
 0x163   : > { %2544 = vmatmul.mubr.bf16.gmra.mrb[116].mxu0 %v9299_v52  ;;  %2771 = vmatmul.mubr.bf16.gmra.mrb[116].mxu1 %v9358_v31 }
 0x164   : > { %v1210_v2 = vmax.f32 %v1160_v59, 0.0  ;;  %v1163_v3 = vadd.f32 %v7659_v60, %v10261_v15  ;;  %2551 = vmatprep.mubr.bf16.mxu0 %v9302_v55  ;;  %v1390_v41 = vadd.f32 %v7723_v35, %v10261_v15  ;;  %v1437_v45 = vmax.f32 %v1387_v40, 0.0  ;;  %v9361_v55 = vld [vmem:[%s9984_s28 + $0x3e0] ss:$8 sps:$4 sm:$0xff]   ;;  %2778 = vmatprep.mubr.bf16.mxu1 %v9359_v53 }
 0x165   : > { %v2860_v1 = vld [vmem:[#allocation2 + $0x10] sm:$0xff] }
 0x166   : > { %1227 = vst.msk [vmem:[#allocation2 + $0x20] sm:$0xff] %vm1222_vm0, %v1210_v2  ;;  %v1211_v7 = vmax.f32 %v1163_v3, 0.0  ;;  %v7660_v8 = vpop.f32.mrb[12].mxu0  ;;  %v1438_v46 = vmax.f32 %v1390_v41, 0.0  ;;  %v7724_v47 = vpop.f32.mrb[12].mxu1  ;;  %1454 = vst.msk [vmem:[#allocation2 + $0xa0] sm:$0xff] %vm1222_vm0, %v1437_v45 }
 0x167   : > { %v7661_v11 = vpop.f32.mrb[13].mxu0  ;;  %v7725_v48 = vpop.f32.mrb[13].mxu1  ;;  %v2861_v58 = vld [vmem:[#allocation2 + $0x18] sm:$0xff] }
 0x168   : > { %1228 = vst.msk [vmem:[#allocation2 + $0x28] sm:$0xff] %vm1222_vm0, %v1211_v7  ;;  %v7662_v13 = vadd.f32 %v7661_v11, %v7660_v8  ;;  %v7663_v14 = vpop.f32.mrb[14].mxu0  ;;  %1455 = vst.msk [vmem:[#allocation2 + $0xa8] sm:$0xff] %vm1222_vm0, %v1438_v46  ;;  %v7727_v52 = vpop.f32.mrb[14].mxu1  ;;  %v7726_v59 = vadd.f32 %v7725_v48, %v7724_v47  ;;  %v2878_v5 = vpack.c.bf16 %v2861_v58, %v2860_v1 }
 0x169   : > { %v7664_v19 = vpop.f32.mrb[15].mxu0  ;;  %v7728_v54 = vpop.f32.mrb[15].mxu1 }
 0x16a   : > { %v1168_v20 = vadd.f32 %v7662_v13, %v10261_v15  ;;  %v7665_v21 = vadd.f32 %v7664_v19, %v7663_v14  ;;  %v7729_v60 = vadd.f32 %v7728_v54, %v7727_v52  ;;  %v1395_v2 = vadd.f32 %v7726_v59, %v10261_v15  ;;  %v9366_v19 = vld [vmem:[%s9984_s28 + $0x3f0] ss:$8 sps:$4 sm:$0xff]  }
 0x16b   : > { %2552 = vmatmul.mubr.bf16.gmra.mrb[120].mxu0 %v9305_v12  ;;  %2779 = vmatmul.mubr.bf16.gmra.mrb[120].mxu1 %v9361_v55 }
 0x16c   : > { %v1212_v26 = vmax.f32 %v1168_v20, 0.0  ;;  %v1171_v27 = vadd.f32 %v7665_v21, %v10261_v15  ;;  %2559 = vmatprep.mubr.bf16.mxu0 %v9308_v16  ;;  %v1398_v3 = vadd.f32 %v7729_v60, %v10261_v15  ;;  %v1439_v8 = vmax.f32 %v1395_v2, 0.0  ;;  %v9363_v16 = vld [vmem:[%s9984_s28 + $0x3f4] ss:$8 sps:$4 sm:$0xff]   ;;  %s9539_s28 = smov [#allocation4]  }
 0x16d   : > { %2786 = vmatprep.mubr.bf16.mxu1 %v9363_v16  ;;  %s9476_s17 = sshll.u32 %s9539_s28, 4  ;;  %s9477_s17 = int_to_ptr.vmem [resolvable:$false] %s9476_s17 }
 0x16e   : > { %1229 = vst.msk [vmem:[#allocation2 + $0x30] sm:$0xff] %vm1222_vm0, %v1212_v26  ;;  %v1213_v32 = vmax.f32 %v1171_v27, 0.0  ;;  %v7666_v33 = vpop.f32.mrb[16].mxu0  ;;  %v1440_v9 = vmax.f32 %v1398_v3, 0.0  ;;  %v7730_v10 = vpop.f32.mrb[16].mxu1  ;;  %1456 = vst.msk [vmem:[#allocation2 + $0xb0] sm:$0xff] %vm1222_vm0, %v1439_v8  ;;  %p9479_p2 = scmp.lt.s32.totalorder %s11961_s25, %s9477_s17 }
 0x16f   : > { %v7667_v36 = vpop.f32.mrb[17].mxu0  ;;  %v7731_v11 = vpop.f32.mrb[17].mxu1  ;;  %s9478_s22 = scalar_lea.vmem %s9477_s17, 2048 }
 0x170   : > { %1230 = vst.msk [vmem:[#allocation2 + $0x38] sm:$0xff] %vm1222_vm0, %v1213_v32  ;;  %v7668_v38 = vadd.f32 %v7667_v36, %v7666_v33  ;;  %v7669_v39 = vpop.f32.mrb[18].mxu0  ;;  %1457 = vst.msk [vmem:[#allocation2 + $0xb8] sm:$0xff] %vm1222_vm0, %v1440_v9  ;;  %v7733_v14 = vpop.f32.mrb[18].mxu1  ;;  %v7732_v23 = vadd.f32 %v7731_v11, %v7730_v10  ;;  %p9480_p3 = scmp.lt.s32.totalorder %s9478_s22, %s9472_s16 }
 0x171   : > { %v7670_v42 = vpop.f32.mrb[19].mxu0  ;;  %v7734_v17 = vpop.f32.mrb[19].mxu1 }
 0x172   : > { %v1176_v43 = vadd.f32 %v7668_v38, %v10261_v15  ;;  %v7671_v44 = vadd.f32 %v7670_v42, %v7669_v39  ;;  %v7735_v24 = vadd.f32 %v7734_v17, %v7733_v14  ;;  %v1403_v29 = vadd.f32 %v7732_v23, %v10261_v15  ;;  %p9481_p4 = por %p9480_p3, %p9479_p2 }
 0x173   : > { %2560 = vmatmul.mubr.bf16.gmra.mrb[124].mxu0 %v9311_v37  ;;  %2787 = vmatmul.mubr.bf16.gmra.mrb[124].mxu1 %v9366_v19 }
 0x174   : > { %v1214_v49 = vmax.f32 %v1176_v43, 0.0  ;;  %v1179_v51 = vadd.f32 %v7671_v44, %v10261_v15  ;;  %8363 = vmatprep.mubr.msk.bf16.mxu0 %vm9537_vm1, %v9536_v50  ;;  %v1406_v30 = vadd.f32 %v7735_v24, %v10261_v15  ;;  %8395 = vmatprep.mubr.msk.bf16.mxu1 %vm9537_vm1, %v9536_v50  ;;  %v1441_v35 = vmax.f32 %v1403_v29, 0.0  ;;  %p9482_p5 = pnand %p9481_p4, %p9475_p1 }
 0x175   : > { %v2862_v28 = vld [vmem:[#allocation2 + $0x30] sm:$0xff] }
 0x176   : > { %1231 = vst.msk [vmem:[#allocation2 + $0x40] sm:$0xff] %vm1222_vm0, %v1214_v49  ;;  %v1215_v56 = vmax.f32 %v1179_v51, 0.0  ;;  %v7672_v57 = vpop.f32.mrb[20].mxu0  ;;  %v1442_v36 = vmax.f32 %v1406_v30, 0.0  ;;  %v7736_v37 = vpop.f32.mrb[20].mxu1  ;;  %1458 = vst.msk [vmem:[#allocation2 + $0xc0] sm:$0xff] %vm1222_vm0, %v1441_v35 }
 0x177   : > { %v7673_v61 = vpop.f32.mrb[21].mxu0  ;;  %v2863_v22 = vld [vmem:[#allocation2 + $0x38] sm:$0xff]  ;;  %v7737_v38 = vpop.f32.mrb[21].mxu1 }
 0x178   : > { %1232 = vst.msk [vmem:[#allocation2 + $0x48] sm:$0xff] %vm1222_vm0, %v1215_v56  ;;  %v7674_v62 = vadd.f32 %v7673_v61, %v7672_v57  ;;  %v7675_v63 = vpop.f32.mrb[22].mxu0  ;;  %v2879_v32 = vpack.c.bf16 %v2863_v22, %v2862_v28  ;;  %1459 = vst.msk [vmem:[#allocation2 + $0xc8] sm:$0xff] %vm1222_vm0, %v1442_v36  ;;  %v7738_v41 = vadd.f32 %v7737_v38, %v7736_v37  ;;  %v7739_v42 = vpop.f32.mrb[22].mxu1 }
 0x179   : > { %v7676_v4 = vpop.f32.mrb[23].mxu0  ;;  %v7740_v43 = vpop.f32.mrb[23].mxu1 }
 0x17a   : > { %v1184_v6 = vadd.f32 %v7674_v62, %v10261_v15  ;;  %v7677_v7 = vadd.f32 %v7676_v4, %v7675_v63  ;;  %v1411_v46 = vadd.f32 %v7738_v41, %v10261_v15  ;;  %v7741_v47 = vadd.f32 %v7740_v43, %v7739_v42 }
 0x17b   : > { %8364 = vmatmul.mubr.msk.bf16.vlgmr.msra.gmra.mrb[128].mxu0 %vm1222_vm0, %v2878_v5 }
 0x17c   : > { %v1216_v12 = vmax.f32 %v1184_v6, 0.0  ;;  %v1187_v13 = vadd.f32 %v7677_v7, %v10261_v15  ;;  %8367 = vmatprep.mubr.msk.bf16.mxu0 %vm9537_vm1, %v9536_v50  ;;  %8440 = vmatpush3.bf16.msra.mxu0 %v9362_v0  ;;  %v1443_v55 = vmax.f32 %v1411_v46, 0.0  ;;  %v1414_v56 = vadd.f32 %v7741_v47, %v10261_v15 }
 0x17d   : > { %8441 = vmatprep.subr.bf16.mxu0 %v9536_v50 }
 0x17e   : > { %1233 = vst.msk [vmem:[#allocation2 + $0x50] sm:$0xff] %vm1222_vm0, %v1216_v12  ;;  %v1217_v20 = vmax.f32 %v1187_v13, 0.0  ;;  %v7678_v21 = vpop.f32.mrb[24].mxu0  ;;  %1460 = vst.msk [vmem:[#allocation2 + $0xd0] sm:$0xff] %vm1222_vm0, %v1443_v55  ;;  %v1444_v60 = vmax.f32 %v1414_v56, 0.0  ;;  %v7742_v61 = vpop.f32.mrb[24].mxu1 }
 0x17f   : > { %v7679_v25 = vpop.f32.mrb[25].mxu0  ;;  %v7743_v62 = vpop.f32.mrb[25].mxu1 }
 0x180   : > { %1234 = vst.msk [vmem:[#allocation2 + $0x58] sm:$0xff] %vm1222_vm0, %v1217_v20  ;;  %v7680_v26 = vadd.f32 %v7679_v25, %v7678_v21  ;;  %v7681_v27 = vpop.f32.mrb[26].mxu0  ;;  %8442 = vmatpush3.bf16.msra.mxu0 %v9365_v18  ;;  %1461 = vst.msk [vmem:[#allocation2 + $0xd8] sm:$0xff] %vm1222_vm0, %v1444_v60  ;;  %v7744_v2 = vadd.f32 %v7743_v62, %v7742_v61  ;;  %v7745_v3 = vpop.f32.mrb[26].mxu1 }
 0x181   : > { %v7682_v31 = vpop.f32.mrb[27].mxu0  ;;  %8519 = vmatprep.subr.bf16.mxu0 %v9536_v50  ;;  %v7746_v4 = vpop.f32.mrb[27].mxu1 }
 0x182   : > { %v1192_v33 = vadd.f32 %v7680_v26, %v10261_v15  ;;  %v7683_v34 = vadd.f32 %v7682_v31, %v7681_v27  ;;  %v1419_v6 = vadd.f32 %v7744_v2, %v10261_v15  ;;  %v7747_v7 = vadd.f32 %v7746_v4, %v7745_v3 }
 0x183   : > { %8368 = vmatmul.mubr.msk.bf16.gmra.mrb[132].mxu0 %vm1222_vm0, %v2879_v32 }
 0x184   : > { %v1218_v39 = vmax.f32 %v1192_v33, 0.0  ;;  %v1195_v40 = vadd.f32 %v7683_v34, %v10261_v15  ;;  %8371 = vmatprep.mubr.msk.bf16.mxu0 %vm9537_vm1, %v9536_v50  ;;  %v1445_v11 = vmax.f32 %v1419_v6, 0.0  ;;  %v1422_v12 = vadd.f32 %v7747_v7, %v10261_v15 }
 0x185   : > { %v2864_v49 = vld [vmem:[#allocation2 + $0x50] sm:$0xff] }
 0x186   : > { %1235 = vst.msk [vmem:[#allocation2 + $0x60] sm:$0xff] %vm1222_vm0, %v1218_v39  ;;  %v1219_v44 = vmax.f32 %v1195_v40, 0.0  ;;  %v7684_v45 = vpop.f32.mrb[28].mxu0  ;;  %1462 = vst.msk [vmem:[#allocation2 + $0xe0] sm:$0xff] %vm1222_vm0, %v1445_v11  ;;  %v1446_v17 = vmax.f32 %v1422_v12, 0.0  ;;  %v7748_v18 = vpop.f32.mrb[28].mxu1 }
 0x187   : > { %v7685_v48 = vpop.f32.mrb[29].mxu0  ;;  %v2865_v51 = vld [vmem:[#allocation2 + $0x58] sm:$0xff]  ;;  %v7749_v19 = vpop.f32.mrb[29].mxu1 }
 0x188   : > { %1236 = vst.msk [vmem:[#allocation2 + $0x68] sm:$0xff] %vm1222_vm0, %v1219_v44  ;;  %v7686_v52 = vadd.f32 %v7685_v48, %v7684_v45  ;;  %v7687_v53 = vpop.f32.mrb[30].mxu0  ;;  %v2880_v54 = vpack.c.bf16 %v2865_v51, %v2864_v49  ;;  %1463 = vst.msk [vmem:[#allocation2 + $0xe8] sm:$0xff] %vm1222_vm0, %v1446_v17  ;;  %v7750_v22 = vadd.f32 %v7749_v19, %v7748_v18  ;;  %v7751_v23 = vpop.f32.mrb[30].mxu1 }
 0x189   : > { %v7688_v57 = vpop.f32.mrb[31].mxu0  ;;  %v7752_v24 = vpop.f32.mrb[31].mxu1 }
 0x18a   : > { %v1200_v58 = vadd.f32 %v7686_v52, %v10261_v15  ;;  %v7689_v59 = vadd.f32 %v7688_v57, %v7687_v53  ;;  %v1427_v27 = vadd.f32 %v7750_v22, %v10261_v15  ;;  %v7753_v28 = vadd.f32 %v7752_v24, %v7751_v23 }
 0x18b   : > { %8372 = vmatmul.mubr.msk.bf16.gmra.mrb[136].mxu0 %vm1222_vm0, %v2880_v54 }
 0x18c   : > { %v1220_v63 = vmax.f32 %v1200_v58, 0.0  ;;  %v1203_v1 = vadd.f32 %v7689_v59, %v10261_v15  ;;  %8375 = vmatprep.mubr.msk.bf16.mxu0 %vm9537_vm1, %v9536_v50  ;;  %v1447_v32 = vmax.f32 %v1427_v27, 0.0  ;;  %v1430_v33 = vadd.f32 %v7753_v28, %v10261_v15 }
 0x18e   : > { %1237 = vst.msk [vmem:[#allocation2 + $0x70] sm:$0xff] %vm1222_vm0, %v1220_v63  ;;  %v1221_v5 = vmax.f32 %v1203_v1, 0.0  ;;  %v7770_v0 = vpop.f32.mrb[32].mxu0  ;;  %1464 = vst.msk [vmem:[#allocation2 + $0xf0] sm:$0xff] %vm1222_vm0, %v1447_v32  ;;  %v1448_v37 = vmax.f32 %v1430_v33, 0.0  ;;  %v7834_v38 = vpop.f32.mrb[32].mxu1 }
 0x18f   : > { %v7771_v8 = vpop.f32.mrb[33].mxu0  ;;  %v7835_v39 = vpop.f32.mrb[33].mxu1 }
 0x190   : > { %1238 = vst.msk [vmem:[#allocation2 + $0x78] sm:$0xff] %vm1222_vm0, %v1221_v5  ;;  %v7772_v9 = vadd.f32 %v7771_v8, %v7770_v0  ;;  %v7773_v10 = vpop.f32.mrb[34].mxu0  ;;  %1465 = vst.msk [vmem:[#allocation2 + $0xf8] sm:$0xff] %vm1222_vm0, %v1448_v37  ;;  %v7836_v42 = vadd.f32 %v7835_v39, %v7834_v38  ;;  %v7837_v43 = vpop.f32.mrb[34].mxu1 }
 0x191   : > { %v7774_v13 = vpop.f32.mrb[35].mxu0  ;;  %v7838_v44 = vpop.f32.mrb[35].mxu1 }
 0x192   : > { %v1598_v14 = vadd.f32 %v7772_v9, %v10261_v15  ;;  %v7775_v16 = vadd.f32 %v7774_v13, %v7773_v10  ;;  %v1825_v47 = vadd.f32 %v7836_v42, %v10261_v15  ;;  %v7839_v48 = vadd.f32 %v7838_v44, %v7837_v43 }
 0x194   : > { %v1660_v20 = vmax.f32 %v1598_v14, 0.0  ;;  %v1601_v21 = vadd.f32 %v7775_v16, %v10261_v15  ;;  %v1887_v53 = vmax.f32 %v1825_v47, 0.0  ;;  %v1828_v54 = vadd.f32 %v7839_v48, %v10261_v15 }
 0x196   : > { %1677 = vst.msk [vmem:[#allocation2 + $0x100] sm:$0xff] %vm1222_vm0, %v1660_v20  ;;  %v1661_v25 = vmax.f32 %v1601_v21, 0.0  ;;  %v7776_v26 = vpop.f32.mrb[36].mxu0  ;;  %1904 = vst.msk [vmem:[#allocation2 + $0x180] sm:$0xff] %vm1222_vm0, %v1887_v53  ;;  %v1888_v58 = vmax.f32 %v1828_v54, 0.0  ;;  %v7840_v59 = vpop.f32.mrb[36].mxu1 }
 0x197   : > { %v7777_v29 = vpop.f32.mrb[37].mxu0  ;;  %v7841_v60 = vpop.f32.mrb[37].mxu1 }
 0x198   : > { %1678 = vst.msk [vmem:[#allocation2 + $0x108] sm:$0xff] %vm1222_vm0, %v1661_v25  ;;  %v7778_v30 = vadd.f32 %v7777_v29, %v7776_v26  ;;  %v7779_v31 = vpop.f32.mrb[38].mxu0  ;;  %1905 = vst.msk [vmem:[#allocation2 + $0x188] sm:$0xff] %vm1222_vm0, %v1888_v58  ;;  %v7842_v63 = vadd.f32 %v7841_v60, %v7840_v59  ;;  %v7843_v1 = vpop.f32.mrb[38].mxu1 }
 0x199   : > { %v7780_v34 = vpop.f32.mrb[39].mxu0  ;;  %v7844_v2 = vpop.f32.mrb[39].mxu1 }
 0x19a   : > { %v1606_v35 = vadd.f32 %v7778_v30, %v10261_v15  ;;  %v7781_v36 = vadd.f32 %v7780_v34, %v7779_v31  ;;  %v1833_v5 = vadd.f32 %v7842_v63, %v10261_v15  ;;  %v7845_v0 = vadd.f32 %v7844_v2, %v7843_v1 }
 0x19c   : > { %v1662_v40 = vmax.f32 %v1606_v35, 0.0  ;;  %v1609_v41 = vadd.f32 %v7781_v36, %v10261_v15  ;;  %v1889_v12 = vmax.f32 %v1833_v5, 0.0  ;;  %v1836_v13 = vadd.f32 %v7845_v0, %v10261_v15 }
 0x19e   : > { %1679 = vst.msk [vmem:[#allocation2 + $0x110] sm:$0xff] %vm1222_vm0, %v1662_v40  ;;  %v1663_v45 = vmax.f32 %v1609_v41, 0.0  ;;  %v7782_v46 = vpop.f32.mrb[40].mxu0  ;;  %1906 = vst.msk [vmem:[#allocation2 + $0x190] sm:$0xff] %vm1222_vm0, %v1889_v12  ;;  %v1890_v18 = vmax.f32 %v1836_v13, 0.0  ;;  %v7846_v19 = vpop.f32.mrb[40].mxu1 }
 0x19f   : > { %v7783_v49 = vpop.f32.mrb[41].mxu0  ;;  %v7847_v20 = vpop.f32.mrb[41].mxu1 }
 0x1a0   : > { %1680 = vst.msk [vmem:[#allocation2 + $0x118] sm:$0xff] %vm1222_vm0, %v1663_v45  ;;  %v7784_v51 = vadd.f32 %v7783_v49, %v7782_v46  ;;  %v7785_v52 = vpop.f32.mrb[42].mxu0  ;;  %1907 = vst.msk [vmem:[#allocation2 + $0x198] sm:$0xff] %vm1222_vm0, %v1890_v18  ;;  %v7848_v23 = vadd.f32 %v7847_v20, %v7846_v19  ;;  %v7849_v24 = vpop.f32.mrb[42].mxu1 }
 0x1a1   : > { %v7786_v55 = vpop.f32.mrb[43].mxu0  ;;  %v7850_v25 = vpop.f32.mrb[43].mxu1 }
 0x1a2   : > { %v1614_v56 = vadd.f32 %v7784_v51, %v10261_v15  ;;  %v7787_v57 = vadd.f32 %v7786_v55, %v7785_v52  ;;  %v1841_v28 = vadd.f32 %v7848_v23, %v10261_v15  ;;  %v7851_v29 = vadd.f32 %v7850_v25, %v7849_v24 }
 0x1a4   : > { %v1664_v61 = vmax.f32 %v1614_v56, 0.0  ;;  %v1617_v62 = vadd.f32 %v7787_v57, %v10261_v15  ;;  %v1891_v33 = vmax.f32 %v1841_v28, 0.0  ;;  %v1844_v34 = vadd.f32 %v7851_v29, %v10261_v15 }
 0x1a5   : > { %v4544_v6 = vld [vmem:[#allocation2 + $0x110] sm:$0xff] }
 0x1a6   : > { %1681 = vst.msk [vmem:[#allocation2 + $0x120] sm:$0xff] %vm1222_vm0, %v1664_v61  ;;  %v1665_v3 = vmax.f32 %v1617_v62, 0.0  ;;  %v7788_v4 = vpop.f32.mrb[44].mxu0  ;;  %1908 = vst.msk [vmem:[#allocation2 + $0x1a0] sm:$0xff] %vm1222_vm0, %v1891_v33  ;;  %v1892_v38 = vmax.f32 %v1844_v34, 0.0  ;;  %v7852_v39 = vpop.f32.mrb[44].mxu1 }
 0x1a7   : > { %v4545_v7 = vld [vmem:[#allocation2 + $0x118] sm:$0xff]  ;;  %v7789_v8 = vpop.f32.mrb[45].mxu0  ;;  %v7853_v40 = vpop.f32.mrb[45].mxu1 }
 0x1a8   : > { %v10385_v9 = vpack.c.bf16 %v4545_v7, %v4544_v6  ;;  %1682 = vst.msk [vmem:[#allocation2 + $0x128] sm:$0xff] %vm1222_vm0, %v1665_v3  ;;  %v7790_v10 = vadd.f32 %v7789_v8, %v7788_v4  ;;  %v7791_v11 = vpop.f32.mrb[46].mxu0  ;;  %1909 = vst.msk [vmem:[#allocation2 + $0x1a8] sm:$0xff] %vm1222_vm0, %v1892_v38  ;;  %v7854_v43 = vadd.f32 %v7853_v40, %v7852_v39  ;;  %v7855_v44 = vpop.f32.mrb[46].mxu1 }
 0x1a9   : > { %v7792_v14 = vpop.f32.mrb[47].mxu0  ;;  %v7856_v45 = vpop.f32.mrb[47].mxu1 }
 0x1aa   : > { %v1622_v16 = vadd.f32 %v7790_v10, %v10261_v15  ;;  %v7793_v17 = vadd.f32 %v7792_v14, %v7791_v11  ;;  %8376 = vmatmul.mubr.msk.bf16.gmra.mrb[140].mxu0 %vm1222_vm0, %v10385_v9  ;;  %v1849_v48 = vadd.f32 %v7854_v43, %v10261_v15  ;;  %v7857_v49 = vadd.f32 %v7856_v45, %v7855_v44 }
 0x1ab   : > { %8379 = vmatprep.mubr.msk.bf16.mxu0 %vm9537_vm1, %v9536_v50 }
 0x1ac   : > { %v1666_v21 = vmax.f32 %v1622_v16, 0.0  ;;  %v1625_v22 = vadd.f32 %v7793_v17, %v10261_v15  ;;  %v1893_v57 = vmax.f32 %v1849_v48, 0.0  ;;  %v1852_v58 = vadd.f32 %v7857_v49, %v10261_v15 }
 0x1ae   : > { %1683 = vst.msk [vmem:[#allocation2 + $0x130] sm:$0xff] %vm1222_vm0, %v1666_v21  ;;  %v1667_v26 = vmax.f32 %v1625_v22, 0.0  ;;  %v7794_v27 = vpop.f32.mrb[48].mxu0  ;;  %1910 = vst.msk [vmem:[#allocation2 + $0x1b0] sm:$0xff] %vm1222_vm0, %v1893_v57  ;;  %v1894_v62 = vmax.f32 %v1852_v58, 0.0  ;;  %v7858_v63 = vpop.f32.mrb[48].mxu1 }
 0x1af   : > { %v7795_v30 = vpop.f32.mrb[49].mxu0  ;;  %v7859_v1 = vpop.f32.mrb[49].mxu1 }
 0x1b0   : > { %1684 = vst.msk [vmem:[#allocation2 + $0x138] sm:$0xff] %vm1222_vm0, %v1667_v26  ;;  %v7796_v31 = vadd.f32 %v7795_v30, %v7794_v27  ;;  %v7797_v32 = vpop.f32.mrb[50].mxu0  ;;  %1911 = vst.msk [vmem:[#allocation2 + $0x1b8] sm:$0xff] %vm1222_vm0, %v1894_v62  ;;  %v7860_v4 = vadd.f32 %v7859_v1, %v7858_v63  ;;  %v7861_v5 = vpop.f32.mrb[50].mxu1 }
 0x1b1   : > { %v7798_v35 = vpop.f32.mrb[51].mxu0  ;;  %v7862_v0 = vpop.f32.mrb[51].mxu1 }
 0x1b2   : > { %v1630_v36 = vadd.f32 %v7796_v31, %v10261_v15  ;;  %v7799_v37 = vadd.f32 %v7798_v35, %v7797_v32  ;;  %v1857_v8 = vadd.f32 %v7860_v4, %v10261_v15  ;;  %v7863_v10 = vadd.f32 %v7862_v0, %v7861_v5 }
 0x1b4   : > { %v1668_v41 = vmax.f32 %v1630_v36, 0.0  ;;  %v1633_v42 = vadd.f32 %v7799_v37, %v10261_v15  ;;  %v1895_v14 = vmax.f32 %v1857_v8, 0.0  ;;  %v1860_v16 = vadd.f32 %v7863_v10, %v10261_v15 }
 0x1b5   : > { %v4934_v51 = vld [vmem:[#allocation2 + $0x130] sm:$0xff] }
 0x1b6   : > { %1685 = vst.msk [vmem:[#allocation2 + $0x140] sm:$0xff] %vm1222_vm0, %v1668_v41  ;;  %v1669_v46 = vmax.f32 %v1633_v42, 0.0  ;;  %v7800_v47 = vpop.f32.mrb[52].mxu0  ;;  %1912 = vst.msk [vmem:[#allocation2 + $0x1c0] sm:$0xff] %vm1222_vm0, %v1895_v14  ;;  %v1896_v20 = vmax.f32 %v1860_v16, 0.0  ;;  %v7864_v21 = vpop.f32.mrb[52].mxu1 }
 0x1b7   : > { %v4935_v52 = vld [vmem:[#allocation2 + $0x138] sm:$0xff]  ;;  %v7801_v53 = vpop.f32.mrb[53].mxu0  ;;  %v7865_v22 = vpop.f32.mrb[53].mxu1 }
 0x1b8   : > { %v10407_v54 = vpack.c.bf16 %v4935_v52, %v4934_v51  ;;  %1686 = vst.msk [vmem:[#allocation2 + $0x148] sm:$0xff] %vm1222_vm0, %v1669_v46  ;;  %v7802_v55 = vadd.f32 %v7801_v53, %v7800_v47  ;;  %v7803_v56 = vpop.f32.mrb[54].mxu0  ;;  %1913 = vst.msk [vmem:[#allocation2 + $0x1c8] sm:$0xff] %vm1222_vm0, %v1896_v20  ;;  %v7866_v25 = vadd.f32 %v7865_v22, %v7864_v21  ;;  %v7867_v26 = vpop.f32.mrb[54].mxu1 }
 0x1b9   : > { %v7804_v59 = vpop.f32.mrb[55].mxu0  ;;  %v7868_v27 = vpop.f32.mrb[55].mxu1 }
 0x1ba   : > { %v1638_v60 = vadd.f32 %v7802_v55, %v10261_v15  ;;  %v7805_v61 = vadd.f32 %v7804_v59, %v7803_v56  ;;  %8380 = vmatmul.mubr.msk.bf16.gmra.mrb[144].mxu0 %vm1222_vm0, %v10407_v54  ;;  %v1865_v30 = vadd.f32 %v7866_v25, %v10261_v15  ;;  %v7869_v31 = vadd.f32 %v7868_v27, %v7867_v26 }
 0x1bb   : > { %8383 = vmatprep.mubr.msk.bf16.mxu0 %vm9537_vm1, %v9536_v50 }
 0x1bc   : > { %v1670_v2 = vmax.f32 %v1638_v60, 0.0  ;;  %v1641_v3 = vadd.f32 %v7805_v61, %v10261_v15  ;;  %v1897_v38 = vmax.f32 %v1865_v30, 0.0  ;;  %v1868_v39 = vadd.f32 %v7869_v31, %v10261_v15 }
 0x1be   : > { %1687 = vst.msk [vmem:[#allocation2 + $0x150] sm:$0xff] %vm1222_vm0, %v1670_v2  ;;  %v1671_v6 = vmax.f32 %v1641_v3, 0.0  ;;  %v7806_v7 = vpop.f32.mrb[56].mxu0  ;;  %1914 = vst.msk [vmem:[#allocation2 + $0x1d0] sm:$0xff] %vm1222_vm0, %v1897_v38  ;;  %v1898_v43 = vmax.f32 %v1868_v39, 0.0  ;;  %v7870_v44 = vpop.f32.mrb[56].mxu1 }
 0x1bf   : > { %v7807_v11 = vpop.f32.mrb[57].mxu0  ;;  %v7871_v47 = vpop.f32.mrb[57].mxu1 }
 0x1c0   : > { %1688 = vst.msk [vmem:[#allocation2 + $0x158] sm:$0xff] %vm1222_vm0, %v1671_v6  ;;  %v7808_v12 = vadd.f32 %v7807_v11, %v7806_v7  ;;  %v7809_v13 = vpop.f32.mrb[58].mxu0  ;;  %1915 = vst.msk [vmem:[#allocation2 + $0x1d8] sm:$0xff] %vm1222_vm0, %v1898_v43  ;;  %v7873_v48 = vpop.f32.mrb[58].mxu1  ;;  %v7872_v52 = vadd.f32 %v7871_v47, %v7870_v44  ;;  %v10463_v47 = vld [vmem:[%s12007_s2] ss:$0 sm:$0xff] }
 0x1c1   : > { %v7810_v17 = vpop.f32.mrb[59].mxu0  ;;  %v7874_v53 = vpop.f32.mrb[59].mxu1 }
 0x1c2   : > { %v1646_v18 = vadd.f32 %v7808_v12, %v10261_v15  ;;  %v7811_v19 = vadd.f32 %v7810_v17, %v7809_v13  ;;  %v7875_v56 = vadd.f32 %v7874_v53, %v7873_v48  ;;  %v1873_v59 = vadd.f32 %v7872_v52, %v10261_v15 }
 0x1c4   : > { %v1672_v23 = vmax.f32 %v1646_v18, 0.0  ;;  %v1649_v24 = vadd.f32 %v7811_v19, %v10261_v15  ;;  %v1876_v61 = vadd.f32 %v7875_v56, %v10261_v15  ;;  %v1899_v1 = vmax.f32 %v1873_v59, 0.0 }
 0x1c5   : > { %v2870_v33 = vld [vmem:[#allocation2 + $0x150] sm:$0xff] }
 0x1c6   : > { %1689 = vst.msk [vmem:[#allocation2 + $0x160] sm:$0xff] %vm1222_vm0, %v1672_v23  ;;  %v1673_v28 = vmax.f32 %v1649_v24, 0.0  ;;  %v7812_v29 = vpop.f32.mrb[60].mxu0  ;;  %v7876_v2 = vpop.f32.mrb[60].mxu1  ;;  %v1900_v3 = vmax.f32 %v1876_v61, 0.0  ;;  %1916 = vst.msk [vmem:[#allocation2 + $0x1e0] sm:$0xff] %vm1222_vm0, %v1899_v1 }
 0x1c7   : > { %v7813_v32 = vpop.f32.mrb[61].mxu0  ;;  %v2871_v34 = vld [vmem:[#allocation2 + $0x158] sm:$0xff]  ;;  %v7877_v4 = vpop.f32.mrb[61].mxu1 }
 0x1c8   : > { %1690 = vst.msk [vmem:[#allocation2 + $0x168] sm:$0xff] %vm1222_vm0, %v1673_v28  ;;  %v7814_v35 = vadd.f32 %v7813_v32, %v7812_v29  ;;  %v7815_v36 = vpop.f32.mrb[62].mxu0  ;;  %v2883_v37 = vpack.c.bf16 %v2871_v34, %v2870_v33  ;;  %v7878_v6 = vadd.f32 %v7877_v4, %v7876_v2  ;;  %v7879_v7 = vpop.f32.mrb[62].mxu1  ;;  %1917 = vst.msk [vmem:[#allocation2 + $0x1e8] sm:$0xff] %vm1222_vm0, %v1900_v3 }
 0x1c9   : > { %v7816_v40 = vpop.f32.mrb[63].mxu0  ;;  %v7880_v8 = vpop.f32.mrb[63].mxu1 }
 0x1ca   : > { %v1654_v41 = vadd.f32 %v7814_v35, %v10261_v15  ;;  %v7817_v42 = vadd.f32 %v7816_v40, %v7815_v36  ;;  %8384 = vmatmul.mubr.msk.bf16.gmra.mrb[148].mxu0 %vm1222_vm0, %v2883_v37  ;;  %v1881_v12 = vadd.f32 %v7878_v6, %v10261_v15  ;;  %v7881_v13 = vadd.f32 %v7880_v8, %v7879_v7 }
 0x1cb   : > { %8387 = vmatprep.mubr.msk.bf16.mxu0 %vm9537_vm1, %v9536_v50 }
 0x1cc   : > { %v1674_v45 = vmax.f32 %v1654_v41, 0.0  ;;  %v1657_v46 = vadd.f32 %v7817_v42, %v10261_v15  ;;  %v1901_v18 = vmax.f32 %v1881_v12, 0.0  ;;  %v1884_v19 = vadd.f32 %v7881_v13, %v10261_v15 }
 0x1ce   : > { %1691 = vst.msk [vmem:[#allocation2 + $0x170] sm:$0xff] %vm1222_vm0, %v1674_v45  ;;  %v1675_v49 = vmax.f32 %v1657_v46, 0.0  ;;  %v7898_v51 = vpop.f32.mrb[64].mxu0  ;;  %1918 = vst.msk [vmem:[#allocation2 + $0x1f0] sm:$0xff] %vm1222_vm0, %v1901_v18  ;;  %v1902_v23 = vmax.f32 %v1884_v19, 0.0  ;;  %v7962_v24 = vpop.f32.mrb[64].mxu1 }
 0x1cf   : > { %v7899_v55 = vpop.f32.mrb[65].mxu0  ;;  %v7963_v25 = vpop.f32.mrb[65].mxu1 }
 0x1d0   : > { %1692 = vst.msk [vmem:[#allocation2 + $0x178] sm:$0xff] %vm1222_vm0, %v1675_v49  ;;  %v7900_v57 = vadd.f32 %v7899_v55, %v7898_v51  ;;  %v7901_v58 = vpop.f32.mrb[66].mxu0  ;;  %1919 = vst.msk [vmem:[#allocation2 + $0x1f8] sm:$0xff] %vm1222_vm0, %v1902_v23  ;;  %v7964_v28 = vadd.f32 %v7963_v25, %v7962_v24  ;;  %v7965_v29 = vpop.f32.mrb[66].mxu1 }
 0x1d1   : > { %v7902_v60 = vpop.f32.mrb[67].mxu0  ;;  %v7966_v30 = vpop.f32.mrb[67].mxu1 }
 0x1d2   : > { %v2052_v62 = vadd.f32 %v7900_v57, %v10261_v15  ;;  %v7903_v63 = vadd.f32 %v7902_v60, %v7901_v58  ;;  %v2279_v33 = vadd.f32 %v7964_v28, %v10261_v15  ;;  %v7967_v34 = vadd.f32 %v7966_v30, %v7965_v29 }
 0x1d4   : > { %v2114_v5 = vmax.f32 %v2052_v62, 0.0  ;;  %v2055_v0 = vadd.f32 %v7903_v63, %v10261_v15  ;;  %v2341_v38 = vmax.f32 %v2279_v33, 0.0  ;;  %v2282_v39 = vadd.f32 %v7967_v34, %v10261_v15 }
 0x1d6   : > { %2131 = vst.msk [vmem:[#allocation2 + $0x200] sm:$0xff] %vm1222_vm0, %v2114_v5  ;;  %v2115_v10 = vmax.f32 %v2055_v0, 0.0  ;;  %v7904_v11 = vpop.f32.mrb[68].mxu0  ;;  %2358 = vst.msk [vmem:[#allocation2 + $0x280] sm:$0xff] %vm1222_vm0, %v2341_v38  ;;  %v2342_v43 = vmax.f32 %v2282_v39, 0.0  ;;  %v7968_v44 = vpop.f32.mrb[68].mxu1 }
 0x1d7   : > { %v7905_v14 = vpop.f32.mrb[69].mxu0  ;;  %v7969_v45 = vpop.f32.mrb[69].mxu1 }
 0x1d8   : > { %2132 = vst.msk [vmem:[#allocation2 + $0x208] sm:$0xff] %vm1222_vm0, %v2115_v10  ;;  %v7906_v16 = vadd.f32 %v7905_v14, %v7904_v11  ;;  %v7907_v17 = vpop.f32.mrb[70].mxu0  ;;  %2359 = vst.msk [vmem:[#allocation2 + $0x288] sm:$0xff] %vm1222_vm0, %v2342_v43  ;;  %v7970_v49 = vadd.f32 %v7969_v45, %v7968_v44  ;;  %v7971_v51 = vpop.f32.mrb[70].mxu1 }
 0x1d9   : > { %v7908_v20 = vpop.f32.mrb[71].mxu0  ;;  %v7972_v52 = vpop.f32.mrb[71].mxu1 }
 0x1da   : > { %v2060_v21 = vadd.f32 %v7906_v16, %v10261_v15  ;;  %v7909_v22 = vadd.f32 %v7908_v20, %v7907_v17  ;;  %v2287_v55 = vadd.f32 %v10463_v47, %v7970_v49  ;;  %v7973_v56 = vadd.f32 %v7972_v52, %v7971_v51 }
 0x1dc   : > { %v2116_v26 = vmax.f32 %v2060_v21, 0.0  ;;  %v2063_v27 = vadd.f32 %v7909_v22, %v10261_v15  ;;  %v2343_v63 = vmax.f32 %v2287_v55, 0.0  ;;  %v2290_v1 = vadd.f32 %v10463_v47, %v7973_v56 }
 0x1de   : > { %2133 = vst.msk [vmem:[#allocation2 + $0x210] sm:$0xff] %vm1222_vm0, %v2116_v26  ;;  %v2117_v31 = vmax.f32 %v2063_v27, 0.0  ;;  %v7910_v32 = vpop.f32.mrb[72].mxu0  ;;  %2360 = vst.msk [vmem:[#allocation2 + $0x290] sm:$0xff] %vm1222_vm0, %v2343_v63  ;;  %v2344_v5 = vmax.f32 %v2290_v1, 0.0  ;;  %v7974_v0 = vpop.f32.mrb[72].mxu1 }
 0x1df   : > { %v7911_v35 = vpop.f32.mrb[73].mxu0  ;;  %v7975_v6 = vpop.f32.mrb[73].mxu1  ;;  %v3182_v63 = vld [vmem:[#allocation2 + $0x28] sm:$0xff] }
 0x1e0   : > { %2134 = vst.msk [vmem:[#allocation2 + $0x218] sm:$0xff] %vm1222_vm0, %v2117_v31  ;;  %v7912_v36 = vadd.f32 %v7911_v35, %v7910_v32  ;;  %v7913_v37 = vpop.f32.mrb[74].mxu0  ;;  %2361 = vst.msk [vmem:[#allocation2 + $0x298] sm:$0xff] %vm1222_vm0, %v2344_v5  ;;  %v7976_v10 = vadd.f32 %v7975_v6, %v7974_v0  ;;  %v7977_v11 = vpop.f32.mrb[74].mxu1  ;;  %v9371_v0 = vld [vmem:[%s12008_s3 + $0x40] sm:$0xff]  }
 0x1e1   : > { %v7914_v40 = vpop.f32.mrb[75].mxu0  ;;  %v7978_v12 = vpop.f32.mrb[75].mxu1 }
 0x1e2   : > { %v2068_v41 = vadd.f32 %v7912_v36, %v10261_v15  ;;  %v7915_v42 = vadd.f32 %v7914_v40, %v7913_v37  ;;  %v2295_v16 = vadd.f32 %v10463_v47, %v7976_v10  ;;  %v7979_v17 = vadd.f32 %v7978_v12, %v7977_v11 }
 0x1e4   : > { %v2118_v46 = vmax.f32 %v2068_v41, 0.0  ;;  %v2071_v48 = vadd.f32 %v10463_v47, %v7915_v42  ;;  %v2345_v22 = vmax.f32 %v2295_v16, 0.0  ;;  %v2298_v23 = vadd.f32 %v10463_v47, %v7979_v17  ;;  %v3184_v17 = vld [vmem:[#allocation2 + $0x48] sm:$0xff] }
 0x1e5   : > { %v2872_v58 = vld [vmem:[#allocation2 + $0x210] sm:$0xff] }
 0x1e6   : > { %2135 = vst.msk [vmem:[#allocation2 + $0x220] sm:$0xff] %vm1222_vm0, %v2118_v46  ;;  %v2119_v15 = vmax.f32 %v2071_v48, 0.0  ;;  %v7916_v53 = vpop.f32.mrb[76].mxu0  ;;  %v7980_v18 = vpop.f32.mrb[76].mxu1  ;;  %2362 = vst.msk [vmem:[#allocation2 + $0x2a0] sm:$0xff] %vm1222_vm0, %v2345_v22  ;;  %v2346_v27 = vmax.f32 %v2298_v23, 0.0 }
 0x1e7   : > { %v7917_v57 = vpop.f32.mrb[77].mxu0  ;;  %v2873_v59 = vld [vmem:[#allocation2 + $0x218] sm:$0xff]  ;;  %v7981_v28 = vpop.f32.mrb[77].mxu1  ;;  %v3183_v23 = vld [vmem:[#allocation2 + $0x40] sm:$0xff] }
 0x1e8   : > { %2136 = vst.msk [vmem:[#allocation2 + $0x228] sm:$0xff] %vm1222_vm0, %v2119_v15  ;;  %v7918_v60 = vadd.f32 %v7917_v57, %v7916_v53  ;;  %v7919_v61 = vpop.f32.mrb[78].mxu0  ;;  %v2884_v62 = vpack.c.bf16 %v2873_v59, %v2872_v58  ;;  %v7982_v29 = vadd.f32 %v7981_v28, %v7980_v18  ;;  %v7983_v30 = vpop.f32.mrb[78].mxu1  ;;  %2363 = vst.msk [vmem:[#allocation2 + $0x2a8] sm:$0xff] %vm1222_vm0, %v2346_v27 }
 0x1e9   : > { %v7920_v2 = vpop.f32.mrb[79].mxu0  ;;  %v7984_v33 = vpop.f32.mrb[79].mxu1 }
 0x1ea   : > { %v2076_v3 = vadd.f32 %v10463_v47, %v7918_v60  ;;  %v7921_v4 = vadd.f32 %v7920_v2, %v7919_v61  ;;  %8388 = vmatmul.mubr.msk.bf16.gmra.mrb[152].mxu0 %vm1222_vm0, %v2884_v62  ;;  %v2303_v34 = vadd.f32 %v10463_v47, %v7982_v29  ;;  %v7985_v35 = vadd.f32 %v7984_v33, %v7983_v30 }
 0x1eb   : > { %8391 = vmatprep.mubr.msk.bf16.mxu0 %vm9537_vm1, %v9536_v50  ;;  %v10520_v30 = vpack.c.bf16 %v3184_v17, %v3183_v23 }
 0x1ec   : > { %v2120_v7 = vmax.f32 %v2076_v3, 0.0  ;;  %v2079_v8 = vadd.f32 %v10463_v47, %v7921_v4  ;;  %v2347_v42 = vmax.f32 %v2303_v34, 0.0  ;;  %v2306_v43 = vadd.f32 %v10463_v47, %v7985_v35  ;;  %v3181_v4 = vld [vmem:[#allocation2 + $0x20] sm:$0xff] }
 0x1ed   : > { %v10505_v6 = vpack.c.bf16 %v3182_v63, %v3181_v4 }
 0x1ee   : > { %2137 = vst.msk [vmem:[#allocation2 + $0x230] sm:$0xff] %vm1222_vm0, %v2120_v7  ;;  %v2121_v13 = vmax.f32 %v2079_v8, 0.0  ;;  %v7922_v14 = vpop.f32.mrb[80].mxu0  ;;  %v7986_v38 = vpop.f32.mrb[80].mxu1  ;;  %2364 = vst.msk [vmem:[#allocation2 + $0x2b0] sm:$0xff] %vm1222_vm0, %v2347_v42  ;;  %v2348_v15 = vmax.f32 %v2306_v43, 0.0 }
 0x1ef   : > { %v7923_v19 = vpop.f32.mrb[81].mxu0  ;;  %v7987_v44 = vpop.f32.mrb[81].mxu1  ;;  %v9368_v43 = vld [vmem:[%s12008_s3 + $0x8] sm:$0xff]  }
 0x1f0   : > { %2138 = vst.msk [vmem:[#allocation2 + $0x238] sm:$0xff] %vm1222_vm0, %v2121_v13  ;;  %v7924_v20 = vadd.f32 %v7923_v19, %v7922_v14  ;;  %v7925_v21 = vpop.f32.mrb[82].mxu0  ;;  %v7988_v49 = vadd.f32 %v7987_v44, %v7986_v38  ;;  %v7989_v51 = vpop.f32.mrb[82].mxu1  ;;  %2365 = vst.msk [vmem:[#allocation2 + $0x2b8] sm:$0xff] %vm1222_vm0, %v2348_v15  ;;  %v9372_v14 = vld [vmem:[%s12008_s3 + $0x48] sm:$0xff]  }
 0x1f1   : > { %v7926_v24 = vpop.f32.mrb[83].mxu0  ;;  %v7990_v53 = vpop.f32.mrb[83].mxu1 }
 0x1f2   : > { %v2084_v25 = vadd.f32 %v10463_v47, %v7924_v20  ;;  %v7927_v26 = vadd.f32 %v7926_v24, %v7925_v21  ;;  %v2311_v57 = vadd.f32 %v10463_v47, %v7988_v49  ;;  %v7991_v58 = vadd.f32 %v7990_v53, %v7989_v51  ;;  %v2828_v53 = vld [vmem:[#allocation2] sm:$0xff] }
 0x1f4   : > { %v2122_v31 = vmax.f32 %v2084_v25, 0.0  ;;  %v2087_v32 = vadd.f32 %v10463_v47, %v7927_v26  ;;  %v2349_v61 = vmax.f32 %v2311_v57, 0.0  ;;  %v2314_v62 = vadd.f32 %v10463_v47, %v7991_v58 }
 0x1f5   : > { %v2874_v40 = vld [vmem:[#allocation2 + $0x230] sm:$0xff] }
 0x1f6   : > { %2139 = vst.msk [vmem:[#allocation2 + $0x240] sm:$0xff] %vm1222_vm0, %v2122_v31  ;;  %v2123_v36 = vmax.f32 %v2087_v32, 0.0  ;;  %v7928_v37 = vpop.f32.mrb[84].mxu0  ;;  %2366 = vst.msk [vmem:[#allocation2 + $0x2c0] sm:$0xff] %vm1222_vm0, %v2349_v61  ;;  %v2350_v3 = vmax.f32 %v2314_v62, 0.0  ;;  %v7992_v13 = vpop.f32.mrb[84].mxu1 }
 0x1f7   : > { %v7929_v39 = vpop.f32.mrb[85].mxu0  ;;  %v2875_v41 = vld [vmem:[#allocation2 + $0x238] sm:$0xff]  ;;  %v7993_v16 = vpop.f32.mrb[85].mxu1  ;;  %v9367_v31 = vld [vmem:[%s12008_s3] sm:$0xff]   ;;  %v9369_v61 = vld [vmem:[%s12008_s3 + $0x30] sm:$0xff]  }
 0x1f8   : > { %2140 = vst.msk [vmem:[#allocation2 + $0x248] sm:$0xff] %vm1222_vm0, %v2123_v36  ;;  %v7930_v45 = vadd.f32 %v7929_v39, %v7928_v37  ;;  %v7931_v46 = vpop.f32.mrb[86].mxu0  ;;  %v2885_v48 = vpack.c.bf16 %v2875_v41, %v2874_v40  ;;  %2367 = vst.msk [vmem:[#allocation2 + $0x2c8] sm:$0xff] %vm1222_vm0, %v2350_v3  ;;  %v7994_v20 = vadd.f32 %v7993_v16, %v7992_v13  ;;  %v7995_v21 = vpop.f32.mrb[86].mxu1 }
 0x1f9   : > { %v7932_v52 = vpop.f32.mrb[87].mxu0  ;;  %v7996_v22 = vpop.f32.mrb[87].mxu1 }
 0x1fa   : > { %v2092_v55 = vadd.f32 %v10463_v47, %v7930_v45  ;;  %v7933_v56 = vadd.f32 %v7932_v52, %v7931_v46  ;;  %8392 = vmatmul.mubr.msk.bf16.gmra.mrb[156].mxu0 %vm1222_vm0, %v2885_v48  ;;  %v2319_v26 = vadd.f32 %v10463_v47, %v7994_v20  ;;  %v7997_v27 = vadd.f32 %v7996_v22, %v7995_v21  ;;  %v2829_v45 = vld [vmem:[#allocation2 + $0x8] sm:$0xff] }
 0x1fb   : > { %8443 = vmatprep.mubr.msk.bf16.mxu0 %vm9537_vm1, %v9536_v50  ;;  %v3186_v52 = vld [vmem:[#allocation2 + $0x68] sm:$0xff] }
 0x1fc   : > { %v2124_v59 = vmax.f32 %v2092_v55, 0.0  ;;  %v2095_v60 = vadd.f32 %v10463_v47, %v7933_v56  ;;  %v2351_v36 = vmax.f32 %v2319_v26, 0.0  ;;  %v2322_v37 = vadd.f32 %v10463_v47, %v7997_v27 }
 0x1fe   : > { %2141 = vst.msk [vmem:[#allocation2 + $0x250] sm:$0xff] %vm1222_vm0, %v2124_v59  ;;  %v2125_v1 = vmax.f32 %v2095_v60, 0.0  ;;  %v7934_v2 = vpop.f32.mrb[88].mxu0  ;;  %2368 = vst.msk [vmem:[#allocation2 + $0x2d0] sm:$0xff] %vm1222_vm0, %v2351_v36  ;;  %v2352_v41 = vmax.f32 %v2322_v37, 0.0  ;;  %v7998_v42 = vpop.f32.mrb[88].mxu1  ;;  %v2846_v59 = vpack.c.bf16 %v2829_v45, %v2828_v53 }
 0x1ff   : > { %v7935_v5 = vpop.f32.mrb[89].mxu0  ;;  %v7999_v44 = vpop.f32.mrb[89].mxu1  ;;  %v3185_v60 = vld [vmem:[#allocation2 + $0x60] sm:$0xff] }
 0x200   : > { %2142 = vst.msk [vmem:[#allocation2 + $0x258] sm:$0xff] %vm1222_vm0, %v2125_v1  ;;  %v7936_v7 = vadd.f32 %v7935_v5, %v7934_v2  ;;  %v7937_v8 = vpop.f32.mrb[90].mxu0  ;;  %2369 = vst.msk [vmem:[#allocation2 + $0x2d8] sm:$0xff] %vm1222_vm0, %v2352_v41  ;;  %v8000_v49 = vadd.f32 %v7999_v44, %v7998_v42  ;;  %v8001_v51 = vpop.f32.mrb[90].mxu1  ;;  %v3201_v63 = vpack.c.bf16 %v3186_v52, %v3185_v60  ;;  %v3190_v41 = vld [vmem:[#allocation2 + $0x148] sm:$0xff] }
 0x201   : > { %v7938_v10 = vpop.f32.mrb[91].mxu0  ;;  %v8002_v15 = vpop.f32.mrb[91].mxu1 }
 0x202   : > { %8444 = vmatmul.mubr.msk.bf16.vlgmr.msra.gmra.mrb[160].mxu0 %vm1222_vm0, %v10505_v6  ;;  %v2100_v11 = vadd.f32 %v10463_v47, %v7936_v7  ;;  %v7939_v12 = vadd.f32 %v7938_v10, %v7937_v8  ;;  %v2327_v57 = vadd.f32 %v10463_v47, %v8000_v49  ;;  %v8003_v58 = vadd.f32 %v8002_v15, %v8001_v51 }
 0x203   : > { %8447 = vmatprep.mubr.msk.bf16.mxu0 %vm9537_vm1, %v9536_v50  ;;  %8520 = vmatpush3.bf16.msra.mxu0 %v9371_v0 }
 0x204   : > { %v2126_v18 = vmax.f32 %v2100_v11, 0.0  ;;  %v2103_v19 = vadd.f32 %v10463_v47, %v7939_v12  ;;  %8521 = vmatprep.subr.bf16.mxu0 %v9536_v50  ;;  %v2353_v3 = vmax.f32 %v2327_v57, 0.0  ;;  %v2330_v4 = vadd.f32 %v10463_v47, %v8003_v58  ;;  %v9370_v11 = vld [vmem:[%s12008_s3 + $0x38] sm:$0xff]  }
 0x205   : > { %v2876_v28 = vld [vmem:[#allocation2 + $0x250] sm:$0xff] }
 0x206   : > { %2143 = vst.msk [vmem:[#allocation2 + $0x260] sm:$0xff] %vm1222_vm0, %v2126_v18  ;;  %v2127_v24 = vmax.f32 %v2103_v19, 0.0  ;;  %v7940_v25 = vpop.f32.mrb[92].mxu0  ;;  %2370 = vst.msk [vmem:[#allocation2 + $0x2e0] sm:$0xff] %vm1222_vm0, %v2353_v3  ;;  %v2354_v8 = vmax.f32 %v2330_v4, 0.0  ;;  %v8004_v10 = vpop.f32.mrb[92].mxu1 }
 0x207   : > { %v2877_v29 = vld [vmem:[#allocation2 + $0x258] sm:$0xff]  ;;  %v7941_v32 = vpop.f32.mrb[93].mxu0  ;;  %8522 = vmatpush3.bf16.msra.mxu0 %v9372_v14  ;;  %v8005_v12 = vpop.f32.mrb[93].mxu1  ;;  %v10565_v18 = vld [vmem:[#allocation2 + $0x128] sm:$0xff] }
 0x208   : > { %v2886_v33 = vpack.c.bf16 %v2877_v29, %v2876_v28  ;;  %2144 = vst.msk [vmem:[#allocation2 + $0x268] sm:$0xff] %vm1222_vm0, %v2127_v24  ;;  %v7942_v34 = vadd.f32 %v7941_v32, %v7940_v25  ;;  %v7943_v35 = vpop.f32.mrb[94].mxu0  ;;  %8599 = vmatprep.subr.bf16.mxu0 %v9536_v50  ;;  %2371 = vst.msk [vmem:[#allocation2 + $0x2e8] sm:$0xff] %vm1222_vm0, %v2354_v8  ;;  %v8006_v16 = vadd.f32 %v8005_v12, %v8004_v10  ;;  %v8007_v17 = vpop.f32.mrb[94].mxu1  ;;  %v4739_v24 = vld [vmem:[#allocation2 + $0x120] sm:$0xff]  ;;  %v3192_v3 = vld [vmem:[#allocation2 + $0x168] sm:$0xff] }
 0x209   : > { %v7944_v38 = vpop.f32.mrb[95].mxu0  ;;  %v8008_v19 = vpop.f32.mrb[95].mxu1  ;;  %v10570_v26 = vpack.c.bf16 %v10565_v18, %v4739_v24  ;;  %v3191_v12 = vld [vmem:[#allocation2 + $0x160] sm:$0xff] }
 0x20a   : > { %8396 = vmatmul.mubr.msk.bf16.vlgmr.msra.gmra.mrb[128].mxu1 %vm1222_vm0, %v2886_v33  ;;  %8448 = vmatmul.mubr.msk.bf16.gmra.mrb[164].mxu0 %vm1222_vm0, %v10520_v30  ;;  %v2108_v39 = vadd.f32 %v10463_v47, %v7942_v34  ;;  %v7945_v40 = vadd.f32 %v7944_v38, %v7943_v35  ;;  %v2335_v22 = vadd.f32 %v10463_v47, %v8006_v16 }
 0x20b   : > { %8400 = vmatpush3.bf16.msra.mxu1 %v9367_v31  ;;  %8403 = vmatprep.mubr.msk.bf16.mxu1 %vm9537_vm1, %v9536_v50  ;;  %v8009_v23 = vadd.f32 %v8008_v19, %v8007_v17 }
 0x20c   : > { %8401 = vmatprep.subr.bf16.mxu1 %v9536_v50  ;;  %8451 = vmatprep.mubr.msk.bf16.mxu0 %vm9537_vm1, %v9536_v50  ;;  %v2128_v46 = vmax.f32 %v2108_v39, 0.0  ;;  %v2111_v48 = vadd.f32 %v10463_v47, %v7945_v40  ;;  %v2355_v29 = vmax.f32 %v2335_v22, 0.0 }
 0x20d   : > { %v2338_v31 = vadd.f32 %v10463_v47, %v8009_v23 }
 0x20e   : > { %2145 = vst.msk [vmem:[#allocation2 + $0x270] sm:$0xff] %vm1222_vm0, %v2128_v46  ;;  %v2129_v55 = vmax.f32 %v2111_v48, 0.0  ;;  %v8026_v56 = vpop.f32.mrb[96].mxu0  ;;  %2372 = vst.msk [vmem:[#allocation2 + $0x2f0] sm:$0xff] %vm1222_vm0, %v2355_v29  ;;  %v8090_v36 = vpop.f32.mrb[96].mxu1  ;;  %v3189_v48 = vld [vmem:[#allocation2 + $0x140] sm:$0xff] }
 0x20f   : > { %8402 = vmatpush3.bf16.msra.mxu1 %v9368_v43  ;;  %v8027_v62 = vpop.f32.mrb[97].mxu0  ;;  %v2356_v35 = vmax.f32 %v2338_v31, 0.0  ;;  %v8091_v37 = vpop.f32.mrb[97].mxu1  ;;  %v10589_v51 = vpack.c.bf16 %v3190_v41, %v3189_v48 }
 0x210   : > { %8479 = vmatprep.subr.bf16.mxu1 %v9536_v50  ;;  %2146 = vst.msk [vmem:[#allocation2 + $0x278] sm:$0xff] %vm1222_vm0, %v2129_v55  ;;  %v8028_v1 = vadd.f32 %v8027_v62, %v8026_v56  ;;  %v8029_v2 = vpop.f32.mrb[98].mxu0  ;;  %v8092_v39 = vadd.f32 %v8091_v37, %v8090_v36  ;;  %v8093_v40 = vpop.f32.mrb[98].mxu1  ;;  %v4350_v62 = vld [vmem:[#allocation2 + $0x108] sm:$0xff] }
 0x211   : > { %v8030_v5 = vpop.f32.mrb[99].mxu0  ;;  %2373 = vst.msk [vmem:[#allocation2 + $0x2f8] sm:$0xff] %vm1222_vm0, %v2356_v35  ;;  %v8094_v42 = vpop.f32.mrb[99].mxu1  ;;  %v2836_v35 = vld [vmem:[#allocation2 + $0x120] sm:$0xff] }
 0x212   : > { %8404 = vmatmul.mubr.msk.bf16.vlgmr.msra.gmra.mrb[132].mxu1 %vm1222_vm0, %v2846_v59  ;;  %8452 = vmatmul.mubr.msk.bf16.gmra.mrb[168].mxu0 %vm1222_vm0, %v3201_v63  ;;  %v2506_v0 = vadd.f32 %v10463_v47, %v8028_v1  ;;  %v8031_v7 = vadd.f32 %v8030_v5, %v8029_v2  ;;  %v2733_v45 = vadd.f32 %v10463_v47, %v8092_v39  ;;  %v4349_v5 = vld [vmem:[#allocation2 + $0x100] sm:$0xff] }
 0x213   : > { %8480 = vmatpush3.bf16.msra.mxu1 %v9369_v61  ;;  %8407 = vmatprep.mubr.msk.bf16.mxu1 %vm9537_vm1, %v9536_v50  ;;  %v8095_v46 = vadd.f32 %v8094_v42, %v8093_v40  ;;  %v2850_v39 = vpack.c.bf16 %v10565_v18, %v2836_v35  ;;  %v3193_v40 = vld [vmem:[#allocation2 + $0x220] sm:$0xff] }
 0x214   : > { %8455 = vmatprep.mubr.msk.bf16.mxu0 %vm9537_vm1, %v9536_v50  ;;  %v2568_v13 = vmax.f32 %v2506_v0, 0.0  ;;  %v2509_v14 = vadd.f32 %v10463_v47, %v8031_v7  ;;  %8481 = vmatprep.subr.bf16.mxu1 %v9536_v50  ;;  %v2795_v53 = vmax.f32 %v2733_v45, 0.0 }
 0x215   : > { %v2736_v55 = vadd.f32 %v10463_v47, %v8095_v46 }
 0x216   : > { %2585 = vst.msk [vmem:[#allocation2 + $0x300] sm:$0xff] %vm1222_vm0, %v2568_v13  ;;  %v2569_v20 = vmax.f32 %v2509_v14, 0.0  ;;  %v8032_v21 = vpop.f32.mrb[100].mxu0  ;;  %2812 = vst.msk [vmem:[#allocation2 + $0x380] sm:$0xff] %vm1222_vm0, %v2795_v53  ;;  %v8096_v60 = vpop.f32.mrb[100].mxu1  ;;  %v3204_v14 = vpack.c.bf16 %v3192_v3, %v3191_v12 }
 0x217   : > { %v8033_v25 = vpop.f32.mrb[101].mxu0  ;;  %8482 = vmatpush3.bf16.msra.mxu1 %v9370_v11  ;;  %v2796_v59 = vmax.f32 %v2736_v55, 0.0  ;;  %v8097_v61 = vpop.f32.mrb[101].mxu1  ;;  %v10607_v11 = vpack.c.bf16 %v4350_v62, %v4349_v5 }
 0x218   : > { %2586 = vst.msk [vmem:[#allocation2 + $0x308] sm:$0xff] %vm1222_vm0, %v2569_v20  ;;  %v8034_v27 = vadd.f32 %v8033_v25, %v8032_v21  ;;  %v8035_v28 = vpop.f32.mrb[102].mxu0  ;;  %8559 = vmatprep.subr.bf16.mxu1 %v9536_v50  ;;  %v8098_v1 = vadd.f32 %v8097_v61, %v8096_v60  ;;  %v8099_v2 = vpop.f32.mrb[102].mxu1 }
 0x219   : > { %v8036_v32 = vpop.f32.mrb[103].mxu0  ;;  %2813 = vst.msk [vmem:[#allocation2 + $0x388] sm:$0xff] %vm1222_vm0, %v2796_v59  ;;  %v8100_v4 = vpop.f32.mrb[103].mxu1  ;;  %v3196_v59 = vld [vmem:[#allocation2 + $0x248] sm:$0xff] }
 0x21a   : > { %8408 = vmatmul.mubr.msk.bf16.gmra.mrb[136].mxu1 %vm1222_vm0, %v10505_v6  ;;  %8456 = vmatmul.mubr.msk.bf16.gmra.mrb[172].mxu0 %vm1222_vm0, %v10570_v26  ;;  %v2514_v33 = vadd.f32 %v10463_v47, %v8034_v27  ;;  %v8037_v34 = vadd.f32 %v8036_v32, %v8035_v28  ;;  %v2741_v8 = vadd.f32 %v10463_v47, %v8098_v1  ;;  %v3195_v1 = vld [vmem:[#allocation2 + $0x240] sm:$0xff] }
 0x21b   : > { %8411 = vmatprep.mubr.msk.bf16.mxu1 %vm9537_vm1, %v9536_v50  ;;  %8459 = vmatprep.mubr.msk.bf16.mxu0 %vm9537_vm1, %v9536_v50  ;;  %v8101_v10 = vadd.f32 %v8100_v4, %v8099_v2  ;;  %v10642_v3 = vpack.c.bf16 %v3196_v59, %v3195_v1 }
 0x21c   : > { %v2570_v38 = vmax.f32 %v2514_v33, 0.0  ;;  %v2517_v6 = vadd.f32 %v10463_v47, %v8037_v34  ;;  %v2797_v19 = vmax.f32 %v2741_v8, 0.0  ;;  %v3194_v33 = vld [vmem:[#allocation2 + $0x228] sm:$0xff] }
 0x21d   : > { %v2744_v20 = vadd.f32 %v10463_v47, %v8101_v10  ;;  %v10625_v42 = vpack.c.bf16 %v3194_v33, %v3193_v40 }
 0x21e   : > { %2587 = vst.msk [vmem:[#allocation2 + $0x310] sm:$0xff] %vm1222_vm0, %v2570_v38  ;;  %v2571_v43 = vmax.f32 %v2517_v6, 0.0  ;;  %v8038_v44 = vpop.f32.mrb[104].mxu0  ;;  %2814 = vst.msk [vmem:[#allocation2 + $0x390] sm:$0xff] %vm1222_vm0, %v2797_v19  ;;  %v8102_v25 = vpop.f32.mrb[104].mxu1 }
 0x21f   : > { %v8039_v49 = vpop.f32.mrb[105].mxu0  ;;  %v2798_v24 = vmax.f32 %v2744_v20, 0.0  ;;  %v8103_v27 = vpop.f32.mrb[105].mxu1 }
 0x220   : > { %2588 = vst.msk [vmem:[#allocation2 + $0x318] sm:$0xff] %vm1222_vm0, %v2571_v43  ;;  %v8040_v52 = vadd.f32 %v8039_v49, %v8038_v44  ;;  %v8041_v15 = vpop.f32.mrb[106].mxu0  ;;  %v8104_v31 = vadd.f32 %v8103_v27, %v8102_v25  ;;  %v8105_v32 = vpop.f32.mrb[106].mxu1 }
 0x221   : > { %v8042_v56 = vpop.f32.mrb[107].mxu0  ;;  %2815 = vst.msk [vmem:[#allocation2 + $0x398] sm:$0xff] %vm1222_vm0, %v2798_v24  ;;  %v8106_v34 = vpop.f32.mrb[107].mxu1 }
 0x222   : > { %8412 = vmatmul.mubr.msk.bf16.gmra.mrb[140].mxu1 %vm1222_vm0, %v10520_v30  ;;  %8460 = vmatmul.mubr.msk.bf16.gmra.mrb[176].mxu0 %vm1222_vm0, %v10589_v51  ;;  %v2522_v57 = vadd.f32 %v10463_v47, %v8040_v52  ;;  %v8043_v58 = vadd.f32 %v8042_v56, %v8041_v15  ;;  %v2749_v38 = vadd.f32 %v10463_v47, %v8104_v31 }
 0x223   : > { %8415 = vmatprep.mubr.msk.bf16.mxu1 %vm9537_vm1, %v9536_v50  ;;  %8463 = vmatprep.mubr.msk.bf16.mxu0 %vm9537_vm1, %v9536_v50  ;;  %v8107_v6 = vadd.f32 %v8106_v34, %v8105_v32  ;;  %v2840_v32 = vld [vmem:[#allocation2 + $0x200] sm:$0xff] }
 0x224   : > { %v2572_v63 = vmax.f32 %v2522_v57, 0.0  ;;  %v2525_v30 = vadd.f32 %v10463_v47, %v8043_v58  ;;  %v2799_v45 = vmax.f32 %v2749_v38, 0.0 }
 0x225   : > { %v2752_v46 = vadd.f32 %v10463_v47, %v8107_v6 }
 0x226   : > { %2589 = vst.msk [vmem:[#allocation2 + $0x320] sm:$0xff] %vm1222_vm0, %v2572_v63  ;;  %v2573_v0 = vmax.f32 %v2525_v30, 0.0  ;;  %v8044_v7 = vpop.f32.mrb[108].mxu0  ;;  %2816 = vst.msk [vmem:[#allocation2 + $0x3a0] sm:$0xff] %vm1222_vm0, %v2799_v45  ;;  %v8108_v15 = vpop.f32.mrb[108].mxu1 }
 0x227   : > { %v8045_v13 = vpop.f32.mrb[109].mxu0  ;;  %v2800_v52 = vmax.f32 %v2752_v46, 0.0  ;;  %v8109_v53 = vpop.f32.mrb[109].mxu1 }
 0x228   : > { %2590 = vst.msk [vmem:[#allocation2 + $0x328] sm:$0xff] %vm1222_vm0, %v2573_v0  ;;  %v8046_v16 = vadd.f32 %v8045_v13, %v8044_v7  ;;  %v8047_v17 = vpop.f32.mrb[110].mxu0  ;;  %v8110_v57 = vadd.f32 %v8109_v53, %v8108_v15  ;;  %v8111_v58 = vpop.f32.mrb[110].mxu1 }
 0x229   : > { %v8048_v21 = vpop.f32.mrb[111].mxu0  ;;  %2817 = vst.msk [vmem:[#allocation2 + $0x3a8] sm:$0xff] %vm1222_vm0, %v2800_v52  ;;  %v8112_v60 = vpop.f32.mrb[111].mxu1  ;;  %v3571_v52 = vld [vmem:[#allocation2 + $0x88] sm:$0xff] }
 0x22a   : > { %8416 = vmatmul.mubr.msk.bf16.gmra.mrb[144].mxu1 %vm1222_vm0, %v10607_v11  ;;  %8464 = vmatmul.mubr.msk.bf16.gmra.mrb[180].mxu0 %vm1222_vm0, %v3204_v14  ;;  %v2530_v22 = vadd.f32 %v10463_v47, %v8046_v16  ;;  %v8049_v23 = vadd.f32 %v8048_v21, %v8047_v17  ;;  %v2757_v63 = vadd.f32 %v10463_v47, %v8110_v57  ;;  %v3197_v16 = vld [vmem:[#allocation2 + $0x260] sm:$0xff]  ;;  %v3198_v17 = vld [vmem:[#allocation2 + $0x268] sm:$0xff] }
 0x22b   : > { %8419 = vmatprep.mubr.msk.bf16.mxu1 %vm9537_vm1, %v9536_v50  ;;  %8467 = vmatprep.mubr.msk.bf16.mxu0 %vm9537_vm1, %v9536_v50  ;;  %v8113_v30 = vadd.f32 %v8112_v60, %v8111_v58  ;;  %v3207_v25 = vpack.c.bf16 %v3198_v17, %v3197_v16  ;;  %v3573_v16 = vld [vmem:[#allocation2 + $0xa8] sm:$0xff] }
 0x22c   : > { %v2574_v28 = vmax.f32 %v2530_v22, 0.0  ;;  %v2533_v29 = vadd.f32 %v10463_v47, %v8049_v23  ;;  %v2801_v0 = vmax.f32 %v2757_v63, 0.0  ;;  %v2841_v23 = vld [vmem:[#allocation2 + $0x208] sm:$0xff] }
 0x22d   : > { %v2760_v7 = vadd.f32 %v10463_v47, %v8113_v30  ;;  %v2852_v34 = vpack.c.bf16 %v2841_v23, %v2840_v32 }
 0x22e   : > { %2591 = vst.msk [vmem:[#allocation2 + $0x330] sm:$0xff] %vm1222_vm0, %v2574_v28  ;;  %v2575_v36 = vmax.f32 %v2533_v29, 0.0  ;;  %v8050_v37 = vpop.f32.mrb[112].mxu0  ;;  %2818 = vst.msk [vmem:[#allocation2 + $0x3b0] sm:$0xff] %vm1222_vm0, %v2801_v0  ;;  %v8114_v14 = vpop.f32.mrb[112].mxu1 }
 0x22f   : > { %v8051_v41 = vpop.f32.mrb[113].mxu0  ;;  %v2802_v13 = vmax.f32 %v2760_v7, 0.0  ;;  %v8115_v19 = vpop.f32.mrb[113].mxu1 }
 0x230   : > { %2592 = vst.msk [vmem:[#allocation2 + $0x338] sm:$0xff] %vm1222_vm0, %v2575_v36  ;;  %v8052_v43 = vadd.f32 %v8051_v41, %v8050_v37  ;;  %v8053_v44 = vpop.f32.mrb[114].mxu0  ;;  %v8116_v21 = vadd.f32 %v8115_v19, %v8114_v14  ;;  %v8117_v22 = vpop.f32.mrb[114].mxu1  ;;  %v3572_v14 = vld [vmem:[#allocation2 + $0xa0] sm:$0xff] }
 0x231   : > { %v8054_v48 = vpop.f32.mrb[115].mxu0  ;;  %2819 = vst.msk [vmem:[#allocation2 + $0x3b8] sm:$0xff] %vm1222_vm0, %v2802_v13  ;;  %v8118_v24 = vpop.f32.mrb[115].mxu1 }
 0x232   : > { %8420 = vmatmul.mubr.msk.bf16.gmra.mrb[148].mxu1 %vm1222_vm0, %v2850_v39  ;;  %8468 = vmatmul.mubr.msk.bf16.gmra.mrb[184].mxu0 %vm1222_vm0, %v10625_v42  ;;  %v2538_v49 = vadd.f32 %v10463_v47, %v8052_v43  ;;  %v8055_v18 = vadd.f32 %v8054_v48, %v8053_v44  ;;  %v2765_v29 = vadd.f32 %v10463_v47, %v8116_v21 }
 0x233   : > { %8423 = vmatprep.mubr.msk.bf16.mxu1 %vm9537_vm1, %v9536_v50  ;;  %8471 = vmatprep.mubr.msk.bf16.mxu0 %vm9537_vm1, %v9536_v50  ;;  %v8119_v31 = vadd.f32 %v8118_v24, %v8117_v22  ;;  %v10701_v24 = vpack.c.bf16 %v3573_v16, %v3572_v14  ;;  %v3582_v14 = vld [vmem:[#allocation2 + $0x280] sm:$0xff]  ;;  %v3583_v16 = vld [vmem:[#allocation2 + $0x288] sm:$0xff] }
 0x234   : > { %v2576_v55 = vmax.f32 %v2538_v49, 0.0  ;;  %v2541_v56 = vadd.f32 %v10463_v47, %v8055_v18  ;;  %v2803_v37 = vmax.f32 %v2765_v29, 0.0  ;;  %v3570_v18 = vld [vmem:[#allocation2 + $0x80] sm:$0xff] }
 0x235   : > { %v2768_v38 = vadd.f32 %v10463_v47, %v8119_v31  ;;  %v3588_v59 = vpack.c.bf16 %v3571_v52, %v3570_v18 }
 0x236   : > { %2593 = vst.msk [vmem:[#allocation2 + $0x340] sm:$0xff] %vm1222_vm0, %v2576_v55  ;;  %v2577_v61 = vmax.f32 %v2541_v56, 0.0  ;;  %v8056_v62 = vpop.f32.mrb[116].mxu0  ;;  %2820 = vst.msk [vmem:[#allocation2 + $0x3c0] sm:$0xff] %vm1222_vm0, %v2803_v37  ;;  %v8120_v43 = vpop.f32.mrb[116].mxu1 }
 0x237   : > { %v8057_v2 = vpop.f32.mrb[117].mxu0  ;;  %v2804_v41 = vmax.f32 %v2768_v38, 0.0  ;;  %v8121_v44 = vpop.f32.mrb[117].mxu1 }
 0x238   : > { %2594 = vst.msk [vmem:[#allocation2 + $0x348] sm:$0xff] %vm1222_vm0, %v2577_v61  ;;  %v8058_v4 = vadd.f32 %v8057_v2, %v8056_v62  ;;  %v8059_v5 = vpop.f32.mrb[118].mxu0  ;;  %v8122_v48 = vadd.f32 %v8121_v44, %v8120_v43  ;;  %v8123_v49 = vpop.f32.mrb[118].mxu1  ;;  %v9375_v62 = vld [vmem:[%s12008_s3 + $0x60] sm:$0xff]   ;;  %v9373_v43 = vld [vmem:[%s12008_s3 + $0x50] sm:$0xff]  }
 0x239   : > { %v8060_v8 = vpop.f32.mrb[119].mxu0  ;;  %2821 = vst.msk [vmem:[#allocation2 + $0x3c8] sm:$0xff] %vm1222_vm0, %v2804_v41  ;;  %v8124_v15 = vpop.f32.mrb[119].mxu1  ;;  %v3376_v41 = vld [vmem:[#allocation2 + $0x30] sm:$0xff] }
 0x23a   : > { %8424 = vmatmul.mubr.msk.bf16.gmra.mrb[152].mxu1 %vm1222_vm0, %v10589_v51  ;;  %8472 = vmatmul.mubr.msk.bf16.gmra.mrb[188].mxu0 %vm1222_vm0, %v10642_v3  ;;  %v2546_v10 = vadd.f32 %v10463_v47, %v8058_v4  ;;  %v8061_v12 = vadd.f32 %v8060_v8, %v8059_v5  ;;  %v2773_v56 = vadd.f32 %v10463_v47, %v8122_v48 }
 0x23b   : > { %8427 = vmatprep.mubr.msk.bf16.mxu1 %vm9537_vm1, %v9536_v50  ;;  %8475 = vmatprep.mubr.msk.bf16.mxu0 %vm9537_vm1, %v9536_v50  ;;  %v8125_v57 = vadd.f32 %v8124_v15, %v8123_v49  ;;  %v9374_v15 = vld [vmem:[%s12008_s3 + $0x58] sm:$0xff]  }
 0x23c   : > { %v2578_v51 = vmax.f32 %v2546_v10, 0.0  ;;  %v2549_v20 = vadd.f32 %v10463_v47, %v8061_v12  ;;  %v2805_v63 = vmax.f32 %v2773_v56, 0.0 }
 0x23d   : > { %v2776_v30 = vadd.f32 %v10463_v47, %v8125_v57 }
 0x23e   : > { %2595 = vst.msk [vmem:[#allocation2 + $0x350] sm:$0xff] %vm1222_vm0, %v2578_v51  ;;  %v2579_v27 = vmax.f32 %v2549_v20, 0.0  ;;  %v8062_v28 = vpop.f32.mrb[120].mxu0  ;;  %2822 = vst.msk [vmem:[#allocation2 + $0x3d0] sm:$0xff] %vm1222_vm0, %v2805_v63  ;;  %v8126_v0 = vpop.f32.mrb[120].mxu1  ;;  %v5518_v63 = vld [vmem:[#allocation2 + $0x1a0] sm:$0xff] }
 0x23f   : > { %v8063_v33 = vpop.f32.mrb[121].mxu0  ;;  %v2806_v5 = vmax.f32 %v2776_v30, 0.0  ;;  %v8127_v7 = vpop.f32.mrb[121].mxu1  ;;  %v10753_v30 = vld [vmem:[#allocation2 + $0x1a8] sm:$0xff] }
 0x240   : > { %2596 = vst.msk [vmem:[#allocation2 + $0x358] sm:$0xff] %vm1222_vm0, %v2579_v27  ;;  %v8064_v35 = vadd.f32 %v8063_v33, %v8062_v28  ;;  %v8065_v36 = vpop.f32.mrb[122].mxu0  ;;  %v8128_v12 = vadd.f32 %v8127_v7, %v8126_v0  ;;  %v8129_v13 = vpop.f32.mrb[122].mxu1  ;;  %v3383_v0 = vld [vmem:[#allocation2 + $0x138] sm:$0xff]  ;;  %v3580_v7 = vld [vmem:[#allocation2 + $0x1c0] sm:$0xff] }
 0x241   : > { %v8066_v6 = vpop.f32.mrb[123].mxu0  ;;  %2823 = vst.msk [vmem:[#allocation2 + $0x3d8] sm:$0xff] %vm1222_vm0, %v2806_v5  ;;  %v8130_v17 = vpop.f32.mrb[123].mxu1 }
 0x242   : > { %8428 = vmatmul.mubr.msk.bf16.gmra.mrb[156].mxu1 %vm1222_vm0, %v2852_v34  ;;  %8476 = vmatmul.mubr.msk.bf16.gmra.mrb[192].mxu0 %vm1222_vm0, %v3207_v25  ;;  %v2554_v39 = vadd.f32 %v10463_v47, %v8064_v35  ;;  %v8067_v40 = vadd.f32 %v8066_v6, %v8065_v36  ;;  %v2781_v20 = vadd.f32 %v10463_v47, %v8128_v12  ;;  %v3377_v35 = vld [vmem:[#allocation2 + $0x38] sm:$0xff]  ;;  %v3575_v36 = vld [vmem:[#allocation2 + $0xc8] sm:$0xff] }
 0x243   : > { %8431 = vmatprep.mubr.msk.bf16.mxu1 %vm9537_vm1, %v9536_v50  ;;  %8523 = vmatprep.mubr.msk.bf16.mxu0 %vm9537_vm1, %v9536_v50  ;;  %v8131_v21 = vadd.f32 %v8130_v17, %v8129_v13  ;;  %v3385_v13 = vld [vmem:[#allocation2 + $0x158] sm:$0xff]  ;;  %v3384_v17 = vld [vmem:[#allocation2 + $0x150] sm:$0xff] }
 0x244   : > { %v2580_v45 = vmax.f32 %v2554_v39, 0.0  ;;  %v2557_v46 = vadd.f32 %v10463_v47, %v8067_v40  ;;  %v2807_v25 = vmax.f32 %v2781_v20, 0.0  ;;  %v3594_v20 = vpack.c.bf16 %v3583_v16, %v3582_v14  ;;  %v3769_v16 = vld [vmem:[#allocation2 + $0xd0] sm:$0xff] }
 0x245   : > { %v2784_v27 = vadd.f32 %v10463_v47, %v8131_v21 }
 0x246   : > { %2597 = vst.msk [vmem:[#allocation2 + $0x360] sm:$0xff] %vm1222_vm0, %v2580_v45  ;;  %v2581_v53 = vmax.f32 %v2557_v46, 0.0  ;;  %v8068_v55 = vpop.f32.mrb[124].mxu0  ;;  %2824 = vst.msk [vmem:[#allocation2 + $0x3e0] sm:$0xff] %vm1222_vm0, %v2807_v25  ;;  %v8132_v31 = vpop.f32.mrb[124].mxu1  ;;  %v3394_v45 = vpack.c.bf16 %v3377_v35, %v3376_v41  ;;  %v3584_v25 = vld [vmem:[#allocation2 + $0x2a0] sm:$0xff] }
 0x247   : > { %v8069_v58 = vpop.f32.mrb[125].mxu0  ;;  %v2808_v29 = vmax.f32 %v2784_v27, 0.0  ;;  %v8133_v32 = vpop.f32.mrb[125].mxu1  ;;  %v3585_v27 = vld [vmem:[#allocation2 + $0x2a8] sm:$0xff]  ;;  %v3586_v35 = vld [vmem:[#allocation2 + $0x2c0] sm:$0xff]  ;;  %v3391_v41 = vld [vmem:[#allocation2 + $0x258] sm:$0xff] }
 0x248   : > { %2598 = vst.msk [vmem:[#allocation2 + $0x368] sm:$0xff] %vm1222_vm0, %v2581_v53  ;;  %v8070_v60 = vadd.f32 %v8069_v58, %v8068_v55  ;;  %v8071_v61 = vpop.f32.mrb[126].mxu0  ;;  %v8134_v33 = vadd.f32 %v8133_v32, %v8132_v31  ;;  %v8135_v34 = vpop.f32.mrb[126].mxu1  ;;  %v5129_v53 = vld [vmem:[#allocation2 + $0x188] sm:$0xff]  ;;  %v3379_v55 = vld [vmem:[#allocation2 + $0x58] sm:$0xff]  ;;  %v3378_v58 = vld [vmem:[#allocation2 + $0x50] sm:$0xff] }
 0x249   : > { %v8072_v1 = vpop.f32.mrb[127].mxu0  ;;  %2825 = vst.msk [vmem:[#allocation2 + $0x3e8] sm:$0xff] %vm1222_vm0, %v2808_v29  ;;  %v8136_v37 = vpop.f32.mrb[127].mxu1  ;;  %v3386_v31 = vld [vmem:[#allocation2 + $0x170] sm:$0xff] }
 0x24a   : > { %8432 = vmatmul.mubr.msk.bf16.gmra.mrb[160].mxu1 %vm1222_vm0, %v10625_v42  ;;  %8524 = vmatmul.mubr.msk.bf16.vlgmr.msra.gmra.mrb[196].mxu0 %vm1222_vm0, %v3588_v59  ;;  %v2562_v2 = vadd.f32 %v10463_v47, %v8070_v60  ;;  %v8073_v4 = vadd.f32 %v8072_v1, %v8071_v61  ;;  %v9376_v42 = vld [vmem:[%s12008_s3 + $0x68] sm:$0xff]   ;;  %v2789_v6 = vadd.f32 %v10463_v47, %v8134_v33  ;;  %v3381_v1 = vld [vmem:[#allocation2 + $0x78] sm:$0xff] }
 0x24b   : > { %8435 = vmatprep.mubr.msk.bf16.mxu1 %vm9537_vm1, %v9536_v50  ;;  %8527 = vmatprep.mubr.msk.bf16.mxu0 %vm9537_vm1, %v9536_v50  ;;  %v8137_v39 = vadd.f32 %v8136_v37, %v8135_v34  ;;  %v3395_v61 = vpack.c.bf16 %v3379_v55, %v3378_v58  ;;  %v10784_v34 = vpack.c.bf16 %v3585_v27, %v3584_v25  ;;  %v3766_v58 = vld [vmem:[#allocation2 + $0x98] sm:$0xff]  ;;  %v3971_v25 = vld [vmem:[#allocation2 + $0x1e8] sm:$0xff] }
 0x24c   : > { %v2582_v8 = vmax.f32 %v2562_v2, 0.0  ;;  %v2565_v10 = vadd.f32 %v10463_v47, %v8073_v4  ;;  %8600 = vmatpush3.bf16.msra.mxu0 %v9375_v62  ;;  %v2809_v48 = vmax.f32 %v2789_v6, 0.0  ;;  %v3380_v2 = vld [vmem:[#allocation2 + $0x70] sm:$0xff]  ;;  %v10756_v4 = vpack.c.bf16 %v10753_v30, %v5518_v63 }
 0x24d   : > { %8601 = vmatprep.subr.bf16.mxu0 %v9536_v50  ;;  %v2792_v49 = vadd.f32 %v10463_v47, %v8137_v39  ;;  %v5128_v47 = vld [vmem:[#allocation2 + $0x180] sm:$0xff]  ;;  %v3396_v5 = vpack.c.bf16 %v3381_v1, %v3380_v2  ;;  %v3388_v6 = vld [vmem:[#allocation2 + $0x230] sm:$0xff] }
 0x24e   : > { %2599 = vst.msk [vmem:[#allocation2 + $0x370] sm:$0xff] %vm1222_vm0, %v2582_v8  ;;  %v2583_v19 = vmax.f32 %v2565_v10, 0.0  ;;  %v10695_v51 = vpop.f32.mrb[128].mxu0  ;;  %2826 = vst.msk [vmem:[#allocation2 + $0x3f0] sm:$0xff] %vm1222_vm0, %v2809_v48  ;;  %v10741_v59 = vpack.c.bf16 %v5129_v53, %v5128_v47  ;;  %v3581_v8 = vld [vmem:[#allocation2 + $0x1c8] sm:$0xff]  ;;  %v3382_v10 = vld [vmem:[#allocation2 + $0x130] sm:$0xff] }
 0x24f   : > { %v8365_v22 = vpop.f32.mrb[129].mxu0  ;;  %v2810_v52 = vmax.f32 %v2792_v49, 0.0  ;;  %v10765_v12 = vpack.c.bf16 %v3581_v8, %v3580_v7  ;;  %v3390_v48 = vld [vmem:[#allocation2 + $0x250] sm:$0xff]  ;;  %v3393_v53 = vld [vmem:[#allocation2 + $0x278] sm:$0xff] }
 0x250   : > { %2600 = vst.msk [vmem:[#allocation2 + $0x378] sm:$0xff] %vm1222_vm0, %v2583_v19  ;;  %v10699_v23 = vpop.f32.mrb[130].mxu0  ;;  %8602 = vmatpush3.bf16.msra.mxu0 %v9376_v42  ;;  %v3397_v42 = vpack.c.bf16 %v3383_v0, %v3382_v10  ;;  %v3398_v19 = vpack.c.bf16 %v3385_v13, %v3384_v17  ;;  %v3387_v22 = vld [vmem:[#allocation2 + $0x178] sm:$0xff]  ;;  %v3392_v47 = vld [vmem:[#allocation2 + $0x270] sm:$0xff] }
 0x251   : > { %v8366_v28 = vpop.f32.mrb[131].mxu0  ;;  %8679 = vmatprep.subr.bf16.mxu0 %v9536_v50  ;;  %2827 = vst.msk [vmem:[#allocation2 + $0x3f8] sm:$0xff] %vm1222_vm0, %v2810_v52  ;;  %v3399_v33 = vpack.c.bf16 %v3387_v22, %v3386_v31  ;;  %v9379_v52 = vld [vmem:[%s12008_s3 + $0x80] sm:$0xff]   ;;  %v3402_v55 = vpack.c.bf16 %v3393_v53, %v3392_v47  ;;  %v9377_v2 = vld [vmem:[%s12008_s3 + $0x70] sm:$0xff]   ;;  %v9378_v7 = vld [vmem:[%s12008_s3 + $0x78] sm:$0xff]  }
 0x252   : > { %8436 = vmatmul.mubr.msk.bf16.gmra.mrb[164].mxu1 %vm1222_vm0, %v10642_v3  ;;  %8528 = vmatmul.mubr.msk.bf16.gmra.mrb[200].mxu0 %vm1222_vm0, %v10701_v24  ;;  %v3574_v3 = vld [vmem:[#allocation2 + $0xc0] sm:$0xff]  ;;  %v3767_v8 = vld [vmem:[#allocation2 + $0xb0] sm:$0xff]  ;;  %v3768_v10 = vld [vmem:[#allocation2 + $0xb8] sm:$0xff] }
 0x253   : > { %8483 = vmatprep.mubr.msk.bf16.mxu1 %vm9537_vm1, %v9536_v50  ;;  %8531 = vmatprep.mubr.msk.bf16.mxu0 %vm9537_vm1, %v9536_v50  ;;  %v10723_v46 = vpack.c.bf16 %v3575_v36, %v3574_v3  ;;  %v3587_v3 = vld [vmem:[#allocation2 + $0x2c8] sm:$0xff]  ;;  %v3389_v36 = vld [vmem:[#allocation2 + $0x238] sm:$0xff]  ;;  %v10845_v13 = vpack.c.bf16 %v3768_v10, %v3767_v8  ;;  %v3970_v22 = vld [vmem:[#allocation2 + $0x1e0] sm:$0xff] }
 0x254   : > { %v10793_v37 = vpack.c.bf16 %v3587_v3, %v3586_v35  ;;  %v3400_v39 = vpack.c.bf16 %v3389_v36, %v3388_v6  ;;  %v3770_v17 = vld [vmem:[#allocation2 + $0xd8] sm:$0xff]  ;;  %v3773_v31 = vld [vmem:[#allocation2 + $0x1b0] sm:$0xff] }
 0x255   : > { %v3775_v6 = vld [vmem:[#allocation2 + $0x1d0] sm:$0xff]  ;;  %v3782_v10 = vld [vmem:[#allocation2 + $0x2d8] sm:$0xff] }
 0x256   : > { %v10715_v38 = vpop.f32.mrb[132].mxu0  ;;  %v3781_v8 = vld [vmem:[#allocation2 + $0x2d0] sm:$0xff] }
 0x257   : > { %v8369_v40 = vpop.f32.mrb[133].mxu0 }
 0x258   : > { %v10721_v44 = vpop.f32.mrb[134].mxu0 }
 0x259   : > { %v8370_v18 = vpop.f32.mrb[135].mxu0 }
 0x25a   : > { %8484 = vmatmul.mubr.msk.bf16.vlgmr.msra.gmra.mrb[168].mxu1 %vm1222_vm0, %v3394_v45  ;;  %8532 = vmatmul.mubr.msk.bf16.gmra.mrb[204].mxu0 %vm1222_vm0, %v10723_v46  ;;  %v3401_v18 = vpack.c.bf16 %v3391_v41, %v3390_v48  ;;  %v3778_v48 = vld [vmem:[#allocation2 + $0x298] sm:$0xff] }
 0x25b   : > { %8560 = vmatpush3.bf16.msra.mxu1 %v9373_v43  ;;  %8487 = vmatprep.mubr.msk.bf16.mxu1 %vm9537_vm1, %v9536_v50 }
 0x25c   : > { %8535 = vmatprep.mubr.msk.bf16.mxu0 %vm9537_vm1, %v9536_v50  ;;  %8561 = vmatprep.subr.bf16.mxu1 %v9536_v50 }
 0x25e   : > { %v10739_v56 = vpop.f32.mrb[136].mxu0 }
 0x25f   : > { %v8373_v57 = vpop.f32.mrb[137].mxu0  ;;  %8562 = vmatpush3.bf16.msra.mxu1 %v9374_v15  ;;  %v9380_v15 = vld [vmem:[%s12008_s3 + $0x88] sm:$0xff]  }
 0x260   : > { %v10743_v60 = vpop.f32.mrb[138].mxu0  ;;  %8639 = vmatprep.subr.bf16.mxu1 %v9536_v50 }
 0x261   : > { %v8374_v62 = vpop.f32.mrb[139].mxu0 }
 0x262   : > { %8488 = vmatmul.mubr.msk.bf16.gmra.mrb[172].mxu1 %vm1222_vm0, %v3395_v61  ;;  %8536 = vmatmul.mubr.msk.bf16.gmra.mrb[208].mxu0 %vm1222_vm0, %v10741_v59  ;;  %v3964_v61 = vld [vmem:[#allocation2 + $0xe0] sm:$0xff]  ;;  %v3965_v62 = vld [vmem:[#allocation2 + $0xe8] sm:$0xff] }
 0x263   : > { %8491 = vmatprep.mubr.msk.bf16.mxu1 %vm9537_vm1, %v9536_v50  ;;  %8539 = vmatprep.mubr.msk.bf16.mxu0 %vm9537_vm1, %v9536_v50  ;;  %v3980_v0 = vpack.c.bf16 %v3965_v62, %v3964_v61 }
 0x26a   : > { %8492 = vmatmul.mubr.msk.bf16.gmra.mrb[176].mxu1 %vm1222_vm0, %v3396_v5  ;;  %8540 = vmatmul.mubr.msk.bf16.gmra.mrb[212].mxu0 %vm1222_vm0, %v10756_v4 }
 0x26b   : > { %8495 = vmatprep.mubr.msk.bf16.mxu1 %vm9537_vm1, %v9536_v50  ;;  %8543 = vmatprep.mubr.msk.bf16.mxu0 %vm9537_vm1, %v9536_v50 }
 0x272   : > { %8496 = vmatmul.mubr.msk.bf16.gmra.mrb[180].mxu1 %vm1222_vm0, %v3397_v42  ;;  %8544 = vmatmul.mubr.msk.bf16.gmra.mrb[216].mxu0 %vm1222_vm0, %v10765_v12  ;;  %v3966_v42 = vld [vmem:[#allocation2 + $0x1a0] sm:$0xff] }
 0x273   : > { %8499 = vmatprep.mubr.msk.bf16.mxu1 %vm9537_vm1, %v9536_v50  ;;  %8547 = vmatprep.mubr.msk.bf16.mxu0 %vm9537_vm1, %v9536_v50  ;;  %v3981_v14 = vpack.c.bf16 %v10753_v30, %v3966_v42  ;;  %v3771_v30 = vld [vmem:[#allocation2 + $0x190] sm:$0xff]  ;;  %v4352_v42 = vld [vmem:[#allocation2 + $0x128] sm:$0xff] }
 0x27a   : > { %8500 = vmatmul.mubr.msk.bf16.gmra.mrb[184].mxu1 %vm1222_vm0, %v3398_v19  ;;  %8548 = vmatmul.mubr.msk.bf16.gmra.mrb[220].mxu0 %vm1222_vm0, %v3594_v20  ;;  %v10856_v19 = vpack.c.bf16 %v3770_v17, %v3769_v16  ;;  %v3772_v20 = vld [vmem:[#allocation2 + $0x198] sm:$0xff] }
 0x27b   : > { %8503 = vmatprep.mubr.msk.bf16.mxu1 %vm9537_vm1, %v9536_v50  ;;  %8551 = vmatprep.mubr.msk.bf16.mxu0 %vm9537_vm1, %v9536_v50  ;;  %v3786_v27 = vpack.c.bf16 %v3772_v20, %v3771_v30  ;;  %v4351_v30 = vld [vmem:[#allocation2 + $0x120] sm:$0xff] }
 0x27d   : > { %v10780_v21 = vpop.f32.mrb[140].mxu0 }
 0x27e   : > { %v8377_v28 = vpop.f32.mrb[141].mxu0 }
 0x27f   : > { %v10782_v29 = vpop.f32.mrb[142].mxu0  ;;  %v3983_v28 = vpack.c.bf16 %v3971_v25, %v3970_v22  ;;  %v10927_v25 = vpack.c.bf16 %v3782_v10, %v3781_v8 }
 0x280   : > { %v8378_v32 = vpop.f32.mrb[143].mxu0 }
 0x281   : > { %v3774_v32 = vld [vmem:[#allocation2 + $0x1b8] sm:$0xff] }
 0x282   : > { %8504 = vmatmul.mubr.msk.bf16.gmra.mrb[188].mxu1 %vm1222_vm0, %v3399_v33  ;;  %8552 = vmatmul.mubr.msk.bf16.gmra.mrb[224].mxu0 %vm1222_vm0, %v10784_v34  ;;  %v10876_v36 = vpack.c.bf16 %v3774_v32, %v3773_v31  ;;  %v4354_v32 = vld [vmem:[#allocation2 + $0x148] sm:$0xff] }
 0x283   : > { %8507 = vmatprep.mubr.msk.bf16.mxu1 %vm9537_vm1, %v9536_v50  ;;  %8555 = vmatprep.mubr.msk.bf16.mxu0 %vm9537_vm1, %v9536_v50 }
 0x28a   : > { %8508 = vmatmul.mubr.msk.bf16.gmra.mrb[192].mxu1 %vm1222_vm0, %v3400_v39  ;;  %8556 = vmatmul.mubr.msk.bf16.gmra.mrb[228].mxu0 %vm1222_vm0, %v10793_v37  ;;  %v3776_v39 = vld [vmem:[#allocation2 + $0x1d8] sm:$0xff] }
 0x28b   : > { %8511 = vmatprep.mubr.msk.bf16.mxu1 %vm9537_vm1, %v9536_v50  ;;  %8603 = vmatprep.mubr.msk.bf16.mxu0 %vm9537_vm1, %v9536_v50  ;;  %v10886_v41 = vpack.c.bf16 %v3776_v39, %v3775_v6 }
 0x28d   : > { %v10802_v40 = vpop.f32.mrb[144].mxu0 }
 0x28e   : > { %v8381_v43 = vpop.f32.mrb[145].mxu0 }
 0x28f   : > { %v10804_v45 = vpop.f32.mrb[146].mxu0 }
 0x290   : > { %v8382_v49 = vpop.f32.mrb[147].mxu0 }
 0x291   : > { %v3976_v49 = vld [vmem:[#allocation2 + $0x2e0] sm:$0xff] }
 0x292   : > { %8512 = vmatmul.mubr.msk.bf16.gmra.mrb[196].mxu1 %vm1222_vm0, %v3401_v18  ;;  %8604 = vmatmul.mubr.msk.bf16.vlgmr.msra.gmra.mrb[232].mxu0 %vm1222_vm0, %v10701_v24  ;;  %v3765_v24 = vld [vmem:[#allocation2 + $0x90] sm:$0xff]  ;;  %v3977_v18 = vld [vmem:[#allocation2 + $0x2e8] sm:$0xff] }
 0x293   : > { %8515 = vmatprep.mubr.msk.bf16.mxu1 %vm9537_vm1, %v9536_v50  ;;  %8607 = vmatprep.mubr.msk.bf16.mxu0 %vm9537_vm1, %v9536_v50  ;;  %v3783_v5 = vpack.c.bf16 %v3766_v58, %v3765_v24  ;;  %v3779_v24 = vld [vmem:[#allocation2 + $0x2b0] sm:$0xff]  ;;  %v3780_v58 = vld [vmem:[#allocation2 + $0x2b8] sm:$0xff] }
 0x294   : > { %8680 = vmatpush3.bf16.msra.mxu0 %v9379_v52 }
 0x295   : > { %8681 = vmatprep.subr.bf16.mxu0 %v9536_v50 }
 0x298   : > { %8682 = vmatpush3.bf16.msra.mxu0 %v9380_v15 }
 0x299   : > { %8759 = vmatprep.subr.bf16.mxu0 %v9536_v50 }
 0x29a   : > { %8516 = vmatmul.mubr.msk.bf16.gmra.mrb[200].mxu1 %vm1222_vm0, %v3402_v55  ;;  %8608 = vmatmul.mubr.msk.bf16.gmra.mrb[236].mxu0 %vm1222_vm0, %v10723_v46  ;;  %v3986_v55 = vpack.c.bf16 %v3977_v18, %v3976_v49  ;;  %v9381_v49 = vld [vmem:[%s12008_s3 + $0x90] sm:$0xff]  }
 0x29b   : > { %8563 = vmatprep.mubr.msk.bf16.mxu1 %vm9537_vm1, %v9536_v50  ;;  %8611 = vmatprep.mubr.msk.bf16.mxu0 %vm9537_vm1, %v9536_v50 }
 0x29d   : > { %v10828_v57 = vpop.f32.mrb[148].mxu0 }
 0x29e   : > { %v8385_v63 = vpop.f32.mrb[149].mxu0 }
 0x29f   : > { %v10830_v1 = vpop.f32.mrb[150].mxu0 }
 0x2a0   : > { %v8386_v46 = vpop.f32.mrb[151].mxu0 }
 0x2a1   : > { %v9383_v46 = vld [vmem:[%s12008_s3 + $0xa0] sm:$0xff]  }
 0x2a2   : > { %8564 = vmatmul.mubr.msk.bf16.vlgmr.msra.gmra.mrb[204].mxu1 %vm1222_vm0, %v3783_v5  ;;  %8612 = vmatmul.mubr.msk.bf16.gmra.mrb[240].mxu0 %vm1222_vm0, %v3980_v0  ;;  %v9384_v5 = vld [vmem:[%s12008_s3 + $0xa8] sm:$0xff]  }
 0x2a3   : > { %8640 = vmatpush3.bf16.msra.mxu1 %v9377_v2  ;;  %8567 = vmatprep.mubr.msk.bf16.mxu1 %vm9537_vm1, %v9536_v50  ;;  %v10906_v2 = vpack.c.bf16 %v3780_v58, %v3779_v24  ;;  %v4356_v24 = vld [vmem:[#allocation2 + $0x208] sm:$0xff] }
 0x2a4   : > { %8615 = vmatprep.mubr.msk.bf16.mxu0 %vm9537_vm1, %v9536_v50  ;;  %8641 = vmatprep.subr.bf16.mxu1 %v9536_v50 }
 0x2a7   : > { %8642 = vmatpush3.bf16.msra.mxu1 %v9378_v7 }
 0x2a8   : > { %8719 = vmatprep.subr.bf16.mxu1 %v9536_v50 }
 0x2aa   : > { %8568 = vmatmul.mubr.msk.bf16.gmra.mrb[208].mxu1 %vm1222_vm0, %v10845_v13  ;;  %8616 = vmatmul.mubr.msk.bf16.gmra.mrb[244].mxu0 %vm1222_vm0, %v3981_v14 }
 0x2ab   : > { %8571 = vmatprep.mubr.msk.bf16.mxu1 %vm9537_vm1, %v9536_v50  ;;  %8619 = vmatprep.mubr.msk.bf16.mxu0 %vm9537_vm1, %v9536_v50 }
 0x2b2   : > { %8572 = vmatmul.mubr.msk.bf16.gmra.mrb[212].mxu1 %vm1222_vm0, %v10856_v19  ;;  %8620 = vmatmul.mubr.msk.bf16.gmra.mrb[248].mxu0 %vm1222_vm0, %v10765_v12 }
 0x2b3   : > { %8575 = vmatprep.mubr.msk.bf16.mxu1 %vm9537_vm1, %v9536_v50  ;;  %8623 = vmatprep.mubr.msk.bf16.mxu0 %vm9537_vm1, %v9536_v50 }
 0x2ba   : > { %8576 = vmatmul.mubr.msk.bf16.gmra.mrb[216].mxu1 %vm1222_vm0, %v3786_v27  ;;  %8624 = vmatmul.mubr.msk.bf16.gmra.mrb[252].mxu0 %vm1222_vm0, %v3983_v28  ;;  %v4368_v27 = vpack.c.bf16 %v4352_v42, %v4351_v30 }
 0x2bb   : > { %8579 = vmatprep.mubr.msk.bf16.mxu1 %vm9537_vm1, %v9536_v50  ;;  %8627 = vmatprep.mubr.msk.bf16.mxu0 %vm9537_vm1, %v9536_v50 }
 0x2bd   : > { %v10872_v12 = vpop.f32.mrb[152].mxu0 }
 0x2be   : > { %v8389_v33 = vpop.f32.mrb[153].mxu0 }
 0x2bf   : > { %v10874_v35 = vpop.f32.mrb[154].mxu0 }
 0x2c0   : > { %v8390_v3 = vpop.f32.mrb[155].mxu0 }
 0x2c2   : > { %8580 = vmatmul.mubr.msk.bf16.gmra.mrb[220].mxu1 %vm1222_vm0, %v10876_v36  ;;  %8628 = vmatmul.mubr.msk.bf16.gmra.mrb[0].mxu0 %vm1222_vm0, %v10784_v34  ;;  %v3777_v34 = vld [vmem:[#allocation2 + $0x290] sm:$0xff] }
 0x2c3   : > { %8583 = vmatprep.mubr.msk.bf16.mxu1 %vm9537_vm1, %v9536_v50  ;;  %8631 = vmatprep.mubr.msk.bf16.mxu0 %vm9537_vm1, %v9536_v50  ;;  %v3789_v53 = vpack.c.bf16 %v3778_v48, %v3777_v34  ;;  %v4353_v48 = vld [vmem:[#allocation2 + $0x140] sm:$0xff] }
 0x2ca   : > { %8584 = vmatmul.mubr.msk.bf16.gmra.mrb[224].mxu1 %vm1222_vm0, %v10886_v41  ;;  %8632 = vmatmul.mubr.msk.bf16.gmra.mrb[4].mxu0 %vm1222_vm0, %v10793_v37 }
 0x2cb   : > { %8587 = vmatprep.mubr.msk.bf16.mxu1 %vm9537_vm1, %v9536_v50  ;;  %8635 = vmatprep.mubr.msk.bf16.mxu0 %vm9537_vm1, %v9536_v50 }
 0x2cd   : > { %v10896_v43 = vpop.f32.mrb[156].mxu0 }
 0x2ce   : > { %v8393_v52 = vpop.f32.mrb[157].mxu0 }
 0x2cf   : > { %v10898_v15 = vpop.f32.mrb[158].mxu0 }
 0x2d0   : > { %v8394_v47 = vpop.f32.mrb[159].mxu0 }
 0x2d2   : > { %8588 = vmatmul.mubr.msk.bf16.gmra.mrb[228].mxu1 %vm1222_vm0, %v3789_v53  ;;  %8636 = vmatmul.mubr.msk.bf16.gmra.mrb[8].mxu0 %vm1222_vm0, %v3986_v55  ;;  %v10942_v53 = vpack.c.bf16 %v4354_v32, %v4353_v48 }
 0x2d3   : > { %8591 = vmatprep.mubr.msk.bf16.mxu1 %vm9537_vm1, %v9536_v50  ;;  %8683 = vmatprep.mubr.msk.bf16.mxu0 %vm9537_vm1, %v9536_v50 }
 0x2d5   : > { %v3286_v37 = vpop.f32.mrb[160].mxu0 }
 0x2d6   : > { %v8445_v61 = vpop.f32.mrb[161].mxu0 }
 0x2d7   : > { %v3289_v62 = vpop.f32.mrb[162].mxu0 }
 0x2d8   : > { %v8446_v63 = vpop.f32.mrb[163].mxu0 }
 0x2da   : > { %8592 = vmatmul.mubr.msk.bf16.gmra.mrb[232].mxu1 %vm1222_vm0, %v10906_v2  ;;  %8684 = vmatmul.mubr.msk.bf16.vlgmr.msra.gmra.mrb[12].mxu0 %vm1222_vm0, %v10607_v11 }
 0x2db   : > { %8595 = vmatprep.mubr.msk.bf16.mxu1 %vm9537_vm1, %v9536_v50  ;;  %8687 = vmatprep.mubr.msk.bf16.mxu0 %vm9537_vm1, %v9536_v50 }
 0x2dc   : > { %8760 = vmatpush3.bf16.msra.mxu0 %v9383_v46 }
 0x2dd   : > { %v10922_v0 = vpop.f32.mrb[128].mxu1  ;;  %v3294_v7 = vpop.f32.mrb[164].mxu0  ;;  %8761 = vmatprep.subr.bf16.mxu0 %v9536_v50 }
 0x2de   : > { %v8397_v11 = vpop.f32.mrb[129].mxu1  ;;  %v8449_v14 = vpop.f32.mrb[165].mxu0 }
 0x2df   : > { %v10925_v16 = vpop.f32.mrb[130].mxu1  ;;  %v3297_v17 = vpop.f32.mrb[166].mxu0 }
 0x2e0   : > { %v8398_v20 = vpop.f32.mrb[131].mxu1  ;;  %v8450_v22 = vpop.f32.mrb[167].mxu0  ;;  %8762 = vmatpush3.bf16.msra.mxu0 %v9384_v5  ;;  %v4355_v5 = vld [vmem:[#allocation2 + $0x200] sm:$0xff] }
 0x2e1   : > { %8839 = vmatprep.subr.bf16.mxu0 %v9536_v50  ;;  %v4370_v11 = vpack.c.bf16 %v4356_v24, %v4355_v5  ;;  %v4159_v20 = vld [vmem:[#allocation2 + $0xf0] sm:$0xff]  ;;  %v4160_v22 = vld [vmem:[#allocation2 + $0xf8] sm:$0xff] }
 0x2e2   : > { %8596 = vmatmul.mubr.msk.bf16.gmra.mrb[236].mxu1 %vm1222_vm0, %v10927_v25  ;;  %8688 = vmatmul.mubr.msk.bf16.gmra.mrb[16].mxu0 %vm1222_vm0, %v4368_v27  ;;  %v4358_v27 = vld [vmem:[#allocation2 + $0x228] sm:$0xff]  ;;  %v4175_v48 = vpack.c.bf16 %v4160_v22, %v4159_v20 }
 0x2e3   : > { %8643 = vmatprep.mubr.msk.bf16.mxu1 %vm9537_vm1, %v9536_v50  ;;  %8691 = vmatprep.mubr.msk.bf16.mxu0 %vm9537_vm1, %v9536_v50 }
 0x2e5   : > { %v3109_v28 = vpop.f32.mrb[132].mxu1  ;;  %v3302_v31 = vpop.f32.mrb[168].mxu0 }
 0x2e6   : > { %v3110_v33 = vadd.f32 %v3109_v28, %v10695_v51  ;;  %v8405_v3 = vpop.f32.mrb[133].mxu1  ;;  %v8453_v6 = vpop.f32.mrb[169].mxu0 }
 0x2e7   : > { %v3112_v39 = vpop.f32.mrb[134].mxu1  ;;  %v3305_v34 = vpop.f32.mrb[170].mxu0  ;;  %v4357_v3 = vld [vmem:[#allocation2 + $0x220] sm:$0xff] }
 0x2e8   : > { %v3113_v18 = vadd.f32 %v3112_v39, %v10699_v23  ;;  %v8406_v52 = vpop.f32.mrb[135].mxu1  ;;  %v8454_v47 = vpop.f32.mrb[171].mxu0  ;;  %v10944_v55 = vadd.f32 %v3286_v37, %v3110_v33  ;;  %v9382_v23 = vld [vmem:[%s12008_s3 + $0x98] sm:$0xff]  }
 0x2e9   : > { %v4360_v47 = vld [vmem:[#allocation2 + $0x248] sm:$0xff] }
 0x2ea   : > { %8644 = vmatmul.mubr.msk.bf16.vlgmr.msra.gmra.mrb[240].mxu1 %vm1222_vm0, %v10845_v13  ;;  %8692 = vmatmul.mubr.msk.bf16.gmra.mrb[20].mxu0 %vm1222_vm0, %v10942_v53  ;;  %v10950_v51 = vadd.f32 %v3289_v62, %v3113_v18 }
 0x2eb   : > { %8720 = vmatpush3.bf16.msra.mxu1 %v9381_v49  ;;  %8647 = vmatprep.mubr.msk.bf16.mxu1 %vm9537_vm1, %v9536_v50  ;;  %v10976_v49 = vpack.c.bf16 %v4358_v27, %v4357_v3 }
 0x2ec   : > { %8695 = vmatprep.mubr.msk.bf16.mxu0 %vm9537_vm1, %v9536_v50  ;;  %8721 = vmatprep.subr.bf16.mxu1 %v9536_v50 }
 0x2ed   : > { %v3117_v37 = vpop.f32.mrb[136].mxu1  ;;  %v3310_v13 = vpop.f32.mrb[172].mxu0 }
 0x2ee   : > { %v3118_v58 = vadd.f32 %v3117_v37, %v10715_v38  ;;  %v8409_v61 = vpop.f32.mrb[137].mxu1  ;;  %v8457_v62 = vpop.f32.mrb[173].mxu0 }
 0x2ef   : > { %v3120_v63 = vpop.f32.mrb[138].mxu1  ;;  %v3313_v46 = vpop.f32.mrb[174].mxu0  ;;  %8722 = vmatpush3.bf16.msra.mxu1 %v9382_v23  ;;  %v4359_v61 = vld [vmem:[#allocation2 + $0x240] sm:$0xff] }
 0x2f0   : > { %v3121_v8 = vadd.f32 %v3120_v63, %v10721_v44  ;;  %v8410_v10 = vpop.f32.mrb[139].mxu1  ;;  %v8458_v42 = vpop.f32.mrb[175].mxu0  ;;  %8799 = vmatprep.subr.bf16.mxu1 %v9536_v50  ;;  %v10963_v14 = vadd.f32 %v3294_v7, %v3118_v58  ;;  %v10991_v5 = vpack.c.bf16 %v4360_v47, %v4359_v61 }
 0x2f1   : > { %v4361_v42 = vld [vmem:[#allocation2 + $0x300] sm:$0xff] }
 0x2f2   : > { %8648 = vmatmul.mubr.msk.bf16.gmra.mrb[244].mxu1 %vm1222_vm0, %v10856_v19  ;;  %8696 = vmatmul.mubr.msk.bf16.gmra.mrb[24].mxu0 %vm1222_vm0, %v4370_v11  ;;  %v10968_v38 = vadd.f32 %v3297_v17, %v3121_v8  ;;  %v4362_v11 = vld [vmem:[#allocation2 + $0x308] sm:$0xff] }
 0x2f3   : > { %8651 = vmatprep.mubr.msk.bf16.mxu1 %vm9537_vm1, %v9536_v50  ;;  %8699 = vmatprep.mubr.msk.bf16.mxu0 %vm9537_vm1, %v9536_v50 }
 0x2f5   : > { %v3125_v44 = vpop.f32.mrb[140].mxu1  ;;  %v3318_v30 = vpop.f32.mrb[176].mxu0 }
 0x2f6   : > { %v3126_v7 = vadd.f32 %v3125_v44, %v10739_v56  ;;  %v8413_v28 = vpop.f32.mrb[141].mxu1  ;;  %v8461_v32 = vpop.f32.mrb[177].mxu0 }
 0x2f7   : > { %v3128_v19 = vpop.f32.mrb[142].mxu1  ;;  %v3321_v33 = vpop.f32.mrb[178].mxu0  ;;  %v4373_v28 = vpack.c.bf16 %v4362_v11, %v4361_v42 }
 0x2f8   : > { %v3129_v17 = vadd.f32 %v3128_v19, %v10743_v60  ;;  %v8414_v6 = vpop.f32.mrb[143].mxu1  ;;  %v8462_v39 = vpop.f32.mrb[179].mxu0  ;;  %v10978_v18 = vadd.f32 %v3302_v31, %v3126_v7 }
 0x2f9   : > { %v4363_v6 = vld [vmem:[#allocation2 + $0x320] sm:$0xff] }
 0x2fa   : > { %8652 = vmatmul.mubr.msk.bf16.gmra.mrb[248].mxu1 %vm1222_vm0, %v4175_v48  ;;  %8700 = vmatmul.mubr.msk.bf16.gmra.mrb[28].mxu0 %vm1222_vm0, %v10976_v49  ;;  %v10983_v56 = vadd.f32 %v3305_v34, %v3129_v17  ;;  %v4166_v17 = vld [vmem:[#allocation2 + $0x1f8] sm:$0xff] }
 0x2fb   : > { %8655 = vmatprep.mubr.msk.bf16.mxu1 %vm9537_vm1, %v9536_v50  ;;  %8703 = vmatprep.mubr.msk.bf16.mxu0 %vm9537_vm1, %v9536_v50 }
 0x2fd   : > { %v3133_v60 = vpop.f32.mrb[144].mxu1  ;;  %v3326_v52 = vpop.f32.mrb[180].mxu0 }
 0x2fe   : > { %v3134_v23 = vadd.f32 %v3133_v60, %v10780_v21  ;;  %v8417_v31 = vpop.f32.mrb[145].mxu1  ;;  %v8465_v37 = vpop.f32.mrb[181].mxu0 }
 0x2ff   : > { %v3136_v24 = vpop.f32.mrb[146].mxu1  ;;  %v3329_v58 = vpop.f32.mrb[182].mxu0 }
 0x300   : > { %v3137_v62 = vadd.f32 %v3136_v24, %v10782_v29  ;;  %v8418_v34 = vpop.f32.mrb[147].mxu1  ;;  %v8466_v63 = vpop.f32.mrb[183].mxu0  ;;  %v10993_v8 = vadd.f32 %v3310_v13, %v3134_v23 }
 0x301   : > { %v4365_v34 = vld [vmem:[#allocation2 + $0x340] sm:$0xff]  ;;  %v4366_v63 = vld [vmem:[#allocation2 + $0x348] sm:$0xff] }
 0x302   : > { %8656 = vmatmul.mubr.msk.bf16.gmra.mrb[252].mxu1 %vm1222_vm0, %v10876_v36  ;;  %8704 = vmatmul.mubr.msk.bf16.gmra.mrb[32].mxu0 %vm1222_vm0, %v10991_v5  ;;  %v10999_v21 = vadd.f32 %v3313_v46, %v3137_v62 }
 0x303   : > { %8659 = vmatprep.mubr.msk.bf16.mxu1 %vm9537_vm1, %v9536_v50  ;;  %8707 = vmatprep.mubr.msk.bf16.mxu0 %vm9537_vm1, %v9536_v50 }
 0x305   : > { %v3141_v29 = vpop.f32.mrb[148].mxu1  ;;  %v3334_v10 = vpop.f32.mrb[184].mxu0 }
 0x306   : > { %v3142_v13 = vadd.f32 %v3141_v29, %v10802_v40  ;;  %v8421_v44 = vpop.f32.mrb[149].mxu1  ;;  %v8469_v20 = vpop.f32.mrb[185].mxu0  ;;  %v4165_v40 = vld [vmem:[#allocation2 + $0x1f0] sm:$0xff] }
 0x307   : > { %v3144_v36 = vpop.f32.mrb[150].mxu1  ;;  %v3337_v22 = vpop.f32.mrb[186].mxu0  ;;  %v4178_v37 = vpack.c.bf16 %v4166_v17, %v4165_v40  ;;  %v11035_v20 = vpack.c.bf16 %v4366_v63, %v4365_v34 }
 0x308   : > { %v3145_v27 = vadd.f32 %v3144_v36, %v10804_v45  ;;  %v8422_v46 = vpop.f32.mrb[151].mxu1  ;;  %v8470_v7 = vpop.f32.mrb[187].mxu0  ;;  %v11007_v32 = vadd.f32 %v3318_v30, %v3142_v13  ;;  %v4364_v30 = vld [vmem:[#allocation2 + $0x328] sm:$0xff] }
 0x309   : > { %v11020_v24 = vpack.c.bf16 %v4364_v30, %v4363_v6 }
 0x30a   : > { %8660 = vmatmul.mubr.msk.bf16.gmra.mrb[0].mxu1 %vm1222_vm0, %v10886_v41  ;;  %8708 = vmatmul.mubr.msk.bf16.gmra.mrb[36].mxu0 %vm1222_vm0, %v4373_v28  ;;  %v11012_v19 = vadd.f32 %v3321_v33, %v3145_v27 }
 0x30b   : > { %8663 = vmatprep.mubr.msk.bf16.mxu1 %vm9537_vm1, %v9536_v50  ;;  %8711 = vmatprep.mubr.msk.bf16.mxu0 %vm9537_vm1, %v9536_v50 }
 0x30d   : > { %v3149_v45 = vpop.f32.mrb[152].mxu1  ;;  %v3342_v3 = vpop.f32.mrb[188].mxu0 }
 0x30e   : > { %v3150_v39 = vadd.f32 %v3149_v45, %v10828_v57  ;;  %v8425_v48 = vpop.f32.mrb[153].mxu1  ;;  %v8473_v41 = vpop.f32.mrb[189].mxu0 }
 0x30f   : > { %v3152_v60 = vpop.f32.mrb[154].mxu1  ;;  %v3345_v47 = vpop.f32.mrb[190].mxu0  ;;  %v4171_v48 = vld [vmem:[#allocation2 + $0x2f0] sm:$0xff] }
 0x310   : > { %v3153_v33 = vadd.f32 %v3152_v60, %v10830_v1  ;;  %v8426_v23 = vpop.f32.mrb[155].mxu1  ;;  %v8474_v31 = vpop.f32.mrb[191].mxu0  ;;  %v11022_v61 = vadd.f32 %v3326_v52, %v3150_v39 }
 0x312   : > { %8664 = vmatmul.mubr.msk.bf16.gmra.mrb[4].mxu1 %vm1222_vm0, %v4178_v37  ;;  %8712 = vmatmul.mubr.msk.bf16.gmra.mrb[40].mxu0 %vm1222_vm0, %v11020_v24  ;;  %v11027_v62 = vadd.f32 %v3329_v58, %v3153_v33 }
 0x313   : > { %8667 = vmatprep.mubr.msk.bf16.mxu1 %vm9537_vm1, %v9536_v50  ;;  %8715 = vmatprep.mubr.msk.bf16.mxu0 %vm9537_vm1, %v9536_v50 }
 0x315   : > { %v3157_v57 = vpop.f32.mrb[156].mxu1  ;;  %v3350_v1 = vpop.f32.mrb[192].mxu0 }
 0x316   : > { %v3158_v52 = vadd.f32 %v3157_v57, %v10872_v12  ;;  %v8429_v29 = vpop.f32.mrb[157].mxu1  ;;  %v8477_v42 = vpop.f32.mrb[193].mxu0 }
 0x317   : > { %v3160_v11 = vpop.f32.mrb[158].mxu1  ;;  %v3353_v13 = vpop.f32.mrb[194].mxu0 }
 0x318   : > { %v3161_v44 = vadd.f32 %v3160_v11, %v10874_v35  ;;  %v8430_v58 = vpop.f32.mrb[159].mxu1  ;;  %v8478_v36 = vpop.f32.mrb[195].mxu0  ;;  %v11037_v27 = vadd.f32 %v3334_v10, %v3158_v52  ;;  %v4744_v52 = vld [vmem:[#allocation2 + $0x168] sm:$0xff] }
 0x319   : > { %v4743_v58 = vld [vmem:[#allocation2 + $0x160] sm:$0xff] }
 0x31a   : > { %8668 = vmatmul.mubr.msk.bf16.gmra.mrb[8].mxu1 %vm1222_vm0, %v10906_v2  ;;  %8716 = vmatmul.mubr.msk.bf16.gmra.mrb[44].mxu0 %vm1222_vm0, %v11035_v20  ;;  %v11043_v46 = vadd.f32 %v3337_v22, %v3161_v44  ;;  %v9387_v22 = vld [vmem:[%s12008_s3 + $0xc0] sm:$0xff]  }
 0x31b   : > { %8671 = vmatprep.mubr.msk.bf16.mxu1 %vm9537_vm1, %v9536_v50  ;;  %8763 = vmatprep.mubr.msk.bf16.mxu0 %vm9537_vm1, %v9536_v50 }
 0x31d   : > { %v3165_v12 = vpop.f32.mrb[160].mxu1  ;;  %v3675_v35 = vpop.f32.mrb[196].mxu0 }
 0x31e   : > { %v3166_v7 = vadd.f32 %v3165_v12, %v10896_v43  ;;  %v8433_v10 = vpop.f32.mrb[161].mxu1  ;;  %v8525_v28 = vpop.f32.mrb[197].mxu0 }
 0x31f   : > { %v3168_v40 = vpop.f32.mrb[162].mxu1  ;;  %v3678_v45 = vpop.f32.mrb[198].mxu0 }
 0x320   : > { %v3169_v2 = vadd.f32 %v3168_v40, %v10898_v15  ;;  %v8434_v17 = vpop.f32.mrb[163].mxu1  ;;  %v8526_v6 = vpop.f32.mrb[199].mxu0  ;;  %v11054_v30 = vadd.f32 %v3342_v3, %v3166_v7  ;;  %v9388_v15 = vld [vmem:[%s12008_s3 + $0xc8] sm:$0xff]   ;;  %v4759_v7 = vpack.c.bf16 %v4744_v52, %v4743_v58 }
 0x322   : > { %8672 = vmatmul.mubr.msk.bf16.gmra.mrb[12].mxu1 %vm1222_vm0, %v10927_v25  ;;  %8764 = vmatmul.mubr.msk.bf16.vlgmr.msra.gmra.mrb[48].mxu0 %vm1222_vm0, %v10570_v26  ;;  %v11060_v43 = vadd.f32 %v3345_v47, %v3169_v2  ;;  %v4172_v25 = vld [vmem:[#allocation2 + $0x2f8] sm:$0xff] }
 0x323   : > { %8675 = vmatprep.mubr.msk.bf16.mxu1 %vm9537_vm1, %v9536_v50  ;;  %8767 = vmatprep.mubr.msk.bf16.mxu0 %vm9537_vm1, %v9536_v50  ;;  %v4181_v57 = vpack.c.bf16 %v4172_v25, %v4171_v48 }
 0x324   : > { %8840 = vmatpush3.bf16.msra.mxu0 %v9387_v22  ;;  %v4546_v22 = vld [vmem:[#allocation2 + $0x130] sm:$0xff] }
 0x325   : > { %v3173_v3 = vpop.f32.mrb[164].mxu1  ;;  %v3683_v39 = vpop.f32.mrb[200].mxu0  ;;  %8841 = vmatprep.subr.bf16.mxu0 %v9536_v50 }
 0x326   : > { %v3174_v26 = vadd.f32 %v3173_v3, %v10922_v0  ;;  %v8437_v41 = vpop.f32.mrb[165].mxu1  ;;  %v8529_v60 = vpop.f32.mrb[201].mxu0 }
 0x327   : > { %v3176_v47 = vpop.f32.mrb[166].mxu1  ;;  %v3686_v33 = vpop.f32.mrb[202].mxu0  ;;  %v4549_v60 = vld [vmem:[#allocation2 + $0x158] sm:$0xff] }
 0x328   : > { %v3177_v23 = vadd.f32 %v3176_v47, %v10925_v16  ;;  %v8438_v31 = vpop.f32.mrb[167].mxu1  ;;  %v8530_v37 = vpop.f32.mrb[203].mxu0  ;;  %8842 = vmatpush3.bf16.msra.mxu0 %v9388_v15  ;;  %v11072_v34 = vadd.f32 %v3350_v1, %v3174_v26 }
 0x329   : > { %8919 = vmatprep.subr.bf16.mxu0 %v9536_v50 }
 0x32a   : > { %8676 = vmatmul.mubr.msk.bf16.gmra.mrb[16].mxu1 %vm1222_vm0, %v4181_v57  ;;  %8768 = vmatmul.mubr.msk.bf16.gmra.mrb[52].mxu0 %vm1222_vm0, %v10942_v53  ;;  %v11078_v0 = vadd.f32 %v3353_v13, %v3177_v23  ;;  %v9385_v53 = vld [vmem:[%s12008_s3 + $0xb0] sm:$0xff]  }
 0x32b   : > { %8723 = vmatprep.mubr.msk.bf16.mxu1 %vm9537_vm1, %v9536_v50  ;;  %8771 = vmatprep.mubr.msk.bf16.mxu0 %vm9537_vm1, %v9536_v50  ;;  %v4548_v57 = vld [vmem:[#allocation2 + $0x150] sm:$0xff] }
 0x32c   : > { %v11120_v52 = vpack.c.bf16 %v4549_v60, %v4548_v57 }
 0x32d   : > { %v3481_v16 = vpop.f32.mrb[168].mxu1  ;;  %v3691_v63 = vpop.f32.mrb[204].mxu0 }
 0x32e   : > { %v3552_v1 = vadd.f32 %v3481_v16, %v10944_v55  ;;  %v8485_v29 = vpop.f32.mrb[169].mxu1  ;;  %v8533_v42 = vpop.f32.mrb[205].mxu0 }
 0x32f   : > { %v3484_v11 = vpop.f32.mrb[170].mxu1  ;;  %v3694_v44 = vpop.f32.mrb[206].mxu0  ;;  %v4551_v42 = vld [vmem:[#allocation2 + $0x218] sm:$0xff] }
 0x330   : > { %v3553_v13 = vadd.f32 %v3484_v11, %v10950_v51  ;;  %v8486_v36 = vpop.f32.mrb[171].mxu1  ;;  %v8534_v12 = vpop.f32.mrb[207].mxu0  ;;  %v11089_v10 = vadd.f32 %v3675_v35, %v3552_v1  ;;  %v9386_v51 = vld [vmem:[%s12008_s3 + $0xb8] sm:$0xff]   ;;  %v4749_v11 = vld [vmem:[#allocation2 + $0x260] sm:$0xff] }
 0x332   : > { %8724 = vmatmul.mubr.msk.bf16.vlgmr.msra.gmra.mrb[20].mxu1 %vm1222_vm0, %v10385_v9  ;;  %8772 = vmatmul.mubr.msk.bf16.gmra.mrb[56].mxu0 %vm1222_vm0, %v4759_v7  ;;  %v11094_v55 = vadd.f32 %v3678_v45, %v3553_v13  ;;  %v4547_v9 = vld [vmem:[#allocation2 + $0x138] sm:$0xff] }
 0x333   : > { %8800 = vmatpush3.bf16.msra.mxu1 %v9385_v53  ;;  %8727 = vmatprep.mubr.msk.bf16.mxu1 %vm9537_vm1, %v9536_v50  ;;  %v4563_v25 = vpack.c.bf16 %v4547_v9, %v4546_v22 }
 0x334   : > { %8775 = vmatprep.mubr.msk.bf16.mxu0 %vm9537_vm1, %v9536_v50  ;;  %8801 = vmatprep.subr.bf16.mxu1 %v9536_v50 }
 0x335   : > { %v3489_v35 = vpop.f32.mrb[172].mxu1  ;;  %v3699_v28 = vpop.f32.mrb[208].mxu0 }
 0x336   : > { %v3554_v40 = vadd.f32 %v3489_v35, %v10963_v14  ;;  %v8489_v45 = vpop.f32.mrb[173].mxu1  ;;  %v8537_v2 = vpop.f32.mrb[209].mxu0 }
 0x337   : > { %v3492_v17 = vpop.f32.mrb[174].mxu1  ;;  %v3702_v6 = vpop.f32.mrb[210].mxu0  ;;  %8802 = vmatpush3.bf16.msra.mxu1 %v9386_v51  ;;  %v4553_v2 = vld [vmem:[#allocation2 + $0x238] sm:$0xff] }
 0x338   : > { %v3555_v15 = vadd.f32 %v3492_v17, %v10968_v38  ;;  %v8490_v3 = vpop.f32.mrb[175].mxu1  ;;  %v8538_v48 = vpop.f32.mrb[211].mxu0  ;;  %8879 = vmatprep.subr.bf16.mxu1 %v9536_v50  ;;  %v11107_v26 = vadd.f32 %v3683_v39, %v3554_v40 }
 0x339   : > { %v4552_v48 = vld [vmem:[#allocation2 + $0x230] sm:$0xff] }
 0x33a   : > { %8728 = vmatmul.mubr.msk.bf16.gmra.mrb[24].mxu1 %vm1222_vm0, %v4563_v25  ;;  %8776 = vmatmul.mubr.msk.bf16.gmra.mrb[60].mxu0 %vm1222_vm0, %v10976_v49  ;;  %v11112_v14 = vadd.f32 %v3686_v33, %v3555_v15  ;;  %v11148_v60 = vpack.c.bf16 %v4553_v2, %v4552_v48 }
 0x33b   : > { %8731 = vmatprep.mubr.msk.bf16.mxu1 %vm9537_vm1, %v9536_v50  ;;  %8779 = vmatprep.mubr.msk.bf16.mxu0 %vm9537_vm1, %v9536_v50 }
 0x33d   : > { %v3497_v38 = vpop.f32.mrb[176].mxu1  ;;  %v3707_v41 = vpop.f32.mrb[212].mxu0 }
 0x33e   : > { %v3556_v47 = vadd.f32 %v3497_v38, %v10978_v18  ;;  %v8493_v39 = vpop.f32.mrb[177].mxu1  ;;  %v8541_v23 = vpop.f32.mrb[213].mxu0 }
 0x33f   : > { %v3500_v31 = vpop.f32.mrb[178].mxu1  ;;  %v3710_v37 = vpop.f32.mrb[214].mxu0  ;;  %v4555_v23 = vld [vmem:[#allocation2 + $0x258] sm:$0xff] }
 0x340   : > { %v3557_v49 = vadd.f32 %v3500_v31, %v10983_v56  ;;  %v8494_v33 = vpop.f32.mrb[179].mxu1  ;;  %v8542_v16 = vpop.f32.mrb[215].mxu0  ;;  %v11122_v1 = vadd.f32 %v3691_v63, %v3556_v47  ;;  %v4750_v63 = vld [vmem:[#allocation2 + $0x268] sm:$0xff] }
 0x341   : > { %v4762_v9 = vpack.c.bf16 %v4750_v63, %v4749_v11  ;;  %v4554_v16 = vld [vmem:[#allocation2 + $0x250] sm:$0xff] }
 0x342   : > { %8732 = vmatmul.mubr.msk.bf16.gmra.mrb[28].mxu1 %vm1222_vm0, %v11120_v52  ;;  %8780 = vmatmul.mubr.msk.bf16.gmra.mrb[64].mxu0 %vm1222_vm0, %v10991_v5  ;;  %v11128_v18 = vadd.f32 %v3694_v44, %v3557_v49  ;;  %v4550_v5 = vld [vmem:[#allocation2 + $0x210] sm:$0xff] }
 0x343   : > { %8735 = vmatprep.mubr.msk.bf16.mxu1 %vm9537_vm1, %v9536_v50  ;;  %8783 = vmatprep.mubr.msk.bf16.mxu0 %vm9537_vm1, %v9536_v50  ;;  %v4565_v35 = vpack.c.bf16 %v4551_v42, %v4550_v5  ;;  %v11164_v42 = vpack.c.bf16 %v4555_v23, %v4554_v16  ;;  %v4560_v16 = vld [vmem:[#allocation2 + $0x350] sm:$0xff] }
 0x345   : > { %v3505_v56 = vpop.f32.mrb[180].mxu1  ;;  %v3715_v29 = vpop.f32.mrb[216].mxu0 }
 0x346   : > { %v3558_v58 = vadd.f32 %v3505_v56, %v10993_v8  ;;  %v8497_v53 = vpop.f32.mrb[181].mxu1  ;;  %v8545_v13 = vpop.f32.mrb[217].mxu0 }
 0x347   : > { %v3508_v36 = vpop.f32.mrb[182].mxu1  ;;  %v3718_v12 = vpop.f32.mrb[218].mxu0  ;;  %v4557_v53 = vld [vmem:[#allocation2 + $0x318] sm:$0xff]  ;;  %v4756_v13 = vld [vmem:[#allocation2 + $0x368] sm:$0xff] }
 0x348   : > { %v3559_v44 = vadd.f32 %v3508_v36, %v10999_v21  ;;  %v8498_v7 = vpop.f32.mrb[183].mxu1  ;;  %v8546_v51 = vpop.f32.mrb[219].mxu0  ;;  %v11136_v40 = vadd.f32 %v3699_v28, %v3558_v58 }
 0x34a   : > { %8736 = vmatmul.mubr.msk.bf16.gmra.mrb[32].mxu1 %vm1222_vm0, %v4565_v35  ;;  %8784 = vmatmul.mubr.msk.bf16.gmra.mrb[68].mxu0 %vm1222_vm0, %v4762_v9  ;;  %v11140_v45 = vadd.f32 %v3702_v6, %v3559_v44 }
 0x34b   : > { %8739 = vmatprep.mubr.msk.bf16.mxu1 %vm9537_vm1, %v9536_v50  ;;  %8787 = vmatprep.mubr.msk.bf16.mxu0 %vm9537_vm1, %v9536_v50 }
 0x34d   : > { %v3513_v8 = vpop.f32.mrb[184].mxu1  ;;  %v3723_v21 = vpop.f32.mrb[220].mxu0 }
 0x34e   : > { %v3560_v17 = vadd.f32 %v3513_v8, %v11007_v32  ;;  %v8501_v22 = vpop.f32.mrb[185].mxu1  ;;  %v8549_v28 = vpop.f32.mrb[221].mxu0 }
 0x34f   : > { %v3516_v15 = vpop.f32.mrb[186].mxu1  ;;  %v3726_v3 = vpop.f32.mrb[222].mxu0  ;;  %v4558_v22 = vld [vmem:[#allocation2 + $0x330] sm:$0xff]  ;;  %v4559_v28 = vld [vmem:[#allocation2 + $0x338] sm:$0xff] }
 0x350   : > { %v3561_v25 = vadd.f32 %v3516_v15, %v11012_v19  ;;  %v8502_v6 = vpop.f32.mrb[187].mxu1  ;;  %v8550_v38 = vpop.f32.mrb[223].mxu0  ;;  %v11150_v47 = vadd.f32 %v3707_v41, %v3560_v17  ;;  %v11192_v23 = vpack.c.bf16 %v4559_v28, %v4558_v22 }
 0x352   : > { %8740 = vmatmul.mubr.msk.bf16.gmra.mrb[36].mxu1 %vm1222_vm0, %v11148_v60  ;;  %8788 = vmatmul.mubr.msk.bf16.gmra.mrb[72].mxu0 %vm1222_vm0, %v11020_v24  ;;  %v11156_v32 = vadd.f32 %v3710_v37, %v3561_v25 }
 0x353   : > { %8743 = vmatprep.mubr.msk.bf16.mxu1 %vm9537_vm1, %v9536_v50  ;;  %8791 = vmatprep.mubr.msk.bf16.mxu0 %vm9537_vm1, %v9536_v50 }
 0x355   : > { %v3521_v19 = vpop.f32.mrb[188].mxu1  ;;  %v3731_v39 = vpop.f32.mrb[224].mxu0 }
 0x356   : > { %v3562_v41 = vadd.f32 %v3521_v19, %v11022_v61  ;;  %v8505_v31 = vpop.f32.mrb[189].mxu1  ;;  %v8553_v57 = vpop.f32.mrb[225].mxu0 }
 0x357   : > { %v3524_v49 = vpop.f32.mrb[190].mxu1  ;;  %v3734_v33 = vpop.f32.mrb[226].mxu0 }
 0x358   : > { %v3563_v24 = vadd.f32 %v3524_v49, %v11027_v62  ;;  %v8506_v37 = vpop.f32.mrb[191].mxu1  ;;  %v8554_v56 = vpop.f32.mrb[227].mxu0  ;;  %v11166_v11 = vadd.f32 %v3715_v29, %v3562_v41  ;;  %v4556_v62 = vld [vmem:[#allocation2 + $0x310] sm:$0xff]  ;;  %v4755_v29 = vld [vmem:[#allocation2 + $0x360] sm:$0xff] }
 0x359   : > { %v4568_v9 = vpack.c.bf16 %v4557_v53, %v4556_v62  ;;  %v4765_v8 = vpack.c.bf16 %v4756_v13, %v4755_v29  ;;  %v9391_v41 = vld [vmem:[%s12008_s3 + $0xe0] sm:$0xff]   ;;  %v5131_v37 = vld [vmem:[#allocation2 + $0x1a8] sm:$0xff] }
 0x35a   : > { %8744 = vmatmul.mubr.msk.bf16.gmra.mrb[40].mxu1 %vm1222_vm0, %v11164_v42  ;;  %8792 = vmatmul.mubr.msk.bf16.gmra.mrb[76].mxu0 %vm1222_vm0, %v11035_v20  ;;  %v11172_v61 = vadd.f32 %v3718_v12, %v3563_v24  ;;  %v4561_v24 = vld [vmem:[#allocation2 + $0x358] sm:$0xff] }
 0x35b   : > { %8747 = vmatprep.mubr.msk.bf16.mxu1 %vm9537_vm1, %v9536_v50  ;;  %8795 = vmatprep.mubr.msk.bf16.mxu0 %vm9537_vm1, %v9536_v50 }
 0x35d   : > { %v3529_v63 = vpop.f32.mrb[192].mxu1  ;;  %v3739_v58 = vpop.f32.mrb[228].mxu0 }
 0x35e   : > { %v3564_v36 = vadd.f32 %v3529_v63, %v11037_v27  ;;  %v8509_v5 = vpop.f32.mrb[193].mxu1  ;;  %v8557_v44 = vpop.f32.mrb[229].mxu0 }
 0x35f   : > { %v3532_v7 = vpop.f32.mrb[194].mxu1  ;;  %v3742_v20 = vpop.f32.mrb[230].mxu0 }
 0x360   : > { %v3565_v12 = vadd.f32 %v3532_v7, %v11043_v46  ;;  %v8510_v51 = vpop.f32.mrb[195].mxu1  ;;  %v8558_v35 = vpop.f32.mrb[231].mxu0  ;;  %v11180_v2 = vadd.f32 %v3723_v21, %v3564_v36  ;;  %v11215_v36 = vpack.c.bf16 %v4561_v24, %v4560_v16 }
 0x362   : > { %8748 = vmatmul.mubr.msk.bf16.gmra.mrb[44].mxu1 %vm1222_vm0, %v4568_v9  ;;  %8796 = vmatmul.mubr.msk.bf16.gmra.mrb[80].mxu0 %vm1222_vm0, %v4765_v8  ;;  %v11184_v17 = vadd.f32 %v3726_v3, %v3565_v12  ;;  %v5132_v12 = vld [vmem:[#allocation2 + $0x1c0] sm:$0xff] }
 0x363   : > { %8751 = vmatprep.mubr.msk.bf16.mxu1 %vm9537_vm1, %v9536_v50  ;;  %8843 = vmatprep.mubr.msk.bf16.mxu0 %vm9537_vm1, %v9536_v50 }
 0x365   : > { %v3537_v27 = vpop.f32.mrb[196].mxu1  ;;  %v4065_v46 = vpop.f32.mrb[232].mxu0 }
 0x366   : > { %v3566_v15 = vadd.f32 %v3537_v27, %v11054_v30  ;;  %v8513_v21 = vpop.f32.mrb[197].mxu1  ;;  %v8605_v48 = vpop.f32.mrb[233].mxu0 }
 0x367   : > { %v3540_v25 = vpop.f32.mrb[198].mxu1  ;;  %v4068_v6 = vpop.f32.mrb[234].mxu0 }
 0x368   : > { %v3567_v38 = vadd.f32 %v3540_v25, %v11060_v43  ;;  %v8514_v3 = vpop.f32.mrb[199].mxu1  ;;  %v8606_v19 = vpop.f32.mrb[235].mxu0  ;;  %v11197_v31 = vadd.f32 %v3731_v39, %v3566_v15  ;;  %v5130_v43 = vld [vmem:[#allocation2 + $0x1a0] sm:$0xff]  ;;  %v9392_v39 = vld [vmem:[%s12008_s3 + $0xe8] sm:$0xff]  }
 0x369   : > { %v5147_v5 = vpack.c.bf16 %v5131_v37, %v5130_v43  ;;  %v5134_v25 = vld [vmem:[#allocation2 + $0x280] sm:$0xff] }
 0x36a   : > { %8752 = vmatmul.mubr.msk.bf16.gmra.mrb[48].mxu1 %vm1222_vm0, %v11192_v23  ;;  %8844 = vmatmul.mubr.msk.bf16.vlgmr.msra.gmra.mrb[84].mxu0 %vm1222_vm0, %v10741_v59  ;;  %v11203_v30 = vadd.f32 %v3734_v33, %v3567_v38  ;;  %v5135_v38 = vld [vmem:[#allocation2 + $0x288] sm:$0xff] }
 0x36b   : > { %8755 = vmatprep.mubr.msk.bf16.mxu1 %vm9537_vm1, %v9536_v50  ;;  %8847 = vmatprep.mubr.msk.bf16.mxu0 %vm9537_vm1, %v9536_v50  ;;  %v5149_v24 = vpack.c.bf16 %v5135_v38, %v5134_v25 }
 0x36c   : > { %8920 = vmatpush3.bf16.msra.mxu0 %v9391_v41 }
 0x36d   : > { %v3545_v57 = vpop.f32.mrb[200].mxu1  ;;  %v4073_v49 = vpop.f32.mrb[236].mxu0  ;;  %8921 = vmatprep.subr.bf16.mxu0 %v9536_v50 }
 0x36e   : > { %v3568_v59 = vadd.f32 %v3545_v57, %v11072_v34  ;;  %v8517_v33 = vpop.f32.mrb[201].mxu1  ;;  %v8609_v56 = vpop.f32.mrb[237].mxu0 }
 0x36f   : > { %v3548_v62 = vpop.f32.mrb[202].mxu1  ;;  %v4076_v63 = vpop.f32.mrb[238].mxu0  ;;  %v4939_v33 = vld [vmem:[#allocation2 + $0x178] sm:$0xff]  ;;  %v5136_v56 = vld [vmem:[#allocation2 + $0x2a0] sm:$0xff] }
 0x370   : > { %v3569_v53 = vadd.f32 %v3548_v62, %v11078_v0  ;;  %v8518_v29 = vpop.f32.mrb[203].mxu1  ;;  %v8610_v13 = vpop.f32.mrb[239].mxu0  ;;  %8922 = vmatpush3.bf16.msra.mxu0 %v9392_v39  ;;  %v11217_v44 = vadd.f32 %v3739_v58, %v3568_v59  ;;  %v5133_v58 = vld [vmem:[#allocation2 + $0x1c8] sm:$0xff] }
 0x371   : > { %8999 = vmatprep.subr.bf16.mxu0 %v9536_v50  ;;  %v11234_v21 = vpack.c.bf16 %v5133_v58, %v5132_v12  ;;  %v5137_v62 = vld [vmem:[#allocation2 + $0x2a8] sm:$0xff] }
 0x372   : > { %8756 = vmatmul.mubr.msk.bf16.gmra.mrb[52].mxu1 %vm1222_vm0, %v11215_v36  ;;  %8848 = vmatmul.mubr.msk.bf16.gmra.mrb[88].mxu0 %vm1222_vm0, %v5147_v5  ;;  %v11223_v34 = vadd.f32 %v3742_v20, %v3569_v53  ;;  %v9389_v20 = vld [vmem:[%s12008_s3 + $0xd0] sm:$0xff]  }
 0x373   : > { %8803 = vmatprep.mubr.msk.bf16.mxu1 %vm9537_vm1, %v9536_v50  ;;  %8851 = vmatprep.mubr.msk.bf16.mxu0 %vm9537_vm1, %v9536_v50  ;;  %v4938_v5 = vld [vmem:[#allocation2 + $0x170] sm:$0xff] }
 0x374   : > { %v4954_v58 = vpack.c.bf16 %v4939_v33, %v4938_v5 }
 0x375   : > { %v3870_v0 = vpop.f32.mrb[204].mxu1  ;;  %v4081_v7 = vpop.f32.mrb[240].mxu0 }
 0x376   : > { %v3941_v51 = vadd.f32 %v3870_v0, %v11089_v10  ;;  %v8565_v35 = vpop.f32.mrb[205].mxu1  ;;  %v8613_v9 = vpop.f32.mrb[241].mxu0 }
 0x377   : > { %v3873_v8 = vpop.f32.mrb[206].mxu1  ;;  %v4084_v27 = vpop.f32.mrb[242].mxu0 }
 0x378   : > { %v3942_v22 = vadd.f32 %v3873_v8, %v11094_v55  ;;  %v8566_v28 = vpop.f32.mrb[207].mxu1  ;;  %v8614_v15 = vpop.f32.mrb[243].mxu0  ;;  %v11236_v48 = vadd.f32 %v4065_v46, %v3941_v51  ;;  %v9390_v55 = vld [vmem:[%s12008_s3 + $0xd8] sm:$0xff]   ;;  %v11268_v51 = vpack.c.bf16 %v5137_v62, %v5136_v56  ;;  %v5138_v8 = vld [vmem:[#allocation2 + $0x2c0] sm:$0xff] }
 0x37a   : > { %8804 = vmatmul.mubr.msk.bf16.vlgmr.msra.gmra.mrb[56].mxu1 %vm1222_vm0, %v10407_v54  ;;  %8852 = vmatmul.mubr.msk.bf16.gmra.mrb[92].mxu0 %vm1222_vm0, %v11234_v21  ;;  %v11242_v10 = vadd.f32 %v4068_v6, %v3942_v22 }
 0x37b   : > { %8880 = vmatpush3.bf16.msra.mxu1 %v9389_v20  ;;  %8807 = vmatprep.mubr.msk.bf16.mxu1 %vm9537_vm1, %v9536_v50  ;;  %v5139_v20 = vld [vmem:[#allocation2 + $0x2c8] sm:$0xff] }
 0x37c   : > { %8855 = vmatprep.mubr.msk.bf16.mxu0 %vm9537_vm1, %v9536_v50  ;;  %8881 = vmatprep.subr.bf16.mxu1 %v9536_v50  ;;  %v11283_v38 = vpack.c.bf16 %v5139_v20, %v5138_v8 }
 0x37d   : > { %v3878_v46 = vpop.f32.mrb[208].mxu1  ;;  %v4089_v54 = vpop.f32.mrb[244].mxu0 }
 0x37e   : > { %v3943_v6 = vadd.f32 %v3878_v46, %v11107_v26  ;;  %v8569_v3 = vpop.f32.mrb[209].mxu1  ;;  %v8617_v19 = vpop.f32.mrb[245].mxu0 }
 0x37f   : > { %v3881_v41 = vpop.f32.mrb[210].mxu1  ;;  %v4092_v43 = vpop.f32.mrb[246].mxu0  ;;  %8882 = vmatpush3.bf16.msra.mxu1 %v9390_v55  ;;  %v5140_v19 = vld [vmem:[#allocation2 + $0x380] sm:$0xff] }
 0x380   : > { %v3944_v39 = vadd.f32 %v3881_v41, %v11112_v14  ;;  %v8570_v57 = vpop.f32.mrb[211].mxu1  ;;  %v8618_v16 = vpop.f32.mrb[247].mxu0  ;;  %8959 = vmatprep.subr.bf16.mxu1 %v9536_v50  ;;  %v11255_v37 = vadd.f32 %v4073_v49, %v3943_v6  ;;  %v5141_v41 = vld [vmem:[#allocation2 + $0x388] sm:$0xff] }
 0x381   : > { %v5152_v33 = vpack.c.bf16 %v5141_v41, %v5140_v19 }
 0x382   : > { %8808 = vmatmul.mubr.msk.bf16.gmra.mrb[60].mxu1 %vm1222_vm0, %v11120_v52  ;;  %8856 = vmatmul.mubr.msk.bf16.gmra.mrb[96].mxu0 %vm1222_vm0, %v5149_v24  ;;  %v11260_v26 = vadd.f32 %v4076_v63, %v3944_v39 }
 0x383   : > { %8811 = vmatprep.mubr.msk.bf16.mxu1 %vm9537_vm1, %v9536_v50  ;;  %8859 = vmatprep.mubr.msk.bf16.mxu0 %vm9537_vm1, %v9536_v50 }
 0x385   : > { %v3886_v14 = vpop.f32.mrb[212].mxu1  ;;  %v4097_v59 = vpop.f32.mrb[248].mxu0 }
 0x386   : > { %v3945_v49 = vadd.f32 %v3886_v14, %v11122_v1  ;;  %v8573_v53 = vpop.f32.mrb[213].mxu1  ;;  %v8621_v29 = vpop.f32.mrb[249].mxu0 }
 0x387   : > { %v3889_v52 = vpop.f32.mrb[214].mxu1  ;;  %v4100_v13 = vpop.f32.mrb[250].mxu0  ;;  %v4945_v53 = vld [vmem:[#allocation2 + $0x278] sm:$0xff]  ;;  %v5142_v29 = vld [vmem:[#allocation2 + $0x3a0] sm:$0xff] }
 0x388   : > { %v3946_v63 = vadd.f32 %v3889_v52, %v11128_v18  ;;  %v8574_v0 = vpop.f32.mrb[215].mxu1  ;;  %v8622_v12 = vpop.f32.mrb[251].mxu0  ;;  %v11270_v35 = vadd.f32 %v4081_v7, %v3945_v49 }
 0x38a   : > { %8812 = vmatmul.mubr.msk.bf16.gmra.mrb[64].mxu1 %vm1222_vm0, %v4954_v58  ;;  %8860 = vmatmul.mubr.msk.bf16.gmra.mrb[100].mxu0 %vm1222_vm0, %v11268_v51  ;;  %v11275_v1 = vadd.f32 %v4084_v27, %v3946_v63 }
 0x38b   : > { %8815 = vmatprep.mubr.msk.bf16.mxu1 %vm9537_vm1, %v9536_v50  ;;  %8863 = vmatprep.mubr.msk.bf16.mxu0 %vm9537_vm1, %v9536_v50 }
 0x38d   : > { %v3894_v18 = vpop.f32.mrb[216].mxu1  ;;  %v4105_v9 = vpop.f32.mrb[252].mxu0 }
 0x38e   : > { %v3947_v7 = vadd.f32 %v3894_v18, %v11136_v40  ;;  %v8577_v22 = vpop.f32.mrb[217].mxu1  ;;  %v8625_v28 = vpop.f32.mrb[253].mxu0 }
 0x38f   : > { %v3897_v15 = vpop.f32.mrb[218].mxu1  ;;  %v4108_v55 = vpop.f32.mrb[254].mxu0  ;;  %v5144_v22 = vld [vmem:[#allocation2 + $0x3c0] sm:$0xff]  ;;  %v5145_v28 = vld [vmem:[#allocation2 + $0x3c8] sm:$0xff] }
 0x390   : > { %v3948_v46 = vadd.f32 %v3897_v15, %v11140_v45  ;;  %v8578_v27 = vpop.f32.mrb[219].mxu1  ;;  %v8626_v25 = vpop.f32.mrb[255].mxu0  ;;  %v11285_v6 = vadd.f32 %v4089_v54, %v3947_v7  ;;  %v11327_v41 = vpack.c.bf16 %v5145_v28, %v5144_v22 }
 0x392   : > { %8816 = vmatmul.mubr.msk.bf16.gmra.mrb[68].mxu1 %vm1222_vm0, %v11148_v60  ;;  %8864 = vmatmul.mubr.msk.bf16.gmra.mrb[104].mxu0 %vm1222_vm0, %v11283_v38  ;;  %v11291_v3 = vadd.f32 %v4092_v43, %v3948_v46 }
 0x393   : > { %8819 = vmatprep.mubr.msk.bf16.mxu1 %vm9537_vm1, %v9536_v50  ;;  %8867 = vmatprep.mubr.msk.bf16.mxu0 %vm9537_vm1, %v9536_v50 }
 0x395   : > { %v3902_v40 = vpop.f32.mrb[220].mxu1  ;;  %v4113_v45 = vpop.f32.mrb[0].mxu0 }
 0x396   : > { %v3949_v54 = vadd.f32 %v3902_v40, %v11150_v47  ;;  %v8581_v39 = vpop.f32.mrb[221].mxu1  ;;  %v8629_v57 = vpop.f32.mrb[1].mxu0  ;;  %v4944_v47 = vld [vmem:[#allocation2 + $0x270] sm:$0xff] }
 0x397   : > { %v3905_v60 = vpop.f32.mrb[222].mxu1  ;;  %v4116_v16 = vpop.f32.mrb[2].mxu0  ;;  %v4957_v18 = vpack.c.bf16 %v4945_v53, %v4944_v47  ;;  %v4951_v53 = vld [vmem:[#allocation2 + $0x378] sm:$0xff] }
 0x398   : > { %v3950_v24 = vadd.f32 %v3905_v60, %v11156_v32  ;;  %v8582_v43 = vpop.f32.mrb[223].mxu1  ;;  %v8630_v14 = vpop.f32.mrb[3].mxu0  ;;  %v11299_v56 = vadd.f32 %v4097_v59, %v3949_v54  ;;  %v5143_v59 = vld [vmem:[#allocation2 + $0x3a8] sm:$0xff] }
 0x399   : > { %v11312_v8 = vpack.c.bf16 %v5143_v59, %v5142_v29 }
 0x39a   : > { %8820 = vmatmul.mubr.msk.bf16.gmra.mrb[72].mxu1 %vm1222_vm0, %v11164_v42  ;;  %8868 = vmatmul.mubr.msk.bf16.gmra.mrb[108].mxu0 %vm1222_vm0, %v5152_v33  ;;  %v11304_v62 = vadd.f32 %v4100_v13, %v3950_v24 }
 0x39b   : > { %8823 = vmatprep.mubr.msk.bf16.mxu1 %vm9537_vm1, %v9536_v50  ;;  %8871 = vmatprep.mubr.msk.bf16.mxu0 %vm9537_vm1, %v9536_v50 }
 0x39d   : > { %v3910_v32 = vpop.f32.mrb[224].mxu1  ;;  %v4121_v49 = vpop.f32.mrb[4].mxu0 }
 0x39e   : > { %v3951_v52 = vadd.f32 %v3910_v32, %v11166_v11  ;;  %v8585_v5 = vpop.f32.mrb[225].mxu1  ;;  %v8633_v42 = vpop.f32.mrb[5].mxu0  ;;  %v4950_v32 = vld [vmem:[#allocation2 + $0x370] sm:$0xff] }
 0x39f   : > { %v3913_v63 = vpop.f32.mrb[226].mxu1  ;;  %v4124_v0 = vpop.f32.mrb[6].mxu0 }
 0x3a0   : > { %v3952_v13 = vadd.f32 %v3913_v63, %v11172_v61  ;;  %v8586_v12 = vpop.f32.mrb[227].mxu1  ;;  %v8634_v58 = vpop.f32.mrb[7].mxu0  ;;  %v11314_v20 = vadd.f32 %v4105_v9, %v3951_v52  ;;  %v4960_v63 = vpack.c.bf16 %v4951_v53, %v4950_v32 }
 0x3a2   : > { %8824 = vmatmul.mubr.msk.bf16.gmra.mrb[76].mxu1 %vm1222_vm0, %v4957_v18  ;;  %8872 = vmatmul.mubr.msk.bf16.gmra.mrb[112].mxu0 %vm1222_vm0, %v11312_v8  ;;  %v11319_v7 = vadd.f32 %v4108_v55, %v3952_v13  ;;  %v5522_v18 = vld [vmem:[#allocation2 + $0x1e0] sm:$0xff] }
 0x3a3   : > { %8827 = vmatprep.mubr.msk.bf16.mxu1 %vm9537_vm1, %v9536_v50  ;;  %8875 = vmatprep.mubr.msk.bf16.mxu0 %vm9537_vm1, %v9536_v50 }
 0x3a5   : > { %v3918_v11 = vpop.f32.mrb[228].mxu1  ;;  %v4129_v61 = vpop.f32.mrb[8].mxu0 }
 0x3a6   : > { %v3953_v9 = vadd.f32 %v3918_v11, %v11180_v2  ;;  %v8589_v15 = vpop.f32.mrb[229].mxu1  ;;  %v8637_v46 = vpop.f32.mrb[9].mxu0  ;;  %v5523_v11 = vld [vmem:[#allocation2 + $0x1e8] sm:$0xff] }
 0x3a7   : > { %v3921_v27 = vpop.f32.mrb[230].mxu1  ;;  %v4132_v25 = vpop.f32.mrb[10].mxu0  ;;  %v9393_v15 = vld [vmem:[%s12008_s3 + $0xf0] sm:$0xff]  }
 0x3a8   : > { %v3954_v40 = vadd.f32 %v3921_v27, %v11184_v17  ;;  %v8590_v55 = vpop.f32.mrb[231].mxu1  ;;  %v8638_v19 = vpop.f32.mrb[11].mxu0  ;;  %v11329_v54 = vadd.f32 %v4113_v45, %v3953_v9 }
 0x3a9   : > { %v5538_v55 = vpack.c.bf16 %v5523_v11, %v5522_v18 }
 0x3aa   : > { %8828 = vmatmul.mubr.msk.bf16.gmra.mrb[80].mxu1 %vm1222_vm0, %v11192_v23  ;;  %8876 = vmatmul.mubr.msk.bf16.gmra.mrb[116].mxu0 %vm1222_vm0, %v11327_v41  ;;  %v11335_v39 = vadd.f32 %v4116_v16, %v3954_v40 }
 0x3ab   : > { %8831 = vmatprep.mubr.msk.bf16.mxu1 %vm9537_vm1, %v9536_v50  ;;  %8923 = vmatprep.mubr.msk.bf16.mxu0 %vm9537_vm1, %v9536_v50 }
 0x3ad   : > { %v3926_v2 = vpop.f32.mrb[232].mxu1  ;;  %v4454_v17 = vpop.f32.mrb[12].mxu0 }
 0x3ae   : > { %v3955_v57 = vadd.f32 %v3926_v2, %v11197_v31  ;;  %v8593_v45 = vpop.f32.mrb[233].mxu1  ;;  %v8685_v60 = vpop.f32.mrb[13].mxu0  ;;  %v9394_v2 = vld [vmem:[%s12008_s3 + $0xf8] sm:$0xff]  }
 0x3af   : > { %v3929_v24 = vpop.f32.mrb[234].mxu1  ;;  %v4457_v43 = vpop.f32.mrb[14].mxu0  ;;  %v5326_v45 = vld [vmem:[#allocation2 + $0x1b8] sm:$0xff] }
 0x3b0   : > { %v3956_v23 = vadd.f32 %v3929_v24, %v11203_v30  ;;  %v8594_v14 = vpop.f32.mrb[235].mxu1  ;;  %v8686_v33 = vpop.f32.mrb[15].mxu0  ;;  %v11343_v16 = vadd.f32 %v4121_v49, %v3955_v57  ;;  %v5325_v57 = vld [vmem:[#allocation2 + $0x1b0] sm:$0xff] }
 0x3b1   : > { %v5342_v53 = vpack.c.bf16 %v5326_v45, %v5325_v57  ;;  %v5331_v57 = vld [vmem:[#allocation2 + $0x2b0] sm:$0xff]  ;;  %v5332_v45 = vld [vmem:[#allocation2 + $0x2b8] sm:$0xff] }
 0x3b2   : > { %8832 = vmatmul.mubr.msk.bf16.gmra.mrb[84].mxu1 %vm1222_vm0, %v11215_v36  ;;  %8924 = vmatmul.mubr.msk.bf16.vlgmr.msra.gmra.mrb[120].mxu0 %vm1222_vm0, %v10756_v4  ;;  %v11349_v47 = vadd.f32 %v4124_v0, %v3956_v23 }
 0x3b3   : > { %8835 = vmatprep.mubr.msk.bf16.mxu1 %vm9537_vm1, %v9536_v50  ;;  %8927 = vmatprep.mubr.msk.bf16.mxu0 %vm9537_vm1, %v9536_v50 }
 0x3b5   : > { %v3934_v31 = vpop.f32.mrb[236].mxu1  ;;  %v4462_v30 = vpop.f32.mrb[16].mxu0 }
 0x3b6   : > { %v3957_v49 = vadd.f32 %v3934_v31, %v11217_v44  ;;  %v8597_v29 = vpop.f32.mrb[237].mxu1  ;;  %v8689_v59 = vpop.f32.mrb[17].mxu0  ;;  %v5323_v44 = vld [vmem:[#allocation2 + $0x190] sm:$0xff] }
 0x3b7   : > { %v3937_v36 = vpop.f32.mrb[238].mxu1  ;;  %v4465_v52 = vpop.f32.mrb[18].mxu0  ;;  %v5327_v59 = vld [vmem:[#allocation2 + $0x1d0] sm:$0xff] }
 0x3b8   : > { %v3958_v4 = vadd.f32 %v3937_v36, %v11223_v34  ;;  %v8598_v5 = vpop.f32.mrb[239].mxu1  ;;  %v8690_v42 = vpop.f32.mrb[19].mxu0  ;;  %v11357_v0 = vadd.f32 %v4129_v61, %v3957_v49  ;;  %v5324_v34 = vld [vmem:[#allocation2 + $0x198] sm:$0xff] }
 0x3b9   : > { %v5341_v46 = vpack.c.bf16 %v5324_v34, %v5323_v44 }
 0x3ba   : > { %8836 = vmatmul.mubr.msk.bf16.gmra.mrb[88].mxu1 %vm1222_vm0, %v4960_v63  ;;  %8928 = vmatmul.mubr.msk.bf16.gmra.mrb[124].mxu0 %vm1222_vm0, %v11234_v21  ;;  %v11362_v13 = vadd.f32 %v4132_v25, %v3958_v4 }
 0x3bb   : > { %8883 = vmatprep.mubr.msk.bf16.mxu1 %vm9537_vm1, %v9536_v50  ;;  %8931 = vmatprep.mubr.msk.bf16.mxu0 %vm9537_vm1, %v9536_v50 }
 0x3bd   : > { %v4260_v12 = vpop.f32.mrb[240].mxu1  ;;  %v4470_v58 = vpop.f32.mrb[20].mxu0 }
 0x3be   : > { %v4331_v61 = vadd.f32 %v4260_v12, %v11236_v48  ;;  %v8645_v22 = vpop.f32.mrb[241].mxu1  ;;  %v8693_v28 = vpop.f32.mrb[21].mxu0 }
 0x3bf   : > { %v4263_v9 = vpop.f32.mrb[242].mxu1  ;;  %v4473_v21 = vpop.f32.mrb[22].mxu0  ;;  %v5529_v22 = vld [vmem:[#allocation2 + $0x2e8] sm:$0xff] }
 0x3c0   : > { %v4332_v27 = vadd.f32 %v4263_v9, %v11242_v10  ;;  %v8646_v25 = vpop.f32.mrb[243].mxu1  ;;  %v8694_v40 = vpop.f32.mrb[23].mxu0  ;;  %v11373_v19 = vadd.f32 %v4454_v17, %v4331_v61  ;;  %v5330_v61 = vld [vmem:[#allocation2 + $0x298] sm:$0xff] }
 0x3c2   : > { %8884 = vmatmul.mubr.msk.bf16.vlgmr.msra.gmra.mrb[92].mxu1 %vm1222_vm0, %v5341_v46  ;;  %8932 = vmatmul.mubr.msk.bf16.gmra.mrb[128].mxu0 %vm1222_vm0, %v5538_v55  ;;  %v11377_v48 = vadd.f32 %v4457_v43, %v4332_v27 }
 0x3c3   : > { %8960 = vmatpush3.bf16.msra.mxu1 %v9393_v15  ;;  %8887 = vmatprep.mubr.msk.bf16.mxu1 %vm9537_vm1, %v9536_v50 }
 0x3c4   : > { %8935 = vmatprep.mubr.msk.bf16.mxu0 %vm9537_vm1, %v9536_v50  ;;  %8961 = vmatprep.subr.bf16.mxu1 %v9536_v50 }
 0x3c5   : > { %v4268_v10 = vpop.f32.mrb[244].mxu1  ;;  %v4478_v17 = vpop.f32.mrb[24].mxu0 }
 0x3c6   : > { %v4333_v60 = vadd.f32 %v4268_v10, %v11255_v37  ;;  %v8649_v24 = vpop.f32.mrb[245].mxu1  ;;  %v8697_v43 = vpop.f32.mrb[25].mxu0 }
 0x3c7   : > { %v4271_v23 = vpop.f32.mrb[246].mxu1  ;;  %v4481_v14 = vpop.f32.mrb[26].mxu0  ;;  %8962 = vmatpush3.bf16.msra.mxu1 %v9394_v2 }
 0x3c8   : > { %v4334_v33 = vadd.f32 %v4271_v23, %v11260_v26  ;;  %v8650_v31 = vpop.f32.mrb[247].mxu1  ;;  %v8698_v32 = vpop.f32.mrb[27].mxu0  ;;  %v11389_v49 = vadd.f32 %v4462_v30, %v4333_v60  ;;  %9011 = vmatprep.subr.bf16.mxu1 %v9536_v50  ;;  %v5328_v30 = vld [vmem:[#allocation2 + $0x1d8] sm:$0xff] }
 0x3c9   : > { %v11403_v34 = vpack.c.bf16 %v5328_v30, %v5327_v59  ;;  %v11431_v32 = vpack.c.bf16 %v5332_v45, %v5331_v57  ;;  %v5333_v59 = vld [vmem:[#allocation2 + $0x2d0] sm:$0xff]  ;;  %v5334_v30 = vld [vmem:[#allocation2 + $0x2d8] sm:$0xff] }
 0x3ca   : > { %8888 = vmatmul.mubr.msk.bf16.gmra.mrb[96].mxu1 %vm1222_vm0, %v5342_v53  ;;  %8936 = vmatmul.mubr.msk.bf16.gmra.mrb[132].mxu0 %vm1222_vm0, %v11268_v51  ;;  %v11395_v37 = vadd.f32 %v4465_v52, %v4334_v33  ;;  %v5338_v57 = vld [vmem:[#allocation2 + $0x3b8] sm:$0xff] }
 0x3cb   : > { %8891 = vmatprep.mubr.msk.bf16.mxu1 %vm9537_vm1, %v9536_v50  ;;  %8939 = vmatprep.mubr.msk.bf16.mxu0 %vm9537_vm1, %v9536_v50 }
 0x3cd   : > { %v4276_v26 = vpop.f32.mrb[248].mxu1  ;;  %v4486_v29 = vpop.f32.mrb[28].mxu0 }
 0x3ce   : > { %v4335_v36 = vadd.f32 %v4276_v26, %v11270_v35  ;;  %v8653_v4 = vpop.f32.mrb[249].mxu1  ;;  %v8701_v5 = vpop.f32.mrb[29].mxu0  ;;  %v5329_v35 = vld [vmem:[#allocation2 + $0x290] sm:$0xff] }
 0x3cf   : > { %v4279_v42 = vpop.f32.mrb[250].mxu1  ;;  %v4489_v63 = vpop.f32.mrb[30].mxu0  ;;  %v5344_v40 = vpack.c.bf16 %v5330_v61, %v5329_v35  ;;  %v5336_v61 = vld [vmem:[#allocation2 + $0x398] sm:$0xff] }
 0x3d0   : > { %v4336_v51 = vadd.f32 %v4279_v42, %v11275_v1  ;;  %v8654_v52 = vpop.f32.mrb[251].mxu1  ;;  %v8702_v44 = vpop.f32.mrb[31].mxu0  ;;  %v11405_v12 = vadd.f32 %v4470_v58, %v4335_v36  ;;  %v5528_v58 = vld [vmem:[#allocation2 + $0x2e0] sm:$0xff] }
 0x3d1   : > { %v5541_v55 = vpack.c.bf16 %v5529_v22, %v5528_v58  ;;  %v11447_v52 = vpack.c.bf16 %v5334_v30, %v5333_v59  ;;  %v5535_v58 = vld [vmem:[#allocation2 + $0x3e8] sm:$0xff]  ;;  %v5339_v30 = vld [vmem:[#allocation2 + $0x3d0] sm:$0xff] }
 0x3d2   : > { %8892 = vmatmul.mubr.msk.bf16.gmra.mrb[100].mxu1 %vm1222_vm0, %v11403_v34  ;;  %8940 = vmatmul.mubr.msk.bf16.gmra.mrb[136].mxu0 %vm1222_vm0, %v11283_v38  ;;  %v11411_v18 = vadd.f32 %v4473_v21, %v4336_v51 }
 0x3d3   : > { %8895 = vmatprep.mubr.msk.bf16.mxu1 %vm9537_vm1, %v9536_v50  ;;  %8943 = vmatprep.mubr.msk.bf16.mxu0 %vm9537_vm1, %v9536_v50 }
 0x3d5   : > { %v4284_v1 = vpop.f32.mrb[252].mxu1  ;;  %v4494_v11 = vpop.f32.mrb[32].mxu0 }
 0x3d6   : > { %v4337_v28 = vadd.f32 %v4284_v1, %v11285_v6  ;;  %v8657_v9 = vpop.f32.mrb[253].mxu1  ;;  %v8705_v15 = vpop.f32.mrb[33].mxu0 }
 0x3d7   : > { %v4287_v46 = vpop.f32.mrb[254].mxu1  ;;  %v4497_v38 = vpop.f32.mrb[34].mxu0 }
 0x3d8   : > { %v4338_v21 = vadd.f32 %v4287_v46, %v11291_v3  ;;  %v8658_v27 = vpop.f32.mrb[255].mxu1  ;;  %v8706_v25 = vpop.f32.mrb[35].mxu0  ;;  %v11419_v2 = vadd.f32 %v4478_v17, %v4337_v28 }
 0x3da   : > { %8896 = vmatmul.mubr.msk.bf16.gmra.mrb[104].mxu1 %vm1222_vm0, %v5344_v40  ;;  %8944 = vmatmul.mubr.msk.bf16.gmra.mrb[140].mxu0 %vm1222_vm0, %v5541_v55  ;;  %v11423_v10 = vadd.f32 %v4481_v14, %v4338_v21 }
 0x3db   : > { %8899 = vmatprep.mubr.msk.bf16.mxu1 %vm9537_vm1, %v9536_v50  ;;  %8947 = vmatprep.mubr.msk.bf16.mxu0 %vm9537_vm1, %v9536_v50 }
 0x3dd   : > { %v4292_v6 = vpop.f32.mrb[0].mxu1  ;;  %v4502_v3 = vpop.f32.mrb[36].mxu0 }
 0x3de   : > { %v4339_v60 = vadd.f32 %v4292_v6, %v11299_v56  ;;  %v8661_v17 = vpop.f32.mrb[1].mxu1  ;;  %v8709_v24 = vpop.f32.mrb[37].mxu0  ;;  %v5337_v6 = vld [vmem:[#allocation2 + $0x3b0] sm:$0xff] }
 0x3df   : > { %v4295_v43 = vpop.f32.mrb[2].mxu1  ;;  %v4505_v23 = vpop.f32.mrb[38].mxu0 }
 0x3e0   : > { %v4340_v33 = vadd.f32 %v4295_v43, %v11304_v62  ;;  %v8662_v14 = vpop.f32.mrb[3].mxu1  ;;  %v8710_v31 = vpop.f32.mrb[39].mxu0  ;;  %v11433_v53 = vadd.f32 %v4486_v29, %v4339_v60 }
 0x3e1   : > { %v11475_v14 = vpack.c.bf16 %v5338_v57, %v5337_v6 }
 0x3e2   : > { %8900 = vmatmul.mubr.msk.bf16.gmra.mrb[108].mxu1 %vm1222_vm0, %v11431_v32  ;;  %8948 = vmatmul.mubr.msk.bf16.gmra.mrb[144].mxu0 %vm1222_vm0, %v11312_v8  ;;  %v11439_v26 = vadd.f32 %v4489_v63, %v4340_v33 }
 0x3e3   : > { %8903 = vmatprep.mubr.msk.bf16.mxu1 %vm9537_vm1, %v9536_v50  ;;  %8951 = vmatprep.mubr.msk.bf16.mxu0 %vm9537_vm1, %v9536_v50 }
 0x3e5   : > { %v4300_v56 = vpop.f32.mrb[4].mxu1  ;;  %v4510_v62 = vpop.f32.mrb[40].mxu0 }
 0x3e6   : > { %v4341_v29 = vadd.f32 %v4300_v56, %v11314_v20  ;;  %v8665_v36 = vpop.f32.mrb[5].mxu1  ;;  %v8713_v4 = vpop.f32.mrb[41].mxu0  ;;  %v5335_v20 = vld [vmem:[#allocation2 + $0x390] sm:$0xff] }
 0x3e7   : > { %v4303_v5 = vpop.f32.mrb[6].mxu1  ;;  %v4513_v42 = vpop.f32.mrb[42].mxu0  ;;  %v5347_v27 = vpack.c.bf16 %v5336_v61, %v5335_v20  ;;  %v5714_v61 = vld [vmem:[#allocation2 + $0x1b8] sm:$0xff] }
 0x3e8   : > { %v4342_v8 = vadd.f32 %v4303_v5, %v11319_v7  ;;  %v8666_v63 = vpop.f32.mrb[7].mxu1  ;;  %v8714_v51 = vpop.f32.mrb[43].mxu0  ;;  %v11449_v44 = vadd.f32 %v4494_v11, %v4341_v29  ;;  %v5534_v11 = vld [vmem:[#allocation2 + $0x3e0] sm:$0xff]  ;;  %v5340_v29 = vld [vmem:[#allocation2 + $0x3d8] sm:$0xff] }
 0x3e9   : > { %v5544_v25 = vpack.c.bf16 %v5535_v58, %v5534_v11  ;;  %v11487_v20 = vpack.c.bf16 %v5340_v29, %v5339_v30 }
 0x3ea   : > { %8904 = vmatmul.mubr.msk.bf16.gmra.mrb[112].mxu1 %vm1222_vm0, %v11447_v52  ;;  %8952 = vmatmul.mubr.msk.bf16.gmra.mrb[148].mxu0 %vm1222_vm0, %v11327_v41  ;;  %v11455_v35 = vadd.f32 %v4497_v38, %v4342_v8 }
 0x3eb   : > { %8907 = vmatprep.mubr.msk.bf16.mxu1 %vm9537_vm1, %v9536_v50  ;;  %8955 = vmatprep.mubr.msk.bf16.mxu0 %vm9537_vm1, %v9536_v50 }
 0x3ed   : > { %v4308_v7 = vpop.f32.mrb[8].mxu1  ;;  %v4518_v1 = vpop.f32.mrb[44].mxu0 }
 0x3ee   : > { %v4343_v22 = vadd.f32 %v4308_v7, %v11329_v54  ;;  %v8669_v28 = vpop.f32.mrb[9].mxu1  ;;  %v8717_v9 = vpop.f32.mrb[45].mxu0 }
 0x3ef   : > { %v4311_v15 = vpop.f32.mrb[10].mxu1  ;;  %v4521_v41 = vpop.f32.mrb[46].mxu0 }
 0x3f0   : > { %v4344_v46 = vadd.f32 %v4311_v15, %v11335_v39  ;;  %v8670_v38 = vpop.f32.mrb[11].mxu1  ;;  %v8718_v21 = vpop.f32.mrb[47].mxu0  ;;  %v11463_v40 = vadd.f32 %v4502_v3, %v4343_v22 }
 0x3f2   : > { %8908 = vmatmul.mubr.msk.bf16.gmra.mrb[116].mxu1 %vm1222_vm0, %v5347_v27  ;;  %8956 = vmatmul.mubr.msk.bf16.gmra.mrb[152].mxu0 %vm1222_vm0, %v5544_v25  ;;  %v11467_v55 = vadd.f32 %v4505_v23, %v4344_v46 }
 0x3f3   : > { %8911 = vmatprep.mubr.msk.bf16.mxu1 %vm9537_vm1, %v9536_v50  ;;  %9007 = vmatprep.mubr.msk.bf16.mxu0 %vm9537_vm1, %v9536_v50 }
 0x3f5   : > { %v4316_v54 = vpop.f32.mrb[12].mxu1  ;;  %v4844_v39 = vpop.f32.mrb[48].mxu0 }
 0x3f6   : > { %v4345_v45 = vadd.f32 %v4316_v54, %v11343_v16  ;;  %v8673_v3 = vpop.f32.mrb[13].mxu1  ;;  %v8765_v60 = vpop.f32.mrb[49].mxu0 }
 0x3f7   : > { %v4319_v17 = vpop.f32.mrb[14].mxu1  ;;  %v4847_v24 = vpop.f32.mrb[50].mxu0 }
 0x3f8   : > { %v4346_v43 = vadd.f32 %v4319_v17, %v11349_v47  ;;  %v8674_v23 = vpop.f32.mrb[15].mxu1  ;;  %v8766_v33 = vpop.f32.mrb[51].mxu0  ;;  %v11477_v31 = vadd.f32 %v4510_v62, %v4345_v45 }
 0x3f9   : > { %v5717_v23 = vld [vmem:[#allocation2 + $0x1f0] sm:$0xff]  ;;  %v5718_v33 = vld [vmem:[#allocation2 + $0x1f8] sm:$0xff] }
 0x3fa   : > { %8912 = vmatmul.mubr.msk.bf16.gmra.mrb[120].mxu1 %vm1222_vm0, %v11475_v14  ;;  %v11481_v56 = vadd.f32 %v4513_v42, %v4346_v43 }
 0x3fb   : > { %8915 = vmatprep.mubr.msk.bf16.mxu1 %vm9537_vm1, %v9536_v50 }
 0x3fd   : > { %v4324_v16 = vpop.f32.mrb[16].mxu1  ;;  %v4852_v59 = vpop.f32.mrb[52].mxu0 }
 0x3fe   : > { %v4347_v47 = vadd.f32 %v4324_v16, %v11357_v0  ;;  %v8677_v36 = vpop.f32.mrb[17].mxu1  ;;  %v8769_v4 = vpop.f32.mrb[53].mxu0  ;;  %v5713_v0 = vld [vmem:[#allocation2 + $0x1b0] sm:$0xff] }
 0x3ff   : > { %v4327_v5 = vpop.f32.mrb[18].mxu1  ;;  %v4855_v8 = vpop.f32.mrb[54].mxu0 }
 0x400   : > { %v4348_v62 = vadd.f32 %v4327_v5, %v11362_v13  ;;  %v8678_v63 = vpop.f32.mrb[19].mxu1  ;;  %v8770_v51 = vpop.f32.mrb[55].mxu0  ;;  %v11489_v42 = vadd.f32 %v4518_v1, %v4347_v47  ;;  %v5731_v1 = vpack.c.bf16 %v5714_v61, %v5713_v0 }
 0x402   : > { %8916 = vmatmul.mubr.msk.bf16.gmra.mrb[124].mxu1 %vm1222_vm0, %v11487_v20  ;;  %v11493_v7 = vadd.f32 %v4521_v41, %v4348_v62 }
 0x403   : > { %8963 = vmatprep.mubr.msk.bf16.mxu1 %vm9537_vm1, %v9536_v50 }
 0x405   : > { %v4649_v11 = vpop.f32.mrb[20].mxu1  ;;  %v4860_v58 = vpop.f32.mrb[56].mxu0 }
 0x406   : > { %v4720_v13 = vadd.f32 %v4649_v11, %v11373_v19  ;;  %v8725_v22 = vpop.f32.mrb[21].mxu1  ;;  %v8773_v28 = vpop.f32.mrb[57].mxu0 }
 0x407   : > { %v4652_v9 = vpop.f32.mrb[22].mxu1  ;;  %v4863_v15 = vpop.f32.mrb[58].mxu0 }
 0x408   : > { %v4721_v46 = vadd.f32 %v4652_v9, %v11377_v48  ;;  %v8726_v38 = vpop.f32.mrb[23].mxu1  ;;  %v8774_v21 = vpop.f32.mrb[59].mxu0  ;;  %v11499_v41 = vadd.f32 %v4844_v39, %v4720_v13 }
 0x40a   : > { %8964 = vmatmul.mubr.msk.bf16.vlgmr.msra.gmra.mrb[128].mxu1 %vm1222_vm0, %v5731_v1  ;;  %v11502_v27 = vadd.f32 %v4847_v24, %v4721_v46 }
 0x40b   : > { %8967 = vmatprep.mubr.msk.bf16.mxu1 %vm9537_vm1, %v9536_v50 }
 0x40d   : > { %v4657_v25 = vpop.f32.mrb[24].mxu1  ;;  %v4868_v19 = vpop.f32.mrb[60].mxu0 }
 0x40e   : > { %v4722_v54 = vadd.f32 %v4657_v25, %v11389_v49  ;;  %v8729_v6 = vpop.f32.mrb[25].mxu1  ;;  %v8777_v57 = vpop.f32.mrb[61].mxu0 }
 0x40f   : > { %v4660_v45 = vpop.f32.mrb[26].mxu1  ;;  %v4871_v3 = vpop.f32.mrb[62].mxu0  ;;  %v5723_v57 = vld [vmem:[#allocation2 + $0x2f0] sm:$0xff] }
 0x410   : > { %v4723_v48 = vadd.f32 %v4660_v45, %v11395_v37  ;;  %v8730_v60 = vpop.f32.mrb[27].mxu1  ;;  %v8778_v39 = vpop.f32.mrb[63].mxu0  ;;  %v11508_v17 = vadd.f32 %v4852_v59, %v4722_v54  ;;  %v5724_v45 = vld [vmem:[#allocation2 + $0x2f8] sm:$0xff] }
 0x412   : > { %8968 = vmatmul.mubr.msk.bf16.gmra.mrb[132].mxu1 %vm1222_vm0, %v11403_v34  ;;  %v11512_v24 = vadd.f32 %v4855_v8, %v4723_v48  ;;  %v5733_v34 = vpack.c.bf16 %v5718_v33, %v5717_v23  ;;  %v5736_v33 = vpack.c.bf16 %v5724_v45, %v5723_v57 }
 0x413   : > { %8971 = vmatprep.mubr.msk.bf16.mxu1 %vm9537_vm1, %v9536_v50 }
 0x415   : > { %v4665_v43 = vpop.f32.mrb[28].mxu1  ;;  %v4876_v49 = vpop.f32.mrb[64].mxu0 }
 0x416   : > { %v4724_v16 = vadd.f32 %v4665_v43, %v11405_v12  ;;  %v8733_v30 = vpop.f32.mrb[29].mxu1  ;;  %v8781_v37 = vpop.f32.mrb[65].mxu0 }
 0x417   : > { %v4668_v29 = vpop.f32.mrb[30].mxu1  ;;  %v4879_v47 = vpop.f32.mrb[66].mxu0 }
 0x418   : > { %v4725_v59 = vadd.f32 %v4668_v29, %v11411_v18  ;;  %v8734_v36 = vpop.f32.mrb[31].mxu1  ;;  %v8782_v4 = vpop.f32.mrb[67].mxu0  ;;  %v11518_v5 = vadd.f32 %v4860_v58, %v4724_v16 }
 0x41a   : > { %8972 = vmatmul.mubr.msk.bf16.gmra.mrb[136].mxu1 %vm1222_vm0, %v5733_v34  ;;  %v11521_v8 = vadd.f32 %v4863_v15, %v4725_v59 }
 0x41b   : > { %8975 = vmatprep.mubr.msk.bf16.mxu1 %vm9537_vm1, %v9536_v50 }
 0x41d   : > { %v4673_v62 = vpop.f32.mrb[32].mxu1  ;;  %v4884_v12 = vpop.f32.mrb[68].mxu0 }
 0x41e   : > { %v4726_v63 = vadd.f32 %v4673_v62, %v11419_v2  ;;  %v8737_v51 = vpop.f32.mrb[33].mxu1  ;;  %v8785_v0 = vpop.f32.mrb[69].mxu0 }
 0x41f   : > { %v4676_v61 = vpop.f32.mrb[34].mxu1  ;;  %v4887_v18 = vpop.f32.mrb[70].mxu0  ;;  %v9397_v51 = vld [vmem:[%s12010_s5 + $0x28] sm:$0xff]  }
 0x420   : > { %v4727_v11 = vadd.f32 %v4676_v61, %v11423_v10  ;;  %v8738_v13 = vpop.f32.mrb[35].mxu1  ;;  %v8786_v58 = vpop.f32.mrb[71].mxu0  ;;  %v11527_v22 = vadd.f32 %v4868_v19, %v4726_v63  ;;  %v9396_v63 = vld [vmem:[%s12010_s5] sm:$0xff]  }
 0x421   : > { %9012 = vmatpush3.bf16.msra.mxu1 %v9396_v63 }
 0x422   : > { %8976 = vmatmul.mubr.msk.bf16.gmra.mrb[140].mxu1 %vm1222_vm0, %v11431_v32  ;;  %v11531_v28 = vadd.f32 %v4871_v3, %v4727_v11  ;;  %v9395_v32 = vld [vmem:[%s12010_s5 + $0x20] sm:$0xff]   ;;  %9013 = vmatprep.subr.bf16.mxu1 %v9536_v50 }
 0x423   : > { %8979 = vmatprep.mubr.msk.bf16.mxu1 %vm9537_vm1, %v9536_v50  ;;  %9000 = vmatpush3.bf16.msra.mxu0 %v9395_v32 }
 0x424   : > { %9001 = vmatprep.subr.bf16.mxu0 %v9536_v50 }
 0x425   : > { %v4681_v9 = vpop.f32.mrb[36].mxu1  ;;  %v4892_v2 = vpop.f32.mrb[72].mxu0 }
 0x426   : > { %v4728_v15 = vadd.f32 %v4681_v9, %v11433_v53  ;;  %v8741_v1 = vpop.f32.mrb[37].mxu1  ;;  %v8789_v46 = vpop.f32.mrb[73].mxu0 }
 0x427   : > { %v4684_v38 = vpop.f32.mrb[38].mxu1  ;;  %v4895_v10 = vpop.f32.mrb[74].mxu0  ;;  %9002 = vmatpush3.bf16.msra.mxu0 %v9397_v51 }
 0x428   : > { %v4729_v21 = vadd.f32 %v4684_v38, %v11439_v26  ;;  %v8742_v25 = vpop.f32.mrb[39].mxu1  ;;  %v8790_v19 = vpop.f32.mrb[75].mxu0  ;;  %v11537_v54 = vadd.f32 %v4876_v49, %v4728_v15  ;;  %9003 = vmatprep.subr.bf16.mxu0 %v9536_v50  ;;  %v5729_v38 = vld [vmem:[#allocation2 + $0x3f0] sm:$0xff] }
 0x42a   : > { %8980 = vmatmul.mubr.msk.bf16.gmra.mrb[144].mxu1 %vm1222_vm0, %v11447_v52  ;;  %v11544_v6 = vadd.f32 %v4879_v47, %v4729_v21 }
 0x42b   : > { %8983 = vmatprep.mubr.msk.bf16.mxu1 %vm9537_vm1, %v9536_v50 }
 0x42d   : > { %v4689_v53 = vpop.f32.mrb[40].mxu1  ;;  %v4900_v26 = vpop.f32.mrb[76].mxu0 }
 0x42e   : > { %v4730_v3 = vadd.f32 %v4689_v53, %v11449_v44  ;;  %v8745_v48 = vpop.f32.mrb[41].mxu1  ;;  %v8793_v60 = vpop.f32.mrb[77].mxu0 }
 0x42f   : > { %v4692_v39 = vpop.f32.mrb[42].mxu1  ;;  %v4903_v43 = vpop.f32.mrb[78].mxu0 }
 0x430   : > { %v4731_v52 = vadd.f32 %v4692_v39, %v11455_v35  ;;  %v8746_v49 = vpop.f32.mrb[43].mxu1  ;;  %v8794_v23 = vpop.f32.mrb[79].mxu0  ;;  %v11551_v16 = vadd.f32 %v4884_v12, %v4730_v3  ;;  %v9398_v3 = vld [vmem:[%s12010_s5 + $0x8] sm:$0xff]  }
 0x431   : > { %9014 = vmatpush3.bf16.msra.mxu1 %v9398_v3 }
 0x432   : > { %8984 = vmatmul.mubr.msk.bf16.gmra.mrb[148].mxu1 %vm1222_vm0, %v5736_v33  ;;  %v11554_v30 = vadd.f32 %v4887_v18, %v4731_v52  ;;  %9015 = vmatprep.subr.bf16.mxu1 %v9536_v50  ;;  %v9399_v52 = vld [vmem:[%s12010_s5 + $0x30] sm:$0xff]  }
 0x433   : > { %8987 = vmatprep.mubr.msk.bf16.mxu1 %vm9537_vm1, %v9536_v50  ;;  %9004 = vmatpush3.bf16.msra.mxu0 %v9399_v52 }
 0x434   : > { %9005 = vmatprep.subr.bf16.mxu0 %v9536_v50 }
 0x435   : > { %v4697_v37 = vpop.f32.mrb[44].mxu1  ;;  %v4908_v44 = vpop.f32.mrb[80].mxu0 }
 0x436   : > { %v4732_v29 = vadd.f32 %v4697_v37, %v11463_v40  ;;  %v8749_v47 = vpop.f32.mrb[45].mxu1  ;;  %v8797_v59 = vpop.f32.mrb[81].mxu0 }
 0x437   : > { %v4700_v36 = vpop.f32.mrb[46].mxu1  ;;  %v4911_v35 = vpop.f32.mrb[82].mxu0 }
 0x438   : > { %v4733_v4 = vadd.f32 %v4700_v36, %v11467_v55  ;;  %v8750_v34 = vpop.f32.mrb[47].mxu1  ;;  %v8798_v62 = vpop.f32.mrb[83].mxu0  ;;  %v11560_v12 = vadd.f32 %v4892_v2, %v4732_v29 }
 0x43a   : > { %8988 = vmatmul.mubr.msk.bf16.gmra.mrb[152].mxu1 %vm1222_vm0, %v11475_v14  ;;  %v11570_v40 = vadd.f32 %v4895_v10, %v4733_v4  ;;  %v5730_v10 = vld [vmem:[#allocation2 + $0x3f8] sm:$0xff] }
 0x43b   : > { %8991 = vmatprep.mubr.msk.bf16.mxu1 %vm9537_vm1, %v9536_v50 }
 0x43d   : > { %v4705_v55 = vpop.f32.mrb[48].mxu1  ;;  %v5233_v0 = vpop.f32.mrb[84].mxu0 }
 0x43e   : > { %v4734_v61 = vadd.f32 %v4705_v55, %v11477_v31  ;;  %v8753_v18 = vpop.f32.mrb[49].mxu1  ;;  %v8845_v11 = vpop.f32.mrb[85].mxu0 }
 0x43f   : > { %v4708_v13 = vpop.f32.mrb[50].mxu1  ;;  %v5236_v58 = vpop.f32.mrb[86].mxu0 }
 0x440   : > { %v4735_v14 = vadd.f32 %v4708_v13, %v11481_v56  ;;  %v8754_v9 = vpop.f32.mrb[51].mxu1  ;;  %v8846_v2 = vpop.f32.mrb[87].mxu0  ;;  %v11578_v15 = vadd.f32 %v4900_v26, %v4734_v61 }
 0x442   : > { %8992 = vmatmul.mubr.msk.bf16.gmra.mrb[156].mxu1 %vm1222_vm0, %v11487_v20  ;;  %v11582_v1 = vadd.f32 %v4903_v43, %v4735_v14  ;;  %v5739_v20 = vpack.c.bf16 %v5730_v10, %v5729_v38  ;;  %v9402_v10 = vld [vmem:[%s12010_s5 + $0x18] sm:$0xff]  }
 0x443   : > { %8995 = vmatprep.mubr.msk.bf16.mxu1 %vm9537_vm1, %v9536_v50 }
 0x445   : > { %v4713_v46 = vpop.f32.mrb[52].mxu1  ;;  %v5241_v31 = vpop.f32.mrb[88].mxu0 }
 0x446   : > { %v4736_v21 = vadd.f32 %v4713_v46, %v11489_v42  ;;  %v8757_v25 = vpop.f32.mrb[53].mxu1  ;;  %v8849_v56 = vpop.f32.mrb[89].mxu0 }
 0x447   : > { %v4716_v19 = vpop.f32.mrb[54].mxu1  ;;  %v5244_v32 = vpop.f32.mrb[90].mxu0 }
 0x448   : > { %v4737_v53 = vadd.f32 %v4716_v19, %v11493_v7  ;;  %v8758_v26 = vpop.f32.mrb[55].mxu1  ;;  %v8850_v57 = vpop.f32.mrb[91].mxu0  ;;  %v11588_v45 = vadd.f32 %v4908_v44, %v4736_v21 }
 0x44a   : > { %8996 = vmatmul.mubr.msk.bf16.gmra.mrb[160].mxu1 %vm1222_vm0, %v5739_v20  ;;  %v11594_v48 = vadd.f32 %v4911_v35, %v4737_v53 }
 0x44b   : > { %9019 = vmatprep.mubr.msk.bf16.mxu1 %vm9537_vm1, %v9536_v50 }
 0x44d   : > { %v5039_v42 = vpop.f32.mrb[56].mxu1  ;;  %v5249_v7 = vpop.f32.mrb[92].mxu0 }
 0x44e   : > { %v5110_v60 = vadd.f32 %v5039_v42, %v11499_v41  ;;  %v8805_v39 = vpop.f32.mrb[57].mxu1  ;;  %v8853_v43 = vpop.f32.mrb[93].mxu0 }
 0x44f   : > { %v5042_v49 = vpop.f32.mrb[58].mxu1  ;;  %v5252_v23 = vpop.f32.mrb[94].mxu0 }
 0x450   : > { %v5111_v33 = vadd.f32 %v5042_v49, %v11502_v27  ;;  %v8806_v37 = vpop.f32.mrb[59].mxu1  ;;  %v8854_v44 = vpop.f32.mrb[95].mxu0  ;;  %v11604_v29 = vadd.f32 %v5233_v0, %v5110_v60  ;;  %v9400_v0 = vld [vmem:[%s12010_s5 + $0x10] sm:$0xff]  }
 0x451   : > { %9016 = vmatpush3.bf16.msra.mxu1 %v9400_v0 }
 0x452   : > { %v11607_v47 = vadd.f32 %v5236_v58, %v5111_v33  ;;  %9017 = vmatprep.subr.bf16.mxu1 %v9536_v50 }
 0x455   : > { %v5047_v41 = vpop.f32.mrb[60].mxu1  ;;  %v5257_v59 = vpop.f32.mrb[96].mxu0  ;;  %9018 = vmatpush3.bf16.msra.mxu1 %v9402_v10 }
 0x456   : > { %v5112_v36 = vadd.f32 %v5047_v41, %v11508_v17  ;;  %v8809_v35 = vpop.f32.mrb[61].mxu1  ;;  %v8857_v4 = vpop.f32.mrb[97].mxu0  ;;  %9035 = vmatprep.subr.bf16.mxu1 %v9536_v50 }
 0x457   : > { %v5050_v34 = vpop.f32.mrb[62].mxu1  ;;  %v5260_v62 = vpop.f32.mrb[98].mxu0 }
 0x458   : > { %v5113_v63 = vadd.f32 %v5050_v34, %v11512_v24  ;;  %v8810_v27 = vpop.f32.mrb[63].mxu1  ;;  %v8858_v51 = vpop.f32.mrb[99].mxu0  ;;  %v11611_v55 = vadd.f32 %v5241_v31, %v5112_v36 }
 0x45a   : > { %v11616_v61 = vadd.f32 %v5244_v32, %v5113_v63 }
 0x45d   : > { %v5055_v17 = vpop.f32.mrb[64].mxu1  ;;  %v5265_v18 = vpop.f32.mrb[100].mxu0 }
 0x45e   : > { %v5114_v11 = vadd.f32 %v5055_v17, %v11518_v5  ;;  %v8813_v13 = vpop.f32.mrb[65].mxu1  ;;  %v8861_v58 = vpop.f32.mrb[101].mxu0 }
 0x45f   : > { %v5058_v24 = vpop.f32.mrb[66].mxu1  ;;  %v5268_v14 = vpop.f32.mrb[102].mxu0 }
 0x460   : > { %v5115_v9 = vadd.f32 %v5058_v24, %v11521_v8  ;;  %v8814_v2 = vpop.f32.mrb[67].mxu1  ;;  %v8862_v46 = vpop.f32.mrb[103].mxu0  ;;  %v11621_v31 = vadd.f32 %v5249_v7, %v5114_v11  ;;  %v9401_v8 = vld [vmem:[%s12010_s5 + $0x38] sm:$0xff]  }
 0x461   : > { %9006 = vmatpush3.bf16.msra.mxu0 %v9401_v8 }
 0x462   : > { %v11623_v38 = vadd.f32 %v5252_v23, %v5115_v9  ;;  %9023 = vmatprep.subr.bf16.mxu0 %v9536_v50 }
 0x465   : > { %v5063_v21 = vpop.f32.mrb[68].mxu1  ;;  %v5273_v25 = vpop.f32.mrb[104].mxu0 }
 0x466   : > { %v5116_v5 = vadd.f32 %v5063_v21, %v11527_v22  ;;  %v8817_v56 = vpop.f32.mrb[69].mxu1  ;;  %v8865_v19 = vpop.f32.mrb[105].mxu0 }
 0x467   : > { %v5066_v32 = vpop.f32.mrb[70].mxu1  ;;  %v5276_v53 = vpop.f32.mrb[106].mxu0 }
 0x468   : > { %v5117_v26 = vadd.f32 %v5066_v32, %v11531_v28  ;;  %v8818_v57 = vpop.f32.mrb[71].mxu1  ;;  %v8866_v20 = vpop.f32.mrb[107].mxu0  ;;  %v11634_v3 = vadd.f32 %v5257_v59, %v5116_v5 }
 0x46a   : > { %v11637_v22 = vadd.f32 %v5260_v62, %v5117_v26 }
 0x46d   : > { %v5071_v42 = vpop.f32.mrb[72].mxu1  ;;  %v5281_v7 = vpop.f32.mrb[108].mxu0 }
 0x46e   : > { %v5118_v60 = vadd.f32 %v5071_v42, %v11537_v54  ;;  %v8821_v39 = vpop.f32.mrb[73].mxu1  ;;  %v8869_v43 = vpop.f32.mrb[109].mxu0 }
 0x46f   : > { %v5074_v52 = vpop.f32.mrb[74].mxu1  ;;  %v5284_v49 = vpop.f32.mrb[110].mxu0 }
 0x470   : > { %v5119_v23 = vadd.f32 %v5074_v52, %v11544_v6  ;;  %v8822_v28 = vpop.f32.mrb[75].mxu1  ;;  %v8870_v33 = vpop.f32.mrb[111].mxu0  ;;  %v11641_v37 = vadd.f32 %v5265_v18, %v5118_v60 }
 0x472   : > { %v11643_v44 = vadd.f32 %v5268_v14, %v5119_v23 }
 0x475   : > { %v5079_v41 = vpop.f32.mrb[76].mxu1  ;;  %v5289_v59 = vpop.f32.mrb[112].mxu0 }
 0x476   : > { %v5120_v36 = vadd.f32 %v5079_v41, %v11551_v16  ;;  %v8825_v35 = vpop.f32.mrb[77].mxu1  ;;  %v8873_v4 = vpop.f32.mrb[113].mxu0 }
 0x477   : > { %v5082_v34 = vpop.f32.mrb[78].mxu1  ;;  %v5292_v54 = vpop.f32.mrb[114].mxu0 }
 0x478   : > { %v5121_v62 = vadd.f32 %v5082_v34, %v11554_v30  ;;  %v8826_v63 = vpop.f32.mrb[79].mxu1  ;;  %v8874_v27 = vpop.f32.mrb[115].mxu0  ;;  %v11647_v51 = vadd.f32 %v5273_v25, %v5120_v36 }
 0x47a   : > { %v11649_v6 = vadd.f32 %v5276_v53, %v5121_v62 }
 0x47d   : > { %v5087_v0 = vpop.f32.mrb[80].mxu1  ;;  %v5297_v17 = vpop.f32.mrb[116].mxu0 }
 0x47e   : > { %v5122_v18 = vadd.f32 %v5087_v0, %v11560_v12  ;;  %v8829_v11 = vpop.f32.mrb[81].mxu1  ;;  %v8877_v13 = vpop.f32.mrb[117].mxu0 }
 0x47f   : > { %v5090_v58 = vpop.f32.mrb[82].mxu1  ;;  %v5300_v16 = vpop.f32.mrb[118].mxu0 }
 0x480   : > { %v5123_v24 = vadd.f32 %v5090_v58, %v11570_v40  ;;  %v8830_v14 = vpop.f32.mrb[83].mxu1  ;;  %v8878_v9 = vpop.f32.mrb[119].mxu0  ;;  %v11653_v2 = vadd.f32 %v5281_v7, %v5122_v18 }
 0x482   : > { %v11655_v30 = vadd.f32 %v5284_v49, %v5123_v24 }
 0x485   : > { %v5095_v46 = vpop.f32.mrb[84].mxu1  ;;  %v5623_v10 = vpop.f32.mrb[120].mxu0 }
 0x486   : > { %v5124_v21 = vadd.f32 %v5095_v46, %v11578_v15  ;;  %v8833_v25 = vpop.f32.mrb[85].mxu1  ;;  %v8925_v5 = vpop.f32.mrb[121].mxu0 }
 0x487   : > { %v5098_v56 = vpop.f32.mrb[86].mxu1  ;;  %v5626_v12 = vpop.f32.mrb[122].mxu0 }
 0x488   : > { %v5125_v19 = vadd.f32 %v5098_v56, %v11582_v1  ;;  %v8834_v8 = vpop.f32.mrb[87].mxu1  ;;  %v8926_v32 = vpop.f32.mrb[123].mxu0  ;;  %v11659_v53 = vadd.f32 %v5289_v59, %v5124_v21 }
 0x48a   : > { %v11661_v40 = vadd.f32 %v5292_v54, %v5125_v19 }
 0x48d   : > { %v5103_v26 = vpop.f32.mrb[88].mxu1  ;;  %v5631_v57 = vpop.f32.mrb[124].mxu0 }
 0x48e   : > { %v5126_v20 = vadd.f32 %v5103_v26, %v11588_v45  ;;  %v8837_v42 = vpop.f32.mrb[89].mxu1  ;;  %v8929_v7 = vpop.f32.mrb[125].mxu0 }
 0x48f   : > { %v5106_v60 = vpop.f32.mrb[90].mxu1  ;;  %v5634_v15 = vpop.f32.mrb[126].mxu0 }
 0x490   : > { %v5127_v39 = vadd.f32 %v5106_v60, %v11594_v48  ;;  %v8838_v43 = vpop.f32.mrb[91].mxu1  ;;  %v8930_v52 = vpop.f32.mrb[127].mxu0  ;;  %v11665_v49 = vadd.f32 %v5297_v17, %v5126_v20 }
 0x492   : > { %v11667_v1 = vadd.f32 %v5300_v16, %v5127_v39 }
 0x495   : > { %v5428_v23 = vpop.f32.mrb[92].mxu1  ;;  %v5639_v28 = vpop.f32.mrb[128].mxu0 }
 0x496   : > { %v5499_v33 = vadd.f32 %v5428_v23, %v11604_v29  ;;  %v8885_v41 = vpop.f32.mrb[93].mxu1  ;;  %v8933_v59 = vpop.f32.mrb[129].mxu0 }
 0x497   : > { %v5431_v36 = vpop.f32.mrb[94].mxu1  ;;  %v5642_v45 = vpop.f32.mrb[130].mxu0 }
 0x498   : > { %v5500_v35 = vadd.f32 %v5431_v36, %v11607_v47  ;;  %v8886_v4 = vpop.f32.mrb[95].mxu1  ;;  %v8934_v34 = vpop.f32.mrb[131].mxu0  ;;  %v11671_v54 = vadd.f32 %v5623_v10, %v5499_v33 }
 0x49a   : > { %v11673_v48 = vadd.f32 %v5626_v12, %v5500_v35 }
 0x49d   : > { %v5436_v62 = vpop.f32.mrb[96].mxu1  ;;  %v5647_v63 = vpop.f32.mrb[132].mxu0 }
 0x49e   : > { %v5501_v27 = vadd.f32 %v5436_v62, %v11611_v55  ;;  %v8889_v0 = vpop.f32.mrb[97].mxu1  ;;  %v8937_v17 = vpop.f32.mrb[133].mxu0 }
 0x49f   : > { %v5439_v18 = vpop.f32.mrb[98].mxu1  ;;  %v5650_v29 = vpop.f32.mrb[134].mxu0 }
 0x4a0   : > { %v5502_v11 = vadd.f32 %v5439_v18, %v11616_v61  ;;  %v8890_v13 = vpop.f32.mrb[99].mxu1  ;;  %v8938_v58 = vpop.f32.mrb[135].mxu0  ;;  %v11677_v16 = vadd.f32 %v5631_v57, %v5501_v27 }
 0x4a2   : > { %v11679_v47 = vadd.f32 %v5634_v15, %v5502_v11 }
 0x4a5   : > { %v5444_v24 = vpop.f32.mrb[100].mxu1  ;;  %v5655_v14 = vpop.f32.mrb[136].mxu0 }
 0x4a6   : > { %v5503_v9 = vadd.f32 %v5444_v24, %v11621_v31  ;;  %v8893_v46 = vpop.f32.mrb[101].mxu1  ;;  %v8941_v10 = vpop.f32.mrb[137].mxu0 }
 0x4a7   : > { %v5447_v21 = vpop.f32.mrb[102].mxu1  ;;  %v5658_v55 = vpop.f32.mrb[138].mxu0 }
 0x4a8   : > { %v5504_v25 = vadd.f32 %v5447_v21, %v11623_v38  ;;  %v8894_v5 = vpop.f32.mrb[103].mxu1  ;;  %v8942_v56 = vpop.f32.mrb[139].mxu0  ;;  %v11683_v12 = vadd.f32 %v5639_v28, %v5503_v9 }
 0x4aa   : > { %v11685_v61 = vadd.f32 %v5642_v45, %v5504_v25 }
 0x4ad   : > { %v5452_v19 = vpop.f32.mrb[104].mxu1  ;;  %v5663_v8 = vpop.f32.mrb[140].mxu0 }
 0x4ae   : > { %v5505_v32 = vadd.f32 %v5452_v19, %v11634_v3  ;;  %v8897_v26 = vpop.f32.mrb[105].mxu1  ;;  %v8945_v57 = vpop.f32.mrb[141].mxu0 }
 0x4af   : > { %v5455_v20 = vpop.f32.mrb[106].mxu1  ;;  %v5666_v31 = vpop.f32.mrb[142].mxu0 }
 0x4b0   : > { %v5506_v42 = vadd.f32 %v5455_v20, %v11637_v22  ;;  %v8898_v7 = vpop.f32.mrb[107].mxu1  ;;  %v8946_v60 = vpop.f32.mrb[143].mxu0  ;;  %v11689_v15 = vadd.f32 %v5647_v63, %v5505_v32 }
 0x4b2   : > { %v11691_v38 = vadd.f32 %v5650_v29, %v5506_v42 }
 0x4b5   : > { %v5460_v39 = vpop.f32.mrb[108].mxu1  ;;  %v5671_v43 = vpop.f32.mrb[144].mxu0 }
 0x4b6   : > { %v5507_v52 = vadd.f32 %v5460_v39, %v11641_v37  ;;  %v8901_v23 = vpop.f32.mrb[109].mxu1  ;;  %v8949_v28 = vpop.f32.mrb[145].mxu0 }
 0x4b7   : > { %v5463_v33 = vpop.f32.mrb[110].mxu1  ;;  %v5674_v3 = vpop.f32.mrb[146].mxu0 }
 0x4b8   : > { %v5508_v41 = vadd.f32 %v5463_v33, %v11643_v44  ;;  %v8902_v59 = vpop.f32.mrb[111].mxu1  ;;  %v8950_v36 = vpop.f32.mrb[147].mxu0  ;;  %v11695_v45 = vadd.f32 %v5655_v14, %v5507_v52 }
 0x4b9   : > { %v9404_v36 = vld [vmem:[%s12010_s5 + $0x60] sm:$0xff]  }
 0x4ba   : > { %v11697_v22 = vadd.f32 %v5658_v55, %v5508_v41 }
 0x4bd   : > { %v5468_v35 = vpop.f32.mrb[112].mxu1  ;;  %v5679_v4 = vpop.f32.mrb[148].mxu0 }
 0x4be   : > { %v5509_v34 = vadd.f32 %v5468_v35, %v11647_v51  ;;  %v8905_v62 = vpop.f32.mrb[113].mxu1  ;;  %v8953_v63 = vpop.f32.mrb[149].mxu0 }
 0x4bf   : > { %v5471_v27 = vpop.f32.mrb[114].mxu1  ;;  %v5682_v37 = vpop.f32.mrb[150].mxu0 }
 0x4c0   : > { %v5510_v0 = vadd.f32 %v5471_v27, %v11649_v6  ;;  %v8906_v17 = vpop.f32.mrb[115].mxu1  ;;  %v8954_v18 = vpop.f32.mrb[151].mxu0  ;;  %v11701_v29 = vadd.f32 %v5663_v8, %v5509_v34  ;;  %v9406_v27 = vld [vmem:[%s12010_s5 + $0x68] sm:$0xff]  }
 0x4c1   : > { %v9408_v18 = vld [vmem:[%s12010_s5 + $0x70] sm:$0xff]  }
 0x4c2   : > { %v11703_v44 = vadd.f32 %v5666_v31, %v5510_v0 }
 0x4c5   : > { %v5476_v11 = vpop.f32.mrb[116].mxu1  ;;  %v5687_v13 = vpop.f32.mrb[152].mxu0 }
 0x4c6   : > { %v5511_v58 = vadd.f32 %v5476_v11, %v11653_v2  ;;  %v8909_v24 = vpop.f32.mrb[117].mxu1  ;;  %v8957_v14 = vpop.f32.mrb[153].mxu0 }
 0x4c7   : > { %v5479_v9 = vpop.f32.mrb[118].mxu1  ;;  %v5690_v51 = vpop.f32.mrb[154].mxu0 }
 0x4c8   : > { %v5512_v46 = vadd.f32 %v5479_v9, %v11655_v30  ;;  %v8910_v10 = vpop.f32.mrb[119].mxu1  ;;  %v8958_v21 = vpop.f32.mrb[155].mxu0  ;;  %v11707_v55 = vadd.f32 %v5671_v43, %v5511_v58 }
 0x4ca   : > { %v11709_v6 = vadd.f32 %v5674_v3, %v5512_v46  ;;  %v9405_v46 = vld [vmem:[%s12010_s5 + $0x48] sm:$0xff]  }
 0x4cd   : > { %v5484_v25 = vpop.f32.mrb[120].mxu1 }
 0x4ce   : > { %v5513_v5 = vadd.f32 %v5484_v25, %v11659_v53  ;;  %v8913_v56 = vpop.f32.mrb[121].mxu1 }
 0x4cf   : > { %v5487_v19 = vpop.f32.mrb[122].mxu1 }
 0x4d0   : > { %v5514_v8 = vadd.f32 %v5487_v19, %v11661_v40  ;;  %v8914_v2 = vpop.f32.mrb[123].mxu1  ;;  %v11713_v32 = vadd.f32 %v5679_v4, %v5513_v5  ;;  %v11726_v40 = vld [vmem:[%s12009_s4] ss:$0 sm:$0xff]  ;;  %v9407_v5 = vld [vmem:[%s12010_s5 + $0x50] sm:$0xff]  }
 0x4d2   : > { %v11715_v26 = vadd.f32 %v5682_v37, %v5514_v8 }
 0x4d5   : > { %v5492_v57 = vpop.f32.mrb[124].mxu1 }
 0x4d6   : > { %v5515_v30 = vadd.f32 %v5492_v57, %v11665_v49  ;;  %v8917_v20 = vpop.f32.mrb[125].mxu1 }
 0x4d7   : > { %v5495_v31 = vpop.f32.mrb[126].mxu1 }
 0x4d8   : > { %v5516_v42 = vadd.f32 %v5495_v31, %v11667_v1  ;;  %v8918_v7 = vpop.f32.mrb[127].mxu1  ;;  %v11719_v60 = vadd.f32 %v5687_v13, %v5515_v30  ;;  %v9409_v31 = vld [vmem:[%s12010_s5 + $0x58] sm:$0xff]  }
 0x4da   : > { %v11721_v53 = vadd.f32 %v5690_v51, %v5516_v42 }
 0x4dd   : > { %v5818_v39 = vpop.f32.mrb[128].mxu1 }
 0x4de   : > { %v5889_v43 = vadd.f32 %v5818_v39, %v11671_v54  ;;  %v8965_v52 = vpop.f32.mrb[129].mxu1 }
 0x4df   : > { %v5821_v23 = vpop.f32.mrb[130].mxu1 }
 0x4e0   : > { %v5914_v49 = vadd.f32 %v11726_v40, %v5889_v43  ;;  %v5890_v28 = vadd.f32 %v5821_v23, %v11673_v48  ;;  %v8966_v1 = vpop.f32.mrb[131].mxu1  ;;  %v9411_v43 = vld [vmem:[%s12010_s5 + $0x80] sm:$0xff]  }
 0x4e2   : > { %v5915_v33 = vadd.f32 %v11726_v40, %v5890_v28  ;;  %v5932_v3 = vmax.f32 %v5914_v49, 0.0 }
 0x4e4   : > { %v5933_v41 = vmax.f32 %v5915_v33, 0.0 }
 0x4e5   : > { %v5826_v59 = vpop.f32.mrb[132].mxu1 }
 0x4e6   : > { %v5950_v35 = vpack.c.bf16 %v5933_v41, %v5932_v3  ;;  %v5891_v54 = vadd.f32 %v5826_v59, %v11677_v16  ;;  %v8969_v4 = vpop.f32.mrb[133].mxu1  ;;  %v9413_v41 = vld [vmem:[%s12010_s5 + $0x88] sm:$0xff]  }
 0x4e7   : > { %v5829_v34 = vpop.f32.mrb[134].mxu1  ;;  %v9416_v4 = vld [vmem:[%s12010_s5 + $0xb0] sm:$0xff]  }
 0x4e8   : > { %v5916_v62 = vadd.f32 %v11726_v40, %v5891_v54  ;;  %v5892_v48 = vadd.f32 %v5829_v34, %v11679_v47  ;;  %v8970_v63 = vpop.f32.mrb[135].mxu1  ;;  %9020 = vmatmul.mubr.msk.bf16.vlgmr.msra.gmra.mrb[164].mxu1 %vm5993_vm2, %v5950_v35  ;;  %v9403_v47 = vld [vmem:[%s12010_s5 + $0x40] sm:$0xff]   ;;  %v9415_v54 = vld [vmem:[%s12010_s5 + $0x90] sm:$0xff]  }
 0x4e9   : > { %9036 = vmatpush3.bf16.msra.mxu1 %v9404_v36  ;;  %9043 = vmatprep.mubr.msk.bf16.mxu1 %vm9537_vm1, %v9536_v50 }
 0x4ea   : > { %v5917_v37 = vadd.f32 %v11726_v40, %v5892_v48  ;;  %9037 = vmatprep.subr.bf16.mxu1 %v9536_v50  ;;  %v5934_v16 = vmax.f32 %v5916_v62, 0.0 }
 0x4ec   : > { %v5935_v0 = vmax.f32 %v5917_v37, 0.0 }
 0x4ed   : > { %v5834_v17 = vpop.f32.mrb[136].mxu1  ;;  %9038 = vmatpush3.bf16.msra.mxu1 %v9406_v27 }
 0x4ee   : > { %v5959_v11 = vpack.c.bf16 %v5935_v0, %v5934_v16  ;;  %v5893_v13 = vadd.f32 %v5834_v17, %v11683_v12  ;;  %v8973_v58 = vpop.f32.mrb[137].mxu1  ;;  %9039 = vmatprep.subr.bf16.mxu1 %v9536_v50  ;;  %v9410_v12 = vld [vmem:[%s12010_s5 + $0x78] sm:$0xff]  }
 0x4ef   : > { %v5837_v24 = vpop.f32.mrb[138].mxu1  ;;  %v9417_v0 = vld [vmem:[%s12010_s5 + $0x98] sm:$0xff]  }
 0x4f0   : > { %v5918_v14 = vadd.f32 %v11726_v40, %v5893_v13  ;;  %v5894_v9 = vadd.f32 %v5837_v24, %v11685_v61  ;;  %v8974_v51 = vpop.f32.mrb[139].mxu1  ;;  %9008 = vmatmul.mubr.msk.bf16.vlgmr.msra.gmra.mrb[156].mxu0 %vm5993_vm2, %v5959_v11  ;;  %v9419_v11 = vld [vmem:[%s12010_s5 + $0xc0] sm:$0xff]  }
 0x4f1   : > { %9024 = vmatpush3.bf16.msra.mxu0 %v9403_v47  ;;  %9040 = vmatpush3.bf16.msra.mxu1 %v9408_v18  ;;  %v9420_v13 = vld [vmem:[%s12010_s5 + $0xe0] sm:$0xff]  }
 0x4f2   : > { %v5919_v10 = vadd.f32 %v11726_v40, %v5894_v9  ;;  %9025 = vmatprep.subr.bf16.mxu0 %v9536_v50  ;;  %9041 = vmatprep.subr.bf16.mxu1 %v9536_v50  ;;  %v5936_v61 = vmax.f32 %v5918_v14, 0.0 }
 0x4f3   : > { %9031 = vmatprep.mubr.msk.bf16.mxu0 %vm9537_vm1, %v9536_v50 }
 0x4f4   : > { %v5937_v21 = vmax.f32 %v5919_v10, 0.0  ;;  %v9422_v10 = vld [vmem:[%s12010_s5 + $0xe8] sm:$0xff]  }
 0x4f5   : > { %9026 = vmatpush3.bf16.msra.mxu0 %v9405_v46  ;;  %v5842_v25 = vpop.f32.mrb[140].mxu1  ;;  %9042 = vmatpush3.bf16.msra.mxu1 %v9410_v12 }
 0x4f6   : > { %v6106_v56 = vpack.c.bf16 %v5937_v21, %v5936_v61  ;;  %v5895_v19 = vadd.f32 %v5842_v25, %v11689_v15  ;;  %v8977_v8 = vpop.f32.mrb[141].mxu1  ;;  %9027 = vmatprep.subr.bf16.mxu0 %v9536_v50  ;;  %9059 = vmatprep.subr.bf16.mxu1 %v9536_v50 }
 0x4f7   : > { %v5845_v2 = vpop.f32.mrb[142].mxu1 }
 0x4f8   : > { %v5920_v57 = vadd.f32 %v11726_v40, %v5895_v19  ;;  %v5896_v30 = vadd.f32 %v5845_v2, %v11691_v38  ;;  %v8978_v20 = vpop.f32.mrb[143].mxu1  ;;  %v9412_v38 = vld [vmem:[%s12010_s5 + $0xa0] sm:$0xff]  }
 0x4f9   : > { %9028 = vmatpush3.bf16.msra.mxu0 %v9407_v5  ;;  %v9423_v5 = vld [vmem:[%s12010_s5 + $0xd0] sm:$0xff]  }
 0x4fa   : > { %v5921_v42 = vadd.f32 %v11726_v40, %v5896_v30  ;;  %9029 = vmatprep.subr.bf16.mxu0 %v9536_v50  ;;  %v5938_v15 = vmax.f32 %v5920_v57, 0.0 }
 0x4fc   : > { %v5939_v7 = vmax.f32 %v5921_v42, 0.0  ;;  %v9425_v42 = vld [vmem:[%s12010_s5 + $0xd8] sm:$0xff]  }
 0x4fd   : > { %9030 = vmatpush3.bf16.msra.mxu0 %v9409_v31  ;;  %v5850_v39 = vpop.f32.mrb[144].mxu1 }
 0x4fe   : > { %v6186_v52 = vpack.c.bf16 %v5939_v7, %v5938_v15  ;;  %v5897_v23 = vadd.f32 %v5850_v39, %v11695_v45  ;;  %v8981_v49 = vpop.f32.mrb[145].mxu1  ;;  %9047 = vmatprep.subr.bf16.mxu0 %v9536_v50  ;;  %v9414_v45 = vld [vmem:[%s12010_s5 + $0xa8] sm:$0xff]  }
 0x4ff   : > { %v5853_v28 = vpop.f32.mrb[146].mxu1 }
 0x500   : > { %v5922_v1 = vadd.f32 %v11726_v40, %v5897_v23  ;;  %v5898_v33 = vadd.f32 %v5853_v28, %v11697_v22  ;;  %9032 = vmatmul.mubr.msk.bf16.vlgmr.msra.gmra.mrb[160].mxu0 %vm5993_vm2, %v6106_v56  ;;  %v8982_v3 = vpop.f32.mrb[147].mxu1  ;;  %9044 = vmatmul.mubr.msk.bf16.vlgmr.msra.gmra.mrb[168].mxu1 %vm5993_vm2, %v6186_v52  ;;  %v9424_v56 = vld [vmem:[%s12010_s5 + $0xf0] sm:$0xff]  }
 0x501   : > { %9048 = vmatpush3.bf16.msra.mxu0 %v9411_v43  ;;  %9060 = vmatpush3.bf16.msra.mxu1 %v9412_v38  ;;  %v9427_v43 = vld [vmem:[%s12010_s5 + $0x100] sm:$0xff]   ;;  %v9428_v3 = vld [vmem:[%s12010_s5 + $0x108] sm:$0xff]  }
 0x502   : > { %v5923_v59 = vadd.f32 %v11726_v40, %v5898_v33  ;;  %9049 = vmatprep.subr.bf16.mxu0 %v9536_v50  ;;  %9061 = vmatprep.subr.bf16.mxu1 %v9536_v50  ;;  %v5940_v22 = vmax.f32 %v5922_v1, 0.0 }
 0x503   : > { %9055 = vmatprep.mubr.msk.bf16.mxu0 %vm9537_vm1, %v9536_v50  ;;  %9067 = vmatprep.mubr.msk.bf16.mxu1 %vm9537_vm1, %v9536_v50 }
 0x504   : > { %v5941_v36 = vmax.f32 %v5923_v59, 0.0 }
 0x505   : > { %9050 = vmatpush3.bf16.msra.mxu0 %v9413_v41  ;;  %v5858_v35 = vpop.f32.mrb[148].mxu1  ;;  %9062 = vmatpush3.bf16.msra.mxu1 %v9414_v45 }
 0x506   : > { %v6266_v34 = vpack.c.bf16 %v5941_v36, %v5940_v22  ;;  %v5899_v62 = vadd.f32 %v5858_v35, %v11701_v29  ;;  %v8985_v48 = vpop.f32.mrb[149].mxu1  ;;  %9051 = vmatprep.subr.bf16.mxu0 %v9536_v50  ;;  %9063 = vmatprep.subr.bf16.mxu1 %v9536_v50  ;;  %v9418_v29 = vld [vmem:[%s12010_s5 + $0xb8] sm:$0xff]   ;;  %v9433_v36 = vld [vmem:[%s12012_s7 + $0x4] ss:$16 sps:$4 sm:$0xff]  }
 0x507   : > { %v5861_v63 = vpop.f32.mrb[150].mxu1  ;;  %v9430_v22 = vld [vmem:[%s12010_s5 + $0x118] sm:$0xff]   ;;  %v9445_v48 = vld [vmem:[%s12012_s7 + $0x44] ss:$16 sps:$4 sm:$0xff]  }
 0x508   : > { %v5924_v27 = vadd.f32 %v11726_v40, %v5899_v62  ;;  %v5900_v37 = vadd.f32 %v5861_v63, %v11703_v44  ;;  %v8986_v16 = vpop.f32.mrb[151].mxu1  ;;  %v9434_v35 = vld [vmem:[%s12012_s7 + $0x8] ss:$16 sps:$4 sm:$0xff]   ;;  %v9448_v63 = vld [vmem:[%s12012_s7 + $0x4c] ss:$16 sps:$4 sm:$0xff]  }
 0x509   : > { %9052 = vmatpush3.bf16.msra.mxu0 %v9415_v54  ;;  %9064 = vmatpush3.bf16.msra.mxu1 %v9416_v4  ;;  %v9436_v54 = vld [vmem:[%s12012_s7 + $0xc] ss:$16 sps:$4 sm:$0xff]   ;;  %v9440_v62 = vld [vmem:[%s12012_s7 + $0x28] ss:$16 sps:$4 sm:$0xff]   ;;  %v9451_v16 = vld [vmem:[%s12012_s7 + $0x64] ss:$16 sps:$4 sm:$0xff]  }
 0x50a   : > { %v5925_v17 = vadd.f32 %v11726_v40, %v5900_v37  ;;  %9053 = vmatprep.subr.bf16.mxu0 %v9536_v50  ;;  %9065 = vmatprep.subr.bf16.mxu1 %v9536_v50  ;;  %v5942_v47 = vmax.f32 %v5924_v27, 0.0  ;;  %v9442_v4 = vld [vmem:[%s12012_s7 + $0x2c] ss:$16 sps:$4 sm:$0xff]   ;;  %v9443_v27 = vld [vmem:[%s12012_s7 + $0x40] ss:$16 sps:$4 sm:$0xff]  }
 0x50b   : > { %v9446_v37 = vld [vmem:[%s12012_s7 + $0x48] ss:$16 sps:$4 sm:$0xff]  }
 0x50c   : > { %v5943_v18 = vmax.f32 %v5925_v17, 0.0  ;;  %v9452_v17 = vld [vmem:[%s12012_s7 + $0x68] ss:$16 sps:$4 sm:$0xff]  }
 0x50d   : > { %9054 = vmatpush3.bf16.msra.mxu0 %v9417_v0  ;;  %v5866_v44 = vpop.f32.mrb[152].mxu1  ;;  %9066 = vmatpush3.bf16.msra.mxu1 %v9418_v29  ;;  %v9454_v0 = vld [vmem:[%s12012_s7 + $0x6c] ss:$16 sps:$4 sm:$0xff]   ;;  %v9449_v29 = vld [vmem:[%s12012_s7 + $0x60] ss:$16 sps:$4 sm:$0xff]  }
 0x50e   : > { %v6346_v58 = vpack.c.bf16 %v5943_v18, %v5942_v47  ;;  %v5901_v24 = vadd.f32 %v5866_v44, %v11707_v55  ;;  %v8989_v14 = vpop.f32.mrb[153].mxu1  ;;  %9071 = vmatprep.subr.bf16.mxu0 %v9536_v50  ;;  %9083 = vmatprep.subr.bf16.mxu1 %v9536_v50  ;;  %v9421_v55 = vld [vmem:[%s12010_s5 + $0xc8] sm:$0xff]   ;;  %v9538_v47 = vmov 0  }
 0x50f   : > { %v5869_v9 = vpop.f32.mrb[154].mxu1 }
 0x510   : > { %v5926_v51 = vadd.f32 %v11726_v40, %v5901_v24  ;;  %v5902_v46 = vadd.f32 %v5869_v9, %v11709_v6  ;;  %9056 = vmatmul.mubr.msk.bf16.vlgmr.msra.gmra.mrb[164].mxu0 %vm5993_vm2, %v6266_v34  ;;  %v8990_v12 = vpop.f32.mrb[155].mxu1  ;;  %9068 = vmatmul.mubr.msk.bf16.vlgmr.msra.gmra.mrb[172].mxu1 %vm5993_vm2, %v6346_v58  ;;  %v9437_v34 = vld [vmem:[%s12012_s7 + $0x20] ss:$16 sps:$4 sm:$0xff]  }
 0x511   : > { %9072 = vmatpush3.bf16.msra.mxu0 %v9419_v11  ;;  %9084 = vmatpush3.bf16.msra.mxu1 %v9420_v13 }
 0x512   : > { %v5927_v61 = vadd.f32 %v11726_v40, %v5902_v46  ;;  %9073 = vmatprep.subr.bf16.mxu0 %v9536_v50  ;;  %9085 = vmatprep.subr.bf16.mxu1 %v9536_v50  ;;  %v5944_v6 = vmax.f32 %v5926_v51, 0.0 }
 0x513   : > { %9079 = vmatprep.mubr.msk.bf16.mxu0 %vm9537_vm1, %v9536_v50  ;;  %9091 = vmatprep.mubr.msk.bf16.mxu1 %vm9537_vm1, %v9536_v50 }
 0x514   : > { %v5945_v21 = vmax.f32 %v5927_v61, 0.0 }
 0x515   : > { %9074 = vmatpush3.bf16.msra.mxu0 %v9421_v55  ;;  %v5874_v25 = vpop.f32.mrb[156].mxu1  ;;  %9086 = vmatpush3.bf16.msra.mxu1 %v9422_v10 }
 0x516   : > { %v6426_v19 = vpack.c.bf16 %v5945_v21, %v5944_v6  ;;  %v5903_v8 = vadd.f32 %v5874_v25, %v11713_v32  ;;  %v8993_v2 = vpop.f32.mrb[157].mxu1  ;;  %9075 = vmatprep.subr.bf16.mxu0 %v9536_v50  ;;  %9087 = vmatprep.subr.bf16.mxu1 %v9536_v50  ;;  %v9426_v32 = vld [vmem:[%s12010_s5 + $0xf8] sm:$0xff]  }
 0x517   : > { %v5877_v57 = vpop.f32.mrb[158].mxu1 }
 0x518   : > { %v5928_v30 = vadd.f32 %v11726_v40, %v5903_v8  ;;  %v5904_v20 = vadd.f32 %v5877_v57, %v11715_v26  ;;  %v8994_v31 = vpop.f32.mrb[159].mxu1 }
 0x519   : > { %9076 = vmatpush3.bf16.msra.mxu0 %v9423_v5  ;;  %9088 = vmatpush3.bf16.msra.mxu1 %v9424_v56 }
 0x51a   : > { %v5929_v15 = vadd.f32 %v11726_v40, %v5904_v20  ;;  %9077 = vmatprep.subr.bf16.mxu0 %v9536_v50  ;;  %9089 = vmatprep.subr.bf16.mxu1 %v9536_v50  ;;  %v5946_v7 = vmax.f32 %v5928_v30, 0.0 }
 0x51c   : > { %v5947_v39 = vmax.f32 %v5929_v15, 0.0 }
 0x51d   : > { %9078 = vmatpush3.bf16.msra.mxu0 %v9425_v42  ;;  %v5882_v26 = vpop.f32.mrb[160].mxu1  ;;  %9090 = vmatpush3.bf16.msra.mxu1 %v9426_v32 }
 0x51e   : > { %v6506_v38 = vpack.c.bf16 %v5947_v39, %v5946_v7  ;;  %v5905_v52 = vadd.f32 %v5882_v26, %v11719_v60  ;;  %v8997_v23 = vpop.f32.mrb[161].mxu1  ;;  %9095 = vmatprep.subr.bf16.mxu0 %v9536_v50  ;;  %6799 = vmatprep.subr.bf16.mxu1 %v9433_v36 }
 0x51f   : > { %v5885_v49 = vpop.f32.mrb[162].mxu1 }
 0x520   : > { %v5930_v28 = vadd.f32 %v11726_v40, %v5905_v52  ;;  %v5906_v1 = vadd.f32 %v5885_v49, %v11721_v53  ;;  %9080 = vmatmul.mubr.msk.bf16.vlgmr.msra.gmra.mrb[168].mxu0 %vm5993_vm2, %v6426_v19  ;;  %v8998_v33 = vpop.f32.mrb[163].mxu1  ;;  %9092 = vmatmul.mubr.msk.bf16.vlgmr.msra.gmra.mrb[176].mxu1 %vm5993_vm2, %v6506_v38  ;;  %v9429_v53 = vld [vmem:[%s12010_s5 + $0x110] sm:$0xff]  }
 0x521   : > { %9096 = vmatpush3.bf16.msra.mxu0 %v9427_v43  ;;  %9103 = vmatprep.mubr.msk.bf16.mxu0 %vm9537_vm1, %v9536_v50 }
 0x522   : > { %v5931_v60 = vadd.f32 %v11726_v40, %v5906_v1  ;;  %9097 = vmatprep.subr.bf16.mxu0 %v9536_v50  ;;  %v5948_v41 = vmax.f32 %v5930_v28, 0.0  ;;  %v9431_v40 = vld [vmem:[%s12012_s7] ss:$16 sps:$4 sm:$0xff]   ;;  %6831 = vmatprep.mubr.bf16.mxu1 %v9538_v47 }
 0x523   : > { %6800 = vmatpush1.bf16.msra.mxu1 %v9431_v40  ;;  %v7597_v40 = vld [vmem:[%s12011_s6] ss:$0 sm:$0xff] }
 0x524   : > { %v5949_v45 = vmax.f32 %v5931_v60, 0.0 }
 0x525   : > { %9098 = vmatpush3.bf16.msra.mxu0 %v9428_v3 }
 0x526   : > { %v6586_v59 = vpack.c.bf16 %v5949_v45, %v5948_v41  ;;  %9099 = vmatprep.subr.bf16.mxu0 %v9536_v50 }
 0x529   : > { %9100 = vmatpush3.bf16.msra.mxu0 %v9429_v53 }
 0x52a   : > { %9101 = vmatprep.subr.bf16.mxu0 %v9536_v50  ;;  %v9439_v50 = vld [vmem:[%s12012_s7 + $0x24] ss:$16 sps:$4 sm:$0xff]  }
 0x52b   : > { %6801 = vmatprep.subr.bf16.mxu1 %v9439_v50 }
 0x52c   : > { %6802 = vmatpush1.bf16.msra.mxu1 %v9437_v34 }
 0x52d   : > { %9102 = vmatpush3.bf16.msra.mxu0 %v9430_v22  ;;  %6803 = vmatprep.subr.bf16.mxu1 %v9445_v48 }
 0x52e   : > { %6842 = vmatprep.subr.bf16.mxu0 %v9436_v54 }
 0x530   : > { %9104 = vmatmul.mubr.msk.bf16.vlgmr.msra.gmra.mrb[172].mxu0 %vm5993_vm2, %v6586_v59  ;;  %6804 = vmatpush1.bf16.msra.mxu1 %v9443_v27 }
 0x531   : > { %6843 = vmatpush1.bf16.msra.mxu0 %v9434_v35  ;;  %6805 = vmatprep.subr.bf16.mxu1 %v9451_v16 }
 0x532   : > { %6844 = vmatprep.subr.bf16.mxu0 %v9442_v4  ;;  %6874 = vmatprep.mubr.bf16.mxu0 %v9538_v47 }
 0x534   : > { %6806 = vmatpush1.bf16.msra.mxu1 %v9449_v29 }
 0x535   : > { %6845 = vmatpush1.bf16.msra.mxu0 %v9440_v62 }
 0x536   : > { %6846 = vmatprep.subr.bf16.mxu0 %v9448_v63 }
 0x539   : > { %6847 = vmatpush1.bf16.msra.mxu0 %v9446_v37  ;;  %v6696_v37 = vlaneseq }
 0x53a   : > { %6848 = vmatprep.subr.bf16.mxu0 %v9454_v0 }
 0x53b   : > { %v6697_v16 = vshrl.u32 %v6696_v37, 7 }
 0x53d   : > { %6849 = vmatpush1.bf16.msra.mxu0 %v9452_v17  ;;  %v6698_v0 = vsub.s32 0, %v6697_v16  ;;  %v6706_v29 = vsub.s32 2, %v6697_v16  ;;  %v6694_v17 = vld [vmem:[%s12013_s8] sm:$0xf]  ;;  %v6702_v47 = vsub.s32 1, %v6697_v16 }
 0x5bb   : > { %v6099_v18 = vpop.f32.mrb[164].mxu1 }
 0x5bc   : > { %v9021_v44 = vpop.f32.mrb[165].mxu1 }
 0x5bd   : > { %v6102_v11 = vpop.f32.mrb[166].mxu1  ;;  %v6699_v44 = vrot.slane %v6694_v17, %v6698_v0 }
 0x5be   : > { %v9022_v13 = vpop.f32.mrb[167].mxu1 }
 0x5bf   : > { %v6703_v13 = vrot.slane %v6694_v17, %v6702_v47 }
 0x5c3   : > { %v6031_v58 = vpop.f32.mrb[156].mxu0 }
 0x5c4   : > { %v6100_v24 = vadd.f32 %v6099_v18, %v6031_v58  ;;  %v9009_v14 = vpop.f32.mrb[157].mxu0  ;;  %v6710_v18 = vsub.s32 3, %v6697_v16 }
 0x5c5   : > { %v6034_v9 = vpop.f32.mrb[158].mxu0 }
 0x5c6   : > { %v6103_v51 = vadd.f32 %v6102_v11, %v6034_v9  ;;  %v9010_v46 = vpop.f32.mrb[159].mxu0  ;;  %v6707_v11 = vrot.slane %v6694_v17, %v6706_v29  ;;  %v6711_v58 = vrot.slane %v6694_v17, %v6710_v18 }
 0x5d3   : > { %v6177_v12 = vpop.f32.mrb[160].mxu0  ;;  %v6257_v55 = vpop.f32.mrb[168].mxu1 }
 0x5d4   : > { %v6184_v10 = vadd.f32 %v6177_v12, %v6100_v24  ;;  %v9033_v61 = vpop.f32.mrb[161].mxu0  ;;  %v9045_v6 = vpop.f32.mrb[169].mxu1 }
 0x5d5   : > { %v6180_v21 = vpop.f32.mrb[162].mxu0  ;;  %v6260_v25 = vpop.f32.mrb[170].mxu1 }
 0x5d6   : > { %v6264_v5 = vadd.f32 %v6257_v55, %v6184_v10  ;;  %v6185_v56 = vadd.f32 %v6180_v21, %v6103_v51  ;;  %v9034_v19 = vpop.f32.mrb[163].mxu0  ;;  %v9046_v8 = vpop.f32.mrb[171].mxu1 }
 0x5d8   : > { %v6265_v2 = vadd.f32 %v6260_v25, %v6185_v56 }
 0x5e3   : > { %v6337_v57 = vpop.f32.mrb[164].mxu0  ;;  %v6417_v30 = vpop.f32.mrb[172].mxu1 }
 0x5e4   : > { %v6344_v20 = vadd.f32 %v6337_v57, %v6264_v5  ;;  %v9057_v31 = vpop.f32.mrb[165].mxu0  ;;  %v9069_v42 = vpop.f32.mrb[173].mxu1 }
 0x5e5   : > { %v6340_v32 = vpop.f32.mrb[166].mxu0  ;;  %v6420_v15 = vpop.f32.mrb[174].mxu1 }
 0x5e6   : > { %v6424_v7 = vadd.f32 %v6417_v30, %v6344_v20  ;;  %v6345_v39 = vadd.f32 %v6340_v32, %v6265_v2  ;;  %v9058_v26 = vpop.f32.mrb[167].mxu0  ;;  %v9070_v43 = vpop.f32.mrb[175].mxu1 }
 0x5e8   : > { %v6425_v38 = vadd.f32 %v6420_v15, %v6345_v39 }
 0x5f3   : > { %v6497_v52 = vpop.f32.mrb[168].mxu0  ;;  %v6577_v23 = vpop.f32.mrb[176].mxu1 }
 0x5f4   : > { %v6504_v49 = vadd.f32 %v6497_v52, %v6424_v7  ;;  %v9081_v28 = vpop.f32.mrb[169].mxu0  ;;  %v9093_v1 = vpop.f32.mrb[177].mxu1 }
 0x5f5   : > { %v6500_v33 = vpop.f32.mrb[170].mxu0  ;;  %v6580_v3 = vpop.f32.mrb[178].mxu1 }
 0x5f6   : > { %v6584_v60 = vadd.f32 %v6577_v23, %v6504_v49  ;;  %v6505_v41 = vadd.f32 %v6500_v33, %v6425_v38  ;;  %v9082_v45 = vpop.f32.mrb[171].mxu0  ;;  %v9094_v53 = vpop.f32.mrb[179].mxu1 }
 0x5f8   : > { %v6585_v59 = vadd.f32 %v6580_v3, %v6505_v41 }
 0x603   : > { %v6657_v22 = vpop.f32.mrb[172].mxu0 }
 0x604   : > { %v6664_v36 = vadd.f32 %v6657_v22, %v6584_v60  ;;  %v9105_v35 = vpop.f32.mrb[173].mxu0 }
 0x605   : > { %v6660_v54 = vpop.f32.mrb[174].mxu0 }
 0x606   : > { %v6673_v50 = vadd.f32 %v7597_v40, %v6664_v36  ;;  %v6665_v4 = vadd.f32 %v6660_v54, %v6585_v59  ;;  %v9106_v34 = vpop.f32.mrb[175].mxu0 }
 0x608   : > { %v6674_v62 = vadd.f32 %v7597_v40, %v6665_v4  ;;  %v6675_v48 = vmax.f32 %v6673_v50, 0.0 }
 0x60a   : > { %v6676_v63 = vmax.f32 %v6674_v62, 0.0 }
 0x60c   : > { %v6677_v27 = vpack.c.bf16 %v6676_v63, %v6675_v48 }
 0x60e   : > { %7614 = vmatmul.mubr.msk.bf16.vlgmr.msra.gmra.mrb[180].mxu1 %vm5993_vm2, %v6677_v27  ;;  %7615 = vmatmul.mubr.msk.bf16.vlgmr.msra.gmra.mrb[176].mxu0 %vm5993_vm2, %v6677_v27 }
 0x6e1   : > { %v6833_v24 = vpop.f32.mrb[180].mxu1  ;;  %v6876_v14 = vpop.f32.mrb[176].mxu0 }
 0x6e2   : > { %v6834_v9 = vadd.f32 %v6833_v24, %v6699_v44  ;;  %v6877_v51 = vadd.f32 %v6876_v14, %v6707_v11  ;;  %v6835_v46 = vpop.f32.mrb[181].mxu1  ;;  %v6878_v12 = vpop.f32.mrb[177].mxu0 }
 0x6e3   : > { %v6836_v55 = vadd.f32 %v6835_v46, %v6703_v13  ;;  %v6879_v10 = vadd.f32 %v6878_v12, %v6711_v58  ;;  %v6837_v61 = vpop.f32.mrb[182].mxu1  ;;  %v6880_v6 = vpop.f32.mrb[178].mxu0 }
 0x6e4   : > { %v6885_v21 = vmax.f32 %v6834_v9, 0.0  ;;  %v6887_v25 = vmax.f32 %v6877_v51, 0.0  ;;  %v6838_v5 = vadd.f32 %v6837_v61, %v6699_v44  ;;  %v6881_v56 = vadd.f32 %v6880_v6, %v6707_v11  ;;  %v6839_v19 = vpop.f32.mrb[183].mxu1  ;;  %v6882_v8 = vpop.f32.mrb[179].mxu0 }
 0x6e5   : > { %v6886_v2 = vmax.f32 %v6836_v55, 0.0  ;;  %v6888_v57 = vmax.f32 %v6879_v10, 0.0  ;;  %v6840_v30 = vadd.f32 %v6839_v19, %v6703_v13  ;;  %v6883_v20 = vadd.f32 %v6882_v8, %v6711_v58 }
 0x6e6   : > { %6893 = vst [vmem:[%s874_s24] sm:$0xff] %v6885_v21  ;;  %6895 = vst [vmem:[%s874_s24 + $0x10] sm:$0xff] %v6887_v25  ;;  %v6889_v31 = vmax.f32 %v6838_v5, 0.0  ;;  %v6891_v42 = vmax.f32 %v6881_v56, 0.0 }
 0x6e7   : > { %6894 = vst [vmem:[%s874_s24 + $0x8] sm:$0xff] %v6886_v2  ;;  %6896 = vst [vmem:[%s874_s24 + $0x18] sm:$0xff] %v6888_v57  ;;  %v6890_v32 = vmax.f32 %v6840_v30, 0.0  ;;  %v6892_v15 = vmax.f32 %v6883_v20, 0.0 }
 0x6e8   : > { %6897 = vst [vmem:[%s874_s24 + $0x20] sm:$0xff] %v6889_v31  ;;  %6899 = vst [vmem:[%s874_s24 + $0x30] sm:$0xff] %v6891_v42 }
 0x6e9   : > { %6898 = vst [vmem:[%s874_s24 + $0x28] sm:$0xff] %v6890_v32  ;;  %6900 = vst [vmem:[%s874_s24 + $0x38] sm:$0xff] %v6892_v15 }
 0x6ea   : > { %9485 = shalt.err (!%p9482_p5)
}
 0x6eb   : > { %s9486_s21 = scalar_lea.hbm %s11959_s27, 1024  ;;  %s9490_s26 = scalar_lea.hbm %s12014_s9, 2048 }
 0x6ec   : > { %p9487_p7 = scmp.ne.s32.totalorder %s11959_s27, %s9486_s21  ;;  %p9491_p12 = scmp.lt.u32.totalorder %s11959_s27, %s12014_s9 }
 0x6ed   : > { %p9492_p13 = scmp.lt.u32.totalorder %s9490_s26, %s9486_s21  ;;  %p9494_p1 = scmp.lt.u32.totalorder %s9486_s21, %s11959_s27 }
 0x6ee   : > { %p9488_p10 = pnand %p9487_p7, %p9630_p6 }
 0x6ef   : > { %p9493_p0 = por %p9492_p13, %p9491_p12 }
 0x6f0   : > { %p9489_p11 = pneg %p9488_p10 }
 0x6f1   : > { %p9495_p2 = por %p9494_p1, %p9493_p0 }
 0x6f3   : > { %p9496_p3 = pnand %p9495_p2, %p9489_p11 }
 0x6f5   : > { %9499 = shalt.err (!%p9496_p3)
}
 0x6f6   : > { %s9540_s16 = smov 512   ;;  %s9541_s17 = smov 32  }
 0x6f7   : > { %9111 = dma.vmem_to_hbm [thread:$0]  (%p9630_p6), %s11961_s25, 1024, %s11959_s27, %s6902_s29, %s9540_s16, %s9540_s16, %s9541_s17  }
 0x6f8 PF: > { %s6931_s22 = sand.u32 1, %s9522_s30   ;;  %p9114_p4 = pnand %p6986_p9, %p9634_p8 }
 0x6f9   : > { %s6932_s21 = scalar_lea.sflag [#allocation5], %s6931_s22 }
 0x6fa   : > { %9517 = dma.done.wait (!%p9114_p4), %s6932_s21, 1024  }
 0x6fb   : > { %9519 = vsyncadd (!%p9114_p4), %s6932_s21, 4294966272  ;;  %p19_p5 = scmp.ge.s32.totalorder %s9615_s15, 4   ;;  %s12017_s30 = smov %s9526_s10 }
 0x6fc   : > { %s12018_s10 = smov %s9530_s11  ;;  %s12019_s11 = smov %s9628_s18 }
 0x6fd   : > { %s12020_s12 = smov %s9615_s15  ;;  %21 = sbr.rel (!%p19_p5) target bundleno = 3 (0x3), region = 183 }
 0x704   :  { %6937 = vsyncpa [#allocation5], 1 }
 0x705   :  { %6939 = vsyncpa [#allocation5 + $0x1], 1 }

</bundles_post_ra>
